<compile_context>
chip_gen: v5e
topology: v5e:2x2
jax: 0.10.0
libtpu: 0.0.40
codegen_flags: <defaults>
</compile_context>

<pallas_src>
import jax
import jax.numpy as jnp
import numpy as np
from jax.experimental import pallas as pl
from jax.experimental.pallas import tpu as pltpu

# ----------------------------- model config (small, consistent with module) ---
VOCAB = 512          # vocab_size (original 30522)
HIDDEN = 32          # hidden_size (original 768)
NHEAD = 8            # nhead=8 (same as module)
HEAD_DIM = HIDDEN // NHEAD
DFF = 64             # dim_feedforward (original 2048)
MAX_SEQ = 16         # seq_len (original 100)
NUM_LAYERS = 2
LN_EPS = 1e-5

B = 2                # batch
T_TGT = 8            # target title length
T_MEM = 8            # encoder_features length (original 40)

# rows of the packed per-layer bias / LayerNorm slab, shape (NUM_LAYERS, 16, 64)
(V_SA_BQ, V_SA_BK, V_SA_BV, V_SA_BO,
 V_CA_BQ, V_CA_BK, V_CA_BV, V_CA_BO,
 V_FF_B2,
 V_LN1_W, V_LN1_B, V_LN2_W, V_LN2_B, V_LN3_W, V_LN3_B,
 V_FF_B1) = range(16)
VEC_ROWS = 16
VEC_W = DFF          # 64: widest vector (ff_b1); 32-wide vectors live in lanes [:HIDDEN]

# packed attention-weight slab order per layer (shape (NUM_LAYERS*8, H, H)):
#   [sa_wq, sa_wk, sa_wv, sa_wo, ca_wq, ca_wk, ca_wv, ca_wo]


# ----------------------------- fused Pallas kernel ----------------------------
def _make_fused_kernel(batch, t_tgt, t_mem):
    """Both decoder layers + vocab head in one kernel; all refs are whole-array VMEM blocks."""

    def kernel(x_ref, mem_ref, attn_w_ref, ff_w1_ref, ff_w2_ref, vec_ref,
               head_w_ref, head_b_ref, out_ref):
        x = x_ref[...]          # (B*T, H)
        mem = mem_ref[...]      # (B*M, H)

        def layer_norm(v, w, b):
            mu = jnp.mean(v, axis=-1, keepdims=True)
            var = jnp.mean((v - mu) ** 2, axis=-1, keepdims=True)
            return (v - mu) * jax.lax.rsqrt(var + LN_EPS) * w + b

        def mha(q_in, kv_in, wq, bq, wk, bk, wv, bv, wo, bo, rows_q, rows_kv):
            # fused whole-hidden projections (1/sqrt(hd) already folded into wq/bq)
            q = jnp.dot(q_in, wq, preferred_element_type=jnp.float32) + bq
            k = jnp.dot(kv_in, wk, preferred_element_type=jnp.float32) + bk
            v = jnp.dot(kv_in, wv, preferred_element_type=jnp.float32) + bv
            per_batch = []
            for bi in range(batch):          # static unroll (B=2)
                qb = q[bi * rows_q:(bi + 1) * rows_q]
                kb = k[bi * rows_kv:(bi + 1) * rows_kv]
                vb = v[bi * rows_kv:(bi + 1) * rows_kv]
                heads = []
                for h in range(NHEAD):       # static unroll (8 heads)
                    lo = h * HEAD_DIM
                    hi = lo + HEAD_DIM
                    s = jnp.dot(qb[:, lo:hi], kb[:, lo:hi].T,
                                preferred_element_type=jnp.float32)
                    s = s - jnp.max(s, axis=-1, keepdims=True)
                    p = jnp.exp(s)
                    p = p * pl.reciprocal(jnp.sum(p, axis=-1, keepdims=True),
                                          approx=True)
                    heads.append(jnp.dot(p, vb[:, lo:hi],
                                         preferred_element_type=jnp.float32))
                per_batch.append(jnp.concatenate(heads, axis=-1))    # (rows_q, H)
            o = jnp.concatenate(per_batch, axis=0)                   # (B*rows_q, H)
            return jnp.dot(o, wo, preferred_element_type=jnp.float32) + bo

        for layer in range(NUM_LAYERS):      # static unroll (2 layers)
            base = layer * 8
            vecs = vec_ref[layer]            # (16, 64) bias / LN slab for this layer

            sa = mha(x, x,
                     attn_w_ref[base + 0], vecs[V_SA_BQ:V_SA_BQ + 1, :HIDDEN],
                     attn_w_ref[base + 1], vecs[V_SA_BK:V_SA_BK + 1, :HIDDEN],
                     attn_w_ref[base + 2], vecs[V_SA_BV:V_SA_BV + 1, :HIDDEN],
                     attn_w_ref[base + 3], vecs[V_SA_BO:V_SA_BO + 1, :HIDDEN],
                     t_tgt, t_tgt)
            x = layer_norm(x + sa,
                           vecs[V_LN1_W:V_LN1_W + 1, :HIDDEN],
                           vecs[V_LN1_B:V_LN1_B + 1, :HIDDEN])

            ca = mha(x, mem,
                     attn_w_ref[base + 4], vecs[V_CA_BQ:V_CA_BQ + 1, :HIDDEN],
                     attn_w_ref[base + 5], vecs[V_CA_BK:V_CA_BK + 1, :HIDDEN],
                     attn_w_ref[base + 6], vecs[V_CA_BV:V_CA_BV + 1, :HIDDEN],
                     attn_w_ref[base + 7], vecs[V_CA_BO:V_CA_BO + 1, :HIDDEN],
                     t_tgt, t_mem)
            x = layer_norm(x + ca,
                           vecs[V_LN2_W:V_LN2_W + 1, :HIDDEN],
                           vecs[V_LN2_B:V_LN2_B + 1, :HIDDEN])

            h1 = jnp.maximum(
                jnp.dot(x, ff_w1_ref[layer], preferred_element_type=jnp.float32)
                + vecs[V_FF_B1:V_FF_B1 + 1, :DFF], 0.0)
            ff = (jnp.dot(h1, ff_w2_ref[layer], preferred_element_type=jnp.float32)
                  + vecs[V_FF_B2:V_FF_B2 + 1, :HIDDEN])
            x = layer_norm(x + ff,
                           vecs[V_LN3_W:V_LN3_W + 1, :HIDDEN],
                           vecs[V_LN3_B:V_LN3_B + 1, :HIDDEN])

        # vocab head: (B*T, H) @ (H, V) + b  — single lane-dense 512-wide output
        out_ref[...] = (jnp.dot(x, head_w_ref[...],
                                preferred_element_type=jnp.float32)
                        + head_b_ref[...])

    return kernel


# ----------------------------- wrapper ----------------------------------------
@jax.jit
def title_generator_forward(encoder_features, tgt_ids, packed):
    b, t = tgt_ids.shape
    m = encoder_features.shape[1]
    # glue: embedding gather + positional-encoding add (tiny; XLA fuses them)
    # TODO(synk): could be folded into the kernel via scalar-prefetched ids + in-VMEM table.
    x = (packed["embedding"][tgt_ids]
         + packed["pos_enc"][:, :t, :]).astype(jnp.float32)
    x2 = x.reshape(b * t, HIDDEN)
    mem2 = encoder_features.astype(jnp.float32).reshape(b * m, HIDDEN)

    vmem = pl.BlockSpec(memory_space=pltpu.MemorySpace.VMEM)
    logits = pl.pallas_call(
        _make_fused_kernel(b, t, m),
        out_shape=jax.ShapeDtypeStruct((b * t, VOCAB), jnp.float32),
        in_specs=[vmem] * 8,
        out_specs=vmem,
    )(x2, mem2, packed["attn_w"], packed["ff_w1"], packed["ff_w2"],
      packed["vecs"], packed["head_w"], packed["head_b"])
    return logits.reshape(b, t, VOCAB)


# ----------------------------- param packing ----------------------------------
def pack_params(params):
    """Concatenate / pad the per-layer params into a few VMEM-friendly slabs."""
    scale = 1.0 / float(HEAD_DIM) ** 0.5      # folded into Wq / bq
    attn_mats, ff1, ff2, vec_slabs = [], [], [], []
    for lp in params["layers"]:
        attn_mats += [lp["sa_wq"] * scale, lp["sa_wk"], lp["sa_wv"], lp["sa_wo"],
                      lp["ca_wq"] * scale, lp["ca_wk"], lp["ca_wv"], lp["ca_wo"]]
        ff1.append(lp["ff_w1"])
        ff2.append(lp["ff_w2"])
        rows32 = [lp["sa_bq"] * scale, lp["sa_bk"], lp["sa_bv"], lp["sa_bo"],
                  lp["ca_bq"] * scale, lp["ca_bk"], lp["ca_bv"], lp["ca_bo"],
                  lp["ff_b2"],
                  lp["ln1_w"], lp["ln1_b"], lp["ln2_w"], lp["ln2_b"],
                  lp["ln3_w"], lp["ln3_b"]]
        slab = np.zeros((VEC_ROWS, VEC_W), np.float32)
        for i, r in enumerate(rows32):
            slab[i, :HIDDEN] = np.asarray(r)
        slab[V_FF_B1, :DFF] = np.asarray(lp["ff_b1"])
        vec_slabs.append(slab)
    return {
        "attn_w": jnp.stack(attn_mats),                    # (L*8, H, H)
        "ff_w1": jnp.stack(ff1),                           # (L, H, DFF)
        "ff_w2": jnp.stack(ff2),                           # (L, DFF, H)
        "vecs": jnp.asarray(np.stack(vec_slabs)),          # (L, 16, 64)
        "head_w": params["head_w"],                        # (H, V)
        "head_b": params["head_b"].reshape(1, VOCAB),      # (1, V)
        "embedding": params["embedding"],
        "pos_enc": params["pos_enc"],
    }


# ----------------------------- pure-JAX reference (for validation) ------------
def _ref_mha(q_in, kv_in, wq, bq, wk, bk, wv, bv, wo, bo):
    t, s = q_in.shape[0], kv_in.shape[0]
    q = (q_in @ wq + bq).reshape(t, NHEAD, HEAD_DIM)
    k = (kv_in @ wk + bk).reshape(s, NHEAD, HEAD_DIM)
    v = (kv_in @ wv + bv).reshape(s, NHEAD, HEAD_DIM)
    sc = jnp.einsum("the,she->hts", q, k) / jnp.sqrt(float(HEAD_DIM))
    p = jax.nn.softmax(sc, axis=-1)
    o = jnp.einsum("hts,she->the", p, v).reshape(t, HIDDEN)
    return o @ wo + bo


def _ref_ln(x, w, b):
    mu = jnp.mean(x, axis=-1, keepdims=True)
    var = jnp.mean((x - mu) ** 2, axis=-1, keepdims=True)
    return (x - mu) * jax.lax.rsqrt(var + LN_EPS) * w + b


def _ref_layer(x, mem, lp):
    sa = _ref_mha(x, x, lp["sa_wq"], lp["sa_bq"], lp["sa_wk"], lp["sa_bk"],
                  lp["sa_wv"], lp["sa_bv"], lp["sa_wo"], lp["sa_bo"])
    x = _ref_ln(x + sa, lp["ln1_w"], lp["ln1_b"])
    ca = _ref_mha(x, mem, lp["ca_wq"], lp["ca_bq"], lp["ca_wk"], lp["ca_bk"],
                  lp["ca_wv"], lp["ca_bv"], lp["ca_wo"], lp["ca_bo"])
    x = _ref_ln(x + ca, lp["ln2_w"], lp["ln2_b"])
    h1 = jnp.maximum(x @ lp["ff_w1"] + lp["ff_b1"], 0.0)
    ff = h1 @ lp["ff_w2"] + lp["ff_b2"]
    return _ref_ln(x + ff, lp["ln3_w"], lp["ln3_b"])


def ref_forward(encoder_features, tgt_ids, params):
    t = tgt_ids.shape[1]
    x = params["embedding"][tgt_ids] + params["pos_enc"][:, :t, :]
    for lp in params["layers"]:
        x = jax.vmap(lambda xb, mb, lp=lp: _ref_layer(xb, mb, lp))(x, encoder_features)
    return x @ params["head_w"] + params["head_b"]


# ----------------------------- deterministic param init -----------------------
def make_params(key):
    keys = iter(jax.random.split(key, 128))

    def nrm(shape, scale=0.02):
        return scale * jax.random.normal(next(keys), shape, jnp.float32)

    layers = []
    for _ in range(NUM_LAYERS):
        lp = {}
        for pre in ("sa", "ca"):
            lp[f"{pre}_wq"] = nrm((HIDDEN, HIDDEN)); lp[f"{pre}_bq"] = nrm((HIDDEN,))
            lp[f"{pre}_wk"] = nrm((HIDDEN, HIDDEN)); lp[f"{pre}_bk"] = nrm((HIDDEN,))
            lp[f"{pre}_wv"] = nrm((HIDDEN, HIDDEN)); lp[f"{pre}_bv"] = nrm((HIDDEN,))
            lp[f"{pre}_wo"] = nrm((HIDDEN, HIDDEN)); lp[f"{pre}_bo"] = nrm((HIDDEN,))
        lp["ff_w1"] = nrm((HIDDEN, DFF)); lp["ff_b1"] = nrm((DFF,))
        lp["ff_w2"] = nrm((DFF, HIDDEN)); lp["ff_b2"] = nrm((HIDDEN,))
        for i in (1, 2, 3):
            lp[f"ln{i}_w"] = 1.0 + nrm((HIDDEN,))
            lp[f"ln{i}_b"] = nrm((HIDDEN,))
        layers.append(lp)

    return {
        "embedding": jax.random.normal(next(keys), (VOCAB, HIDDEN), jnp.float32),
        "pos_enc": jax.random.normal(next(keys), (1, MAX_SEQ, HIDDEN), jnp.float32),
        "layers": layers,
        "head_w": nrm((HIDDEN, VOCAB)),
        "head_b": nrm((VOCAB,)),
    }


# ----------------------------- main -------------------------------------------
if __name__ == "__main__":
    root = jax.random.PRNGKey(0)
    k_params, k_mem, k_ids = jax.random.split(root, 3)

    params = make_params(k_params)
    packed = pack_params(params)
    encoder_features = jax.random.normal(k_mem, (B, T_MEM, HIDDEN), jnp.float32)
    tgt_ids = jax.random.randint(k_ids, (B, T_TGT), 0, VOCAB, dtype=jnp.int32)

    logits = title_generator_forward(encoder_features, tgt_ids, packed)
    logits = jax.block_until_ready(logits)
    assert logits.shape == (B, T_TGT, VOCAB), logits.shape

    ref = jax.block_until_ready(ref_forward(encoder_features, tgt_ids, params))
    np.testing.assert_allclose(np.asarray(logits), np.asarray(ref), rtol=2e-3, atol=2e-3)

    print("KERNEL_OK")
</pallas_src>

<mosaic_0001>
module attributes {stable_mosaic.version = 11 : i64} {
  func.func @kernel(%arg0: memref<16x32xf32, #tpu.memory_space<vmem>>, %arg1: memref<16x32xf32, #tpu.memory_space<vmem>>, %arg2: memref<16x32x32xf32, #tpu.memory_space<vmem>>, %arg3: memref<2x32x64xf32, #tpu.memory_space<vmem>>, %arg4: memref<2x64x32xf32, #tpu.memory_space<vmem>>, %arg5: memref<2x16x64xf32, #tpu.memory_space<vmem>>, %arg6: memref<32x512xf32, #tpu.memory_space<vmem>>, %arg7: memref<1x512xf32, #tpu.memory_space<vmem>>, %arg8: memref<16x512xf32, #tpu.memory_space<vmem>>) attributes {dimension_semantics = [], scalar_prefetch = 0 : i64, scratch_operands = 0 : i64, tpu.core_type = #tpu.core_type<tc>} {
    %c0 = arith.constant 0 : index
    %c0_0 = arith.constant 0 : index
    %0 = vector.load %arg0[%c0, %c0_0] : memref<16x32xf32, #tpu.memory_space<vmem>>, vector<16x32xf32>
    %c0_1 = arith.constant 0 : index
    %c0_2 = arith.constant 0 : index
    %1 = vector.load %arg1[%c0_1, %c0_2] : memref<16x32xf32, #tpu.memory_space<vmem>>, vector<16x32xf32>
    %c0_3 = arith.constant 0 : index
    %c0_4 = arith.constant 0 : index
    %c0_5 = arith.constant 0 : index
    %2 = vector.load %arg5[%c0_3, %c0_4, %c0_5] : memref<2x16x64xf32, #tpu.memory_space<vmem>>, vector<1x16x64xf32>
    %3 = vector.shape_cast %2 : vector<1x16x64xf32> to vector<16x64xf32>
    %c0_6 = arith.constant 0 : index
    %c0_7 = arith.constant 0 : index
    %c0_8 = arith.constant 0 : index
    %4 = vector.load %arg2[%c0_6, %c0_7, %c0_8] : memref<16x32x32xf32, #tpu.memory_space<vmem>>, vector<1x32x32xf32>
    %5 = vector.shape_cast %4 : vector<1x32x32xf32> to vector<32x32xf32>
    %6 = vector.extract_strided_slice %3 {offsets = [0, 0], sizes = [1, 32], strides = [1, 1]} : vector<16x64xf32> to vector<1x32xf32>
    %c1 = arith.constant 1 : index
    %c0_9 = arith.constant 0 : index
    %c0_10 = arith.constant 0 : index
    %7 = vector.load %arg2[%c1, %c0_9, %c0_10] : memref<16x32x32xf32, #tpu.memory_space<vmem>>, vector<1x32x32xf32>
    %8 = vector.shape_cast %7 : vector<1x32x32xf32> to vector<32x32xf32>
    %9 = vector.extract_strided_slice %3 {offsets = [1, 0], sizes = [1, 32], strides = [1, 1]} : vector<16x64xf32> to vector<1x32xf32>
    %c2 = arith.constant 2 : index
    %c0_11 = arith.constant 0 : index
    %c0_12 = arith.constant 0 : index
    %10 = vector.load %arg2[%c2, %c0_11, %c0_12] : memref<16x32x32xf32, #tpu.memory_space<vmem>>, vector<1x32x32xf32>
    %11 = vector.shape_cast %10 : vector<1x32x32xf32> to vector<32x32xf32>
    %12 = vector.extract_strided_slice %3 {offsets = [2, 0], sizes = [1, 32], strides = [1, 1]} : vector<16x64xf32> to vector<1x32xf32>
    %c3 = arith.constant 3 : index
    %c0_13 = arith.constant 0 : index
    %c0_14 = arith.constant 0 : index
    %13 = vector.load %arg2[%c3, %c0_13, %c0_14] : memref<16x32x32xf32, #tpu.memory_space<vmem>>, vector<1x32x32xf32>
    %14 = vector.shape_cast %13 : vector<1x32x32xf32> to vector<32x32xf32>
    %15 = vector.extract_strided_slice %3 {offsets = [3, 0], sizes = [1, 32], strides = [1, 1]} : vector<16x64xf32> to vector<1x32xf32>
    %cst = arith.constant dense<0.000000e+00> : vector<16x32xf32>
    %16 = tpu.matmul %0, %5, %cst {dimension_numbers = #tpu.dot_dimension_numbers<[1], [0], [0], [1], [0, 0, 1, 1], [], []>} : vector<16x32xf32>, vector<32x32xf32>, vector<16x32xf32> -> vector<16x32xf32>
    %17 = vector.broadcast %6 : vector<1x32xf32> to vector<16x32xf32>
    %18 = arith.addf %16, %17 : vector<16x32xf32>
    %cst_15 = arith.constant dense<0.000000e+00> : vector<16x32xf32>
    %19 = tpu.matmul %0, %8, %cst_15 {dimension_numbers = #tpu.dot_dimension_numbers<[1], [0], [0], [1], [0, 0, 1, 1], [], []>} : vector<16x32xf32>, vector<32x32xf32>, vector<16x32xf32> -> vector<16x32xf32>
    %20 = vector.broadcast %9 : vector<1x32xf32> to vector<16x32xf32>
    %21 = arith.addf %19, %20 : vector<16x32xf32>
    %cst_16 = arith.constant dense<0.000000e+00> : vector<16x32xf32>
    %22 = tpu.matmul %0, %11, %cst_16 {dimension_numbers = #tpu.dot_dimension_numbers<[1], [0], [0], [1], [0, 0, 1, 1], [], []>} : vector<16x32xf32>, vector<32x32xf32>, vector<16x32xf32> -> vector<16x32xf32>
    %23 = vector.broadcast %12 : vector<1x32xf32> to vector<16x32xf32>
    %24 = arith.addf %22, %23 : vector<16x32xf32>
    %25 = vector.extract_strided_slice %18 {offsets = [0, 0], sizes = [8, 32], strides = [1, 1]} : vector<16x32xf32> to vector<8x32xf32>
    %26 = vector.extract_strided_slice %21 {offsets = [0, 0], sizes = [8, 32], strides = [1, 1]} : vector<16x32xf32> to vector<8x32xf32>
    %27 = vector.extract_strided_slice %24 {offsets = [0, 0], sizes = [8, 32], strides = [1, 1]} : vector<16x32xf32> to vector<8x32xf32>
    %28 = vector.extract_strided_slice %25 {offsets = [0, 0], sizes = [8, 4], strides = [1, 1]} : vector<8x32xf32> to vector<8x4xf32>
    %29 = vector.extract_strided_slice %26 {offsets = [0, 0], sizes = [8, 4], strides = [1, 1]} : vector<8x32xf32> to vector<8x4xf32>
    %30 = tpu.transpose %29, [1, 0] : vector<8x4xf32> -> vector<4x8xf32>
    %cst_17 = arith.constant dense<0.000000e+00> : vector<8x8xf32>
    %31 = tpu.matmul %28, %30, %cst_17 {dimension_numbers = #tpu.dot_dimension_numbers<[1], [0], [0], [1], [0, 0, 1, 1], [], []>} : vector<8x4xf32>, vector<4x8xf32>, vector<8x8xf32> -> vector<8x8xf32>
    %cst_18 = arith.constant dense<0xFF800000> : vector<8xf32>
    %32 = vector.multi_reduction <maximumf>, %31, %cst_18 [1] : vector<8x8xf32> to vector<8xf32>
    %33 = vector.shape_cast %32 : vector<8xf32> to vector<8x1xf32>
    %34 = vector.broadcast %33 : vector<8x1xf32> to vector<8x8xf32>
    %35 = arith.subf %31, %34 : vector<8x8xf32>
    %36 = math.exp %35 : vector<8x8xf32>
    %cst_19 = arith.constant dense<0.000000e+00> : vector<8xf32>
    %37 = vector.multi_reduction <add>, %36, %cst_19 [1] : vector<8x8xf32> to vector<8xf32>
    %38 = vector.shape_cast %37 : vector<8xf32> to vector<8x1xf32>
    %39 = tpu.reciprocal %38 {approx = true} : vector<8x1xf32> -> vector<8x1xf32>
    %40 = vector.broadcast %39 : vector<8x1xf32> to vector<8x8xf32>
    %41 = arith.mulf %36, %40 : vector<8x8xf32>
    %42 = vector.extract_strided_slice %27 {offsets = [0, 0], sizes = [8, 4], strides = [1, 1]} : vector<8x32xf32> to vector<8x4xf32>
    %cst_20 = arith.constant dense<0.000000e+00> : vector<8x4xf32>
    %43 = tpu.matmul %41, %42, %cst_20 {dimension_numbers = #tpu.dot_dimension_numbers<[1], [0], [0], [1], [0, 0, 1, 1], [], []>} : vector<8x8xf32>, vector<8x4xf32>, vector<8x4xf32> -> vector<8x4xf32>
    %44 = vector.extract_strided_slice %25 {offsets = [0, 4], sizes = [8, 4], strides = [1, 1]} : vector<8x32xf32> to vector<8x4xf32>
    %45 = vector.extract_strided_slice %26 {offsets = [0, 4], sizes = [8, 4], strides = [1, 1]} : vector<8x32xf32> to vector<8x4xf32>
    %46 = tpu.transpose %45, [1, 0] : vector<8x4xf32> -> vector<4x8xf32>
    %cst_21 = arith.constant dense<0.000000e+00> : vector<8x8xf32>
    %47 = tpu.matmul %44, %46, %cst_21 {dimension_numbers = #tpu.dot_dimension_numbers<[1], [0], [0], [1], [0, 0, 1, 1], [], []>} : vector<8x4xf32>, vector<4x8xf32>, vector<8x8xf32> -> vector<8x8xf32>
    %cst_22 = arith.constant dense<0xFF800000> : vector<8xf32>
    %48 = vector.multi_reduction <maximumf>, %47, %cst_22 [1] : vector<8x8xf32> to vector<8xf32>
    %49 = vector.shape_cast %48 : vector<8xf32> to vector<8x1xf32>
    %50 = vector.broadcast %49 : vector<8x1xf32> to vector<8x8xf32>
    %51 = arith.subf %47, %50 : vector<8x8xf32>
    %52 = math.exp %51 : vector<8x8xf32>
    %cst_23 = arith.constant dense<0.000000e+00> : vector<8xf32>
    %53 = vector.multi_reduction <add>, %52, %cst_23 [1] : vector<8x8xf32> to vector<8xf32>
    %54 = vector.shape_cast %53 : vector<8xf32> to vector<8x1xf32>
    %55 = tpu.reciprocal %54 {approx = true} : vector<8x1xf32> -> vector<8x1xf32>
    %56 = vector.broadcast %55 : vector<8x1xf32> to vector<8x8xf32>
    %57 = arith.mulf %52, %56 : vector<8x8xf32>
    %58 = vector.extract_strided_slice %27 {offsets = [0, 4], sizes = [8, 4], strides = [1, 1]} : vector<8x32xf32> to vector<8x4xf32>
    %cst_24 = arith.constant dense<0.000000e+00> : vector<8x4xf32>
    %59 = tpu.matmul %57, %58, %cst_24 {dimension_numbers = #tpu.dot_dimension_numbers<[1], [0], [0], [1], [0, 0, 1, 1], [], []>} : vector<8x8xf32>, vector<8x4xf32>, vector<8x4xf32> -> vector<8x4xf32>
    %60 = vector.extract_strided_slice %25 {offsets = [0, 8], sizes = [8, 4], strides = [1, 1]} : vector<8x32xf32> to vector<8x4xf32>
    %61 = vector.extract_strided_slice %26 {offsets = [0, 8], sizes = [8, 4], strides = [1, 1]} : vector<8x32xf32> to vector<8x4xf32>
    %62 = tpu.transpose %61, [1, 0] : vector<8x4xf32> -> vector<4x8xf32>
    %cst_25 = arith.constant dense<0.000000e+00> : vector<8x8xf32>
    %63 = tpu.matmul %60, %62, %cst_25 {dimension_numbers = #tpu.dot_dimension_numbers<[1], [0], [0], [1], [0, 0, 1, 1], [], []>} : vector<8x4xf32>, vector<4x8xf32>, vector<8x8xf32> -> vector<8x8xf32>
    %cst_26 = arith.constant dense<0xFF800000> : vector<8xf32>
    %64 = vector.multi_reduction <maximumf>, %63, %cst_26 [1] : vector<8x8xf32> to vector<8xf32>
    %65 = vector.shape_cast %64 : vector<8xf32> to vector<8x1xf32>
    %66 = vector.broadcast %65 : vector<8x1xf32> to vector<8x8xf32>
    %67 = arith.subf %63, %66 : vector<8x8xf32>
    %68 = math.exp %67 : vector<8x8xf32>
    %cst_27 = arith.constant dense<0.000000e+00> : vector<8xf32>
    %69 = vector.multi_reduction <add>, %68, %cst_27 [1] : vector<8x8xf32> to vector<8xf32>
    %70 = vector.shape_cast %69 : vector<8xf32> to vector<8x1xf32>
    %71 = tpu.reciprocal %70 {approx = true} : vector<8x1xf32> -> vector<8x1xf32>
    %72 = vector.broadcast %71 : vector<8x1xf32> to vector<8x8xf32>
    %73 = arith.mulf %68, %72 : vector<8x8xf32>
    %74 = vector.extract_strided_slice %27 {offsets = [0, 8], sizes = [8, 4], strides = [1, 1]} : vector<8x32xf32> to vector<8x4xf32>
    %cst_28 = arith.constant dense<0.000000e+00> : vector<8x4xf32>
    %75 = tpu.matmul %73, %74, %cst_28 {dimension_numbers = #tpu.dot_dimension_numbers<[1], [0], [0], [1], [0, 0, 1, 1], [], []>} : vector<8x8xf32>, vector<8x4xf32>, vector<8x4xf32> -> vector<8x4xf32>
    %76 = vector.extract_strided_slice %25 {offsets = [0, 12], sizes = [8, 4], strides = [1, 1]} : vector<8x32xf32> to vector<8x4xf32>
    %77 = vector.extract_strided_slice %26 {offsets = [0, 12], sizes = [8, 4], strides = [1, 1]} : vector<8x32xf32> to vector<8x4xf32>
    %78 = tpu.transpose %77, [1, 0] : vector<8x4xf32> -> vector<4x8xf32>
    %cst_29 = arith.constant dense<0.000000e+00> : vector<8x8xf32>
    %79 = tpu.matmul %76, %78, %cst_29 {dimension_numbers = #tpu.dot_dimension_numbers<[1], [0], [0], [1], [0, 0, 1, 1], [], []>} : vector<8x4xf32>, vector<4x8xf32>, vector<8x8xf32> -> vector<8x8xf32>
    %cst_30 = arith.constant dense<0xFF800000> : vector<8xf32>
    %80 = vector.multi_reduction <maximumf>, %79, %cst_30 [1] : vector<8x8xf32> to vector<8xf32>
    %81 = vector.shape_cast %80 : vector<8xf32> to vector<8x1xf32>
    %82 = vector.broadcast %81 : vector<8x1xf32> to vector<8x8xf32>
    %83 = arith.subf %79, %82 : vector<8x8xf32>
    %84 = math.exp %83 : vector<8x8xf32>
    %cst_31 = arith.constant dense<0.000000e+00> : vector<8xf32>
    %85 = vector.multi_reduction <add>, %84, %cst_31 [1] : vector<8x8xf32> to vector<8xf32>
    %86 = vector.shape_cast %85 : vector<8xf32> to vector<8x1xf32>
    %87 = tpu.reciprocal %86 {approx = true} : vector<8x1xf32> -> vector<8x1xf32>
    %88 = vector.broadcast %87 : vector<8x1xf32> to vector<8x8xf32>
    %89 = arith.mulf %84, %88 : vector<8x8xf32>
    %90 = vector.extract_strided_slice %27 {offsets = [0, 12], sizes = [8, 4], strides = [1, 1]} : vector<8x32xf32> to vector<8x4xf32>
    %cst_32 = arith.constant dense<0.000000e+00> : vector<8x4xf32>
    %91 = tpu.matmul %89, %90, %cst_32 {dimension_numbers = #tpu.dot_dimension_numbers<[1], [0], [0], [1], [0, 0, 1, 1], [], []>} : vector<8x8xf32>, vector<8x4xf32>, vector<8x4xf32> -> vector<8x4xf32>
    %92 = vector.extract_strided_slice %25 {offsets = [0, 16], sizes = [8, 4], strides = [1, 1]} : vector<8x32xf32> to vector<8x4xf32>
    %93 = vector.extract_strided_slice %26 {offsets = [0, 16], sizes = [8, 4], strides = [1, 1]} : vector<8x32xf32> to vector<8x4xf32>
    %94 = tpu.transpose %93, [1, 0] : vector<8x4xf32> -> vector<4x8xf32>
    %cst_33 = arith.constant dense<0.000000e+00> : vector<8x8xf32>
    %95 = tpu.matmul %92, %94, %cst_33 {dimension_numbers = #tpu.dot_dimension_numbers<[1], [0], [0], [1], [0, 0, 1, 1], [], []>} : vector<8x4xf32>, vector<4x8xf32>, vector<8x8xf32> -> vector<8x8xf32>
    %cst_34 = arith.constant dense<0xFF800000> : vector<8xf32>
    %96 = vector.multi_reduction <maximumf>, %95, %cst_34 [1] : vector<8x8xf32> to vector<8xf32>
    %97 = vector.shape_cast %96 : vector<8xf32> to vector<8x1xf32>
    %98 = vector.broadcast %97 : vector<8x1xf32> to vector<8x8xf32>
    %99 = arith.subf %95, %98 : vector<8x8xf32>
    %100 = math.exp %99 : vector<8x8xf32>
    %cst_35 = arith.constant dense<0.000000e+00> : vector<8xf32>
    %101 = vector.multi_reduction <add>, %100, %cst_35 [1] : vector<8x8xf32> to vector<8xf32>
    %102 = vector.shape_cast %101 : vector<8xf32> to vector<8x1xf32>
    %103 = tpu.reciprocal %102 {approx = true} : vector<8x1xf32> -> vector<8x1xf32>
    %104 = vector.broadcast %103 : vector<8x1xf32> to vector<8x8xf32>
    %105 = arith.mulf %100, %104 : vector<8x8xf32>
    %106 = vector.extract_strided_slice %27 {offsets = [0, 16], sizes = [8, 4], strides = [1, 1]} : vector<8x32xf32> to vector<8x4xf32>
    %cst_36 = arith.constant dense<0.000000e+00> : vector<8x4xf32>
    %107 = tpu.matmul %105, %106, %cst_36 {dimension_numbers = #tpu.dot_dimension_numbers<[1], [0], [0], [1], [0, 0, 1, 1], [], []>} : vector<8x8xf32>, vector<8x4xf32>, vector<8x4xf32> -> vector<8x4xf32>
    %108 = vector.extract_strided_slice %25 {offsets = [0, 20], sizes = [8, 4], strides = [1, 1]} : vector<8x32xf32> to vector<8x4xf32>
    %109 = vector.extract_strided_slice %26 {offsets = [0, 20], sizes = [8, 4], strides = [1, 1]} : vector<8x32xf32> to vector<8x4xf32>
    %110 = tpu.transpose %109, [1, 0] : vector<8x4xf32> -> vector<4x8xf32>
    %cst_37 = arith.constant dense<0.000000e+00> : vector<8x8xf32>
    %111 = tpu.matmul %108, %110, %cst_37 {dimension_numbers = #tpu.dot_dimension_numbers<[1], [0], [0], [1], [0, 0, 1, 1], [], []>} : vector<8x4xf32>, vector<4x8xf32>, vector<8x8xf32> -> vector<8x8xf32>
    %cst_38 = arith.constant dense<0xFF800000> : vector<8xf32>
    %112 = vector.multi_reduction <maximumf>, %111, %cst_38 [1] : vector<8x8xf32> to vector<8xf32>
    %113 = vector.shape_cast %112 : vector<8xf32> to vector<8x1xf32>
    %114 = vector.broadcast %113 : vector<8x1xf32> to vector<8x8xf32>
    %115 = arith.subf %111, %114 : vector<8x8xf32>
    %116 = math.exp %115 : vector<8x8xf32>
    %cst_39 = arith.constant dense<0.000000e+00> : vector<8xf32>
    %117 = vector.multi_reduction <add>, %116, %cst_39 [1] : vector<8x8xf32> to vector<8xf32>
    %118 = vector.shape_cast %117 : vector<8xf32> to vector<8x1xf32>
    %119 = tpu.reciprocal %118 {approx = true} : vector<8x1xf32> -> vector<8x1xf32>
    %120 = vector.broadcast %119 : vector<8x1xf32> to vector<8x8xf32>
    %121 = arith.mulf %116, %120 : vector<8x8xf32>
    %122 = vector.extract_strided_slice %27 {offsets = [0, 20], sizes = [8, 4], strides = [1, 1]} : vector<8x32xf32> to vector<8x4xf32>
    %cst_40 = arith.constant dense<0.000000e+00> : vector<8x4xf32>
    %123 = tpu.matmul %121, %122, %cst_40 {dimension_numbers = #tpu.dot_dimension_numbers<[1], [0], [0], [1], [0, 0, 1, 1], [], []>} : vector<8x8xf32>, vector<8x4xf32>, vector<8x4xf32> -> vector<8x4xf32>
    %124 = vector.extract_strided_slice %25 {offsets = [0, 24], sizes = [8, 4], strides = [1, 1]} : vector<8x32xf32> to vector<8x4xf32>
    %125 = vector.extract_strided_slice %26 {offsets = [0, 24], sizes = [8, 4], strides = [1, 1]} : vector<8x32xf32> to vector<8x4xf32>
    %126 = tpu.transpose %125, [1, 0] : vector<8x4xf32> -> vector<4x8xf32>
    %cst_41 = arith.constant dense<0.000000e+00> : vector<8x8xf32>
    %127 = tpu.matmul %124, %126, %cst_41 {dimension_numbers = #tpu.dot_dimension_numbers<[1], [0], [0], [1], [0, 0, 1, 1], [], []>} : vector<8x4xf32>, vector<4x8xf32>, vector<8x8xf32> -> vector<8x8xf32>
    %cst_42 = arith.constant dense<0xFF800000> : vector<8xf32>
    %128 = vector.multi_reduction <maximumf>, %127, %cst_42 [1] : vector<8x8xf32> to vector<8xf32>
    %129 = vector.shape_cast %128 : vector<8xf32> to vector<8x1xf32>
    %130 = vector.broadcast %129 : vector<8x1xf32> to vector<8x8xf32>
    %131 = arith.subf %127, %130 : vector<8x8xf32>
    %132 = math.exp %131 : vector<8x8xf32>
    %cst_43 = arith.constant dense<0.000000e+00> : vector<8xf32>
    %133 = vector.multi_reduction <add>, %132, %cst_43 [1] : vector<8x8xf32> to vector<8xf32>
    %134 = vector.shape_cast %133 : vector<8xf32> to vector<8x1xf32>
    %135 = tpu.reciprocal %134 {approx = true} : vector<8x1xf32> -> vector<8x1xf32>
    %136 = vector.broadcast %135 : vector<8x1xf32> to vector<8x8xf32>
    %137 = arith.mulf %132, %136 : vector<8x8xf32>
    %138 = vector.extract_strided_slice %27 {offsets = [0, 24], sizes = [8, 4], strides = [1, 1]} : vector<8x32xf32> to vector<8x4xf32>
    %cst_44 = arith.constant dense<0.000000e+00> : vector<8x4xf32>
    %139 = tpu.matmul %137, %138, %cst_44 {dimension_numbers = #tpu.dot_dimension_numbers<[1], [0], [0], [1], [0, 0, 1, 1], [], []>} : vector<8x8xf32>, vector<8x4xf32>, vector<8x4xf32> -> vector<8x4xf32>
    %140 = vector.extract_strided_slice %25 {offsets = [0, 28], sizes = [8, 4], strides = [1, 1]} : vector<8x32xf32> to vector<8x4xf32>
    %141 = vector.extract_strided_slice %26 {offsets = [0, 28], sizes = [8, 4], strides = [1, 1]} : vector<8x32xf32> to vector<8x4xf32>
    %142 = tpu.transpose %141, [1, 0] : vector<8x4xf32> -> vector<4x8xf32>
    %cst_45 = arith.constant dense<0.000000e+00> : vector<8x8xf32>
    %143 = tpu.matmul %140, %142, %cst_45 {dimension_numbers = #tpu.dot_dimension_numbers<[1], [0], [0], [1], [0, 0, 1, 1], [], []>} : vector<8x4xf32>, vector<4x8xf32>, vector<8x8xf32> -> vector<8x8xf32>
    %cst_46 = arith.constant dense<0xFF800000> : vector<8xf32>
    %144 = vector.multi_reduction <maximumf>, %143, %cst_46 [1] : vector<8x8xf32> to vector<8xf32>
    %145 = vector.shape_cast %144 : vector<8xf32> to vector<8x1xf32>
    %146 = vector.broadcast %145 : vector<8x1xf32> to vector<8x8xf32>
    %147 = arith.subf %143, %146 : vector<8x8xf32>
    %148 = math.exp %147 : vector<8x8xf32>
    %cst_47 = arith.constant dense<0.000000e+00> : vector<8xf32>
    %149 = vector.multi_reduction <add>, %148, %cst_47 [1] : vector<8x8xf32> to vector<8xf32>
    %150 = vector.shape_cast %149 : vector<8xf32> to vector<8x1xf32>
    %151 = tpu.reciprocal %150 {approx = true} : vector<8x1xf32> -> vector<8x1xf32>
    %152 = vector.broadcast %151 : vector<8x1xf32> to vector<8x8xf32>
    %153 = arith.mulf %148, %152 : vector<8x8xf32>
    %154 = vector.extract_strided_slice %27 {offsets = [0, 28], sizes = [8, 4], strides = [1, 1]} : vector<8x32xf32> to vector<8x4xf32>
    %cst_48 = arith.constant dense<0.000000e+00> : vector<8x4xf32>
    %155 = tpu.matmul %153, %154, %cst_48 {dimension_numbers = #tpu.dot_dimension_numbers<[1], [0], [0], [1], [0, 0, 1, 1], [], []>} : vector<8x8xf32>, vector<8x4xf32>, vector<8x4xf32> -> vector<8x4xf32>
    %156 = tpu.concatenate %43, %59, %75, %91, %107, %123, %139, %155 in 1 : vector<8x4xf32>, vector<8x4xf32>, vector<8x4xf32>, vector<8x4xf32>, vector<8x4xf32>, vector<8x4xf32>, vector<8x4xf32>, vector<8x4xf32> -> vector<8x32xf32>
    %157 = vector.extract_strided_slice %18 {offsets = [8, 0], sizes = [8, 32], strides = [1, 1]} : vector<16x32xf32> to vector<8x32xf32>
    %158 = vector.extract_strided_slice %21 {offsets = [8, 0], sizes = [8, 32], strides = [1, 1]} : vector<16x32xf32> to vector<8x32xf32>
    %159 = vector.extract_strided_slice %24 {offsets = [8, 0], sizes = [8, 32], strides = [1, 1]} : vector<16x32xf32> to vector<8x32xf32>
    %160 = vector.extract_strided_slice %157 {offsets = [0, 0], sizes = [8, 4], strides = [1, 1]} : vector<8x32xf32> to vector<8x4xf32>
    %161 = vector.extract_strided_slice %158 {offsets = [0, 0], sizes = [8, 4], strides = [1, 1]} : vector<8x32xf32> to vector<8x4xf32>
    %162 = tpu.transpose %161, [1, 0] : vector<8x4xf32> -> vector<4x8xf32>
    %cst_49 = arith.constant dense<0.000000e+00> : vector<8x8xf32>
    %163 = tpu.matmul %160, %162, %cst_49 {dimension_numbers = #tpu.dot_dimension_numbers<[1], [0], [0], [1], [0, 0, 1, 1], [], []>} : vector<8x4xf32>, vector<4x8xf32>, vector<8x8xf32> -> vector<8x8xf32>
    %cst_50 = arith.constant dense<0xFF800000> : vector<8xf32>
    %164 = vector.multi_reduction <maximumf>, %163, %cst_50 [1] : vector<8x8xf32> to vector<8xf32>
    %165 = vector.shape_cast %164 : vector<8xf32> to vector<8x1xf32>
    %166 = vector.broadcast %165 : vector<8x1xf32> to vector<8x8xf32>
    %167 = arith.subf %163, %166 : vector<8x8xf32>
    %168 = math.exp %167 : vector<8x8xf32>
    %cst_51 = arith.constant dense<0.000000e+00> : vector<8xf32>
    %169 = vector.multi_reduction <add>, %168, %cst_51 [1] : vector<8x8xf32> to vector<8xf32>
    %170 = vector.shape_cast %169 : vector<8xf32> to vector<8x1xf32>
    %171 = tpu.reciprocal %170 {approx = true} : vector<8x1xf32> -> vector<8x1xf32>
    %172 = vector.broadcast %171 : vector<8x1xf32> to vector<8x8xf32>
    %173 = arith.mulf %168, %172 : vector<8x8xf32>
    %174 = vector.extract_strided_slice %159 {offsets = [0, 0], sizes = [8, 4], strides = [1, 1]} : vector<8x32xf32> to vector<8x4xf32>
    %cst_52 = arith.constant dense<0.000000e+00> : vector<8x4xf32>
    %175 = tpu.matmul %173, %174, %cst_52 {dimension_numbers = #tpu.dot_dimension_numbers<[1], [0], [0], [1], [0, 0, 1, 1], [], []>} : vector<8x8xf32>, vector<8x4xf32>, vector<8x4xf32> -> vector<8x4xf32>
    %176 = vector.extract_strided_slice %157 {offsets = [0, 4], sizes = [8, 4], strides = [1, 1]} : vector<8x32xf32> to vector<8x4xf32>
    %177 = vector.extract_strided_slice %158 {offsets = [0, 4], sizes = [8, 4], strides = [1, 1]} : vector<8x32xf32> to vector<8x4xf32>
    %178 = tpu.transpose %177, [1, 0] : vector<8x4xf32> -> vector<4x8xf32>
    %cst_53 = arith.constant dense<0.000000e+00> : vector<8x8xf32>
    %179 = tpu.matmul %176, %178, %cst_53 {dimension_numbers = #tpu.dot_dimension_numbers<[1], [0], [0], [1], [0, 0, 1, 1], [], []>} : vector<8x4xf32>, vector<4x8xf32>, vector<8x8xf32> -> vector<8x8xf32>
    %cst_54 = arith.constant dense<0xFF800000> : vector<8xf32>
    %180 = vector.multi_reduction <maximumf>, %179, %cst_54 [1] : vector<8x8xf32> to vector<8xf32>
    %181 = vector.shape_cast %180 : vector<8xf32> to vector<8x1xf32>
    %182 = vector.broadcast %181 : vector<8x1xf32> to vector<8x8xf32>
    %183 = arith.subf %179, %182 : vector<8x8xf32>
    %184 = math.exp %183 : vector<8x8xf32>
    %cst_55 = arith.constant dense<0.000000e+00> : vector<8xf32>
    %185 = vector.multi_reduction <add>, %184, %cst_55 [1] : vector<8x8xf32> to vector<8xf32>
    %186 = vector.shape_cast %185 : vector<8xf32> to vector<8x1xf32>
    %187 = tpu.reciprocal %186 {approx = true} : vector<8x1xf32> -> vector<8x1xf32>
    %188 = vector.broadcast %187 : vector<8x1xf32> to vector<8x8xf32>
    %189 = arith.mulf %184, %188 : vector<8x8xf32>
    %190 = vector.extract_strided_slice %159 {offsets = [0, 4], sizes = [8, 4], strides = [1, 1]} : vector<8x32xf32> to vector<8x4xf32>
    %cst_56 = arith.constant dense<0.000000e+00> : vector<8x4xf32>
    %191 = tpu.matmul %189, %190, %cst_56 {dimension_numbers = #tpu.dot_dimension_numbers<[1], [0], [0], [1], [0, 0, 1, 1], [], []>} : vector<8x8xf32>, vector<8x4xf32>, vector<8x4xf32> -> vector<8x4xf32>
    %192 = vector.extract_strided_slice %157 {offsets = [0, 8], sizes = [8, 4], strides = [1, 1]} : vector<8x32xf32> to vector<8x4xf32>
    %193 = vector.extract_strided_slice %158 {offsets = [0, 8], sizes = [8, 4], strides = [1, 1]} : vector<8x32xf32> to vector<8x4xf32>
    %194 = tpu.transpose %193, [1, 0] : vector<8x4xf32> -> vector<4x8xf32>
    %cst_57 = arith.constant dense<0.000000e+00> : vector<8x8xf32>
    %195 = tpu.matmul %192, %194, %cst_57 {dimension_numbers = #tpu.dot_dimension_numbers<[1], [0], [0], [1], [0, 0, 1, 1], [], []>} : vector<8x4xf32>, vector<4x8xf32>, vector<8x8xf32> -> vector<8x8xf32>
    %cst_58 = arith.constant dense<0xFF800000> : vector<8xf32>
    %196 = vector.multi_reduction <maximumf>, %195, %cst_58 [1] : vector<8x8xf32> to vector<8xf32>
    %197 = vector.shape_cast %196 : vector<8xf32> to vector<8x1xf32>
    %198 = vector.broadcast %197 : vector<8x1xf32> to vector<8x8xf32>
    %199 = arith.subf %195, %198 : vector<8x8xf32>
    %200 = math.exp %199 : vector<8x8xf32>
    %cst_59 = arith.constant dense<0.000000e+00> : vector<8xf32>
    %201 = vector.multi_reduction <add>, %200, %cst_59 [1] : vector<8x8xf32> to vector<8xf32>
    %202 = vector.shape_cast %201 : vector<8xf32> to vector<8x1xf32>
    %203 = tpu.reciprocal %202 {approx = true} : vector<8x1xf32> -> vector<8x1xf32>
    %204 = vector.broadcast %203 : vector<8x1xf32> to vector<8x8xf32>
    %205 = arith.mulf %200, %204 : vector<8x8xf32>
    %206 = vector.extract_strided_slice %159 {offsets = [0, 8], sizes = [8, 4], strides = [1, 1]} : vector<8x32xf32> to vector<8x4xf32>
    %cst_60 = arith.constant dense<0.000000e+00> : vector<8x4xf32>
    %207 = tpu.matmul %205, %206, %cst_60 {dimension_numbers = #tpu.dot_dimension_numbers<[1], [0], [0], [1], [0, 0, 1, 1], [], []>} : vector<8x8xf32>, vector<8x4xf32>, vector<8x4xf32> -> vector<8x4xf32>
    %208 = vector.extract_strided_slice %157 {offsets = [0, 12], sizes = [8, 4], strides = [1, 1]} : vector<8x32xf32> to vector<8x4xf32>
    %209 = vector.extract_strided_slice %158 {offsets = [0, 12], sizes = [8, 4], strides = [1, 1]} : vector<8x32xf32> to vector<8x4xf32>
    %210 = tpu.transpose %209, [1, 0] : vector<8x4xf32> -> vector<4x8xf32>
    %cst_61 = arith.constant dense<0.000000e+00> : vector<8x8xf32>
    %211 = tpu.matmul %208, %210, %cst_61 {dimension_numbers = #tpu.dot_dimension_numbers<[1], [0], [0], [1], [0, 0, 1, 1], [], []>} : vector<8x4xf32>, vector<4x8xf32>, vector<8x8xf32> -> vector<8x8xf32>
    %cst_62 = arith.constant dense<0xFF800000> : vector<8xf32>
    %212 = vector.multi_reduction <maximumf>, %211, %cst_62 [1] : vector<8x8xf32> to vector<8xf32>
    %213 = vector.shape_cast %212 : vector<8xf32> to vector<8x1xf32>
    %214 = vector.broadcast %213 : vector<8x1xf32> to vector<8x8xf32>
    %215 = arith.subf %211, %214 : vector<8x8xf32>
    %216 = math.exp %215 : vector<8x8xf32>
    %cst_63 = arith.constant dense<0.000000e+00> : vector<8xf32>
    %217 = vector.multi_reduction <add>, %216, %cst_63 [1] : vector<8x8xf32> to vector<8xf32>
    %218 = vector.shape_cast %217 : vector<8xf32> to vector<8x1xf32>
    %219 = tpu.reciprocal %218 {approx = true} : vector<8x1xf32> -> vector<8x1xf32>
    %220 = vector.broadcast %219 : vector<8x1xf32> to vector<8x8xf32>
    %221 = arith.mulf %216, %220 : vector<8x8xf32>
    %222 = vector.extract_strided_slice %159 {offsets = [0, 12], sizes = [8, 4], strides = [1, 1]} : vector<8x32xf32> to vector<8x4xf32>
    %cst_64 = arith.constant dense<0.000000e+00> : vector<8x4xf32>
    %223 = tpu.matmul %221, %222, %cst_64 {dimension_numbers = #tpu.dot_dimension_numbers<[1], [0], [0], [1], [0, 0, 1, 1], [], []>} : vector<8x8xf32>, vector<8x4xf32>, vector<8x4xf32> -> vector<8x4xf32>
    %224 = vector.extract_strided_slice %157 {offsets = [0, 16], sizes = [8, 4], strides = [1, 1]} : vector<8x32xf32> to vector<8x4xf32>
    %225 = vector.extract_strided_slice %158 {offsets = [0, 16], sizes = [8, 4], strides = [1, 1]} : vector<8x32xf32> to vector<8x4xf32>
    %226 = tpu.transpose %225, [1, 0] : vector<8x4xf32> -> vector<4x8xf32>
    %cst_65 = arith.constant dense<0.000000e+00> : vector<8x8xf32>
    %227 = tpu.matmul %224, %226, %cst_65 {dimension_numbers = #tpu.dot_dimension_numbers<[1], [0], [0], [1], [0, 0, 1, 1], [], []>} : vector<8x4xf32>, vector<4x8xf32>, vector<8x8xf32> -> vector<8x8xf32>
    %cst_66 = arith.constant dense<0xFF800000> : vector<8xf32>
    %228 = vector.multi_reduction <maximumf>, %227, %cst_66 [1] : vector<8x8xf32> to vector<8xf32>
    %229 = vector.shape_cast %228 : vector<8xf32> to vector<8x1xf32>
    %230 = vector.broadcast %229 : vector<8x1xf32> to vector<8x8xf32>
    %231 = arith.subf %227, %230 : vector<8x8xf32>
    %232 = math.exp %231 : vector<8x8xf32>
    %cst_67 = arith.constant dense<0.000000e+00> : vector<8xf32>
    %233 = vector.multi_reduction <add>, %232, %cst_67 [1] : vector<8x8xf32> to vector<8xf32>
    %234 = vector.shape_cast %233 : vector<8xf32> to vector<8x1xf32>
    %235 = tpu.reciprocal %234 {approx = true} : vector<8x1xf32> -> vector<8x1xf32>
    %236 = vector.broadcast %235 : vector<8x1xf32> to vector<8x8xf32>
    %237 = arith.mulf %232, %236 : vector<8x8xf32>
    %238 = vector.extract_strided_slice %159 {offsets = [0, 16], sizes = [8, 4], strides = [1, 1]} : vector<8x32xf32> to vector<8x4xf32>
    %cst_68 = arith.constant dense<0.000000e+00> : vector<8x4xf32>
    %239 = tpu.matmul %237, %238, %cst_68 {dimension_numbers = #tpu.dot_dimension_numbers<[1], [0], [0], [1], [0, 0, 1, 1], [], []>} : vector<8x8xf32>, vector<8x4xf32>, vector<8x4xf32> -> vector<8x4xf32>
    %240 = vector.extract_strided_slice %157 {offsets = [0, 20], sizes = [8, 4], strides = [1, 1]} : vector<8x32xf32> to vector<8x4xf32>
    %241 = vector.extract_strided_slice %158 {offsets = [0, 20], sizes = [8, 4], strides = [1, 1]} : vector<8x32xf32> to vector<8x4xf32>
    %242 = tpu.transpose %241, [1, 0] : vector<8x4xf32> -> vector<4x8xf32>
    %cst_69 = arith.constant dense<0.000000e+00> : vector<8x8xf32>
    %243 = tpu.matmul %240, %242, %cst_69 {dimension_numbers = #tpu.dot_dimension_numbers<[1], [0], [0], [1], [0, 0, 1, 1], [], []>} : vector<8x4xf32>, vector<4x8xf32>, vector<8x8xf32> -> vector<8x8xf32>
    %cst_70 = arith.constant dense<0xFF800000> : vector<8xf32>
    %244 = vector.multi_reduction <maximumf>, %243, %cst_70 [1] : vector<8x8xf32> to vector<8xf32>
    %245 = vector.shape_cast %244 : vector<8xf32> to vector<8x1xf32>
    %246 = vector.broadcast %245 : vector<8x1xf32> to vector<8x8xf32>
    %247 = arith.subf %243, %246 : vector<8x8xf32>
    %248 = math.exp %247 : vector<8x8xf32>
    %cst_71 = arith.constant dense<0.000000e+00> : vector<8xf32>
    %249 = vector.multi_reduction <add>, %248, %cst_71 [1] : vector<8x8xf32> to vector<8xf32>
    %250 = vector.shape_cast %249 : vector<8xf32> to vector<8x1xf32>
    %251 = tpu.reciprocal %250 {approx = true} : vector<8x1xf32> -> vector<8x1xf32>
    %252 = vector.broadcast %251 : vector<8x1xf32> to vector<8x8xf32>
    %253 = arith.mulf %248, %252 : vector<8x8xf32>
    %254 = vector.extract_strided_slice %159 {offsets = [0, 20], sizes = [8, 4], strides = [1, 1]} : vector<8x32xf32> to vector<8x4xf32>
    %cst_72 = arith.constant dense<0.000000e+00> : vector<8x4xf32>
    %255 = tpu.matmul %253, %254, %cst_72 {dimension_numbers = #tpu.dot_dimension_numbers<[1], [0], [0], [1], [0, 0, 1, 1], [], []>} : vector<8x8xf32>, vector<8x4xf32>, vector<8x4xf32> -> vector<8x4xf32>
    %256 = vector.extract_strided_slice %157 {offsets = [0, 24], sizes = [8, 4], strides = [1, 1]} : vector<8x32xf32> to vector<8x4xf32>
    %257 = vector.extract_strided_slice %158 {offsets = [0, 24], sizes = [8, 4], strides = [1, 1]} : vector<8x32xf32> to vector<8x4xf32>
    %258 = tpu.transpose %257, [1, 0] : vector<8x4xf32> -> vector<4x8xf32>
    %cst_73 = arith.constant dense<0.000000e+00> : vector<8x8xf32>
    %259 = tpu.matmul %256, %258, %cst_73 {dimension_numbers = #tpu.dot_dimension_numbers<[1], [0], [0], [1], [0, 0, 1, 1], [], []>} : vector<8x4xf32>, vector<4x8xf32>, vector<8x8xf32> -> vector<8x8xf32>
    %cst_74 = arith.constant dense<0xFF800000> : vector<8xf32>
    %260 = vector.multi_reduction <maximumf>, %259, %cst_74 [1] : vector<8x8xf32> to vector<8xf32>
    %261 = vector.shape_cast %260 : vector<8xf32> to vector<8x1xf32>
    %262 = vector.broadcast %261 : vector<8x1xf32> to vector<8x8xf32>
    %263 = arith.subf %259, %262 : vector<8x8xf32>
    %264 = math.exp %263 : vector<8x8xf32>
    %cst_75 = arith.constant dense<0.000000e+00> : vector<8xf32>
    %265 = vector.multi_reduction <add>, %264, %cst_75 [1] : vector<8x8xf32> to vector<8xf32>
    %266 = vector.shape_cast %265 : vector<8xf32> to vector<8x1xf32>
    %267 = tpu.reciprocal %266 {approx = true} : vector<8x1xf32> -> vector<8x1xf32>
    %268 = vector.broadcast %267 : vector<8x1xf32> to vector<8x8xf32>
    %269 = arith.mulf %264, %268 : vector<8x8xf32>
    %270 = vector.extract_strided_slice %159 {offsets = [0, 24], sizes = [8, 4], strides = [1, 1]} : vector<8x32xf32> to vector<8x4xf32>
    %cst_76 = arith.constant dense<0.000000e+00> : vector<8x4xf32>
    %271 = tpu.matmul %269, %270, %cst_76 {dimension_numbers = #tpu.dot_dimension_numbers<[1], [0], [0], [1], [0, 0, 1, 1], [], []>} : vector<8x8xf32>, vector<8x4xf32>, vector<8x4xf32> -> vector<8x4xf32>
    %272 = vector.extract_strided_slice %157 {offsets = [0, 28], sizes = [8, 4], strides = [1, 1]} : vector<8x32xf32> to vector<8x4xf32>
    %273 = vector.extract_strided_slice %158 {offsets = [0, 28], sizes = [8, 4], strides = [1, 1]} : vector<8x32xf32> to vector<8x4xf32>
    %274 = tpu.transpose %273, [1, 0] : vector<8x4xf32> -> vector<4x8xf32>
    %cst_77 = arith.constant dense<0.000000e+00> : vector<8x8xf32>
    %275 = tpu.matmul %272, %274, %cst_77 {dimension_numbers = #tpu.dot_dimension_numbers<[1], [0], [0], [1], [0, 0, 1, 1], [], []>} : vector<8x4xf32>, vector<4x8xf32>, vector<8x8xf32> -> vector<8x8xf32>
    %cst_78 = arith.constant dense<0xFF800000> : vector<8xf32>
    %276 = vector.multi_reduction <maximumf>, %275, %cst_78 [1] : vector<8x8xf32> to vector<8xf32>
    %277 = vector.shape_cast %276 : vector<8xf32> to vector<8x1xf32>
    %278 = vector.broadcast %277 : vector<8x1xf32> to vector<8x8xf32>
    %279 = arith.subf %275, %278 : vector<8x8xf32>
    %280 = math.exp %279 : vector<8x8xf32>
    %cst_79 = arith.constant dense<0.000000e+00> : vector<8xf32>
    %281 = vector.multi_reduction <add>, %280, %cst_79 [1] : vector<8x8xf32> to vector<8xf32>
    %282 = vector.shape_cast %281 : vector<8xf32> to vector<8x1xf32>
    %283 = tpu.reciprocal %282 {approx = true} : vector<8x1xf32> -> vector<8x1xf32>
    %284 = vector.broadcast %283 : vector<8x1xf32> to vector<8x8xf32>
    %285 = arith.mulf %280, %284 : vector<8x8xf32>
    %286 = vector.extract_strided_slice %159 {offsets = [0, 28], sizes = [8, 4], strides = [1, 1]} : vector<8x32xf32> to vector<8x4xf32>
    %cst_80 = arith.constant dense<0.000000e+00> : vector<8x4xf32>
    %287 = tpu.matmul %285, %286, %cst_80 {dimension_numbers = #tpu.dot_dimension_numbers<[1], [0], [0], [1], [0, 0, 1, 1], [], []>} : vector<8x8xf32>, vector<8x4xf32>, vector<8x4xf32> -> vector<8x4xf32>
    %288 = tpu.concatenate %175, %191, %207, %223, %239, %255, %271, %287 in 1 : vector<8x4xf32>, vector<8x4xf32>, vector<8x4xf32>, vector<8x4xf32>, vector<8x4xf32>, vector<8x4xf32>, vector<8x4xf32>, vector<8x4xf32> -> vector<8x32xf32>
    %289 = tpu.concatenate %156, %288 in 0 : vector<8x32xf32>, vector<8x32xf32> -> vector<16x32xf32>
    %cst_81 = arith.constant dense<0.000000e+00> : vector<16x32xf32>
    %290 = tpu.matmul %289, %14, %cst_81 {dimension_numbers = #tpu.dot_dimension_numbers<[1], [0], [0], [1], [0, 0, 1, 1], [], []>} : vector<16x32xf32>, vector<32x32xf32>, vector<16x32xf32> -> vector<16x32xf32>
    %291 = vector.broadcast %15 : vector<1x32xf32> to vector<16x32xf32>
    %292 = arith.addf %290, %291 : vector<16x32xf32>
    %293 = arith.addf %0, %292 : vector<16x32xf32>
    %294 = vector.extract_strided_slice %3 {offsets = [9, 0], sizes = [1, 32], strides = [1, 1]} : vector<16x64xf32> to vector<1x32xf32>
    %295 = vector.extract_strided_slice %3 {offsets = [10, 0], sizes = [1, 32], strides = [1, 1]} : vector<16x64xf32> to vector<1x32xf32>
    %cst_82 = arith.constant dense<0.000000e+00> : vector<16xf32>
    %296 = vector.multi_reduction <add>, %293, %cst_82 [1] : vector<16x32xf32> to vector<16xf32>
    %297 = vector.shape_cast %296 : vector<16xf32> to vector<16x1xf32>
    %cst_83 = arith.constant 3.200000e+01 : f32
    %298 = vector.broadcast %cst_83 : f32 to vector<16x1xf32>
    %299 = arith.divf %297, %298 : vector<16x1xf32>
    %300 = vector.broadcast %299 : vector<16x1xf32> to vector<16x32xf32>
    %301 = arith.subf %293, %300 : vector<16x32xf32>
    %302 = arith.mulf %301, %301 : vector<16x32xf32>
    %cst_84 = arith.constant dense<0.000000e+00> : vector<16xf32>
    %303 = vector.multi_reduction <add>, %302, %cst_84 [1] : vector<16x32xf32> to vector<16xf32>
    %304 = vector.shape_cast %303 : vector<16xf32> to vector<16x1xf32>
    %cst_85 = arith.constant 3.200000e+01 : f32
    %305 = vector.broadcast %cst_85 : f32 to vector<16x1xf32>
    %306 = arith.divf %304, %305 : vector<16x1xf32>
    %307 = vector.broadcast %299 : vector<16x1xf32> to vector<16x32xf32>
    %308 = arith.subf %293, %307 : vector<16x32xf32>
    %cst_86 = arith.constant 9.99999974E-6 : f32
    %309 = vector.broadcast %cst_86 : f32 to vector<16x1xf32>
    %310 = arith.addf %306, %309 : vector<16x1xf32>
    %311 = math.rsqrt %310 : vector<16x1xf32>
    %312 = vector.broadcast %311 : vector<16x1xf32> to vector<16x32xf32>
    %313 = arith.mulf %308, %312 : vector<16x32xf32>
    %314 = vector.broadcast %294 : vector<1x32xf32> to vector<16x32xf32>
    %315 = arith.mulf %313, %314 : vector<16x32xf32>
    %316 = vector.broadcast %295 : vector<1x32xf32> to vector<16x32xf32>
    %317 = arith.addf %315, %316 : vector<16x32xf32>
    %c4 = arith.constant 4 : index
    %c0_87 = arith.constant 0 : index
    %c0_88 = arith.constant 0 : index
    %318 = vector.load %arg2[%c4, %c0_87, %c0_88] : memref<16x32x32xf32, #tpu.memory_space<vmem>>, vector<1x32x32xf32>
    %319 = vector.shape_cast %318 : vector<1x32x32xf32> to vector<32x32xf32>
    %320 = vector.extract_strided_slice %3 {offsets = [4, 0], sizes = [1, 32], strides = [1, 1]} : vector<16x64xf32> to vector<1x32xf32>
    %c5 = arith.constant 5 : index
    %c0_89 = arith.constant 0 : index
    %c0_90 = arith.constant 0 : index
    %321 = vector.load %arg2[%c5, %c0_89, %c0_90] : memref<16x32x32xf32, #tpu.memory_space<vmem>>, vector<1x32x32xf32>
    %322 = vector.shape_cast %321 : vector<1x32x32xf32> to vector<32x32xf32>
    %323 = vector.extract_strided_slice %3 {offsets = [5, 0], sizes = [1, 32], strides = [1, 1]} : vector<16x64xf32> to vector<1x32xf32>
    %c6 = arith.constant 6 : index
    %c0_91 = arith.constant 0 : index
    %c0_92 = arith.constant 0 : index
    %324 = vector.load %arg2[%c6, %c0_91, %c0_92] : memref<16x32x32xf32, #tpu.memory_space<vmem>>, vector<1x32x32xf32>
    %325 = vector.shape_cast %324 : vector<1x32x32xf32> to vector<32x32xf32>
    %326 = vector.extract_strided_slice %3 {offsets = [6, 0], sizes = [1, 32], strides = [1, 1]} : vector<16x64xf32> to vector<1x32xf32>
    %c7 = arith.constant 7 : index
    %c0_93 = arith.constant 0 : index
    %c0_94 = arith.constant 0 : index
    %327 = vector.load %arg2[%c7, %c0_93, %c0_94] : memref<16x32x32xf32, #tpu.memory_space<vmem>>, vector<1x32x32xf32>
    %328 = vector.shape_cast %327 : vector<1x32x32xf32> to vector<32x32xf32>
    %329 = vector.extract_strided_slice %3 {offsets = [7, 0], sizes = [1, 32], strides = [1, 1]} : vector<16x64xf32> to vector<1x32xf32>
    %cst_95 = arith.constant dense<0.000000e+00> : vector<16x32xf32>
    %330 = tpu.matmul %317, %319, %cst_95 {dimension_numbers = #tpu.dot_dimension_numbers<[1], [0], [0], [1], [0, 0, 1, 1], [], []>} : vector<16x32xf32>, vector<32x32xf32>, vector<16x32xf32> -> vector<16x32xf32>
    %331 = vector.broadcast %320 : vector<1x32xf32> to vector<16x32xf32>
    %332 = arith.addf %330, %331 : vector<16x32xf32>
    %cst_96 = arith.constant dense<0.000000e+00> : vector<16x32xf32>
    %333 = tpu.matmul %1, %322, %cst_96 {dimension_numbers = #tpu.dot_dimension_numbers<[1], [0], [0], [1], [0, 0, 1, 1], [], []>} : vector<16x32xf32>, vector<32x32xf32>, vector<16x32xf32> -> vector<16x32xf32>
    %334 = vector.broadcast %323 : vector<1x32xf32> to vector<16x32xf32>
    %335 = arith.addf %333, %334 : vector<16x32xf32>
    %cst_97 = arith.constant dense<0.000000e+00> : vector<16x32xf32>
    %336 = tpu.matmul %1, %325, %cst_97 {dimension_numbers = #tpu.dot_dimension_numbers<[1], [0], [0], [1], [0, 0, 1, 1], [], []>} : vector<16x32xf32>, vector<32x32xf32>, vector<16x32xf32> -> vector<16x32xf32>
    %337 = vector.broadcast %326 : vector<1x32xf32> to vector<16x32xf32>
    %338 = arith.addf %336, %337 : vector<16x32xf32>
    %339 = vector.extract_strided_slice %332 {offsets = [0, 0], sizes = [8, 32], strides = [1, 1]} : vector<16x32xf32> to vector<8x32xf32>
    %340 = vector.extract_strided_slice %335 {offsets = [0, 0], sizes = [8, 32], strides = [1, 1]} : vector<16x32xf32> to vector<8x32xf32>
    %341 = vector.extract_strided_slice %338 {offsets = [0, 0], sizes = [8, 32], strides = [1, 1]} : vector<16x32xf32> to vector<8x32xf32>
    %342 = vector.extract_strided_slice %339 {offsets = [0, 0], sizes = [8, 4], strides = [1, 1]} : vector<8x32xf32> to vector<8x4xf32>
    %343 = vector.extract_strided_slice %340 {offsets = [0, 0], sizes = [8, 4], strides = [1, 1]} : vector<8x32xf32> to vector<8x4xf32>
    %344 = tpu.transpose %343, [1, 0] : vector<8x4xf32> -> vector<4x8xf32>
    %cst_98 = arith.constant dense<0.000000e+00> : vector<8x8xf32>
    %345 = tpu.matmul %342, %344, %cst_98 {dimension_numbers = #tpu.dot_dimension_numbers<[1], [0], [0], [1], [0, 0, 1, 1], [], []>} : vector<8x4xf32>, vector<4x8xf32>, vector<8x8xf32> -> vector<8x8xf32>
    %cst_99 = arith.constant dense<0xFF800000> : vector<8xf32>
    %346 = vector.multi_reduction <maximumf>, %345, %cst_99 [1] : vector<8x8xf32> to vector<8xf32>
    %347 = vector.shape_cast %346 : vector<8xf32> to vector<8x1xf32>
    %348 = vector.broadcast %347 : vector<8x1xf32> to vector<8x8xf32>
    %349 = arith.subf %345, %348 : vector<8x8xf32>
    %350 = math.exp %349 : vector<8x8xf32>
    %cst_100 = arith.constant dense<0.000000e+00> : vector<8xf32>
    %351 = vector.multi_reduction <add>, %350, %cst_100 [1] : vector<8x8xf32> to vector<8xf32>
    %352 = vector.shape_cast %351 : vector<8xf32> to vector<8x1xf32>
    %353 = tpu.reciprocal %352 {approx = true} : vector<8x1xf32> -> vector<8x1xf32>
    %354 = vector.broadcast %353 : vector<8x1xf32> to vector<8x8xf32>
    %355 = arith.mulf %350, %354 : vector<8x8xf32>
    %356 = vector.extract_strided_slice %341 {offsets = [0, 0], sizes = [8, 4], strides = [1, 1]} : vector<8x32xf32> to vector<8x4xf32>
    %cst_101 = arith.constant dense<0.000000e+00> : vector<8x4xf32>
    %357 = tpu.matmul %355, %356, %cst_101 {dimension_numbers = #tpu.dot_dimension_numbers<[1], [0], [0], [1], [0, 0, 1, 1], [], []>} : vector<8x8xf32>, vector<8x4xf32>, vector<8x4xf32> -> vector<8x4xf32>
    %358 = vector.extract_strided_slice %339 {offsets = [0, 4], sizes = [8, 4], strides = [1, 1]} : vector<8x32xf32> to vector<8x4xf32>
    %359 = vector.extract_strided_slice %340 {offsets = [0, 4], sizes = [8, 4], strides = [1, 1]} : vector<8x32xf32> to vector<8x4xf32>
    %360 = tpu.transpose %359, [1, 0] : vector<8x4xf32> -> vector<4x8xf32>
    %cst_102 = arith.constant dense<0.000000e+00> : vector<8x8xf32>
    %361 = tpu.matmul %358, %360, %cst_102 {dimension_numbers = #tpu.dot_dimension_numbers<[1], [0], [0], [1], [0, 0, 1, 1], [], []>} : vector<8x4xf32>, vector<4x8xf32>, vector<8x8xf32> -> vector<8x8xf32>
    %cst_103 = arith.constant dense<0xFF800000> : vector<8xf32>
    %362 = vector.multi_reduction <maximumf>, %361, %cst_103 [1] : vector<8x8xf32> to vector<8xf32>
    %363 = vector.shape_cast %362 : vector<8xf32> to vector<8x1xf32>
    %364 = vector.broadcast %363 : vector<8x1xf32> to vector<8x8xf32>
    %365 = arith.subf %361, %364 : vector<8x8xf32>
    %366 = math.exp %365 : vector<8x8xf32>
    %cst_104 = arith.constant dense<0.000000e+00> : vector<8xf32>
    %367 = vector.multi_reduction <add>, %366, %cst_104 [1] : vector<8x8xf32> to vector<8xf32>
    %368 = vector.shape_cast %367 : vector<8xf32> to vector<8x1xf32>
    %369 = tpu.reciprocal %368 {approx = true} : vector<8x1xf32> -> vector<8x1xf32>
    %370 = vector.broadcast %369 : vector<8x1xf32> to vector<8x8xf32>
    %371 = arith.mulf %366, %370 : vector<8x8xf32>
    %372 = vector.extract_strided_slice %341 {offsets = [0, 4], sizes = [8, 4], strides = [1, 1]} : vector<8x32xf32> to vector<8x4xf32>
    %cst_105 = arith.constant dense<0.000000e+00> : vector<8x4xf32>
    %373 = tpu.matmul %371, %372, %cst_105 {dimension_numbers = #tpu.dot_dimension_numbers<[1], [0], [0], [1], [0, 0, 1, 1], [], []>} : vector<8x8xf32>, vector<8x4xf32>, vector<8x4xf32> -> vector<8x4xf32>
    %374 = vector.extract_strided_slice %339 {offsets = [0, 8], sizes = [8, 4], strides = [1, 1]} : vector<8x32xf32> to vector<8x4xf32>
    %375 = vector.extract_strided_slice %340 {offsets = [0, 8], sizes = [8, 4], strides = [1, 1]} : vector<8x32xf32> to vector<8x4xf32>
    %376 = tpu.transpose %375, [1, 0] : vector<8x4xf32> -> vector<4x8xf32>
    %cst_106 = arith.constant dense<0.000000e+00> : vector<8x8xf32>
    %377 = tpu.matmul %374, %376, %cst_106 {dimension_numbers = #tpu.dot_dimension_numbers<[1], [0], [0], [1], [0, 0, 1, 1], [], []>} : vector<8x4xf32>, vector<4x8xf32>, vector<8x8xf32> -> vector<8x8xf32>
    %cst_107 = arith.constant dense<0xFF800000> : vector<8xf32>
    %378 = vector.multi_reduction <maximumf>, %377, %cst_107 [1] : vector<8x8xf32> to vector<8xf32>
    %379 = vector.shape_cast %378 : vector<8xf32> to vector<8x1xf32>
    %380 = vector.broadcast %379 : vector<8x1xf32> to vector<8x8xf32>
    %381 = arith.subf %377, %380 : vector<8x8xf32>
    %382 = math.exp %381 : vector<8x8xf32>
    %cst_108 = arith.constant dense<0.000000e+00> : vector<8xf32>
    %383 = vector.multi_reduction <add>, %382, %cst_108 [1] : vector<8x8xf32> to vector<8xf32>
    %384 = vector.shape_cast %383 : vector<8xf32> to vector<8x1xf32>
    %385 = tpu.reciprocal %384 {approx = true} : vector<8x1xf32> -> vector<8x1xf32>
    %386 = vector.broadcast %385 : vector<8x1xf32> to vector<8x8xf32>
    %387 = arith.mulf %382, %386 : vector<8x8xf32>
    %388 = vector.extract_strided_slice %341 {offsets = [0, 8], sizes = [8, 4], strides = [1, 1]} : vector<8x32xf32> to vector<8x4xf32>
    %cst_109 = arith.constant dense<0.000000e+00> : vector<8x4xf32>
    %389 = tpu.matmul %387, %388, %cst_109 {dimension_numbers = #tpu.dot_dimension_numbers<[1], [0], [0], [1], [0, 0, 1, 1], [], []>} : vector<8x8xf32>, vector<8x4xf32>, vector<8x4xf32> -> vector<8x4xf32>
    %390 = vector.extract_strided_slice %339 {offsets = [0, 12], sizes = [8, 4], strides = [1, 1]} : vector<8x32xf32> to vector<8x4xf32>
    %391 = vector.extract_strided_slice %340 {offsets = [0, 12], sizes = [8, 4], strides = [1, 1]} : vector<8x32xf32> to vector<8x4xf32>
    %392 = tpu.transpose %391, [1, 0] : vector<8x4xf32> -> vector<4x8xf32>
    %cst_110 = arith.constant dense<0.000000e+00> : vector<8x8xf32>
    %393 = tpu.matmul %390, %392, %cst_110 {dimension_numbers = #tpu.dot_dimension_numbers<[1], [0], [0], [1], [0, 0, 1, 1], [], []>} : vector<8x4xf32>, vector<4x8xf32>, vector<8x8xf32> -> vector<8x8xf32>
    %cst_111 = arith.constant dense<0xFF800000> : vector<8xf32>
    %394 = vector.multi_reduction <maximumf>, %393, %cst_111 [1] : vector<8x8xf32> to vector<8xf32>
    %395 = vector.shape_cast %394 : vector<8xf32> to vector<8x1xf32>
    %396 = vector.broadcast %395 : vector<8x1xf32> to vector<8x8xf32>
    %397 = arith.subf %393, %396 : vector<8x8xf32>
    %398 = math.exp %397 : vector<8x8xf32>
    %cst_112 = arith.constant dense<0.000000e+00> : vector<8xf32>
    %399 = vector.multi_reduction <add>, %398, %cst_112 [1] : vector<8x8xf32> to vector<8xf32>
    %400 = vector.shape_cast %399 : vector<8xf32> to vector<8x1xf32>
    %401 = tpu.reciprocal %400 {approx = true} : vector<8x1xf32> -> vector<8x1xf32>
    %402 = vector.broadcast %401 : vector<8x1xf32> to vector<8x8xf32>
    %403 = arith.mulf %398, %402 : vector<8x8xf32>
    %404 = vector.extract_strided_slice %341 {offsets = [0, 12], sizes = [8, 4], strides = [1, 1]} : vector<8x32xf32> to vector<8x4xf32>
    %cst_113 = arith.constant dense<0.000000e+00> : vector<8x4xf32>
    %405 = tpu.matmul %403, %404, %cst_113 {dimension_numbers = #tpu.dot_dimension_numbers<[1], [0], [0], [1], [0, 0, 1, 1], [], []>} : vector<8x8xf32>, vector<8x4xf32>, vector<8x4xf32> -> vector<8x4xf32>
    %406 = vector.extract_strided_slice %339 {offsets = [0, 16], sizes = [8, 4], strides = [1, 1]} : vector<8x32xf32> to vector<8x4xf32>
    %407 = vector.extract_strided_slice %340 {offsets = [0, 16], sizes = [8, 4], strides = [1, 1]} : vector<8x32xf32> to vector<8x4xf32>
    %408 = tpu.transpose %407, [1, 0] : vector<8x4xf32> -> vector<4x8xf32>
    %cst_114 = arith.constant dense<0.000000e+00> : vector<8x8xf32>
    %409 = tpu.matmul %406, %408, %cst_114 {dimension_numbers = #tpu.dot_dimension_numbers<[1], [0], [0], [1], [0, 0, 1, 1], [], []>} : vector<8x4xf32>, vector<4x8xf32>, vector<8x8xf32> -> vector<8x8xf32>
    %cst_115 = arith.constant dense<0xFF800000> : vector<8xf32>
    %410 = vector.multi_reduction <maximumf>, %409, %cst_115 [1] : vector<8x8xf32> to vector<8xf32>
    %411 = vector.shape_cast %410 : vector<8xf32> to vector<8x1xf32>
    %412 = vector.broadcast %411 : vector<8x1xf32> to vector<8x8xf32>
    %413 = arith.subf %409, %412 : vector<8x8xf32>
    %414 = math.exp %413 : vector<8x8xf32>
    %cst_116 = arith.constant dense<0.000000e+00> : vector<8xf32>
    %415 = vector.multi_reduction <add>, %414, %cst_116 [1] : vector<8x8xf32> to vector<8xf32>
    %416 = vector.shape_cast %415 : vector<8xf32> to vector<8x1xf32>
    %417 = tpu.reciprocal %416 {approx = true} : vector<8x1xf32> -> vector<8x1xf32>
    %418 = vector.broadcast %417 : vector<8x1xf32> to vector<8x8xf32>
    %419 = arith.mulf %414, %418 : vector<8x8xf32>
    %420 = vector.extract_strided_slice %341 {offsets = [0, 16], sizes = [8, 4], strides = [1, 1]} : vector<8x32xf32> to vector<8x4xf32>
    %cst_117 = arith.constant dense<0.000000e+00> : vector<8x4xf32>
    %421 = tpu.matmul %419, %420, %cst_117 {dimension_numbers = #tpu.dot_dimension_numbers<[1], [0], [0], [1], [0, 0, 1, 1], [], []>} : vector<8x8xf32>, vector<8x4xf32>, vector<8x4xf32> -> vector<8x4xf32>
    %422 = vector.extract_strided_slice %339 {offsets = [0, 20], sizes = [8, 4], strides = [1, 1]} : vector<8x32xf32> to vector<8x4xf32>
    %423 = vector.extract_strided_slice %340 {offsets = [0, 20], sizes = [8, 4], strides = [1, 1]} : vector<8x32xf32> to vector<8x4xf32>
    %424 = tpu.transpose %423, [1, 0] : vector<8x4xf32> -> vector<4x8xf32>
    %cst_118 = arith.constant dense<0.000000e+00> : vector<8x8xf32>
    %425 = tpu.matmul %422, %424, %cst_118 {dimension_numbers = #tpu.dot_dimension_numbers<[1], [0], [0], [1], [0, 0, 1, 1], [], []>} : vector<8x4xf32>, vector<4x8xf32>, vector<8x8xf32> -> vector<8x8xf32>
    %cst_119 = arith.constant dense<0xFF800000> : vector<8xf32>
    %426 = vector.multi_reduction <maximumf>, %425, %cst_119 [1] : vector<8x8xf32> to vector<8xf32>
    %427 = vector.shape_cast %426 : vector<8xf32> to vector<8x1xf32>
    %428 = vector.broadcast %427 : vector<8x1xf32> to vector<8x8xf32>
    %429 = arith.subf %425, %428 : vector<8x8xf32>
    %430 = math.exp %429 : vector<8x8xf32>
    %cst_120 = arith.constant dense<0.000000e+00> : vector<8xf32>
    %431 = vector.multi_reduction <add>, %430, %cst_120 [1] : vector<8x8xf32> to vector<8xf32>
    %432 = vector.shape_cast %431 : vector<8xf32> to vector<8x1xf32>
    %433 = tpu.reciprocal %432 {approx = true} : vector<8x1xf32> -> vector<8x1xf32>
    %434 = vector.broadcast %433 : vector<8x1xf32> to vector<8x8xf32>
    %435 = arith.mulf %430, %434 : vector<8x8xf32>
    %436 = vector.extract_strided_slice %341 {offsets = [0, 20], sizes = [8, 4], strides = [1, 1]} : vector<8x32xf32> to vector<8x4xf32>
    %cst_121 = arith.constant dense<0.000000e+00> : vector<8x4xf32>
    %437 = tpu.matmul %435, %436, %cst_121 {dimension_numbers = #tpu.dot_dimension_numbers<[1], [0], [0], [1], [0, 0, 1, 1], [], []>} : vector<8x8xf32>, vector<8x4xf32>, vector<8x4xf32> -> vector<8x4xf32>
    %438 = vector.extract_strided_slice %339 {offsets = [0, 24], sizes = [8, 4], strides = [1, 1]} : vector<8x32xf32> to vector<8x4xf32>
    %439 = vector.extract_strided_slice %340 {offsets = [0, 24], sizes = [8, 4], strides = [1, 1]} : vector<8x32xf32> to vector<8x4xf32>
    %440 = tpu.transpose %439, [1, 0] : vector<8x4xf32> -> vector<4x8xf32>
    %cst_122 = arith.constant dense<0.000000e+00> : vector<8x8xf32>
    %441 = tpu.matmul %438, %440, %cst_122 {dimension_numbers = #tpu.dot_dimension_numbers<[1], [0], [0], [1], [0, 0, 1, 1], [], []>} : vector<8x4xf32>, vector<4x8xf32>, vector<8x8xf32> -> vector<8x8xf32>
    %cst_123 = arith.constant dense<0xFF800000> : vector<8xf32>
    %442 = vector.multi_reduction <maximumf>, %441, %cst_123 [1] : vector<8x8xf32> to vector<8xf32>
    %443 = vector.shape_cast %442 : vector<8xf32> to vector<8x1xf32>
    %444 = vector.broadcast %443 : vector<8x1xf32> to vector<8x8xf32>
    %445 = arith.subf %441, %444 : vector<8x8xf32>
    %446 = math.exp %445 : vector<8x8xf32>
    %cst_124 = arith.constant dense<0.000000e+00> : vector<8xf32>
    %447 = vector.multi_reduction <add>, %446, %cst_124 [1] : vector<8x8xf32> to vector<8xf32>
    %448 = vector.shape_cast %447 : vector<8xf32> to vector<8x1xf32>
    %449 = tpu.reciprocal %448 {approx = true} : vector<8x1xf32> -> vector<8x1xf32>
    %450 = vector.broadcast %449 : vector<8x1xf32> to vector<8x8xf32>
    %451 = arith.mulf %446, %450 : vector<8x8xf32>
    %452 = vector.extract_strided_slice %341 {offsets = [0, 24], sizes = [8, 4], strides = [1, 1]} : vector<8x32xf32> to vector<8x4xf32>
    %cst_125 = arith.constant dense<0.000000e+00> : vector<8x4xf32>
    %453 = tpu.matmul %451, %452, %cst_125 {dimension_numbers = #tpu.dot_dimension_numbers<[1], [0], [0], [1], [0, 0, 1, 1], [], []>} : vector<8x8xf32>, vector<8x4xf32>, vector<8x4xf32> -> vector<8x4xf32>
    %454 = vector.extract_strided_slice %339 {offsets = [0, 28], sizes = [8, 4], strides = [1, 1]} : vector<8x32xf32> to vector<8x4xf32>
    %455 = vector.extract_strided_slice %340 {offsets = [0, 28], sizes = [8, 4], strides = [1, 1]} : vector<8x32xf32> to vector<8x4xf32>
    %456 = tpu.transpose %455, [1, 0] : vector<8x4xf32> -> vector<4x8xf32>
    %cst_126 = arith.constant dense<0.000000e+00> : vector<8x8xf32>
    %457 = tpu.matmul %454, %456, %cst_126 {dimension_numbers = #tpu.dot_dimension_numbers<[1], [0], [0], [1], [0, 0, 1, 1], [], []>} : vector<8x4xf32>, vector<4x8xf32>, vector<8x8xf32> -> vector<8x8xf32>
    %cst_127 = arith.constant dense<0xFF800000> : vector<8xf32>
    %458 = vector.multi_reduction <maximumf>, %457, %cst_127 [1] : vector<8x8xf32> to vector<8xf32>
    %459 = vector.shape_cast %458 : vector<8xf32> to vector<8x1xf32>
    %460 = vector.broadcast %459 : vector<8x1xf32> to vector<8x8xf32>
    %461 = arith.subf %457, %460 : vector<8x8xf32>
    %462 = math.exp %461 : vector<8x8xf32>
    %cst_128 = arith.constant dense<0.000000e+00> : vector<8xf32>
    %463 = vector.multi_reduction <add>, %462, %cst_128 [1] : vector<8x8xf32> to vector<8xf32>
    %464 = vector.shape_cast %463 : vector<8xf32> to vector<8x1xf32>
    %465 = tpu.reciprocal %464 {approx = true} : vector<8x1xf32> -> vector<8x1xf32>
    %466 = vector.broadcast %465 : vector<8x1xf32> to vector<8x8xf32>
    %467 = arith.mulf %462, %466 : vector<8x8xf32>
    %468 = vector.extract_strided_slice %341 {offsets = [0, 28], sizes = [8, 4], strides = [1, 1]} : vector<8x32xf32> to vector<8x4xf32>
    %cst_129 = arith.constant dense<0.000000e+00> : vector<8x4xf32>
    %469 = tpu.matmul %467, %468, %cst_129 {dimension_numbers = #tpu.dot_dimension_numbers<[1], [0], [0], [1], [0, 0, 1, 1], [], []>} : vector<8x8xf32>, vector<8x4xf32>, vector<8x4xf32> -> vector<8x4xf32>
    %470 = tpu.concatenate %357, %373, %389, %405, %421, %437, %453, %469 in 1 : vector<8x4xf32>, vector<8x4xf32>, vector<8x4xf32>, vector<8x4xf32>, vector<8x4xf32>, vector<8x4xf32>, vector<8x4xf32>, vector<8x4xf32> -> vector<8x32xf32>
    %471 = vector.extract_strided_slice %332 {offsets = [8, 0], sizes = [8, 32], strides = [1, 1]} : vector<16x32xf32> to vector<8x32xf32>
    %472 = vector.extract_strided_slice %335 {offsets = [8, 0], sizes = [8, 32], strides = [1, 1]} : vector<16x32xf32> to vector<8x32xf32>
    %473 = vector.extract_strided_slice %338 {offsets = [8, 0], sizes = [8, 32], strides = [1, 1]} : vector<16x32xf32> to vector<8x32xf32>
    %474 = vector.extract_strided_slice %471 {offsets = [0, 0], sizes = [8, 4], strides = [1, 1]} : vector<8x32xf32> to vector<8x4xf32>
    %475 = vector.extract_strided_slice %472 {offsets = [0, 0], sizes = [8, 4], strides = [1, 1]} : vector<8x32xf32> to vector<8x4xf32>
    %476 = tpu.transpose %475, [1, 0] : vector<8x4xf32> -> vector<4x8xf32>
    %cst_130 = arith.constant dense<0.000000e+00> : vector<8x8xf32>
    %477 = tpu.matmul %474, %476, %cst_130 {dimension_numbers = #tpu.dot_dimension_numbers<[1], [0], [0], [1], [0, 0, 1, 1], [], []>} : vector<8x4xf32>, vector<4x8xf32>, vector<8x8xf32> -> vector<8x8xf32>
    %cst_131 = arith.constant dense<0xFF800000> : vector<8xf32>
    %478 = vector.multi_reduction <maximumf>, %477, %cst_131 [1] : vector<8x8xf32> to vector<8xf32>
    %479 = vector.shape_cast %478 : vector<8xf32> to vector<8x1xf32>
    %480 = vector.broadcast %479 : vector<8x1xf32> to vector<8x8xf32>
    %481 = arith.subf %477, %480 : vector<8x8xf32>
    %482 = math.exp %481 : vector<8x8xf32>
    %cst_132 = arith.constant dense<0.000000e+00> : vector<8xf32>
    %483 = vector.multi_reduction <add>, %482, %cst_132 [1] : vector<8x8xf32> to vector<8xf32>
    %484 = vector.shape_cast %483 : vector<8xf32> to vector<8x1xf32>
    %485 = tpu.reciprocal %484 {approx = true} : vector<8x1xf32> -> vector<8x1xf32>
    %486 = vector.broadcast %485 : vector<8x1xf32> to vector<8x8xf32>
    %487 = arith.mulf %482, %486 : vector<8x8xf32>
    %488 = vector.extract_strided_slice %473 {offsets = [0, 0], sizes = [8, 4], strides = [1, 1]} : vector<8x32xf32> to vector<8x4xf32>
    %cst_133 = arith.constant dense<0.000000e+00> : vector<8x4xf32>
    %489 = tpu.matmul %487, %488, %cst_133 {dimension_numbers = #tpu.dot_dimension_numbers<[1], [0], [0], [1], [0, 0, 1, 1], [], []>} : vector<8x8xf32>, vector<8x4xf32>, vector<8x4xf32> -> vector<8x4xf32>
    %490 = vector.extract_strided_slice %471 {offsets = [0, 4], sizes = [8, 4], strides = [1, 1]} : vector<8x32xf32> to vector<8x4xf32>
    %491 = vector.extract_strided_slice %472 {offsets = [0, 4], sizes = [8, 4], strides = [1, 1]} : vector<8x32xf32> to vector<8x4xf32>
    %492 = tpu.transpose %491, [1, 0] : vector<8x4xf32> -> vector<4x8xf32>
    %cst_134 = arith.constant dense<0.000000e+00> : vector<8x8xf32>
    %493 = tpu.matmul %490, %492, %cst_134 {dimension_numbers = #tpu.dot_dimension_numbers<[1], [0], [0], [1], [0, 0, 1, 1], [], []>} : vector<8x4xf32>, vector<4x8xf32>, vector<8x8xf32> -> vector<8x8xf32>
    %cst_135 = arith.constant dense<0xFF800000> : vector<8xf32>
    %494 = vector.multi_reduction <maximumf>, %493, %cst_135 [1] : vector<8x8xf32> to vector<8xf32>
    %495 = vector.shape_cast %494 : vector<8xf32> to vector<8x1xf32>
    %496 = vector.broadcast %495 : vector<8x1xf32> to vector<8x8xf32>
    %497 = arith.subf %493, %496 : vector<8x8xf32>
    %498 = math.exp %497 : vector<8x8xf32>
    %cst_136 = arith.constant dense<0.000000e+00> : vector<8xf32>
    %499 = vector.multi_reduction <add>, %498, %cst_136 [1] : vector<8x8xf32> to vector<8xf32>
    %500 = vector.shape_cast %499 : vector<8xf32> to vector<8x1xf32>
    %501 = tpu.reciprocal %500 {approx = true} : vector<8x1xf32> -> vector<8x1xf32>
    %502 = vector.broadcast %501 : vector<8x1xf32> to vector<8x8xf32>
    %503 = arith.mulf %498, %502 : vector<8x8xf32>
    %504 = vector.extract_strided_slice %473 {offsets = [0, 4], sizes = [8, 4], strides = [1, 1]} : vector<8x32xf32> to vector<8x4xf32>
    %cst_137 = arith.constant dense<0.000000e+00> : vector<8x4xf32>
    %505 = tpu.matmul %503, %504, %cst_137 {dimension_numbers = #tpu.dot_dimension_numbers<[1], [0], [0], [1], [0, 0, 1, 1], [], []>} : vector<8x8xf32>, vector<8x4xf32>, vector<8x4xf32> -> vector<8x4xf32>
    %506 = vector.extract_strided_slice %471 {offsets = [0, 8], sizes = [8, 4], strides = [1, 1]} : vector<8x32xf32> to vector<8x4xf32>
    %507 = vector.extract_strided_slice %472 {offsets = [0, 8], sizes = [8, 4], strides = [1, 1]} : vector<8x32xf32> to vector<8x4xf32>
    %508 = tpu.transpose %507, [1, 0] : vector<8x4xf32> -> vector<4x8xf32>
    %cst_138 = arith.constant dense<0.000000e+00> : vector<8x8xf32>
    %509 = tpu.matmul %506, %508, %cst_138 {dimension_numbers = #tpu.dot_dimension_numbers<[1], [0], [0], [1], [0, 0, 1, 1], [], []>} : vector<8x4xf32>, vector<4x8xf32>, vector<8x8xf32> -> vector<8x8xf32>
    %cst_139 = arith.constant dense<0xFF800000> : vector<8xf32>
    %510 = vector.multi_reduction <maximumf>, %509, %cst_139 [1] : vector<8x8xf32> to vector<8xf32>
    %511 = vector.shape_cast %510 : vector<8xf32> to vector<8x1xf32>
    %512 = vector.broadcast %511 : vector<8x1xf32> to vector<8x8xf32>
    %513 = arith.subf %509, %512 : vector<8x8xf32>
    %514 = math.exp %513 : vector<8x8xf32>
    %cst_140 = arith.constant dense<0.000000e+00> : vector<8xf32>
    %515 = vector.multi_reduction <add>, %514, %cst_140 [1] : vector<8x8xf32> to vector<8xf32>
    %516 = vector.shape_cast %515 : vector<8xf32> to vector<8x1xf32>
    %517 = tpu.reciprocal %516 {approx = true} : vector<8x1xf32> -> vector<8x1xf32>
    %518 = vector.broadcast %517 : vector<8x1xf32> to vector<8x8xf32>
    %519 = arith.mulf %514, %518 : vector<8x8xf32>
    %520 = vector.extract_strided_slice %473 {offsets = [0, 8], sizes = [8, 4], strides = [1, 1]} : vector<8x32xf32> to vector<8x4xf32>
    %cst_141 = arith.constant dense<0.000000e+00> : vector<8x4xf32>
    %521 = tpu.matmul %519, %520, %cst_141 {dimension_numbers = #tpu.dot_dimension_numbers<[1], [0], [0], [1], [0, 0, 1, 1], [], []>} : vector<8x8xf32>, vector<8x4xf32>, vector<8x4xf32> -> vector<8x4xf32>
    %522 = vector.extract_strided_slice %471 {offsets = [0, 12], sizes = [8, 4], strides = [1, 1]} : vector<8x32xf32> to vector<8x4xf32>
    %523 = vector.extract_strided_slice %472 {offsets = [0, 12], sizes = [8, 4], strides = [1, 1]} : vector<8x32xf32> to vector<8x4xf32>
    %524 = tpu.transpose %523, [1, 0] : vector<8x4xf32> -> vector<4x8xf32>
    %cst_142 = arith.constant dense<0.000000e+00> : vector<8x8xf32>
    %525 = tpu.matmul %522, %524, %cst_142 {dimension_numbers = #tpu.dot_dimension_numbers<[1], [0], [0], [1], [0, 0, 1, 1], [], []>} : vector<8x4xf32>, vector<4x8xf32>, vector<8x8xf32> -> vector<8x8xf32>
    %cst_143 = arith.constant dense<0xFF800000> : vector<8xf32>
    %526 = vector.multi_reduction <maximumf>, %525, %cst_143 [1] : vector<8x8xf32> to vector<8xf32>
    %527 = vector.shape_cast %526 : vector<8xf32> to vector<8x1xf32>
    %528 = vector.broadcast %527 : vector<8x1xf32> to vector<8x8xf32>
    %529 = arith.subf %525, %528 : vector<8x8xf32>
    %530 = math.exp %529 : vector<8x8xf32>
    %cst_144 = arith.constant dense<0.000000e+00> : vector<8xf32>
    %531 = vector.multi_reduction <add>, %530, %cst_144 [1] : vector<8x8xf32> to vector<8xf32>
    %532 = vector.shape_cast %531 : vector<8xf32> to vector<8x1xf32>
    %533 = tpu.reciprocal %532 {approx = true} : vector<8x1xf32> -> vector<8x1xf32>
    %534 = vector.broadcast %533 : vector<8x1xf32> to vector<8x8xf32>
    %535 = arith.mulf %530, %534 : vector<8x8xf32>
    %536 = vector.extract_strided_slice %473 {offsets = [0, 12], sizes = [8, 4], strides = [1, 1]} : vector<8x32xf32> to vector<8x4xf32>
    %cst_145 = arith.constant dense<0.000000e+00> : vector<8x4xf32>
    %537 = tpu.matmul %535, %536, %cst_145 {dimension_numbers = #tpu.dot_dimension_numbers<[1], [0], [0], [1], [0, 0, 1, 1], [], []>} : vector<8x8xf32>, vector<8x4xf32>, vector<8x4xf32> -> vector<8x4xf32>
    %538 = vector.extract_strided_slice %471 {offsets = [0, 16], sizes = [8, 4], strides = [1, 1]} : vector<8x32xf32> to vector<8x4xf32>
    %539 = vector.extract_strided_slice %472 {offsets = [0, 16], sizes = [8, 4], strides = [1, 1]} : vector<8x32xf32> to vector<8x4xf32>
    %540 = tpu.transpose %539, [1, 0] : vector<8x4xf32> -> vector<4x8xf32>
    %cst_146 = arith.constant dense<0.000000e+00> : vector<8x8xf32>
    %541 = tpu.matmul %538, %540, %cst_146 {dimension_numbers = #tpu.dot_dimension_numbers<[1], [0], [0], [1], [0, 0, 1, 1], [], []>} : vector<8x4xf32>, vector<4x8xf32>, vector<8x8xf32> -> vector<8x8xf32>
    %cst_147 = arith.constant dense<0xFF800000> : vector<8xf32>
    %542 = vector.multi_reduction <maximumf>, %541, %cst_147 [1] : vector<8x8xf32> to vector<8xf32>
    %543 = vector.shape_cast %542 : vector<8xf32> to vector<8x1xf32>
    %544 = vector.broadcast %543 : vector<8x1xf32> to vector<8x8xf32>
    %545 = arith.subf %541, %544 : vector<8x8xf32>
    %546 = math.exp %545 : vector<8x8xf32>
    %cst_148 = arith.constant dense<0.000000e+00> : vector<8xf32>
    %547 = vector.multi_reduction <add>, %546, %cst_148 [1] : vector<8x8xf32> to vector<8xf32>
    %548 = vector.shape_cast %547 : vector<8xf32> to vector<8x1xf32>
    %549 = tpu.reciprocal %548 {approx = true} : vector<8x1xf32> -> vector<8x1xf32>
    %550 = vector.broadcast %549 : vector<8x1xf32> to vector<8x8xf32>
    %551 = arith.mulf %546, %550 : vector<8x8xf32>
    %552 = vector.extract_strided_slice %473 {offsets = [0, 16], sizes = [8, 4], strides = [1, 1]} : vector<8x32xf32> to vector<8x4xf32>
    %cst_149 = arith.constant dense<0.000000e+00> : vector<8x4xf32>
    %553 = tpu.matmul %551, %552, %cst_149 {dimension_numbers = #tpu.dot_dimension_numbers<[1], [0], [0], [1], [0, 0, 1, 1], [], []>} : vector<8x8xf32>, vector<8x4xf32>, vector<8x4xf32> -> vector<8x4xf32>
    %554 = vector.extract_strided_slice %471 {offsets = [0, 20], sizes = [8, 4], strides = [1, 1]} : vector<8x32xf32> to vector<8x4xf32>
    %555 = vector.extract_strided_slice %472 {offsets = [0, 20], sizes = [8, 4], strides = [1, 1]} : vector<8x32xf32> to vector<8x4xf32>
    %556 = tpu.transpose %555, [1, 0] : vector<8x4xf32> -> vector<4x8xf32>
    %cst_150 = arith.constant dense<0.000000e+00> : vector<8x8xf32>
    %557 = tpu.matmul %554, %556, %cst_150 {dimension_numbers = #tpu.dot_dimension_numbers<[1], [0], [0], [1], [0, 0, 1, 1], [], []>} : vector<8x4xf32>, vector<4x8xf32>, vector<8x8xf32> -> vector<8x8xf32>
    %cst_151 = arith.constant dense<0xFF800000> : vector<8xf32>
    %558 = vector.multi_reduction <maximumf>, %557, %cst_151 [1] : vector<8x8xf32> to vector<8xf32>
    %559 = vector.shape_cast %558 : vector<8xf32> to vector<8x1xf32>
    %560 = vector.broadcast %559 : vector<8x1xf32> to vector<8x8xf32>
    %561 = arith.subf %557, %560 : vector<8x8xf32>
    %562 = math.exp %561 : vector<8x8xf32>
    %cst_152 = arith.constant dense<0.000000e+00> : vector<8xf32>
    %563 = vector.multi_reduction <add>, %562, %cst_152 [1] : vector<8x8xf32> to vector<8xf32>
    %564 = vector.shape_cast %563 : vector<8xf32> to vector<8x1xf32>
    %565 = tpu.reciprocal %564 {approx = true} : vector<8x1xf32> -> vector<8x1xf32>
    %566 = vector.broadcast %565 : vector<8x1xf32> to vector<8x8xf32>
    %567 = arith.mulf %562, %566 : vector<8x8xf32>
    %568 = vector.extract_strided_slice %473 {offsets = [0, 20], sizes = [8, 4], strides = [1, 1]} : vector<8x32xf32> to vector<8x4xf32>
    %cst_153 = arith.constant dense<0.000000e+00> : vector<8x4xf32>
    %569 = tpu.matmul %567, %568, %cst_153 {dimension_numbers = #tpu.dot_dimension_numbers<[1], [0], [0], [1], [0, 0, 1, 1], [], []>} : vector<8x8xf32>, vector<8x4xf32>, vector<8x4xf32> -> vector<8x4xf32>
    %570 = vector.extract_strided_slice %471 {offsets = [0, 24], sizes = [8, 4], strides = [1, 1]} : vector<8x32xf32> to vector<8x4xf32>
    %571 = vector.extract_strided_slice %472 {offsets = [0, 24], sizes = [8, 4], strides = [1, 1]} : vector<8x32xf32> to vector<8x4xf32>
    %572 = tpu.transpose %571, [1, 0] : vector<8x4xf32> -> vector<4x8xf32>
    %cst_154 = arith.constant dense<0.000000e+00> : vector<8x8xf32>
    %573 = tpu.matmul %570, %572, %cst_154 {dimension_numbers = #tpu.dot_dimension_numbers<[1], [0], [0], [1], [0, 0, 1, 1], [], []>} : vector<8x4xf32>, vector<4x8xf32>, vector<8x8xf32> -> vector<8x8xf32>
    %cst_155 = arith.constant dense<0xFF800000> : vector<8xf32>
    %574 = vector.multi_reduction <maximumf>, %573, %cst_155 [1] : vector<8x8xf32> to vector<8xf32>
    %575 = vector.shape_cast %574 : vector<8xf32> to vector<8x1xf32>
    %576 = vector.broadcast %575 : vector<8x1xf32> to vector<8x8xf32>
    %577 = arith.subf %573, %576 : vector<8x8xf32>
    %578 = math.exp %577 : vector<8x8xf32>
    %cst_156 = arith.constant dense<0.000000e+00> : vector<8xf32>
    %579 = vector.multi_reduction <add>, %578, %cst_156 [1] : vector<8x8xf32> to vector<8xf32>
    %580 = vector.shape_cast %579 : vector<8xf32> to vector<8x1xf32>
    %581 = tpu.reciprocal %580 {approx = true} : vector<8x1xf32> -> vector<8x1xf32>
    %582 = vector.broadcast %581 : vector<8x1xf32> to vector<8x8xf32>
    %583 = arith.mulf %578, %582 : vector<8x8xf32>
    %584 = vector.extract_strided_slice %473 {offsets = [0, 24], sizes = [8, 4], strides = [1, 1]} : vector<8x32xf32> to vector<8x4xf32>
    %cst_157 = arith.constant dense<0.000000e+00> : vector<8x4xf32>
    %585 = tpu.matmul %583, %584, %cst_157 {dimension_numbers = #tpu.dot_dimension_numbers<[1], [0], [0], [1], [0, 0, 1, 1], [], []>} : vector<8x8xf32>, vector<8x4xf32>, vector<8x4xf32> -> vector<8x4xf32>
    %586 = vector.extract_strided_slice %471 {offsets = [0, 28], sizes = [8, 4], strides = [1, 1]} : vector<8x32xf32> to vector<8x4xf32>
    %587 = vector.extract_strided_slice %472 {offsets = [0, 28], sizes = [8, 4], strides = [1, 1]} : vector<8x32xf32> to vector<8x4xf32>
    %588 = tpu.transpose %587, [1, 0] : vector<8x4xf32> -> vector<4x8xf32>
    %cst_158 = arith.constant dense<0.000000e+00> : vector<8x8xf32>
    %589 = tpu.matmul %586, %588, %cst_158 {dimension_numbers = #tpu.dot_dimension_numbers<[1], [0], [0], [1], [0, 0, 1, 1], [], []>} : vector<8x4xf32>, vector<4x8xf32>, vector<8x8xf32> -> vector<8x8xf32>
    %cst_159 = arith.constant dense<0xFF800000> : vector<8xf32>
    %590 = vector.multi_reduction <maximumf>, %589, %cst_159 [1] : vector<8x8xf32> to vector<8xf32>
    %591 = vector.shape_cast %590 : vector<8xf32> to vector<8x1xf32>
    %592 = vector.broadcast %591 : vector<8x1xf32> to vector<8x8xf32>
    %593 = arith.subf %589, %592 : vector<8x8xf32>
    %594 = math.exp %593 : vector<8x8xf32>
    %cst_160 = arith.constant dense<0.000000e+00> : vector<8xf32>
    %595 = vector.multi_reduction <add>, %594, %cst_160 [1] : vector<8x8xf32> to vector<8xf32>
    %596 = vector.shape_cast %595 : vector<8xf32> to vector<8x1xf32>
    %597 = tpu.reciprocal %596 {approx = true} : vector<8x1xf32> -> vector<8x1xf32>
    %598 = vector.broadcast %597 : vector<8x1xf32> to vector<8x8xf32>
    %599 = arith.mulf %594, %598 : vector<8x8xf32>
    %600 = vector.extract_strided_slice %473 {offsets = [0, 28], sizes = [8, 4], strides = [1, 1]} : vector<8x32xf32> to vector<8x4xf32>
    %cst_161 = arith.constant dense<0.000000e+00> : vector<8x4xf32>
    %601 = tpu.matmul %599, %600, %cst_161 {dimension_numbers = #tpu.dot_dimension_numbers<[1], [0], [0], [1], [0, 0, 1, 1], [], []>} : vector<8x8xf32>, vector<8x4xf32>, vector<8x4xf32> -> vector<8x4xf32>
    %602 = tpu.concatenate %489, %505, %521, %537, %553, %569, %585, %601 in 1 : vector<8x4xf32>, vector<8x4xf32>, vector<8x4xf32>, vector<8x4xf32>, vector<8x4xf32>, vector<8x4xf32>, vector<8x4xf32>, vector<8x4xf32> -> vector<8x32xf32>
    %603 = tpu.concatenate %470, %602 in 0 : vector<8x32xf32>, vector<8x32xf32> -> vector<16x32xf32>
    %cst_162 = arith.constant dense<0.000000e+00> : vector<16x32xf32>
    %604 = tpu.matmul %603, %328, %cst_162 {dimension_numbers = #tpu.dot_dimension_numbers<[1], [0], [0], [1], [0, 0, 1, 1], [], []>} : vector<16x32xf32>, vector<32x32xf32>, vector<16x32xf32> -> vector<16x32xf32>
    %605 = vector.broadcast %329 : vector<1x32xf32> to vector<16x32xf32>
    %606 = arith.addf %604, %605 : vector<16x32xf32>
    %607 = arith.addf %317, %606 : vector<16x32xf32>
    %608 = vector.extract_strided_slice %3 {offsets = [11, 0], sizes = [1, 32], strides = [1, 1]} : vector<16x64xf32> to vector<1x32xf32>
    %609 = vector.extract_strided_slice %3 {offsets = [12, 0], sizes = [1, 32], strides = [1, 1]} : vector<16x64xf32> to vector<1x32xf32>
    %cst_163 = arith.constant dense<0.000000e+00> : vector<16xf32>
    %610 = vector.multi_reduction <add>, %607, %cst_163 [1] : vector<16x32xf32> to vector<16xf32>
    %611 = vector.shape_cast %610 : vector<16xf32> to vector<16x1xf32>
    %cst_164 = arith.constant 3.200000e+01 : f32
    %612 = vector.broadcast %cst_164 : f32 to vector<16x1xf32>
    %613 = arith.divf %611, %612 : vector<16x1xf32>
    %614 = vector.broadcast %613 : vector<16x1xf32> to vector<16x32xf32>
    %615 = arith.subf %607, %614 : vector<16x32xf32>
    %616 = arith.mulf %615, %615 : vector<16x32xf32>
    %cst_165 = arith.constant dense<0.000000e+00> : vector<16xf32>
    %617 = vector.multi_reduction <add>, %616, %cst_165 [1] : vector<16x32xf32> to vector<16xf32>
    %618 = vector.shape_cast %617 : vector<16xf32> to vector<16x1xf32>
    %cst_166 = arith.constant 3.200000e+01 : f32
    %619 = vector.broadcast %cst_166 : f32 to vector<16x1xf32>
    %620 = arith.divf %618, %619 : vector<16x1xf32>
    %621 = vector.broadcast %613 : vector<16x1xf32> to vector<16x32xf32>
    %622 = arith.subf %607, %621 : vector<16x32xf32>
    %cst_167 = arith.constant 9.99999974E-6 : f32
    %623 = vector.broadcast %cst_167 : f32 to vector<16x1xf32>
    %624 = arith.addf %620, %623 : vector<16x1xf32>
    %625 = math.rsqrt %624 : vector<16x1xf32>
    %626 = vector.broadcast %625 : vector<16x1xf32> to vector<16x32xf32>
    %627 = arith.mulf %622, %626 : vector<16x32xf32>
    %628 = vector.broadcast %608 : vector<1x32xf32> to vector<16x32xf32>
    %629 = arith.mulf %627, %628 : vector<16x32xf32>
    %630 = vector.broadcast %609 : vector<1x32xf32> to vector<16x32xf32>
    %631 = arith.addf %629, %630 : vector<16x32xf32>
    %c0_168 = arith.constant 0 : index
    %c0_169 = arith.constant 0 : index
    %c0_170 = arith.constant 0 : index
    %632 = vector.load %arg3[%c0_168, %c0_169, %c0_170] : memref<2x32x64xf32, #tpu.memory_space<vmem>>, vector<1x32x64xf32>
    %633 = vector.shape_cast %632 : vector<1x32x64xf32> to vector<32x64xf32>
    %cst_171 = arith.constant dense<0.000000e+00> : vector<16x64xf32>
    %634 = tpu.matmul %631, %633, %cst_171 {dimension_numbers = #tpu.dot_dimension_numbers<[1], [0], [0], [1], [0, 0, 1, 1], [], []>} : vector<16x32xf32>, vector<32x64xf32>, vector<16x64xf32> -> vector<16x64xf32>
    %635 = vector.extract_strided_slice %3 {offsets = [15, 0], sizes = [1, 64], strides = [1, 1]} : vector<16x64xf32> to vector<1x64xf32>
    %636 = vector.broadcast %635 : vector<1x64xf32> to vector<16x64xf32>
    %637 = arith.addf %634, %636 : vector<16x64xf32>
    %cst_172 = arith.constant 0.000000e+00 : f32
    %638 = vector.broadcast %cst_172 : f32 to vector<16x64xf32>
    %639 = arith.maximumf %637, %638 : vector<16x64xf32>
    %c0_173 = arith.constant 0 : index
    %c0_174 = arith.constant 0 : index
    %c0_175 = arith.constant 0 : index
    %640 = vector.load %arg4[%c0_173, %c0_174, %c0_175] : memref<2x64x32xf32, #tpu.memory_space<vmem>>, vector<1x64x32xf32>
    %641 = vector.shape_cast %640 : vector<1x64x32xf32> to vector<64x32xf32>
    %cst_176 = arith.constant dense<0.000000e+00> : vector<16x32xf32>
    %642 = tpu.matmul %639, %641, %cst_176 {dimension_numbers = #tpu.dot_dimension_numbers<[1], [0], [0], [1], [0, 0, 1, 1], [], []>} : vector<16x64xf32>, vector<64x32xf32>, vector<16x32xf32> -> vector<16x32xf32>
    %643 = vector.extract_strided_slice %3 {offsets = [8, 0], sizes = [1, 32], strides = [1, 1]} : vector<16x64xf32> to vector<1x32xf32>
    %644 = vector.broadcast %643 : vector<1x32xf32> to vector<16x32xf32>
    %645 = arith.addf %642, %644 : vector<16x32xf32>
    %646 = arith.addf %631, %645 : vector<16x32xf32>
    %647 = vector.extract_strided_slice %3 {offsets = [13, 0], sizes = [1, 32], strides = [1, 1]} : vector<16x64xf32> to vector<1x32xf32>
    %648 = vector.extract_strided_slice %3 {offsets = [14, 0], sizes = [1, 32], strides = [1, 1]} : vector<16x64xf32> to vector<1x32xf32>
    %cst_177 = arith.constant dense<0.000000e+00> : vector<16xf32>
    %649 = vector.multi_reduction <add>, %646, %cst_177 [1] : vector<16x32xf32> to vector<16xf32>
    %650 = vector.shape_cast %649 : vector<16xf32> to vector<16x1xf32>
    %cst_178 = arith.constant 3.200000e+01 : f32
    %651 = vector.broadcast %cst_178 : f32 to vector<16x1xf32>
    %652 = arith.divf %650, %651 : vector<16x1xf32>
    %653 = vector.broadcast %652 : vector<16x1xf32> to vector<16x32xf32>
    %654 = arith.subf %646, %653 : vector<16x32xf32>
    %655 = arith.mulf %654, %654 : vector<16x32xf32>
    %cst_179 = arith.constant dense<0.000000e+00> : vector<16xf32>
    %656 = vector.multi_reduction <add>, %655, %cst_179 [1] : vector<16x32xf32> to vector<16xf32>
    %657 = vector.shape_cast %656 : vector<16xf32> to vector<16x1xf32>
    %cst_180 = arith.constant 3.200000e+01 : f32
    %658 = vector.broadcast %cst_180 : f32 to vector<16x1xf32>
    %659 = arith.divf %657, %658 : vector<16x1xf32>
    %660 = vector.broadcast %652 : vector<16x1xf32> to vector<16x32xf32>
    %661 = arith.subf %646, %660 : vector<16x32xf32>
    %cst_181 = arith.constant 9.99999974E-6 : f32
    %662 = vector.broadcast %cst_181 : f32 to vector<16x1xf32>
    %663 = arith.addf %659, %662 : vector<16x1xf32>
    %664 = math.rsqrt %663 : vector<16x1xf32>
    %665 = vector.broadcast %664 : vector<16x1xf32> to vector<16x32xf32>
    %666 = arith.mulf %661, %665 : vector<16x32xf32>
    %667 = vector.broadcast %647 : vector<1x32xf32> to vector<16x32xf32>
    %668 = arith.mulf %666, %667 : vector<16x32xf32>
    %669 = vector.broadcast %648 : vector<1x32xf32> to vector<16x32xf32>
    %670 = arith.addf %668, %669 : vector<16x32xf32>
    %c1_182 = arith.constant 1 : index
    %c0_183 = arith.constant 0 : index
    %c0_184 = arith.constant 0 : index
    %671 = vector.load %arg5[%c1_182, %c0_183, %c0_184] : memref<2x16x64xf32, #tpu.memory_space<vmem>>, vector<1x16x64xf32>
    %672 = vector.shape_cast %671 : vector<1x16x64xf32> to vector<16x64xf32>
    %c8 = arith.constant 8 : index
    %c0_185 = arith.constant 0 : index
    %c0_186 = arith.constant 0 : index
    %673 = vector.load %arg2[%c8, %c0_185, %c0_186] : memref<16x32x32xf32, #tpu.memory_space<vmem>>, vector<1x32x32xf32>
    %674 = vector.shape_cast %673 : vector<1x32x32xf32> to vector<32x32xf32>
    %675 = vector.extract_strided_slice %672 {offsets = [0, 0], sizes = [1, 32], strides = [1, 1]} : vector<16x64xf32> to vector<1x32xf32>
    %c9 = arith.constant 9 : index
    %c0_187 = arith.constant 0 : index
    %c0_188 = arith.constant 0 : index
    %676 = vector.load %arg2[%c9, %c0_187, %c0_188] : memref<16x32x32xf32, #tpu.memory_space<vmem>>, vector<1x32x32xf32>
    %677 = vector.shape_cast %676 : vector<1x32x32xf32> to vector<32x32xf32>
    %678 = vector.extract_strided_slice %672 {offsets = [1, 0], sizes = [1, 32], strides = [1, 1]} : vector<16x64xf32> to vector<1x32xf32>
    %c10 = arith.constant 10 : index
    %c0_189 = arith.constant 0 : index
    %c0_190 = arith.constant 0 : index
    %679 = vector.load %arg2[%c10, %c0_189, %c0_190] : memref<16x32x32xf32, #tpu.memory_space<vmem>>, vector<1x32x32xf32>
    %680 = vector.shape_cast %679 : vector<1x32x32xf32> to vector<32x32xf32>
    %681 = vector.extract_strided_slice %672 {offsets = [2, 0], sizes = [1, 32], strides = [1, 1]} : vector<16x64xf32> to vector<1x32xf32>
    %c11 = arith.constant 11 : index
    %c0_191 = arith.constant 0 : index
    %c0_192 = arith.constant 0 : index
    %682 = vector.load %arg2[%c11, %c0_191, %c0_192] : memref<16x32x32xf32, #tpu.memory_space<vmem>>, vector<1x32x32xf32>
    %683 = vector.shape_cast %682 : vector<1x32x32xf32> to vector<32x32xf32>
    %684 = vector.extract_strided_slice %672 {offsets = [3, 0], sizes = [1, 32], strides = [1, 1]} : vector<16x64xf32> to vector<1x32xf32>
    %cst_193 = arith.constant dense<0.000000e+00> : vector<16x32xf32>
    %685 = tpu.matmul %670, %674, %cst_193 {dimension_numbers = #tpu.dot_dimension_numbers<[1], [0], [0], [1], [0, 0, 1, 1], [], []>} : vector<16x32xf32>, vector<32x32xf32>, vector<16x32xf32> -> vector<16x32xf32>
    %686 = vector.broadcast %675 : vector<1x32xf32> to vector<16x32xf32>
    %687 = arith.addf %685, %686 : vector<16x32xf32>
    %cst_194 = arith.constant dense<0.000000e+00> : vector<16x32xf32>
    %688 = tpu.matmul %670, %677, %cst_194 {dimension_numbers = #tpu.dot_dimension_numbers<[1], [0], [0], [1], [0, 0, 1, 1], [], []>} : vector<16x32xf32>, vector<32x32xf32>, vector<16x32xf32> -> vector<16x32xf32>
    %689 = vector.broadcast %678 : vector<1x32xf32> to vector<16x32xf32>
    %690 = arith.addf %688, %689 : vector<16x32xf32>
    %cst_195 = arith.constant dense<0.000000e+00> : vector<16x32xf32>
    %691 = tpu.matmul %670, %680, %cst_195 {dimension_numbers = #tpu.dot_dimension_numbers<[1], [0], [0], [1], [0, 0, 1, 1], [], []>} : vector<16x32xf32>, vector<32x32xf32>, vector<16x32xf32> -> vector<16x32xf32>
    %692 = vector.broadcast %681 : vector<1x32xf32> to vector<16x32xf32>
    %693 = arith.addf %691, %692 : vector<16x32xf32>
    %694 = vector.extract_strided_slice %687 {offsets = [0, 0], sizes = [8, 32], strides = [1, 1]} : vector<16x32xf32> to vector<8x32xf32>
    %695 = vector.extract_strided_slice %690 {offsets = [0, 0], sizes = [8, 32], strides = [1, 1]} : vector<16x32xf32> to vector<8x32xf32>
    %696 = vector.extract_strided_slice %693 {offsets = [0, 0], sizes = [8, 32], strides = [1, 1]} : vector<16x32xf32> to vector<8x32xf32>
    %697 = vector.extract_strided_slice %694 {offsets = [0, 0], sizes = [8, 4], strides = [1, 1]} : vector<8x32xf32> to vector<8x4xf32>
    %698 = vector.extract_strided_slice %695 {offsets = [0, 0], sizes = [8, 4], strides = [1, 1]} : vector<8x32xf32> to vector<8x4xf32>
    %699 = tpu.transpose %698, [1, 0] : vector<8x4xf32> -> vector<4x8xf32>
    %cst_196 = arith.constant dense<0.000000e+00> : vector<8x8xf32>
    %700 = tpu.matmul %697, %699, %cst_196 {dimension_numbers = #tpu.dot_dimension_numbers<[1], [0], [0], [1], [0, 0, 1, 1], [], []>} : vector<8x4xf32>, vector<4x8xf32>, vector<8x8xf32> -> vector<8x8xf32>
    %cst_197 = arith.constant dense<0xFF800000> : vector<8xf32>
    %701 = vector.multi_reduction <maximumf>, %700, %cst_197 [1] : vector<8x8xf32> to vector<8xf32>
    %702 = vector.shape_cast %701 : vector<8xf32> to vector<8x1xf32>
    %703 = vector.broadcast %702 : vector<8x1xf32> to vector<8x8xf32>
    %704 = arith.subf %700, %703 : vector<8x8xf32>
    %705 = math.exp %704 : vector<8x8xf32>
    %cst_198 = arith.constant dense<0.000000e+00> : vector<8xf32>
    %706 = vector.multi_reduction <add>, %705, %cst_198 [1] : vector<8x8xf32> to vector<8xf32>
    %707 = vector.shape_cast %706 : vector<8xf32> to vector<8x1xf32>
    %708 = tpu.reciprocal %707 {approx = true} : vector<8x1xf32> -> vector<8x1xf32>
    %709 = vector.broadcast %708 : vector<8x1xf32> to vector<8x8xf32>
    %710 = arith.mulf %705, %709 : vector<8x8xf32>
    %711 = vector.extract_strided_slice %696 {offsets = [0, 0], sizes = [8, 4], strides = [1, 1]} : vector<8x32xf32> to vector<8x4xf32>
    %cst_199 = arith.constant dense<0.000000e+00> : vector<8x4xf32>
    %712 = tpu.matmul %710, %711, %cst_199 {dimension_numbers = #tpu.dot_dimension_numbers<[1], [0], [0], [1], [0, 0, 1, 1], [], []>} : vector<8x8xf32>, vector<8x4xf32>, vector<8x4xf32> -> vector<8x4xf32>
    %713 = vector.extract_strided_slice %694 {offsets = [0, 4], sizes = [8, 4], strides = [1, 1]} : vector<8x32xf32> to vector<8x4xf32>
    %714 = vector.extract_strided_slice %695 {offsets = [0, 4], sizes = [8, 4], strides = [1, 1]} : vector<8x32xf32> to vector<8x4xf32>
    %715 = tpu.transpose %714, [1, 0] : vector<8x4xf32> -> vector<4x8xf32>
    %cst_200 = arith.constant dense<0.000000e+00> : vector<8x8xf32>
    %716 = tpu.matmul %713, %715, %cst_200 {dimension_numbers = #tpu.dot_dimension_numbers<[1], [0], [0], [1], [0, 0, 1, 1], [], []>} : vector<8x4xf32>, vector<4x8xf32>, vector<8x8xf32> -> vector<8x8xf32>
    %cst_201 = arith.constant dense<0xFF800000> : vector<8xf32>
    %717 = vector.multi_reduction <maximumf>, %716, %cst_201 [1] : vector<8x8xf32> to vector<8xf32>
    %718 = vector.shape_cast %717 : vector<8xf32> to vector<8x1xf32>
    %719 = vector.broadcast %718 : vector<8x1xf32> to vector<8x8xf32>
    %720 = arith.subf %716, %719 : vector<8x8xf32>
    %721 = math.exp %720 : vector<8x8xf32>
    %cst_202 = arith.constant dense<0.000000e+00> : vector<8xf32>
    %722 = vector.multi_reduction <add>, %721, %cst_202 [1] : vector<8x8xf32> to vector<8xf32>
    %723 = vector.shape_cast %722 : vector<8xf32> to vector<8x1xf32>
    %724 = tpu.reciprocal %723 {approx = true} : vector<8x1xf32> -> vector<8x1xf32>
    %725 = vector.broadcast %724 : vector<8x1xf32> to vector<8x8xf32>
    %726 = arith.mulf %721, %725 : vector<8x8xf32>
    %727 = vector.extract_strided_slice %696 {offsets = [0, 4], sizes = [8, 4], strides = [1, 1]} : vector<8x32xf32> to vector<8x4xf32>
    %cst_203 = arith.constant dense<0.000000e+00> : vector<8x4xf32>
    %728 = tpu.matmul %726, %727, %cst_203 {dimension_numbers = #tpu.dot_dimension_numbers<[1], [0], [0], [1], [0, 0, 1, 1], [], []>} : vector<8x8xf32>, vector<8x4xf32>, vector<8x4xf32> -> vector<8x4xf32>
    %729 = vector.extract_strided_slice %694 {offsets = [0, 8], sizes = [8, 4], strides = [1, 1]} : vector<8x32xf32> to vector<8x4xf32>
    %730 = vector.extract_strided_slice %695 {offsets = [0, 8], sizes = [8, 4], strides = [1, 1]} : vector<8x32xf32> to vector<8x4xf32>
    %731 = tpu.transpose %730, [1, 0] : vector<8x4xf32> -> vector<4x8xf32>
    %cst_204 = arith.constant dense<0.000000e+00> : vector<8x8xf32>
    %732 = tpu.matmul %729, %731, %cst_204 {dimension_numbers = #tpu.dot_dimension_numbers<[1], [0], [0], [1], [0, 0, 1, 1], [], []>} : vector<8x4xf32>, vector<4x8xf32>, vector<8x8xf32> -> vector<8x8xf32>
    %cst_205 = arith.constant dense<0xFF800000> : vector<8xf32>
    %733 = vector.multi_reduction <maximumf>, %732, %cst_205 [1] : vector<8x8xf32> to vector<8xf32>
    %734 = vector.shape_cast %733 : vector<8xf32> to vector<8x1xf32>
    %735 = vector.broadcast %734 : vector<8x1xf32> to vector<8x8xf32>
    %736 = arith.subf %732, %735 : vector<8x8xf32>
    %737 = math.exp %736 : vector<8x8xf32>
    %cst_206 = arith.constant dense<0.000000e+00> : vector<8xf32>
    %738 = vector.multi_reduction <add>, %737, %cst_206 [1] : vector<8x8xf32> to vector<8xf32>
    %739 = vector.shape_cast %738 : vector<8xf32> to vector<8x1xf32>
    %740 = tpu.reciprocal %739 {approx = true} : vector<8x1xf32> -> vector<8x1xf32>
    %741 = vector.broadcast %740 : vector<8x1xf32> to vector<8x8xf32>
    %742 = arith.mulf %737, %741 : vector<8x8xf32>
    %743 = vector.extract_strided_slice %696 {offsets = [0, 8], sizes = [8, 4], strides = [1, 1]} : vector<8x32xf32> to vector<8x4xf32>
    %cst_207 = arith.constant dense<0.000000e+00> : vector<8x4xf32>
    %744 = tpu.matmul %742, %743, %cst_207 {dimension_numbers = #tpu.dot_dimension_numbers<[1], [0], [0], [1], [0, 0, 1, 1], [], []>} : vector<8x8xf32>, vector<8x4xf32>, vector<8x4xf32> -> vector<8x4xf32>
    %745 = vector.extract_strided_slice %694 {offsets = [0, 12], sizes = [8, 4], strides = [1, 1]} : vector<8x32xf32> to vector<8x4xf32>
    %746 = vector.extract_strided_slice %695 {offsets = [0, 12], sizes = [8, 4], strides = [1, 1]} : vector<8x32xf32> to vector<8x4xf32>
    %747 = tpu.transpose %746, [1, 0] : vector<8x4xf32> -> vector<4x8xf32>
    %cst_208 = arith.constant dense<0.000000e+00> : vector<8x8xf32>
    %748 = tpu.matmul %745, %747, %cst_208 {dimension_numbers = #tpu.dot_dimension_numbers<[1], [0], [0], [1], [0, 0, 1, 1], [], []>} : vector<8x4xf32>, vector<4x8xf32>, vector<8x8xf32> -> vector<8x8xf32>
    %cst_209 = arith.constant dense<0xFF800000> : vector<8xf32>
    %749 = vector.multi_reduction <maximumf>, %748, %cst_209 [1] : vector<8x8xf32> to vector<8xf32>
    %750 = vector.shape_cast %749 : vector<8xf32> to vector<8x1xf32>
    %751 = vector.broadcast %750 : vector<8x1xf32> to vector<8x8xf32>
    %752 = arith.subf %748, %751 : vector<8x8xf32>
    %753 = math.exp %752 : vector<8x8xf32>
    %cst_210 = arith.constant dense<0.000000e+00> : vector<8xf32>
    %754 = vector.multi_reduction <add>, %753, %cst_210 [1] : vector<8x8xf32> to vector<8xf32>
    %755 = vector.shape_cast %754 : vector<8xf32> to vector<8x1xf32>
    %756 = tpu.reciprocal %755 {approx = true} : vector<8x1xf32> -> vector<8x1xf32>
    %757 = vector.broadcast %756 : vector<8x1xf32> to vector<8x8xf32>
    %758 = arith.mulf %753, %757 : vector<8x8xf32>
    %759 = vector.extract_strided_slice %696 {offsets = [0, 12], sizes = [8, 4], strides = [1, 1]} : vector<8x32xf32> to vector<8x4xf32>
    %cst_211 = arith.constant dense<0.000000e+00> : vector<8x4xf32>
    %760 = tpu.matmul %758, %759, %cst_211 {dimension_numbers = #tpu.dot_dimension_numbers<[1], [0], [0], [1], [0, 0, 1, 1], [], []>} : vector<8x8xf32>, vector<8x4xf32>, vector<8x4xf32> -> vector<8x4xf32>
    %761 = vector.extract_strided_slice %694 {offsets = [0, 16], sizes = [8, 4], strides = [1, 1]} : vector<8x32xf32> to vector<8x4xf32>
    %762 = vector.extract_strided_slice %695 {offsets = [0, 16], sizes = [8, 4], strides = [1, 1]} : vector<8x32xf32> to vector<8x4xf32>
    %763 = tpu.transpose %762, [1, 0] : vector<8x4xf32> -> vector<4x8xf32>
    %cst_212 = arith.constant dense<0.000000e+00> : vector<8x8xf32>
    %764 = tpu.matmul %761, %763, %cst_212 {dimension_numbers = #tpu.dot_dimension_numbers<[1], [0], [0], [1], [0, 0, 1, 1], [], []>} : vector<8x4xf32>, vector<4x8xf32>, vector<8x8xf32> -> vector<8x8xf32>
    %cst_213 = arith.constant dense<0xFF800000> : vector<8xf32>
    %765 = vector.multi_reduction <maximumf>, %764, %cst_213 [1] : vector<8x8xf32> to vector<8xf32>
    %766 = vector.shape_cast %765 : vector<8xf32> to vector<8x1xf32>
    %767 = vector.broadcast %766 : vector<8x1xf32> to vector<8x8xf32>
    %768 = arith.subf %764, %767 : vector<8x8xf32>
    %769 = math.exp %768 : vector<8x8xf32>
    %cst_214 = arith.constant dense<0.000000e+00> : vector<8xf32>
    %770 = vector.multi_reduction <add>, %769, %cst_214 [1] : vector<8x8xf32> to vector<8xf32>
    %771 = vector.shape_cast %770 : vector<8xf32> to vector<8x1xf32>
    %772 = tpu.reciprocal %771 {approx = true} : vector<8x1xf32> -> vector<8x1xf32>
    %773 = vector.broadcast %772 : vector<8x1xf32> to vector<8x8xf32>
    %774 = arith.mulf %769, %773 : vector<8x8xf32>
    %775 = vector.extract_strided_slice %696 {offsets = [0, 16], sizes = [8, 4], strides = [1, 1]} : vector<8x32xf32> to vector<8x4xf32>
    %cst_215 = arith.constant dense<0.000000e+00> : vector<8x4xf32>
    %776 = tpu.matmul %774, %775, %cst_215 {dimension_numbers = #tpu.dot_dimension_numbers<[1], [0], [0], [1], [0, 0, 1, 1], [], []>} : vector<8x8xf32>, vector<8x4xf32>, vector<8x4xf32> -> vector<8x4xf32>
    %777 = vector.extract_strided_slice %694 {offsets = [0, 20], sizes = [8, 4], strides = [1, 1]} : vector<8x32xf32> to vector<8x4xf32>
    %778 = vector.extract_strided_slice %695 {offsets = [0, 20], sizes = [8, 4], strides = [1, 1]} : vector<8x32xf32> to vector<8x4xf32>
    %779 = tpu.transpose %778, [1, 0] : vector<8x4xf32> -> vector<4x8xf32>
    %cst_216 = arith.constant dense<0.000000e+00> : vector<8x8xf32>
    %780 = tpu.matmul %777, %779, %cst_216 {dimension_numbers = #tpu.dot_dimension_numbers<[1], [0], [0], [1], [0, 0, 1, 1], [], []>} : vector<8x4xf32>, vector<4x8xf32>, vector<8x8xf32> -> vector<8x8xf32>
    %cst_217 = arith.constant dense<0xFF800000> : vector<8xf32>
    %781 = vector.multi_reduction <maximumf>, %780, %cst_217 [1] : vector<8x8xf32> to vector<8xf32>
    %782 = vector.shape_cast %781 : vector<8xf32> to vector<8x1xf32>
    %783 = vector.broadcast %782 : vector<8x1xf32> to vector<8x8xf32>
    %784 = arith.subf %780, %783 : vector<8x8xf32>
    %785 = math.exp %784 : vector<8x8xf32>
    %cst_218 = arith.constant dense<0.000000e+00> : vector<8xf32>
    %786 = vector.multi_reduction <add>, %785, %cst_218 [1] : vector<8x8xf32> to vector<8xf32>
    %787 = vector.shape_cast %786 : vector<8xf32> to vector<8x1xf32>
    %788 = tpu.reciprocal %787 {approx = true} : vector<8x1xf32> -> vector<8x1xf32>
    %789 = vector.broadcast %788 : vector<8x1xf32> to vector<8x8xf32>
    %790 = arith.mulf %785, %789 : vector<8x8xf32>
    %791 = vector.extract_strided_slice %696 {offsets = [0, 20], sizes = [8, 4], strides = [1, 1]} : vector<8x32xf32> to vector<8x4xf32>
    %cst_219 = arith.constant dense<0.000000e+00> : vector<8x4xf32>
    %792 = tpu.matmul %790, %791, %cst_219 {dimension_numbers = #tpu.dot_dimension_numbers<[1], [0], [0], [1], [0, 0, 1, 1], [], []>} : vector<8x8xf32>, vector<8x4xf32>, vector<8x4xf32> -> vector<8x4xf32>
    %793 = vector.extract_strided_slice %694 {offsets = [0, 24], sizes = [8, 4], strides = [1, 1]} : vector<8x32xf32> to vector<8x4xf32>
    %794 = vector.extract_strided_slice %695 {offsets = [0, 24], sizes = [8, 4], strides = [1, 1]} : vector<8x32xf32> to vector<8x4xf32>
    %795 = tpu.transpose %794, [1, 0] : vector<8x4xf32> -> vector<4x8xf32>
    %cst_220 = arith.constant dense<0.000000e+00> : vector<8x8xf32>
    %796 = tpu.matmul %793, %795, %cst_220 {dimension_numbers = #tpu.dot_dimension_numbers<[1], [0], [0], [1], [0, 0, 1, 1], [], []>} : vector<8x4xf32>, vector<4x8xf32>, vector<8x8xf32> -> vector<8x8xf32>
    %cst_221 = arith.constant dense<0xFF800000> : vector<8xf32>
    %797 = vector.multi_reduction <maximumf>, %796, %cst_221 [1] : vector<8x8xf32> to vector<8xf32>
    %798 = vector.shape_cast %797 : vector<8xf32> to vector<8x1xf32>
    %799 = vector.broadcast %798 : vector<8x1xf32> to vector<8x8xf32>
    %800 = arith.subf %796, %799 : vector<8x8xf32>
    %801 = math.exp %800 : vector<8x8xf32>
    %cst_222 = arith.constant dense<0.000000e+00> : vector<8xf32>
    %802 = vector.multi_reduction <add>, %801, %cst_222 [1] : vector<8x8xf32> to vector<8xf32>
    %803 = vector.shape_cast %802 : vector<8xf32> to vector<8x1xf32>
    %804 = tpu.reciprocal %803 {approx = true} : vector<8x1xf32> -> vector<8x1xf32>
    %805 = vector.broadcast %804 : vector<8x1xf32> to vector<8x8xf32>
    %806 = arith.mulf %801, %805 : vector<8x8xf32>
    %807 = vector.extract_strided_slice %696 {offsets = [0, 24], sizes = [8, 4], strides = [1, 1]} : vector<8x32xf32> to vector<8x4xf32>
    %cst_223 = arith.constant dense<0.000000e+00> : vector<8x4xf32>
    %808 = tpu.matmul %806, %807, %cst_223 {dimension_numbers = #tpu.dot_dimension_numbers<[1], [0], [0], [1], [0, 0, 1, 1], [], []>} : vector<8x8xf32>, vector<8x4xf32>, vector<8x4xf32> -> vector<8x4xf32>
    %809 = vector.extract_strided_slice %694 {offsets = [0, 28], sizes = [8, 4], strides = [1, 1]} : vector<8x32xf32> to vector<8x4xf32>
    %810 = vector.extract_strided_slice %695 {offsets = [0, 28], sizes = [8, 4], strides = [1, 1]} : vector<8x32xf32> to vector<8x4xf32>
    %811 = tpu.transpose %810, [1, 0] : vector<8x4xf32> -> vector<4x8xf32>
    %cst_224 = arith.constant dense<0.000000e+00> : vector<8x8xf32>
    %812 = tpu.matmul %809, %811, %cst_224 {dimension_numbers = #tpu.dot_dimension_numbers<[1], [0], [0], [1], [0, 0, 1, 1], [], []>} : vector<8x4xf32>, vector<4x8xf32>, vector<8x8xf32> -> vector<8x8xf32>
    %cst_225 = arith.constant dense<0xFF800000> : vector<8xf32>
    %813 = vector.multi_reduction <maximumf>, %812, %cst_225 [1] : vector<8x8xf32> to vector<8xf32>
    %814 = vector.shape_cast %813 : vector<8xf32> to vector<8x1xf32>
    %815 = vector.broadcast %814 : vector<8x1xf32> to vector<8x8xf32>
    %816 = arith.subf %812, %815 : vector<8x8xf32>
    %817 = math.exp %816 : vector<8x8xf32>
    %cst_226 = arith.constant dense<0.000000e+00> : vector<8xf32>
    %818 = vector.multi_reduction <add>, %817, %cst_226 [1] : vector<8x8xf32> to vector<8xf32>
    %819 = vector.shape_cast %818 : vector<8xf32> to vector<8x1xf32>
    %820 = tpu.reciprocal %819 {approx = true} : vector<8x1xf32> -> vector<8x1xf32>
    %821 = vector.broadcast %820 : vector<8x1xf32> to vector<8x8xf32>
    %822 = arith.mulf %817, %821 : vector<8x8xf32>
    %823 = vector.extract_strided_slice %696 {offsets = [0, 28], sizes = [8, 4], strides = [1, 1]} : vector<8x32xf32> to vector<8x4xf32>
    %cst_227 = arith.constant dense<0.000000e+00> : vector<8x4xf32>
    %824 = tpu.matmul %822, %823, %cst_227 {dimension_numbers = #tpu.dot_dimension_numbers<[1], [0], [0], [1], [0, 0, 1, 1], [], []>} : vector<8x8xf32>, vector<8x4xf32>, vector<8x4xf32> -> vector<8x4xf32>
    %825 = tpu.concatenate %712, %728, %744, %760, %776, %792, %808, %824 in 1 : vector<8x4xf32>, vector<8x4xf32>, vector<8x4xf32>, vector<8x4xf32>, vector<8x4xf32>, vector<8x4xf32>, vector<8x4xf32>, vector<8x4xf32> -> vector<8x32xf32>
    %826 = vector.extract_strided_slice %687 {offsets = [8, 0], sizes = [8, 32], strides = [1, 1]} : vector<16x32xf32> to vector<8x32xf32>
    %827 = vector.extract_strided_slice %690 {offsets = [8, 0], sizes = [8, 32], strides = [1, 1]} : vector<16x32xf32> to vector<8x32xf32>
    %828 = vector.extract_strided_slice %693 {offsets = [8, 0], sizes = [8, 32], strides = [1, 1]} : vector<16x32xf32> to vector<8x32xf32>
    %829 = vector.extract_strided_slice %826 {offsets = [0, 0], sizes = [8, 4], strides = [1, 1]} : vector<8x32xf32> to vector<8x4xf32>
    %830 = vector.extract_strided_slice %827 {offsets = [0, 0], sizes = [8, 4], strides = [1, 1]} : vector<8x32xf32> to vector<8x4xf32>
    %831 = tpu.transpose %830, [1, 0] : vector<8x4xf32> -> vector<4x8xf32>
    %cst_228 = arith.constant dense<0.000000e+00> : vector<8x8xf32>
    %832 = tpu.matmul %829, %831, %cst_228 {dimension_numbers = #tpu.dot_dimension_numbers<[1], [0], [0], [1], [0, 0, 1, 1], [], []>} : vector<8x4xf32>, vector<4x8xf32>, vector<8x8xf32> -> vector<8x8xf32>
    %cst_229 = arith.constant dense<0xFF800000> : vector<8xf32>
    %833 = vector.multi_reduction <maximumf>, %832, %cst_229 [1] : vector<8x8xf32> to vector<8xf32>
    %834 = vector.shape_cast %833 : vector<8xf32> to vector<8x1xf32>
    %835 = vector.broadcast %834 : vector<8x1xf32> to vector<8x8xf32>
    %836 = arith.subf %832, %835 : vector<8x8xf32>
    %837 = math.exp %836 : vector<8x8xf32>
    %cst_230 = arith.constant dense<0.000000e+00> : vector<8xf32>
    %838 = vector.multi_reduction <add>, %837, %cst_230 [1] : vector<8x8xf32> to vector<8xf32>
    %839 = vector.shape_cast %838 : vector<8xf32> to vector<8x1xf32>
    %840 = tpu.reciprocal %839 {approx = true} : vector<8x1xf32> -> vector<8x1xf32>
    %841 = vector.broadcast %840 : vector<8x1xf32> to vector<8x8xf32>
    %842 = arith.mulf %837, %841 : vector<8x8xf32>
    %843 = vector.extract_strided_slice %828 {offsets = [0, 0], sizes = [8, 4], strides = [1, 1]} : vector<8x32xf32> to vector<8x4xf32>
    %cst_231 = arith.constant dense<0.000000e+00> : vector<8x4xf32>
    %844 = tpu.matmul %842, %843, %cst_231 {dimension_numbers = #tpu.dot_dimension_numbers<[1], [0], [0], [1], [0, 0, 1, 1], [], []>} : vector<8x8xf32>, vector<8x4xf32>, vector<8x4xf32> -> vector<8x4xf32>
    %845 = vector.extract_strided_slice %826 {offsets = [0, 4], sizes = [8, 4], strides = [1, 1]} : vector<8x32xf32> to vector<8x4xf32>
    %846 = vector.extract_strided_slice %827 {offsets = [0, 4], sizes = [8, 4], strides = [1, 1]} : vector<8x32xf32> to vector<8x4xf32>
    %847 = tpu.transpose %846, [1, 0] : vector<8x4xf32> -> vector<4x8xf32>
    %cst_232 = arith.constant dense<0.000000e+00> : vector<8x8xf32>
    %848 = tpu.matmul %845, %847, %cst_232 {dimension_numbers = #tpu.dot_dimension_numbers<[1], [0], [0], [1], [0, 0, 1, 1], [], []>} : vector<8x4xf32>, vector<4x8xf32>, vector<8x8xf32> -> vector<8x8xf32>
    %cst_233 = arith.constant dense<0xFF800000> : vector<8xf32>
    %849 = vector.multi_reduction <maximumf>, %848, %cst_233 [1] : vector<8x8xf32> to vector<8xf32>
    %850 = vector.shape_cast %849 : vector<8xf32> to vector<8x1xf32>
    %851 = vector.broadcast %850 : vector<8x1xf32> to vector<8x8xf32>
    %852 = arith.subf %848, %851 : vector<8x8xf32>
    %853 = math.exp %852 : vector<8x8xf32>
    %cst_234 = arith.constant dense<0.000000e+00> : vector<8xf32>
    %854 = vector.multi_reduction <add>, %853, %cst_234 [1] : vector<8x8xf32> to vector<8xf32>
    %855 = vector.shape_cast %854 : vector<8xf32> to vector<8x1xf32>
    %856 = tpu.reciprocal %855 {approx = true} : vector<8x1xf32> -> vector<8x1xf32>
    %857 = vector.broadcast %856 : vector<8x1xf32> to vector<8x8xf32>
    %858 = arith.mulf %853, %857 : vector<8x8xf32>
    %859 = vector.extract_strided_slice %828 {offsets = [0, 4], sizes = [8, 4], strides = [1, 1]} : vector<8x32xf32> to vector<8x4xf32>
    %cst_235 = arith.constant dense<0.000000e+00> : vector<8x4xf32>
    %860 = tpu.matmul %858, %859, %cst_235 {dimension_numbers = #tpu.dot_dimension_numbers<[1], [0], [0], [1], [0, 0, 1, 1], [], []>} : vector<8x8xf32>, vector<8x4xf32>, vector<8x4xf32> -> vector<8x4xf32>
    %861 = vector.extract_strided_slice %826 {offsets = [0, 8], sizes = [8, 4], strides = [1, 1]} : vector<8x32xf32> to vector<8x4xf32>
    %862 = vector.extract_strided_slice %827 {offsets = [0, 8], sizes = [8, 4], strides = [1, 1]} : vector<8x32xf32> to vector<8x4xf32>
    %863 = tpu.transpose %862, [1, 0] : vector<8x4xf32> -> vector<4x8xf32>
    %cst_236 = arith.constant dense<0.000000e+00> : vector<8x8xf32>
    %864 = tpu.matmul %861, %863, %cst_236 {dimension_numbers = #tpu.dot_dimension_numbers<[1], [0], [0], [1], [0, 0, 1, 1], [], []>} : vector<8x4xf32>, vector<4x8xf32>, vector<8x8xf32> -> vector<8x8xf32>
    %cst_237 = arith.constant dense<0xFF800000> : vector<8xf32>
    %865 = vector.multi_reduction <maximumf>, %864, %cst_237 [1] : vector<8x8xf32> to vector<8xf32>
    %866 = vector.shape_cast %865 : vector<8xf32> to vector<8x1xf32>
    %867 = vector.broadcast %866 : vector<8x1xf32> to vector<8x8xf32>
    %868 = arith.subf %864, %867 : vector<8x8xf32>
    %869 = math.exp %868 : vector<8x8xf32>
    %cst_238 = arith.constant dense<0.000000e+00> : vector<8xf32>
    %870 = vector.multi_reduction <add>, %869, %cst_238 [1] : vector<8x8xf32> to vector<8xf32>
    %871 = vector.shape_cast %870 : vector<8xf32> to vector<8x1xf32>
    %872 = tpu.reciprocal %871 {approx = true} : vector<8x1xf32> -> vector<8x1xf32>
    %873 = vector.broadcast %872 : vector<8x1xf32> to vector<8x8xf32>
    %874 = arith.mulf %869, %873 : vector<8x8xf32>
    %875 = vector.extract_strided_slice %828 {offsets = [0, 8], sizes = [8, 4], strides = [1, 1]} : vector<8x32xf32> to vector<8x4xf32>
    %cst_239 = arith.constant dense<0.000000e+00> : vector<8x4xf32>
    %876 = tpu.matmul %874, %875, %cst_239 {dimension_numbers = #tpu.dot_dimension_numbers<[1], [0], [0], [1], [0, 0, 1, 1], [], []>} : vector<8x8xf32>, vector<8x4xf32>, vector<8x4xf32> -> vector<8x4xf32>
    %877 = vector.extract_strided_slice %826 {offsets = [0, 12], sizes = [8, 4], strides = [1, 1]} : vector<8x32xf32> to vector<8x4xf32>
    %878 = vector.extract_strided_slice %827 {offsets = [0, 12], sizes = [8, 4], strides = [1, 1]} : vector<8x32xf32> to vector<8x4xf32>
    %879 = tpu.transpose %878, [1, 0] : vector<8x4xf32> -> vector<4x8xf32>
    %cst_240 = arith.constant dense<0.000000e+00> : vector<8x8xf32>
    %880 = tpu.matmul %877, %879, %cst_240 {dimension_numbers = #tpu.dot_dimension_numbers<[1], [0], [0], [1], [0, 0, 1, 1], [], []>} : vector<8x4xf32>, vector<4x8xf32>, vector<8x8xf32> -> vector<8x8xf32>
    %cst_241 = arith.constant dense<0xFF800000> : vector<8xf32>
    %881 = vector.multi_reduction <maximumf>, %880, %cst_241 [1] : vector<8x8xf32> to vector<8xf32>
    %882 = vector.shape_cast %881 : vector<8xf32> to vector<8x1xf32>
    %883 = vector.broadcast %882 : vector<8x1xf32> to vector<8x8xf32>
    %884 = arith.subf %880, %883 : vector<8x8xf32>
    %885 = math.exp %884 : vector<8x8xf32>
    %cst_242 = arith.constant dense<0.000000e+00> : vector<8xf32>
    %886 = vector.multi_reduction <add>, %885, %cst_242 [1] : vector<8x8xf32> to vector<8xf32>
    %887 = vector.shape_cast %886 : vector<8xf32> to vector<8x1xf32>
    %888 = tpu.reciprocal %887 {approx = true} : vector<8x1xf32> -> vector<8x1xf32>
    %889 = vector.broadcast %888 : vector<8x1xf32> to vector<8x8xf32>
    %890 = arith.mulf %885, %889 : vector<8x8xf32>
    %891 = vector.extract_strided_slice %828 {offsets = [0, 12], sizes = [8, 4], strides = [1, 1]} : vector<8x32xf32> to vector<8x4xf32>
    %cst_243 = arith.constant dense<0.000000e+00> : vector<8x4xf32>
    %892 = tpu.matmul %890, %891, %cst_243 {dimension_numbers = #tpu.dot_dimension_numbers<[1], [0], [0], [1], [0, 0, 1, 1], [], []>} : vector<8x8xf32>, vector<8x4xf32>, vector<8x4xf32> -> vector<8x4xf32>
    %893 = vector.extract_strided_slice %826 {offsets = [0, 16], sizes = [8, 4], strides = [1, 1]} : vector<8x32xf32> to vector<8x4xf32>
    %894 = vector.extract_strided_slice %827 {offsets = [0, 16], sizes = [8, 4], strides = [1, 1]} : vector<8x32xf32> to vector<8x4xf32>
    %895 = tpu.transpose %894, [1, 0] : vector<8x4xf32> -> vector<4x8xf32>
    %cst_244 = arith.constant dense<0.000000e+00> : vector<8x8xf32>
    %896 = tpu.matmul %893, %895, %cst_244 {dimension_numbers = #tpu.dot_dimension_numbers<[1], [0], [0], [1], [0, 0, 1, 1], [], []>} : vector<8x4xf32>, vector<4x8xf32>, vector<8x8xf32> -> vector<8x8xf32>
    %cst_245 = arith.constant dense<0xFF800000> : vector<8xf32>
    %897 = vector.multi_reduction <maximumf>, %896, %cst_245 [1] : vector<8x8xf32> to vector<8xf32>
    %898 = vector.shape_cast %897 : vector<8xf32> to vector<8x1xf32>
    %899 = vector.broadcast %898 : vector<8x1xf32> to vector<8x8xf32>
    %900 = arith.subf %896, %899 : vector<8x8xf32>
    %901 = math.exp %900 : vector<8x8xf32>
    %cst_246 = arith.constant dense<0.000000e+00> : vector<8xf32>
    %902 = vector.multi_reduction <add>, %901, %cst_246 [1] : vector<8x8xf32> to vector<8xf32>
    %903 = vector.shape_cast %902 : vector<8xf32> to vector<8x1xf32>
    %904 = tpu.reciprocal %903 {approx = true} : vector<8x1xf32> -> vector<8x1xf32>
    %905 = vector.broadcast %904 : vector<8x1xf32> to vector<8x8xf32>
    %906 = arith.mulf %901, %905 : vector<8x8xf32>
    %907 = vector.extract_strided_slice %828 {offsets = [0, 16], sizes = [8, 4], strides = [1, 1]} : vector<8x32xf32> to vector<8x4xf32>
    %cst_247 = arith.constant dense<0.000000e+00> : vector<8x4xf32>
    %908 = tpu.matmul %906, %907, %cst_247 {dimension_numbers = #tpu.dot_dimension_numbers<[1], [0], [0], [1], [0, 0, 1, 1], [], []>} : vector<8x8xf32>, vector<8x4xf32>, vector<8x4xf32> -> vector<8x4xf32>
    %909 = vector.extract_strided_slice %826 {offsets = [0, 20], sizes = [8, 4], strides = [1, 1]} : vector<8x32xf32> to vector<8x4xf32>
    %910 = vector.extract_strided_slice %827 {offsets = [0, 20], sizes = [8, 4], strides = [1, 1]} : vector<8x32xf32> to vector<8x4xf32>
    %911 = tpu.transpose %910, [1, 0] : vector<8x4xf32> -> vector<4x8xf32>
    %cst_248 = arith.constant dense<0.000000e+00> : vector<8x8xf32>
    %912 = tpu.matmul %909, %911, %cst_248 {dimension_numbers = #tpu.dot_dimension_numbers<[1], [0], [0], [1], [0, 0, 1, 1], [], []>} : vector<8x4xf32>, vector<4x8xf32>, vector<8x8xf32> -> vector<8x8xf32>
    %cst_249 = arith.constant dense<0xFF800000> : vector<8xf32>
    %913 = vector.multi_reduction <maximumf>, %912, %cst_249 [1] : vector<8x8xf32> to vector<8xf32>
    %914 = vector.shape_cast %913 : vector<8xf32> to vector<8x1xf32>
    %915 = vector.broadcast %914 : vector<8x1xf32> to vector<8x8xf32>
    %916 = arith.subf %912, %915 : vector<8x8xf32>
    %917 = math.exp %916 : vector<8x8xf32>
    %cst_250 = arith.constant dense<0.000000e+00> : vector<8xf32>
    %918 = vector.multi_reduction <add>, %917, %cst_250 [1] : vector<8x8xf32> to vector<8xf32>
    %919 = vector.shape_cast %918 : vector<8xf32> to vector<8x1xf32>
    %920 = tpu.reciprocal %919 {approx = true} : vector<8x1xf32> -> vector<8x1xf32>
    %921 = vector.broadcast %920 : vector<8x1xf32> to vector<8x8xf32>
    %922 = arith.mulf %917, %921 : vector<8x8xf32>
    %923 = vector.extract_strided_slice %828 {offsets = [0, 20], sizes = [8, 4], strides = [1, 1]} : vector<8x32xf32> to vector<8x4xf32>
    %cst_251 = arith.constant dense<0.000000e+00> : vector<8x4xf32>
    %924 = tpu.matmul %922, %923, %cst_251 {dimension_numbers = #tpu.dot_dimension_numbers<[1], [0], [0], [1], [0, 0, 1, 1], [], []>} : vector<8x8xf32>, vector<8x4xf32>, vector<8x4xf32> -> vector<8x4xf32>
    %925 = vector.extract_strided_slice %826 {offsets = [0, 24], sizes = [8, 4], strides = [1, 1]} : vector<8x32xf32> to vector<8x4xf32>
    %926 = vector.extract_strided_slice %827 {offsets = [0, 24], sizes = [8, 4], strides = [1, 1]} : vector<8x32xf32> to vector<8x4xf32>
    %927 = tpu.transpose %926, [1, 0] : vector<8x4xf32> -> vector<4x8xf32>
    %cst_252 = arith.constant dense<0.000000e+00> : vector<8x8xf32>
    %928 = tpu.matmul %925, %927, %cst_252 {dimension_numbers = #tpu.dot_dimension_numbers<[1], [0], [0], [1], [0, 0, 1, 1], [], []>} : vector<8x4xf32>, vector<4x8xf32>, vector<8x8xf32> -> vector<8x8xf32>
    %cst_253 = arith.constant dense<0xFF800000> : vector<8xf32>
    %929 = vector.multi_reduction <maximumf>, %928, %cst_253 [1] : vector<8x8xf32> to vector<8xf32>
    %930 = vector.shape_cast %929 : vector<8xf32> to vector<8x1xf32>
    %931 = vector.broadcast %930 : vector<8x1xf32> to vector<8x8xf32>
    %932 = arith.subf %928, %931 : vector<8x8xf32>
    %933 = math.exp %932 : vector<8x8xf32>
    %cst_254 = arith.constant dense<0.000000e+00> : vector<8xf32>
    %934 = vector.multi_reduction <add>, %933, %cst_254 [1] : vector<8x8xf32> to vector<8xf32>
    %935 = vector.shape_cast %934 : vector<8xf32> to vector<8x1xf32>
    %936 = tpu.reciprocal %935 {approx = true} : vector<8x1xf32> -> vector<8x1xf32>
    %937 = vector.broadcast %936 : vector<8x1xf32> to vector<8x8xf32>
    %938 = arith.mulf %933, %937 : vector<8x8xf32>
    %939 = vector.extract_strided_slice %828 {offsets = [0, 24], sizes = [8, 4], strides = [1, 1]} : vector<8x32xf32> to vector<8x4xf32>
    %cst_255 = arith.constant dense<0.000000e+00> : vector<8x4xf32>
    %940 = tpu.matmul %938, %939, %cst_255 {dimension_numbers = #tpu.dot_dimension_numbers<[1], [0], [0], [1], [0, 0, 1, 1], [], []>} : vector<8x8xf32>, vector<8x4xf32>, vector<8x4xf32> -> vector<8x4xf32>
    %941 = vector.extract_strided_slice %826 {offsets = [0, 28], sizes = [8, 4], strides = [1, 1]} : vector<8x32xf32> to vector<8x4xf32>
    %942 = vector.extract_strided_slice %827 {offsets = [0, 28], sizes = [8, 4], strides = [1, 1]} : vector<8x32xf32> to vector<8x4xf32>
    %943 = tpu.transpose %942, [1, 0] : vector<8x4xf32> -> vector<4x8xf32>
    %cst_256 = arith.constant dense<0.000000e+00> : vector<8x8xf32>
    %944 = tpu.matmul %941, %943, %cst_256 {dimension_numbers = #tpu.dot_dimension_numbers<[1], [0], [0], [1], [0, 0, 1, 1], [], []>} : vector<8x4xf32>, vector<4x8xf32>, vector<8x8xf32> -> vector<8x8xf32>
    %cst_257 = arith.constant dense<0xFF800000> : vector<8xf32>
    %945 = vector.multi_reduction <maximumf>, %944, %cst_257 [1] : vector<8x8xf32> to vector<8xf32>
    %946 = vector.shape_cast %945 : vector<8xf32> to vector<8x1xf32>
    %947 = vector.broadcast %946 : vector<8x1xf32> to vector<8x8xf32>
    %948 = arith.subf %944, %947 : vector<8x8xf32>
    %949 = math.exp %948 : vector<8x8xf32>
    %cst_258 = arith.constant dense<0.000000e+00> : vector<8xf32>
    %950 = vector.multi_reduction <add>, %949, %cst_258 [1] : vector<8x8xf32> to vector<8xf32>
    %951 = vector.shape_cast %950 : vector<8xf32> to vector<8x1xf32>
    %952 = tpu.reciprocal %951 {approx = true} : vector<8x1xf32> -> vector<8x1xf32>
    %953 = vector.broadcast %952 : vector<8x1xf32> to vector<8x8xf32>
    %954 = arith.mulf %949, %953 : vector<8x8xf32>
    %955 = vector.extract_strided_slice %828 {offsets = [0, 28], sizes = [8, 4], strides = [1, 1]} : vector<8x32xf32> to vector<8x4xf32>
    %cst_259 = arith.constant dense<0.000000e+00> : vector<8x4xf32>
    %956 = tpu.matmul %954, %955, %cst_259 {dimension_numbers = #tpu.dot_dimension_numbers<[1], [0], [0], [1], [0, 0, 1, 1], [], []>} : vector<8x8xf32>, vector<8x4xf32>, vector<8x4xf32> -> vector<8x4xf32>
    %957 = tpu.concatenate %844, %860, %876, %892, %908, %924, %940, %956 in 1 : vector<8x4xf32>, vector<8x4xf32>, vector<8x4xf32>, vector<8x4xf32>, vector<8x4xf32>, vector<8x4xf32>, vector<8x4xf32>, vector<8x4xf32> -> vector<8x32xf32>
    %958 = tpu.concatenate %825, %957 in 0 : vector<8x32xf32>, vector<8x32xf32> -> vector<16x32xf32>
    %cst_260 = arith.constant dense<0.000000e+00> : vector<16x32xf32>
    %959 = tpu.matmul %958, %683, %cst_260 {dimension_numbers = #tpu.dot_dimension_numbers<[1], [0], [0], [1], [0, 0, 1, 1], [], []>} : vector<16x32xf32>, vector<32x32xf32>, vector<16x32xf32> -> vector<16x32xf32>
    %960 = vector.broadcast %684 : vector<1x32xf32> to vector<16x32xf32>
    %961 = arith.addf %959, %960 : vector<16x32xf32>
    %962 = arith.addf %670, %961 : vector<16x32xf32>
    %963 = vector.extract_strided_slice %672 {offsets = [9, 0], sizes = [1, 32], strides = [1, 1]} : vector<16x64xf32> to vector<1x32xf32>
    %964 = vector.extract_strided_slice %672 {offsets = [10, 0], sizes = [1, 32], strides = [1, 1]} : vector<16x64xf32> to vector<1x32xf32>
    %cst_261 = arith.constant dense<0.000000e+00> : vector<16xf32>
    %965 = vector.multi_reduction <add>, %962, %cst_261 [1] : vector<16x32xf32> to vector<16xf32>
    %966 = vector.shape_cast %965 : vector<16xf32> to vector<16x1xf32>
    %cst_262 = arith.constant 3.200000e+01 : f32
    %967 = vector.broadcast %cst_262 : f32 to vector<16x1xf32>
    %968 = arith.divf %966, %967 : vector<16x1xf32>
    %969 = vector.broadcast %968 : vector<16x1xf32> to vector<16x32xf32>
    %970 = arith.subf %962, %969 : vector<16x32xf32>
    %971 = arith.mulf %970, %970 : vector<16x32xf32>
    %cst_263 = arith.constant dense<0.000000e+00> : vector<16xf32>
    %972 = vector.multi_reduction <add>, %971, %cst_263 [1] : vector<16x32xf32> to vector<16xf32>
    %973 = vector.shape_cast %972 : vector<16xf32> to vector<16x1xf32>
    %cst_264 = arith.constant 3.200000e+01 : f32
    %974 = vector.broadcast %cst_264 : f32 to vector<16x1xf32>
    %975 = arith.divf %973, %974 : vector<16x1xf32>
    %976 = vector.broadcast %968 : vector<16x1xf32> to vector<16x32xf32>
    %977 = arith.subf %962, %976 : vector<16x32xf32>
    %cst_265 = arith.constant 9.99999974E-6 : f32
    %978 = vector.broadcast %cst_265 : f32 to vector<16x1xf32>
    %979 = arith.addf %975, %978 : vector<16x1xf32>
    %980 = math.rsqrt %979 : vector<16x1xf32>
    %981 = vector.broadcast %980 : vector<16x1xf32> to vector<16x32xf32>
    %982 = arith.mulf %977, %981 : vector<16x32xf32>
    %983 = vector.broadcast %963 : vector<1x32xf32> to vector<16x32xf32>
    %984 = arith.mulf %982, %983 : vector<16x32xf32>
    %985 = vector.broadcast %964 : vector<1x32xf32> to vector<16x32xf32>
    %986 = arith.addf %984, %985 : vector<16x32xf32>
    %c12 = arith.constant 12 : index
    %c0_266 = arith.constant 0 : index
    %c0_267 = arith.constant 0 : index
    %987 = vector.load %arg2[%c12, %c0_266, %c0_267] : memref<16x32x32xf32, #tpu.memory_space<vmem>>, vector<1x32x32xf32>
    %988 = vector.shape_cast %987 : vector<1x32x32xf32> to vector<32x32xf32>
    %989 = vector.extract_strided_slice %672 {offsets = [4, 0], sizes = [1, 32], strides = [1, 1]} : vector<16x64xf32> to vector<1x32xf32>
    %c13 = arith.constant 13 : index
    %c0_268 = arith.constant 0 : index
    %c0_269 = arith.constant 0 : index
    %990 = vector.load %arg2[%c13, %c0_268, %c0_269] : memref<16x32x32xf32, #tpu.memory_space<vmem>>, vector<1x32x32xf32>
    %991 = vector.shape_cast %990 : vector<1x32x32xf32> to vector<32x32xf32>
    %992 = vector.extract_strided_slice %672 {offsets = [5, 0], sizes = [1, 32], strides = [1, 1]} : vector<16x64xf32> to vector<1x32xf32>
    %c14 = arith.constant 14 : index
    %c0_270 = arith.constant 0 : index
    %c0_271 = arith.constant 0 : index
    %993 = vector.load %arg2[%c14, %c0_270, %c0_271] : memref<16x32x32xf32, #tpu.memory_space<vmem>>, vector<1x32x32xf32>
    %994 = vector.shape_cast %993 : vector<1x32x32xf32> to vector<32x32xf32>
    %995 = vector.extract_strided_slice %672 {offsets = [6, 0], sizes = [1, 32], strides = [1, 1]} : vector<16x64xf32> to vector<1x32xf32>
    %c15 = arith.constant 15 : index
    %c0_272 = arith.constant 0 : index
    %c0_273 = arith.constant 0 : index
    %996 = vector.load %arg2[%c15, %c0_272, %c0_273] : memref<16x32x32xf32, #tpu.memory_space<vmem>>, vector<1x32x32xf32>
    %997 = vector.shape_cast %996 : vector<1x32x32xf32> to vector<32x32xf32>
    %998 = vector.extract_strided_slice %672 {offsets = [7, 0], sizes = [1, 32], strides = [1, 1]} : vector<16x64xf32> to vector<1x32xf32>
    %cst_274 = arith.constant dense<0.000000e+00> : vector<16x32xf32>
    %999 = tpu.matmul %986, %988, %cst_274 {dimension_numbers = #tpu.dot_dimension_numbers<[1], [0], [0], [1], [0, 0, 1, 1], [], []>} : vector<16x32xf32>, vector<32x32xf32>, vector<16x32xf32> -> vector<16x32xf32>
    %1000 = vector.broadcast %989 : vector<1x32xf32> to vector<16x32xf32>
    %1001 = arith.addf %999, %1000 : vector<16x32xf32>
    %cst_275 = arith.constant dense<0.000000e+00> : vector<16x32xf32>
    %1002 = tpu.matmul %1, %991, %cst_275 {dimension_numbers = #tpu.dot_dimension_numbers<[1], [0], [0], [1], [0, 0, 1, 1], [], []>} : vector<16x32xf32>, vector<32x32xf32>, vector<16x32xf32> -> vector<16x32xf32>
    %1003 = vector.broadcast %992 : vector<1x32xf32> to vector<16x32xf32>
    %1004 = arith.addf %1002, %1003 : vector<16x32xf32>
    %cst_276 = arith.constant dense<0.000000e+00> : vector<16x32xf32>
    %1005 = tpu.matmul %1, %994, %cst_276 {dimension_numbers = #tpu.dot_dimension_numbers<[1], [0], [0], [1], [0, 0, 1, 1], [], []>} : vector<16x32xf32>, vector<32x32xf32>, vector<16x32xf32> -> vector<16x32xf32>
    %1006 = vector.broadcast %995 : vector<1x32xf32> to vector<16x32xf32>
    %1007 = arith.addf %1005, %1006 : vector<16x32xf32>
    %1008 = vector.extract_strided_slice %1001 {offsets = [0, 0], sizes = [8, 32], strides = [1, 1]} : vector<16x32xf32> to vector<8x32xf32>
    %1009 = vector.extract_strided_slice %1004 {offsets = [0, 0], sizes = [8, 32], strides = [1, 1]} : vector<16x32xf32> to vector<8x32xf32>
    %1010 = vector.extract_strided_slice %1007 {offsets = [0, 0], sizes = [8, 32], strides = [1, 1]} : vector<16x32xf32> to vector<8x32xf32>
    %1011 = vector.extract_strided_slice %1008 {offsets = [0, 0], sizes = [8, 4], strides = [1, 1]} : vector<8x32xf32> to vector<8x4xf32>
    %1012 = vector.extract_strided_slice %1009 {offsets = [0, 0], sizes = [8, 4], strides = [1, 1]} : vector<8x32xf32> to vector<8x4xf32>
    %1013 = tpu.transpose %1012, [1, 0] : vector<8x4xf32> -> vector<4x8xf32>
    %cst_277 = arith.constant dense<0.000000e+00> : vector<8x8xf32>
    %1014 = tpu.matmul %1011, %1013, %cst_277 {dimension_numbers = #tpu.dot_dimension_numbers<[1], [0], [0], [1], [0, 0, 1, 1], [], []>} : vector<8x4xf32>, vector<4x8xf32>, vector<8x8xf32> -> vector<8x8xf32>
    %cst_278 = arith.constant dense<0xFF800000> : vector<8xf32>
    %1015 = vector.multi_reduction <maximumf>, %1014, %cst_278 [1] : vector<8x8xf32> to vector<8xf32>
    %1016 = vector.shape_cast %1015 : vector<8xf32> to vector<8x1xf32>
    %1017 = vector.broadcast %1016 : vector<8x1xf32> to vector<8x8xf32>
    %1018 = arith.subf %1014, %1017 : vector<8x8xf32>
    %1019 = math.exp %1018 : vector<8x8xf32>
    %cst_279 = arith.constant dense<0.000000e+00> : vector<8xf32>
    %1020 = vector.multi_reduction <add>, %1019, %cst_279 [1] : vector<8x8xf32> to vector<8xf32>
    %1021 = vector.shape_cast %1020 : vector<8xf32> to vector<8x1xf32>
    %1022 = tpu.reciprocal %1021 {approx = true} : vector<8x1xf32> -> vector<8x1xf32>
    %1023 = vector.broadcast %1022 : vector<8x1xf32> to vector<8x8xf32>
    %1024 = arith.mulf %1019, %1023 : vector<8x8xf32>
    %1025 = vector.extract_strided_slice %1010 {offsets = [0, 0], sizes = [8, 4], strides = [1, 1]} : vector<8x32xf32> to vector<8x4xf32>
    %cst_280 = arith.constant dense<0.000000e+00> : vector<8x4xf32>
    %1026 = tpu.matmul %1024, %1025, %cst_280 {dimension_numbers = #tpu.dot_dimension_numbers<[1], [0], [0], [1], [0, 0, 1, 1], [], []>} : vector<8x8xf32>, vector<8x4xf32>, vector<8x4xf32> -> vector<8x4xf32>
    %1027 = vector.extract_strided_slice %1008 {offsets = [0, 4], sizes = [8, 4], strides = [1, 1]} : vector<8x32xf32> to vector<8x4xf32>
    %1028 = vector.extract_strided_slice %1009 {offsets = [0, 4], sizes = [8, 4], strides = [1, 1]} : vector<8x32xf32> to vector<8x4xf32>
    %1029 = tpu.transpose %1028, [1, 0] : vector<8x4xf32> -> vector<4x8xf32>
    %cst_281 = arith.constant dense<0.000000e+00> : vector<8x8xf32>
    %1030 = tpu.matmul %1027, %1029, %cst_281 {dimension_numbers = #tpu.dot_dimension_numbers<[1], [0], [0], [1], [0, 0, 1, 1], [], []>} : vector<8x4xf32>, vector<4x8xf32>, vector<8x8xf32> -> vector<8x8xf32>
    %cst_282 = arith.constant dense<0xFF800000> : vector<8xf32>
    %1031 = vector.multi_reduction <maximumf>, %1030, %cst_282 [1] : vector<8x8xf32> to vector<8xf32>
    %1032 = vector.shape_cast %1031 : vector<8xf32> to vector<8x1xf32>
    %1033 = vector.broadcast %1032 : vector<8x1xf32> to vector<8x8xf32>
    %1034 = arith.subf %1030, %1033 : vector<8x8xf32>
    %1035 = math.exp %1034 : vector<8x8xf32>
    %cst_283 = arith.constant dense<0.000000e+00> : vector<8xf32>
    %1036 = vector.multi_reduction <add>, %1035, %cst_283 [1] : vector<8x8xf32> to vector<8xf32>
    %1037 = vector.shape_cast %1036 : vector<8xf32> to vector<8x1xf32>
    %1038 = tpu.reciprocal %1037 {approx = true} : vector<8x1xf32> -> vector<8x1xf32>
    %1039 = vector.broadcast %1038 : vector<8x1xf32> to vector<8x8xf32>
    %1040 = arith.mulf %1035, %1039 : vector<8x8xf32>
    %1041 = vector.extract_strided_slice %1010 {offsets = [0, 4], sizes = [8, 4], strides = [1, 1]} : vector<8x32xf32> to vector<8x4xf32>
    %cst_284 = arith.constant dense<0.000000e+00> : vector<8x4xf32>
    %1042 = tpu.matmul %1040, %1041, %cst_284 {dimension_numbers = #tpu.dot_dimension_numbers<[1], [0], [0], [1], [0, 0, 1, 1], [], []>} : vector<8x8xf32>, vector<8x4xf32>, vector<8x4xf32> -> vector<8x4xf32>
    %1043 = vector.extract_strided_slice %1008 {offsets = [0, 8], sizes = [8, 4], strides = [1, 1]} : vector<8x32xf32> to vector<8x4xf32>
    %1044 = vector.extract_strided_slice %1009 {offsets = [0, 8], sizes = [8, 4], strides = [1, 1]} : vector<8x32xf32> to vector<8x4xf32>
    %1045 = tpu.transpose %1044, [1, 0] : vector<8x4xf32> -> vector<4x8xf32>
    %cst_285 = arith.constant dense<0.000000e+00> : vector<8x8xf32>
    %1046 = tpu.matmul %1043, %1045, %cst_285 {dimension_numbers = #tpu.dot_dimension_numbers<[1], [0], [0], [1], [0, 0, 1, 1], [], []>} : vector<8x4xf32>, vector<4x8xf32>, vector<8x8xf32> -> vector<8x8xf32>
    %cst_286 = arith.constant dense<0xFF800000> : vector<8xf32>
    %1047 = vector.multi_reduction <maximumf>, %1046, %cst_286 [1] : vector<8x8xf32> to vector<8xf32>
    %1048 = vector.shape_cast %1047 : vector<8xf32> to vector<8x1xf32>
    %1049 = vector.broadcast %1048 : vector<8x1xf32> to vector<8x8xf32>
    %1050 = arith.subf %1046, %1049 : vector<8x8xf32>
    %1051 = math.exp %1050 : vector<8x8xf32>
    %cst_287 = arith.constant dense<0.000000e+00> : vector<8xf32>
    %1052 = vector.multi_reduction <add>, %1051, %cst_287 [1] : vector<8x8xf32> to vector<8xf32>
    %1053 = vector.shape_cast %1052 : vector<8xf32> to vector<8x1xf32>
    %1054 = tpu.reciprocal %1053 {approx = true} : vector<8x1xf32> -> vector<8x1xf32>
    %1055 = vector.broadcast %1054 : vector<8x1xf32> to vector<8x8xf32>
    %1056 = arith.mulf %1051, %1055 : vector<8x8xf32>
    %1057 = vector.extract_strided_slice %1010 {offsets = [0, 8], sizes = [8, 4], strides = [1, 1]} : vector<8x32xf32> to vector<8x4xf32>
    %cst_288 = arith.constant dense<0.000000e+00> : vector<8x4xf32>
    %1058 = tpu.matmul %1056, %1057, %cst_288 {dimension_numbers = #tpu.dot_dimension_numbers<[1], [0], [0], [1], [0, 0, 1, 1], [], []>} : vector<8x8xf32>, vector<8x4xf32>, vector<8x4xf32> -> vector<8x4xf32>
    %1059 = vector.extract_strided_slice %1008 {offsets = [0, 12], sizes = [8, 4], strides = [1, 1]} : vector<8x32xf32> to vector<8x4xf32>
    %1060 = vector.extract_strided_slice %1009 {offsets = [0, 12], sizes = [8, 4], strides = [1, 1]} : vector<8x32xf32> to vector<8x4xf32>
    %1061 = tpu.transpose %1060, [1, 0] : vector<8x4xf32> -> vector<4x8xf32>
    %cst_289 = arith.constant dense<0.000000e+00> : vector<8x8xf32>
    %1062 = tpu.matmul %1059, %1061, %cst_289 {dimension_numbers = #tpu.dot_dimension_numbers<[1], [0], [0], [1], [0, 0, 1, 1], [], []>} : vector<8x4xf32>, vector<4x8xf32>, vector<8x8xf32> -> vector<8x8xf32>
    %cst_290 = arith.constant dense<0xFF800000> : vector<8xf32>
    %1063 = vector.multi_reduction <maximumf>, %1062, %cst_290 [1] : vector<8x8xf32> to vector<8xf32>
    %1064 = vector.shape_cast %1063 : vector<8xf32> to vector<8x1xf32>
    %1065 = vector.broadcast %1064 : vector<8x1xf32> to vector<8x8xf32>
    %1066 = arith.subf %1062, %1065 : vector<8x8xf32>
    %1067 = math.exp %1066 : vector<8x8xf32>
    %cst_291 = arith.constant dense<0.000000e+00> : vector<8xf32>
    %1068 = vector.multi_reduction <add>, %1067, %cst_291 [1] : vector<8x8xf32> to vector<8xf32>
    %1069 = vector.shape_cast %1068 : vector<8xf32> to vector<8x1xf32>
    %1070 = tpu.reciprocal %1069 {approx = true} : vector<8x1xf32> -> vector<8x1xf32>
    %1071 = vector.broadcast %1070 : vector<8x1xf32> to vector<8x8xf32>
    %1072 = arith.mulf %1067, %1071 : vector<8x8xf32>
    %1073 = vector.extract_strided_slice %1010 {offsets = [0, 12], sizes = [8, 4], strides = [1, 1]} : vector<8x32xf32> to vector<8x4xf32>
    %cst_292 = arith.constant dense<0.000000e+00> : vector<8x4xf32>
    %1074 = tpu.matmul %1072, %1073, %cst_292 {dimension_numbers = #tpu.dot_dimension_numbers<[1], [0], [0], [1], [0, 0, 1, 1], [], []>} : vector<8x8xf32>, vector<8x4xf32>, vector<8x4xf32> -> vector<8x4xf32>
    %1075 = vector.extract_strided_slice %1008 {offsets = [0, 16], sizes = [8, 4], strides = [1, 1]} : vector<8x32xf32> to vector<8x4xf32>
    %1076 = vector.extract_strided_slice %1009 {offsets = [0, 16], sizes = [8, 4], strides = [1, 1]} : vector<8x32xf32> to vector<8x4xf32>
    %1077 = tpu.transpose %1076, [1, 0] : vector<8x4xf32> -> vector<4x8xf32>
    %cst_293 = arith.constant dense<0.000000e+00> : vector<8x8xf32>
    %1078 = tpu.matmul %1075, %1077, %cst_293 {dimension_numbers = #tpu.dot_dimension_numbers<[1], [0], [0], [1], [0, 0, 1, 1], [], []>} : vector<8x4xf32>, vector<4x8xf32>, vector<8x8xf32> -> vector<8x8xf32>
    %cst_294 = arith.constant dense<0xFF800000> : vector<8xf32>
    %1079 = vector.multi_reduction <maximumf>, %1078, %cst_294 [1] : vector<8x8xf32> to vector<8xf32>
    %1080 = vector.shape_cast %1079 : vector<8xf32> to vector<8x1xf32>
    %1081 = vector.broadcast %1080 : vector<8x1xf32> to vector<8x8xf32>
    %1082 = arith.subf %1078, %1081 : vector<8x8xf32>
    %1083 = math.exp %1082 : vector<8x8xf32>
    %cst_295 = arith.constant dense<0.000000e+00> : vector<8xf32>
    %1084 = vector.multi_reduction <add>, %1083, %cst_295 [1] : vector<8x8xf32> to vector<8xf32>
    %1085 = vector.shape_cast %1084 : vector<8xf32> to vector<8x1xf32>
    %1086 = tpu.reciprocal %1085 {approx = true} : vector<8x1xf32> -> vector<8x1xf32>
    %1087 = vector.broadcast %1086 : vector<8x1xf32> to vector<8x8xf32>
    %1088 = arith.mulf %1083, %1087 : vector<8x8xf32>
    %1089 = vector.extract_strided_slice %1010 {offsets = [0, 16], sizes = [8, 4], strides = [1, 1]} : vector<8x32xf32> to vector<8x4xf32>
    %cst_296 = arith.constant dense<0.000000e+00> : vector<8x4xf32>
    %1090 = tpu.matmul %1088, %1089, %cst_296 {dimension_numbers = #tpu.dot_dimension_numbers<[1], [0], [0], [1], [0, 0, 1, 1], [], []>} : vector<8x8xf32>, vector<8x4xf32>, vector<8x4xf32> -> vector<8x4xf32>
    %1091 = vector.extract_strided_slice %1008 {offsets = [0, 20], sizes = [8, 4], strides = [1, 1]} : vector<8x32xf32> to vector<8x4xf32>
    %1092 = vector.extract_strided_slice %1009 {offsets = [0, 20], sizes = [8, 4], strides = [1, 1]} : vector<8x32xf32> to vector<8x4xf32>
    %1093 = tpu.transpose %1092, [1, 0] : vector<8x4xf32> -> vector<4x8xf32>
    %cst_297 = arith.constant dense<0.000000e+00> : vector<8x8xf32>
    %1094 = tpu.matmul %1091, %1093, %cst_297 {dimension_numbers = #tpu.dot_dimension_numbers<[1], [0], [0], [1], [0, 0, 1, 1], [], []>} : vector<8x4xf32>, vector<4x8xf32>, vector<8x8xf32> -> vector<8x8xf32>
    %cst_298 = arith.constant dense<0xFF800000> : vector<8xf32>
    %1095 = vector.multi_reduction <maximumf>, %1094, %cst_298 [1] : vector<8x8xf32> to vector<8xf32>
    %1096 = vector.shape_cast %1095 : vector<8xf32> to vector<8x1xf32>
    %1097 = vector.broadcast %1096 : vector<8x1xf32> to vector<8x8xf32>
    %1098 = arith.subf %1094, %1097 : vector<8x8xf32>
    %1099 = math.exp %1098 : vector<8x8xf32>
    %cst_299 = arith.constant dense<0.000000e+00> : vector<8xf32>
    %1100 = vector.multi_reduction <add>, %1099, %cst_299 [1] : vector<8x8xf32> to vector<8xf32>
    %1101 = vector.shape_cast %1100 : vector<8xf32> to vector<8x1xf32>
    %1102 = tpu.reciprocal %1101 {approx = true} : vector<8x1xf32> -> vector<8x1xf32>
    %1103 = vector.broadcast %1102 : vector<8x1xf32> to vector<8x8xf32>
    %1104 = arith.mulf %1099, %1103 : vector<8x8xf32>
    %1105 = vector.extract_strided_slice %1010 {offsets = [0, 20], sizes = [8, 4], strides = [1, 1]} : vector<8x32xf32> to vector<8x4xf32>
    %cst_300 = arith.constant dense<0.000000e+00> : vector<8x4xf32>
    %1106 = tpu.matmul %1104, %1105, %cst_300 {dimension_numbers = #tpu.dot_dimension_numbers<[1], [0], [0], [1], [0, 0, 1, 1], [], []>} : vector<8x8xf32>, vector<8x4xf32>, vector<8x4xf32> -> vector<8x4xf32>
    %1107 = vector.extract_strided_slice %1008 {offsets = [0, 24], sizes = [8, 4], strides = [1, 1]} : vector<8x32xf32> to vector<8x4xf32>
    %1108 = vector.extract_strided_slice %1009 {offsets = [0, 24], sizes = [8, 4], strides = [1, 1]} : vector<8x32xf32> to vector<8x4xf32>
    %1109 = tpu.transpose %1108, [1, 0] : vector<8x4xf32> -> vector<4x8xf32>
    %cst_301 = arith.constant dense<0.000000e+00> : vector<8x8xf32>
    %1110 = tpu.matmul %1107, %1109, %cst_301 {dimension_numbers = #tpu.dot_dimension_numbers<[1], [0], [0], [1], [0, 0, 1, 1], [], []>} : vector<8x4xf32>, vector<4x8xf32>, vector<8x8xf32> -> vector<8x8xf32>
    %cst_302 = arith.constant dense<0xFF800000> : vector<8xf32>
    %1111 = vector.multi_reduction <maximumf>, %1110, %cst_302 [1] : vector<8x8xf32> to vector<8xf32>
    %1112 = vector.shape_cast %1111 : vector<8xf32> to vector<8x1xf32>
    %1113 = vector.broadcast %1112 : vector<8x1xf32> to vector<8x8xf32>
    %1114 = arith.subf %1110, %1113 : vector<8x8xf32>
    %1115 = math.exp %1114 : vector<8x8xf32>
    %cst_303 = arith.constant dense<0.000000e+00> : vector<8xf32>
    %1116 = vector.multi_reduction <add>, %1115, %cst_303 [1] : vector<8x8xf32> to vector<8xf32>
    %1117 = vector.shape_cast %1116 : vector<8xf32> to vector<8x1xf32>
    %1118 = tpu.reciprocal %1117 {approx = true} : vector<8x1xf32> -> vector<8x1xf32>
    %1119 = vector.broadcast %1118 : vector<8x1xf32> to vector<8x8xf32>
    %1120 = arith.mulf %1115, %1119 : vector<8x8xf32>
    %1121 = vector.extract_strided_slice %1010 {offsets = [0, 24], sizes = [8, 4], strides = [1, 1]} : vector<8x32xf32> to vector<8x4xf32>
    %cst_304 = arith.constant dense<0.000000e+00> : vector<8x4xf32>
    %1122 = tpu.matmul %1120, %1121, %cst_304 {dimension_numbers = #tpu.dot_dimension_numbers<[1], [0], [0], [1], [0, 0, 1, 1], [], []>} : vector<8x8xf32>, vector<8x4xf32>, vector<8x4xf32> -> vector<8x4xf32>
    %1123 = vector.extract_strided_slice %1008 {offsets = [0, 28], sizes = [8, 4], strides = [1, 1]} : vector<8x32xf32> to vector<8x4xf32>
    %1124 = vector.extract_strided_slice %1009 {offsets = [0, 28], sizes = [8, 4], strides = [1, 1]} : vector<8x32xf32> to vector<8x4xf32>
    %1125 = tpu.transpose %1124, [1, 0] : vector<8x4xf32> -> vector<4x8xf32>
    %cst_305 = arith.constant dense<0.000000e+00> : vector<8x8xf32>
    %1126 = tpu.matmul %1123, %1125, %cst_305 {dimension_numbers = #tpu.dot_dimension_numbers<[1], [0], [0], [1], [0, 0, 1, 1], [], []>} : vector<8x4xf32>, vector<4x8xf32>, vector<8x8xf32> -> vector<8x8xf32>
    %cst_306 = arith.constant dense<0xFF800000> : vector<8xf32>
    %1127 = vector.multi_reduction <maximumf>, %1126, %cst_306 [1] : vector<8x8xf32> to vector<8xf32>
    %1128 = vector.shape_cast %1127 : vector<8xf32> to vector<8x1xf32>
    %1129 = vector.broadcast %1128 : vector<8x1xf32> to vector<8x8xf32>
    %1130 = arith.subf %1126, %1129 : vector<8x8xf32>
    %1131 = math.exp %1130 : vector<8x8xf32>
    %cst_307 = arith.constant dense<0.000000e+00> : vector<8xf32>
    %1132 = vector.multi_reduction <add>, %1131, %cst_307 [1] : vector<8x8xf32> to vector<8xf32>
    %1133 = vector.shape_cast %1132 : vector<8xf32> to vector<8x1xf32>
    %1134 = tpu.reciprocal %1133 {approx = true} : vector<8x1xf32> -> vector<8x1xf32>
    %1135 = vector.broadcast %1134 : vector<8x1xf32> to vector<8x8xf32>
    %1136 = arith.mulf %1131, %1135 : vector<8x8xf32>
    %1137 = vector.extract_strided_slice %1010 {offsets = [0, 28], sizes = [8, 4], strides = [1, 1]} : vector<8x32xf32> to vector<8x4xf32>
    %cst_308 = arith.constant dense<0.000000e+00> : vector<8x4xf32>
    %1138 = tpu.matmul %1136, %1137, %cst_308 {dimension_numbers = #tpu.dot_dimension_numbers<[1], [0], [0], [1], [0, 0, 1, 1], [], []>} : vector<8x8xf32>, vector<8x4xf32>, vector<8x4xf32> -> vector<8x4xf32>
    %1139 = tpu.concatenate %1026, %1042, %1058, %1074, %1090, %1106, %1122, %1138 in 1 : vector<8x4xf32>, vector<8x4xf32>, vector<8x4xf32>, vector<8x4xf32>, vector<8x4xf32>, vector<8x4xf32>, vector<8x4xf32>, vector<8x4xf32> -> vector<8x32xf32>
    %1140 = vector.extract_strided_slice %1001 {offsets = [8, 0], sizes = [8, 32], strides = [1, 1]} : vector<16x32xf32> to vector<8x32xf32>
    %1141 = vector.extract_strided_slice %1004 {offsets = [8, 0], sizes = [8, 32], strides = [1, 1]} : vector<16x32xf32> to vector<8x32xf32>
    %1142 = vector.extract_strided_slice %1007 {offsets = [8, 0], sizes = [8, 32], strides = [1, 1]} : vector<16x32xf32> to vector<8x32xf32>
    %1143 = vector.extract_strided_slice %1140 {offsets = [0, 0], sizes = [8, 4], strides = [1, 1]} : vector<8x32xf32> to vector<8x4xf32>
    %1144 = vector.extract_strided_slice %1141 {offsets = [0, 0], sizes = [8, 4], strides = [1, 1]} : vector<8x32xf32> to vector<8x4xf32>
    %1145 = tpu.transpose %1144, [1, 0] : vector<8x4xf32> -> vector<4x8xf32>
    %cst_309 = arith.constant dense<0.000000e+00> : vector<8x8xf32>
    %1146 = tpu.matmul %1143, %1145, %cst_309 {dimension_numbers = #tpu.dot_dimension_numbers<[1], [0], [0], [1], [0, 0, 1, 1], [], []>} : vector<8x4xf32>, vector<4x8xf32>, vector<8x8xf32> -> vector<8x8xf32>
    %cst_310 = arith.constant dense<0xFF800000> : vector<8xf32>
    %1147 = vector.multi_reduction <maximumf>, %1146, %cst_310 [1] : vector<8x8xf32> to vector<8xf32>
    %1148 = vector.shape_cast %1147 : vector<8xf32> to vector<8x1xf32>
    %1149 = vector.broadcast %1148 : vector<8x1xf32> to vector<8x8xf32>
    %1150 = arith.subf %1146, %1149 : vector<8x8xf32>
    %1151 = math.exp %1150 : vector<8x8xf32>
    %cst_311 = arith.constant dense<0.000000e+00> : vector<8xf32>
    %1152 = vector.multi_reduction <add>, %1151, %cst_311 [1] : vector<8x8xf32> to vector<8xf32>
    %1153 = vector.shape_cast %1152 : vector<8xf32> to vector<8x1xf32>
    %1154 = tpu.reciprocal %1153 {approx = true} : vector<8x1xf32> -> vector<8x1xf32>
    %1155 = vector.broadcast %1154 : vector<8x1xf32> to vector<8x8xf32>
    %1156 = arith.mulf %1151, %1155 : vector<8x8xf32>
    %1157 = vector.extract_strided_slice %1142 {offsets = [0, 0], sizes = [8, 4], strides = [1, 1]} : vector<8x32xf32> to vector<8x4xf32>
    %cst_312 = arith.constant dense<0.000000e+00> : vector<8x4xf32>
    %1158 = tpu.matmul %1156, %1157, %cst_312 {dimension_numbers = #tpu.dot_dimension_numbers<[1], [0], [0], [1], [0, 0, 1, 1], [], []>} : vector<8x8xf32>, vector<8x4xf32>, vector<8x4xf32> -> vector<8x4xf32>
    %1159 = vector.extract_strided_slice %1140 {offsets = [0, 4], sizes = [8, 4], strides = [1, 1]} : vector<8x32xf32> to vector<8x4xf32>
    %1160 = vector.extract_strided_slice %1141 {offsets = [0, 4], sizes = [8, 4], strides = [1, 1]} : vector<8x32xf32> to vector<8x4xf32>
    %1161 = tpu.transpose %1160, [1, 0] : vector<8x4xf32> -> vector<4x8xf32>
    %cst_313 = arith.constant dense<0.000000e+00> : vector<8x8xf32>
    %1162 = tpu.matmul %1159, %1161, %cst_313 {dimension_numbers = #tpu.dot_dimension_numbers<[1], [0], [0], [1], [0, 0, 1, 1], [], []>} : vector<8x4xf32>, vector<4x8xf32>, vector<8x8xf32> -> vector<8x8xf32>
    %cst_314 = arith.constant dense<0xFF800000> : vector<8xf32>
    %1163 = vector.multi_reduction <maximumf>, %1162, %cst_314 [1] : vector<8x8xf32> to vector<8xf32>
    %1164 = vector.shape_cast %1163 : vector<8xf32> to vector<8x1xf32>
    %1165 = vector.broadcast %1164 : vector<8x1xf32> to vector<8x8xf32>
    %1166 = arith.subf %1162, %1165 : vector<8x8xf32>
    %1167 = math.exp %1166 : vector<8x8xf32>
    %cst_315 = arith.constant dense<0.000000e+00> : vector<8xf32>
    %1168 = vector.multi_reduction <add>, %1167, %cst_315 [1] : vector<8x8xf32> to vector<8xf32>
    %1169 = vector.shape_cast %1168 : vector<8xf32> to vector<8x1xf32>
    %1170 = tpu.reciprocal %1169 {approx = true} : vector<8x1xf32> -> vector<8x1xf32>
    %1171 = vector.broadcast %1170 : vector<8x1xf32> to vector<8x8xf32>
    %1172 = arith.mulf %1167, %1171 : vector<8x8xf32>
    %1173 = vector.extract_strided_slice %1142 {offsets = [0, 4], sizes = [8, 4], strides = [1, 1]} : vector<8x32xf32> to vector<8x4xf32>
    %cst_316 = arith.constant dense<0.000000e+00> : vector<8x4xf32>
    %1174 = tpu.matmul %1172, %1173, %cst_316 {dimension_numbers = #tpu.dot_dimension_numbers<[1], [0], [0], [1], [0, 0, 1, 1], [], []>} : vector<8x8xf32>, vector<8x4xf32>, vector<8x4xf32> -> vector<8x4xf32>
    %1175 = vector.extract_strided_slice %1140 {offsets = [0, 8], sizes = [8, 4], strides = [1, 1]} : vector<8x32xf32> to vector<8x4xf32>
    %1176 = vector.extract_strided_slice %1141 {offsets = [0, 8], sizes = [8, 4], strides = [1, 1]} : vector<8x32xf32> to vector<8x4xf32>
    %1177 = tpu.transpose %1176, [1, 0] : vector<8x4xf32> -> vector<4x8xf32>
    %cst_317 = arith.constant dense<0.000000e+00> : vector<8x8xf32>
    %1178 = tpu.matmul %1175, %1177, %cst_317 {dimension_numbers = #tpu.dot_dimension_numbers<[1], [0], [0], [1], [0, 0, 1, 1], [], []>} : vector<8x4xf32>, vector<4x8xf32>, vector<8x8xf32> -> vector<8x8xf32>
    %cst_318 = arith.constant dense<0xFF800000> : vector<8xf32>
    %1179 = vector.multi_reduction <maximumf>, %1178, %cst_318 [1] : vector<8x8xf32> to vector<8xf32>
    %1180 = vector.shape_cast %1179 : vector<8xf32> to vector<8x1xf32>
    %1181 = vector.broadcast %1180 : vector<8x1xf32> to vector<8x8xf32>
    %1182 = arith.subf %1178, %1181 : vector<8x8xf32>
    %1183 = math.exp %1182 : vector<8x8xf32>
    %cst_319 = arith.constant dense<0.000000e+00> : vector<8xf32>
    %1184 = vector.multi_reduction <add>, %1183, %cst_319 [1] : vector<8x8xf32> to vector<8xf32>
    %1185 = vector.shape_cast %1184 : vector<8xf32> to vector<8x1xf32>
    %1186 = tpu.reciprocal %1185 {approx = true} : vector<8x1xf32> -> vector<8x1xf32>
    %1187 = vector.broadcast %1186 : vector<8x1xf32> to vector<8x8xf32>
    %1188 = arith.mulf %1183, %1187 : vector<8x8xf32>
    %1189 = vector.extract_strided_slice %1142 {offsets = [0, 8], sizes = [8, 4], strides = [1, 1]} : vector<8x32xf32> to vector<8x4xf32>
    %cst_320 = arith.constant dense<0.000000e+00> : vector<8x4xf32>
    %1190 = tpu.matmul %1188, %1189, %cst_320 {dimension_numbers = #tpu.dot_dimension_numbers<[1], [0], [0], [1], [0, 0, 1, 1], [], []>} : vector<8x8xf32>, vector<8x4xf32>, vector<8x4xf32> -> vector<8x4xf32>
    %1191 = vector.extract_strided_slice %1140 {offsets = [0, 12], sizes = [8, 4], strides = [1, 1]} : vector<8x32xf32> to vector<8x4xf32>
    %1192 = vector.extract_strided_slice %1141 {offsets = [0, 12], sizes = [8, 4], strides = [1, 1]} : vector<8x32xf32> to vector<8x4xf32>
    %1193 = tpu.transpose %1192, [1, 0] : vector<8x4xf32> -> vector<4x8xf32>
    %cst_321 = arith.constant dense<0.000000e+00> : vector<8x8xf32>
    %1194 = tpu.matmul %1191, %1193, %cst_321 {dimension_numbers = #tpu.dot_dimension_numbers<[1], [0], [0], [1], [0, 0, 1, 1], [], []>} : vector<8x4xf32>, vector<4x8xf32>, vector<8x8xf32> -> vector<8x8xf32>
    %cst_322 = arith.constant dense<0xFF800000> : vector<8xf32>
    %1195 = vector.multi_reduction <maximumf>, %1194, %cst_322 [1] : vector<8x8xf32> to vector<8xf32>
    %1196 = vector.shape_cast %1195 : vector<8xf32> to vector<8x1xf32>
    %1197 = vector.broadcast %1196 : vector<8x1xf32> to vector<8x8xf32>
    %1198 = arith.subf %1194, %1197 : vector<8x8xf32>
    %1199 = math.exp %1198 : vector<8x8xf32>
    %cst_323 = arith.constant dense<0.000000e+00> : vector<8xf32>
    %1200 = vector.multi_reduction <add>, %1199, %cst_323 [1] : vector<8x8xf32> to vector<8xf32>
    %1201 = vector.shape_cast %1200 : vector<8xf32> to vector<8x1xf32>
    %1202 = tpu.reciprocal %1201 {approx = true} : vector<8x1xf32> -> vector<8x1xf32>
    %1203 = vector.broadcast %1202 : vector<8x1xf32> to vector<8x8xf32>
    %1204 = arith.mulf %1199, %1203 : vector<8x8xf32>
    %1205 = vector.extract_strided_slice %1142 {offsets = [0, 12], sizes = [8, 4], strides = [1, 1]} : vector<8x32xf32> to vector<8x4xf32>
    %cst_324 = arith.constant dense<0.000000e+00> : vector<8x4xf32>
    %1206 = tpu.matmul %1204, %1205, %cst_324 {dimension_numbers = #tpu.dot_dimension_numbers<[1], [0], [0], [1], [0, 0, 1, 1], [], []>} : vector<8x8xf32>, vector<8x4xf32>, vector<8x4xf32> -> vector<8x4xf32>
    %1207 = vector.extract_strided_slice %1140 {offsets = [0, 16], sizes = [8, 4], strides = [1, 1]} : vector<8x32xf32> to vector<8x4xf32>
    %1208 = vector.extract_strided_slice %1141 {offsets = [0, 16], sizes = [8, 4], strides = [1, 1]} : vector<8x32xf32> to vector<8x4xf32>
    %1209 = tpu.transpose %1208, [1, 0] : vector<8x4xf32> -> vector<4x8xf32>
    %cst_325 = arith.constant dense<0.000000e+00> : vector<8x8xf32>
    %1210 = tpu.matmul %1207, %1209, %cst_325 {dimension_numbers = #tpu.dot_dimension_numbers<[1], [0], [0], [1], [0, 0, 1, 1], [], []>} : vector<8x4xf32>, vector<4x8xf32>, vector<8x8xf32> -> vector<8x8xf32>
    %cst_326 = arith.constant dense<0xFF800000> : vector<8xf32>
    %1211 = vector.multi_reduction <maximumf>, %1210, %cst_326 [1] : vector<8x8xf32> to vector<8xf32>
    %1212 = vector.shape_cast %1211 : vector<8xf32> to vector<8x1xf32>
    %1213 = vector.broadcast %1212 : vector<8x1xf32> to vector<8x8xf32>
    %1214 = arith.subf %1210, %1213 : vector<8x8xf32>
    %1215 = math.exp %1214 : vector<8x8xf32>
    %cst_327 = arith.constant dense<0.000000e+00> : vector<8xf32>
    %1216 = vector.multi_reduction <add>, %1215, %cst_327 [1] : vector<8x8xf32> to vector<8xf32>
    %1217 = vector.shape_cast %1216 : vector<8xf32> to vector<8x1xf32>
    %1218 = tpu.reciprocal %1217 {approx = true} : vector<8x1xf32> -> vector<8x1xf32>
    %1219 = vector.broadcast %1218 : vector<8x1xf32> to vector<8x8xf32>
    %1220 = arith.mulf %1215, %1219 : vector<8x8xf32>
    %1221 = vector.extract_strided_slice %1142 {offsets = [0, 16], sizes = [8, 4], strides = [1, 1]} : vector<8x32xf32> to vector<8x4xf32>
    %cst_328 = arith.constant dense<0.000000e+00> : vector<8x4xf32>
    %1222 = tpu.matmul %1220, %1221, %cst_328 {dimension_numbers = #tpu.dot_dimension_numbers<[1], [0], [0], [1], [0, 0, 1, 1], [], []>} : vector<8x8xf32>, vector<8x4xf32>, vector<8x4xf32> -> vector<8x4xf32>
    %1223 = vector.extract_strided_slice %1140 {offsets = [0, 20], sizes = [8, 4], strides = [1, 1]} : vector<8x32xf32> to vector<8x4xf32>
    %1224 = vector.extract_strided_slice %1141 {offsets = [0, 20], sizes = [8, 4], strides = [1, 1]} : vector<8x32xf32> to vector<8x4xf32>
    %1225 = tpu.transpose %1224, [1, 0] : vector<8x4xf32> -> vector<4x8xf32>
    %cst_329 = arith.constant dense<0.000000e+00> : vector<8x8xf32>
    %1226 = tpu.matmul %1223, %1225, %cst_329 {dimension_numbers = #tpu.dot_dimension_numbers<[1], [0], [0], [1], [0, 0, 1, 1], [], []>} : vector<8x4xf32>, vector<4x8xf32>, vector<8x8xf32> -> vector<8x8xf32>
    %cst_330 = arith.constant dense<0xFF800000> : vector<8xf32>
    %1227 = vector.multi_reduction <maximumf>, %1226, %cst_330 [1] : vector<8x8xf32> to vector<8xf32>
    %1228 = vector.shape_cast %1227 : vector<8xf32> to vector<8x1xf32>
    %1229 = vector.broadcast %1228 : vector<8x1xf32> to vector<8x8xf32>
    %1230 = arith.subf %1226, %1229 : vector<8x8xf32>
    %1231 = math.exp %1230 : vector<8x8xf32>
    %cst_331 = arith.constant dense<0.000000e+00> : vector<8xf32>
    %1232 = vector.multi_reduction <add>, %1231, %cst_331 [1] : vector<8x8xf32> to vector<8xf32>
    %1233 = vector.shape_cast %1232 : vector<8xf32> to vector<8x1xf32>
    %1234 = tpu.reciprocal %1233 {approx = true} : vector<8x1xf32> -> vector<8x1xf32>
    %1235 = vector.broadcast %1234 : vector<8x1xf32> to vector<8x8xf32>
    %1236 = arith.mulf %1231, %1235 : vector<8x8xf32>
    %1237 = vector.extract_strided_slice %1142 {offsets = [0, 20], sizes = [8, 4], strides = [1, 1]} : vector<8x32xf32> to vector<8x4xf32>
    %cst_332 = arith.constant dense<0.000000e+00> : vector<8x4xf32>
    %1238 = tpu.matmul %1236, %1237, %cst_332 {dimension_numbers = #tpu.dot_dimension_numbers<[1], [0], [0], [1], [0, 0, 1, 1], [], []>} : vector<8x8xf32>, vector<8x4xf32>, vector<8x4xf32> -> vector<8x4xf32>
    %1239 = vector.extract_strided_slice %1140 {offsets = [0, 24], sizes = [8, 4], strides = [1, 1]} : vector<8x32xf32> to vector<8x4xf32>
    %1240 = vector.extract_strided_slice %1141 {offsets = [0, 24], sizes = [8, 4], strides = [1, 1]} : vector<8x32xf32> to vector<8x4xf32>
    %1241 = tpu.transpose %1240, [1, 0] : vector<8x4xf32> -> vector<4x8xf32>
    %cst_333 = arith.constant dense<0.000000e+00> : vector<8x8xf32>
    %1242 = tpu.matmul %1239, %1241, %cst_333 {dimension_numbers = #tpu.dot_dimension_numbers<[1], [0], [0], [1], [0, 0, 1, 1], [], []>} : vector<8x4xf32>, vector<4x8xf32>, vector<8x8xf32> -> vector<8x8xf32>
    %cst_334 = arith.constant dense<0xFF800000> : vector<8xf32>
    %1243 = vector.multi_reduction <maximumf>, %1242, %cst_334 [1] : vector<8x8xf32> to vector<8xf32>
    %1244 = vector.shape_cast %1243 : vector<8xf32> to vector<8x1xf32>
    %1245 = vector.broadcast %1244 : vector<8x1xf32> to vector<8x8xf32>
    %1246 = arith.subf %1242, %1245 : vector<8x8xf32>
    %1247 = math.exp %1246 : vector<8x8xf32>
    %cst_335 = arith.constant dense<0.000000e+00> : vector<8xf32>
    %1248 = vector.multi_reduction <add>, %1247, %cst_335 [1] : vector<8x8xf32> to vector<8xf32>
    %1249 = vector.shape_cast %1248 : vector<8xf32> to vector<8x1xf32>
    %1250 = tpu.reciprocal %1249 {approx = true} : vector<8x1xf32> -> vector<8x1xf32>
    %1251 = vector.broadcast %1250 : vector<8x1xf32> to vector<8x8xf32>
    %1252 = arith.mulf %1247, %1251 : vector<8x8xf32>
    %1253 = vector.extract_strided_slice %1142 {offsets = [0, 24], sizes = [8, 4], strides = [1, 1]} : vector<8x32xf32> to vector<8x4xf32>
    %cst_336 = arith.constant dense<0.000000e+00> : vector<8x4xf32>
    %1254 = tpu.matmul %1252, %1253, %cst_336 {dimension_numbers = #tpu.dot_dimension_numbers<[1], [0], [0], [1], [0, 0, 1, 1], [], []>} : vector<8x8xf32>, vector<8x4xf32>, vector<8x4xf32> -> vector<8x4xf32>
    %1255 = vector.extract_strided_slice %1140 {offsets = [0, 28], sizes = [8, 4], strides = [1, 1]} : vector<8x32xf32> to vector<8x4xf32>
    %1256 = vector.extract_strided_slice %1141 {offsets = [0, 28], sizes = [8, 4], strides = [1, 1]} : vector<8x32xf32> to vector<8x4xf32>
    %1257 = tpu.transpose %1256, [1, 0] : vector<8x4xf32> -> vector<4x8xf32>
    %cst_337 = arith.constant dense<0.000000e+00> : vector<8x8xf32>
    %1258 = tpu.matmul %1255, %1257, %cst_337 {dimension_numbers = #tpu.dot_dimension_numbers<[1], [0], [0], [1], [0, 0, 1, 1], [], []>} : vector<8x4xf32>, vector<4x8xf32>, vector<8x8xf32> -> vector<8x8xf32>
    %cst_338 = arith.constant dense<0xFF800000> : vector<8xf32>
    %1259 = vector.multi_reduction <maximumf>, %1258, %cst_338 [1] : vector<8x8xf32> to vector<8xf32>
    %1260 = vector.shape_cast %1259 : vector<8xf32> to vector<8x1xf32>
    %1261 = vector.broadcast %1260 : vector<8x1xf32> to vector<8x8xf32>
    %1262 = arith.subf %1258, %1261 : vector<8x8xf32>
    %1263 = math.exp %1262 : vector<8x8xf32>
    %cst_339 = arith.constant dense<0.000000e+00> : vector<8xf32>
    %1264 = vector.multi_reduction <add>, %1263, %cst_339 [1] : vector<8x8xf32> to vector<8xf32>
    %1265 = vector.shape_cast %1264 : vector<8xf32> to vector<8x1xf32>
    %1266 = tpu.reciprocal %1265 {approx = true} : vector<8x1xf32> -> vector<8x1xf32>
    %1267 = vector.broadcast %1266 : vector<8x1xf32> to vector<8x8xf32>
    %1268 = arith.mulf %1263, %1267 : vector<8x8xf32>
    %1269 = vector.extract_strided_slice %1142 {offsets = [0, 28], sizes = [8, 4], strides = [1, 1]} : vector<8x32xf32> to vector<8x4xf32>
    %cst_340 = arith.constant dense<0.000000e+00> : vector<8x4xf32>
    %1270 = tpu.matmul %1268, %1269, %cst_340 {dimension_numbers = #tpu.dot_dimension_numbers<[1], [0], [0], [1], [0, 0, 1, 1], [], []>} : vector<8x8xf32>, vector<8x4xf32>, vector<8x4xf32> -> vector<8x4xf32>
    %1271 = tpu.concatenate %1158, %1174, %1190, %1206, %1222, %1238, %1254, %1270 in 1 : vector<8x4xf32>, vector<8x4xf32>, vector<8x4xf32>, vector<8x4xf32>, vector<8x4xf32>, vector<8x4xf32>, vector<8x4xf32>, vector<8x4xf32> -> vector<8x32xf32>
    %1272 = tpu.concatenate %1139, %1271 in 0 : vector<8x32xf32>, vector<8x32xf32> -> vector<16x32xf32>
    %cst_341 = arith.constant dense<0.000000e+00> : vector<16x32xf32>
    %1273 = tpu.matmul %1272, %997, %cst_341 {dimension_numbers = #tpu.dot_dimension_numbers<[1], [0], [0], [1], [0, 0, 1, 1], [], []>} : vector<16x32xf32>, vector<32x32xf32>, vector<16x32xf32> -> vector<16x32xf32>
    %1274 = vector.broadcast %998 : vector<1x32xf32> to vector<16x32xf32>
    %1275 = arith.addf %1273, %1274 : vector<16x32xf32>
    %1276 = arith.addf %986, %1275 : vector<16x32xf32>
    %1277 = vector.extract_strided_slice %672 {offsets = [11, 0], sizes = [1, 32], strides = [1, 1]} : vector<16x64xf32> to vector<1x32xf32>
    %1278 = vector.extract_strided_slice %672 {offsets = [12, 0], sizes = [1, 32], strides = [1, 1]} : vector<16x64xf32> to vector<1x32xf32>
    %cst_342 = arith.constant dense<0.000000e+00> : vector<16xf32>
    %1279 = vector.multi_reduction <add>, %1276, %cst_342 [1] : vector<16x32xf32> to vector<16xf32>
    %1280 = vector.shape_cast %1279 : vector<16xf32> to vector<16x1xf32>
    %cst_343 = arith.constant 3.200000e+01 : f32
    %1281 = vector.broadcast %cst_343 : f32 to vector<16x1xf32>
    %1282 = arith.divf %1280, %1281 : vector<16x1xf32>
    %1283 = vector.broadcast %1282 : vector<16x1xf32> to vector<16x32xf32>
    %1284 = arith.subf %1276, %1283 : vector<16x32xf32>
    %1285 = arith.mulf %1284, %1284 : vector<16x32xf32>
    %cst_344 = arith.constant dense<0.000000e+00> : vector<16xf32>
    %1286 = vector.multi_reduction <add>, %1285, %cst_344 [1] : vector<16x32xf32> to vector<16xf32>
    %1287 = vector.shape_cast %1286 : vector<16xf32> to vector<16x1xf32>
    %cst_345 = arith.constant 3.200000e+01 : f32
    %1288 = vector.broadcast %cst_345 : f32 to vector<16x1xf32>
    %1289 = arith.divf %1287, %1288 : vector<16x1xf32>
    %1290 = vector.broadcast %1282 : vector<16x1xf32> to vector<16x32xf32>
    %1291 = arith.subf %1276, %1290 : vector<16x32xf32>
    %cst_346 = arith.constant 9.99999974E-6 : f32
    %1292 = vector.broadcast %cst_346 : f32 to vector<16x1xf32>
    %1293 = arith.addf %1289, %1292 : vector<16x1xf32>
    %1294 = math.rsqrt %1293 : vector<16x1xf32>
    %1295 = vector.broadcast %1294 : vector<16x1xf32> to vector<16x32xf32>
    %1296 = arith.mulf %1291, %1295 : vector<16x32xf32>
    %1297 = vector.broadcast %1277 : vector<1x32xf32> to vector<16x32xf32>
    %1298 = arith.mulf %1296, %1297 : vector<16x32xf32>
    %1299 = vector.broadcast %1278 : vector<1x32xf32> to vector<16x32xf32>
    %1300 = arith.addf %1298, %1299 : vector<16x32xf32>
    %c1_347 = arith.constant 1 : index
    %c0_348 = arith.constant 0 : index
    %c0_349 = arith.constant 0 : index
    %1301 = vector.load %arg3[%c1_347, %c0_348, %c0_349] : memref<2x32x64xf32, #tpu.memory_space<vmem>>, vector<1x32x64xf32>
    %1302 = vector.shape_cast %1301 : vector<1x32x64xf32> to vector<32x64xf32>
    %cst_350 = arith.constant dense<0.000000e+00> : vector<16x64xf32>
    %1303 = tpu.matmul %1300, %1302, %cst_350 {dimension_numbers = #tpu.dot_dimension_numbers<[1], [0], [0], [1], [0, 0, 1, 1], [], []>} : vector<16x32xf32>, vector<32x64xf32>, vector<16x64xf32> -> vector<16x64xf32>
    %1304 = vector.extract_strided_slice %672 {offsets = [15, 0], sizes = [1, 64], strides = [1, 1]} : vector<16x64xf32> to vector<1x64xf32>
    %1305 = vector.broadcast %1304 : vector<1x64xf32> to vector<16x64xf32>
    %1306 = arith.addf %1303, %1305 : vector<16x64xf32>
    %cst_351 = arith.constant 0.000000e+00 : f32
    %1307 = vector.broadcast %cst_351 : f32 to vector<16x64xf32>
    %1308 = arith.maximumf %1306, %1307 : vector<16x64xf32>
    %c1_352 = arith.constant 1 : index
    %c0_353 = arith.constant 0 : index
    %c0_354 = arith.constant 0 : index
    %1309 = vector.load %arg4[%c1_352, %c0_353, %c0_354] : memref<2x64x32xf32, #tpu.memory_space<vmem>>, vector<1x64x32xf32>
    %1310 = vector.shape_cast %1309 : vector<1x64x32xf32> to vector<64x32xf32>
    %cst_355 = arith.constant dense<0.000000e+00> : vector<16x32xf32>
    %1311 = tpu.matmul %1308, %1310, %cst_355 {dimension_numbers = #tpu.dot_dimension_numbers<[1], [0], [0], [1], [0, 0, 1, 1], [], []>} : vector<16x64xf32>, vector<64x32xf32>, vector<16x32xf32> -> vector<16x32xf32>
    %1312 = vector.extract_strided_slice %672 {offsets = [8, 0], sizes = [1, 32], strides = [1, 1]} : vector<16x64xf32> to vector<1x32xf32>
    %1313 = vector.broadcast %1312 : vector<1x32xf32> to vector<16x32xf32>
    %1314 = arith.addf %1311, %1313 : vector<16x32xf32>
    %1315 = arith.addf %1300, %1314 : vector<16x32xf32>
    %1316 = vector.extract_strided_slice %672 {offsets = [13, 0], sizes = [1, 32], strides = [1, 1]} : vector<16x64xf32> to vector<1x32xf32>
    %1317 = vector.extract_strided_slice %672 {offsets = [14, 0], sizes = [1, 32], strides = [1, 1]} : vector<16x64xf32> to vector<1x32xf32>
    %cst_356 = arith.constant dense<0.000000e+00> : vector<16xf32>
    %1318 = vector.multi_reduction <add>, %1315, %cst_356 [1] : vector<16x32xf32> to vector<16xf32>
    %1319 = vector.shape_cast %1318 : vector<16xf32> to vector<16x1xf32>
    %cst_357 = arith.constant 3.200000e+01 : f32
    %1320 = vector.broadcast %cst_357 : f32 to vector<16x1xf32>
    %1321 = arith.divf %1319, %1320 : vector<16x1xf32>
    %1322 = vector.broadcast %1321 : vector<16x1xf32> to vector<16x32xf32>
    %1323 = arith.subf %1315, %1322 : vector<16x32xf32>
    %1324 = arith.mulf %1323, %1323 : vector<16x32xf32>
    %cst_358 = arith.constant dense<0.000000e+00> : vector<16xf32>
    %1325 = vector.multi_reduction <add>, %1324, %cst_358 [1] : vector<16x32xf32> to vector<16xf32>
    %1326 = vector.shape_cast %1325 : vector<16xf32> to vector<16x1xf32>
    %cst_359 = arith.constant 3.200000e+01 : f32
    %1327 = vector.broadcast %cst_359 : f32 to vector<16x1xf32>
    %1328 = arith.divf %1326, %1327 : vector<16x1xf32>
    %1329 = vector.broadcast %1321 : vector<16x1xf32> to vector<16x32xf32>
    %1330 = arith.subf %1315, %1329 : vector<16x32xf32>
    %cst_360 = arith.constant 9.99999974E-6 : f32
    %1331 = vector.broadcast %cst_360 : f32 to vector<16x1xf32>
    %1332 = arith.addf %1328, %1331 : vector<16x1xf32>
    %1333 = math.rsqrt %1332 : vector<16x1xf32>
    %1334 = vector.broadcast %1333 : vector<16x1xf32> to vector<16x32xf32>
    %1335 = arith.mulf %1330, %1334 : vector<16x32xf32>
    %1336 = vector.broadcast %1316 : vector<1x32xf32> to vector<16x32xf32>
    %1337 = arith.mulf %1335, %1336 : vector<16x32xf32>
    %1338 = vector.broadcast %1317 : vector<1x32xf32> to vector<16x32xf32>
    %1339 = arith.addf %1337, %1338 : vector<16x32xf32>
    %c0_361 = arith.constant 0 : index
    %c0_362 = arith.constant 0 : index
    %1340 = vector.load %arg6[%c0_361, %c0_362] : memref<32x512xf32, #tpu.memory_space<vmem>>, vector<32x512xf32>
    %cst_363 = arith.constant dense<0.000000e+00> : vector<16x512xf32>
    %1341 = tpu.matmul %1339, %1340, %cst_363 {dimension_numbers = #tpu.dot_dimension_numbers<[1], [0], [0], [1], [0, 0, 1, 1], [], []>} : vector<16x32xf32>, vector<32x512xf32>, vector<16x512xf32> -> vector<16x512xf32>
    %c0_364 = arith.constant 0 : index
    %c0_365 = arith.constant 0 : index
    %1342 = vector.load %arg7[%c0_364, %c0_365] : memref<1x512xf32, #tpu.memory_space<vmem>>, vector<1x512xf32>
    %1343 = vector.broadcast %1342 : vector<1x512xf32> to vector<16x512xf32>
    %1344 = arith.addf %1341, %1343 : vector<16x512xf32>
    %c0_366 = arith.constant 0 : index
    %c0_367 = arith.constant 0 : index
    %1345 = vector.load %arg8[%c0_366, %c0_367] : memref<16x512xf32, #tpu.memory_space<vmem>>, vector<16x512xf32>
    tpu.vector_store %arg8[%c0_366, %c0_367], %1344 {strides = array<i32>} : memref<16x512xf32, #tpu.memory_space<vmem>>, vector<16x512xf32>,
    return
  }
}

</mosaic_0001>

<bundles_post_ra>
// kernel: title_generator_forward.1
= control target key start
LH: loop header
LB: loop body
LE: loop exit
PB: predicated region body
PF: predicated region fallthrough
CT: control target
= control target key end

     0   :  { %s8127_s0 = inlined_call_operand.vmem [shape: f32[16,32], index: 0, kind: input, shape index: {}]   ;;  %s8128_s1 = inlined_call_operand.vmem [shape: f32[16,32], index: 1, kind: input, shape index: {}]   ;;  %s8129_s2 = inlined_call_operand.vmem [shape: f32[16,32,32], index: 2, kind: input, shape index: {}]   ;;  %s8130_s3 = inlined_call_operand.vmem [shape: f32[2,32,64], index: 3, kind: input, shape index: {}]   ;;  %s8131_s4 = inlined_call_operand.vmem [shape: f32[2,64,32], index: 4, kind: input, shape index: {}]   ;;  %s8132_s5 = inlined_call_operand.vmem [shape: f32[2,16,64], index: 5, kind: input, shape index: {}]   ;;  %s8133_s6 = inlined_call_operand.vmem [shape: f32[32,512], index: 6, kind: input, shape index: {}]   ;;  %s8134_s7 = inlined_call_operand.vmem [shape: f32[1,512], index: 7, kind: input, shape index: {}]   ;;  %s8135_s8 = inlined_call_operand.hbm [shape: f32[16,512], index: 8, kind: output, shape index: {}]  }
   0x1   :  { %v39_v0 = vld [vmem:[%s8129_s2 + $0x18] sm:$0xff]  ;;  %v38_v2 = vld [vmem:[%s8129_s2 + $0x10] sm:$0xff]  ;;  %v37_v4 = vld [vmem:[%s8129_s2 + $0x8] sm:$0xff] }
   0x2   :  { %v5595_v1 = vld [vmem:[%s8129_s2 + $0x38] sm:$0xff]  ;;  %75 = vmatpush.msra.mxu0 %v39_v0  ;;  %v5594_v3 = vld [vmem:[%s8129_s2 + $0x30] sm:$0xff]  ;;  %v5593_v5 = vld [vmem:[%s8129_s2 + $0x28] sm:$0xff] }
   0x3   :  { %99 = vmatpush.msra.mxu1 %v5595_v1  ;;  %v5599_v6 = vld [vmem:[%s8129_s2 + $0x58] sm:$0xff]  ;;  %v5598_v7 = vld [vmem:[%s8129_s2 + $0x50] sm:$0xff]  ;;  %v36_v8 = vld [vmem:[%s8129_s2] sm:$0xff] }
   0x4   :  { %76 = vmatpush.msra.mxu0 %v38_v2  ;;  %v5592_v9 = vld [vmem:[%s8129_s2 + $0x20] sm:$0xff]  ;;  %123 = vmatpush.msra.mxu2 %v5599_v6 }
   0x5   :  { %100 = vmatpush.msra.mxu1 %v5594_v3 }
   0x6   :  { %13 = vsyncpa [#allocation3], 0  ;;  %77 = vmatpush.msra.mxu0 %v37_v4  ;;  %v6394_v10 = vld [vmem:[%s8127_s0] sm:$0xff]  ;;  %vm56_vm0 = vcmask 261120   ;;  %124 = vmatpush.msra.mxu2 %v5598_v7  ;;  %v5597_v11 = vld [vmem:[%s8129_s2 + $0x48] sm:$0xff]  ;;  %vm134_vm1 = vcmask 31744  }
   0x7   :  { %101 = vmatpush.msra.mxu1 %v5593_v5  ;;  %v5596_v12 = vld [vmem:[%s8129_s2 + $0x40] sm:$0xff]  ;;  %v6416_v14 = vld [vmem:[%s8127_s0 + $0x8] sm:$0xff]  ;;  %s6298_s0 = smov 120   ;;  %s6299_s13 = smov 124   ;;  %vm161_vm2 = vcmask 64512   ;;  %vm682_vm3 = vcmask 97280  }
   0x8   :  { %78 = vmatpush.msra.mxu0 %v36_v8  ;;  %125 = vmatpush.msra.mxu2 %v5597_v11  ;;  %v6411_v13 = vld [vmem:[%s8132_s5] sm:$0xff]  ;;  %s6300_s14 = smov 116   ;;  %s6301_s15 = smov 100   ;;  %vm684_vm4 = vcmask 130048   ;;  %vm686_vm5 = vcmask 162816   ;;  %vm688_vm6 = vcmask 195584  }
   0x9   :  { %102 = vmatpush.msra.mxu1 %v5592_v9  ;;  %5604 = vmatmul.msk.f32.vlgmr.msra.gmra.mxu0 %vm56_vm0, %v6394_v10  ;;  %v55_v15 = vperm.slane %v6411_v13, 0  ;;  %v86_v16 = vperm.slane %v6411_v13, 1  ;;  %s6302_s16 = smov 112   ;;  %s6303_s17 = smov 108   ;;  %v110_v21 = vperm.slane %v6411_v13, 2  ;;  %vm690_vm7 = vcmask 228352  }
   0xa   :  { %5606 = vmatmul.msk.f32.vlgmr.msra.gmra.mxu1 %vm56_vm0, %v6394_v10  ;;  %126 = vmatpush.msra.mxu2 %v5596_v12  ;;  %s6304_s18 = smov 104   ;;  %s6305_s19 = smov 8  }
   0xb   :  { %5608 = vmatmul.msk.f32.vlgmr.msra.gmra.mxu2 %vm56_vm0, %v6394_v10  ;;  %s6306_s20 = smov 16   ;;  %s8140_s21 = smov 24  }
   0xc   :  { %s6308_s22 = smov 4   ;;  %s6309_s23 = smov 12  }
   0xd   :  { %s8138_s24 = smov 20   ;;  %s8136_s25 = smov 28  }
   0xe   :  { %s8142_s27 = smov 28   ;;  %s8143_s10 = smov 20  }
   0xf   :  { %s5580_s11 = sshll.u32 %s8135_s8, 4  ;;  %s5581_s11 = int_to_ptr.hbm [resolvable:$true] %s5580_s11 }
  0x11   :  { %5605 = vmatmul.msk.f32.gmra.mxu0 %vm56_vm0, %v6416_v14 }
  0x12   :  { %5607 = vmatmul.msk.f32.gmra.mxu1 %vm56_vm0, %v6416_v14 }
  0x13   :  { %5609 = vmatmul.msk.f32.gmra.mxu2 %vm56_vm0, %v6416_v14 }
  0x86   :  { %v80_v17 = vpop.f32.mrf.mxu0 }
  0x87   :  { %v104_v18 = vpop.f32.mrf.mxu1  ;;  %v81_v19 = vadd.f32 %v80_v17, %v55_v15 }
  0x88   :  { %v105_v20 = vadd.f32 %v104_v18, %v86_v16 }
  0x89   :  { %262 = vrot.lane.b32.xlu0 %v81_v19, %s6298_s0 }
  0x8a   :  { %264 = vrot.lane.b32.xlu2 %v105_v20, %s6298_s0  ;;  %198 = vrot.lane.b32.xlu1 %v105_v20, %s6299_s13 }
  0x8b   :  { %5610 = vmatpush.xpose.msk.msra.mxu3 %vm134_vm1, %v105_v20 }
  0x8e   :  { %5611 = vmatmul.msk.f32.vlgmr.msra.gmra.mxu3 %vm134_vm1, %v81_v19  ;;  %v128_v22 = vpop.f32.mrf.mxu2  ;;  %v83_v30 = vpop.f32.mrf.mxu0 }
  0x8f   :  { %v6445_v23 = vadd.f32 %v128_v22, %v110_v21  ;;  %v84_v31 = vadd.f32 %v83_v30, %v55_v15  ;;  %v107_v34 = vpop.f32.mrf.mxu1 }
  0x90   :  { %v108_v35 = vadd.f32 %v107_v34, %v86_v16 }
  0x91   :  { %589 = vrot.lane.b32.xlu0 %v105_v20, %s6301_s15  ;;  %191 = vmatpush.msrb.mxu3 %v6445_v23 }
  0x92   :  { %329 = vrot.lane.b32.xlu2 %v105_v20, %s6300_s14  ;;  %196 = vrot.lane.b32.xlu1 %v81_v19, %s6299_s13 }
  0x96   :  { %v131_v57 = vpop.f32.mrf.mxu2 }
  0x97   :  { %v6499_v58 = vadd.f32 %v131_v57, %v110_v21 }
  0x99   :  { %v5924_v59 = vpack.i.bf16 %v6499_v58, %v6445_v23 }
  0x9a   :  { %394 = vrot.lane.b32.xlu2 %v105_v20, %s6302_s16  ;;  %327 = vrot.lane.b32.xlu1 %v81_v19, %s6300_s14 }
  0xa2   :  { %392 = vrot.lane.b32.xlu2 %v81_v19, %s6302_s16  ;;  %459 = vrot.lane.b32.xlu1 %v105_v20, %s6303_s17 }
  0xaa   :  { %524 = vrot.lane.b32.xlu2 %v105_v20, %s6304_s18  ;;  %457 = vrot.lane.b32.xlu1 %v81_v19, %s6303_s17 }
  0xb2   :  { %587 = vrot.lane.b32.xlu2 %v81_v19, %s6301_s15  ;;  %522 = vrot.lane.b32.xlu1 %v81_v19, %s6304_s18 }
  0xba   :  { %752 = vrot.lane.b32.xlu1 %v84_v31, %s6299_s13  ;;  %820 = vrot.lane.b32.xlu2 %v108_v35, %s6298_s0 }
  0xc2   :  { %818 = vrot.lane.b32.xlu1 %v84_v31, %s6298_s0  ;;  %883 = vrot.lane.b32.xlu2 %v84_v31, %s6300_s14 }
  0xca   :  { %1015 = vrot.lane.b32.xlu1 %v108_v35, %s6303_s17  ;;  %948 = vrot.lane.b32.xlu2 %v84_v31, %s6302_s16 }
  0xd2   :  { %1080 = vrot.lane.b32.xlu1 %v108_v35, %s6304_s18  ;;  %1145 = vrot.lane.b32.xlu2 %v108_v35, %s6301_s15 }
  0xda   :  { %1143 = vrot.lane.b32.xlu1 %v84_v31, %s6301_s15 }
  0xe2   :  { %5925 = vrot.lane.b32.xlu1 %v5924_v59, %s6299_s13 }
  0xe4   :  { %v265_v24 = vpop.permute.xlu2 %264 }
  0xe5   :  { %5616 = vmatpush.xpose.msk.msrb.mxu1 %vm134_vm1, %v265_v24 }
  0xec   :  { %v6449_v25 = vpop.permute.xlu2 %329 }
  0xf4   :  { %v395_v26 = vpop.permute.xlu2 %394 }
  0xf5   :  { %5622 = vmatpush.xpose.msk.msra.mxu1 %vm134_vm1, %v395_v26 }
  0xfb   :  { %v263_v29 = vpop.permute.xlu0 %262 }
  0xfc   :  { %v199_v27 = vpop.permute.xlu1 %198  ;;  %v393_v28 = vpop.permute.xlu2 %392  ;;  %5617 = vmatmul.msk.f32.vlgmr.msrb.gmra.mxu1 %vm134_vm1, %v263_v29 }
  0xfd   :  { %5613 = vmatpush.xpose.msk.msra.mxu3 %vm134_vm1, %v199_v27 }
 0x103   :  { %v590_v47 = vpop.permute.xlu0 %589 }
 0x104   :  { %v525_v32 = vpop.permute.xlu2 %524  ;;  %v6455_v33 = vpop.permute.xlu1 %196  ;;  %5623 = vmatmul.msk.f32.vlgmr.msra.gmra.mxu1 %vm134_vm1, %v393_v28 }
 0x105   :  { %5628 = vmatpush.xpose.msk.msrb.mxu1 %vm134_vm1, %v525_v32 }
 0x109   :  { %5634 = vmatpush.xpose.msk.msra.mxu1 %vm134_vm1, %v108_v35 }
 0x10c   :  { %v6462_v36 = vpop.permute.xlu1 %327  ;;  %v6476_v42 = vpop.permute.xlu2 %587 }
 0x111   :  { %v158_v37 = vpop.f32.mrf.mxu3 }
 0x112   :  { %v162_v38 = vsel %vm161_vm2, %v158_v37, -inf }
 0x113   :  { %163 = vmax.xlane.f32.xlu0 %v162_v38 }
 0x114   :  { %v460_v39 = vpop.permute.xlu1 %459  ;;  %v821_v43 = vpop.permute.xlu2 %820 }
 0x11c   :  { %v6469_v40 = vpop.permute.xlu1 %457  ;;  %v884_v4 = vpop.permute.xlu2 %883 }
 0x124   :  { %v523_v41 = vpop.permute.xlu1 %522  ;;  %v949_v7 = vpop.permute.xlu2 %948 }
 0x125   :  { %5629 = vmatmul.msk.f32.vlgmr.msrb.gmra.mxu1 %vm134_vm1, %v523_v41 }
 0x126   :  { %5640 = vmatpush.xpose.msk.msrb.mxu1 %vm134_vm1, %v821_v43 }
 0x127   :  { %754 = vrot.lane.b32.xlu0 %v108_v35, %s6299_s13 }
 0x12c   :  { %v6479_v44 = vpop.permute.xlu1 %752  ;;  %v1146_v12 = vpop.permute.xlu2 %1145 }
 0x12d   :  { %5635 = vmatmul.msk.f32.vlgmr.msra.gmra.mxu1 %vm134_vm1, %v84_v31 }
 0x134   :  { %v819_v46 = vpop.permute.xlu1 %818 }
 0x135   :  { %5641 = vmatmul.msk.f32.vlgmr.msrb.gmra.mxu1 %vm134_vm1, %v819_v46 }
 0x13c   :  { %v1016_v5 = vpop.permute.xlu1 %1015 }
 0x144   :  { %v1081_v9 = vpop.permute.xlu1 %1080 }
 0x14c   :  { %v1144_v22 = vpop.permute.xlu1 %1143 }
 0x154   :  { %v6549_v24 = vpop.permute.xlu1 %5925 }
 0x179   :  { %v6481_v45 = vpop.f32.mrf.mxu1 }
 0x17a   :  { %v290_v60 = vsel %vm161_vm2, %v6481_v45, -inf }
 0x181   :  { %v6484_v48 = vpop.f32.mrf.mxu1 }
 0x182   :  { %v420_v49 = vsel %vm161_vm2, %v6484_v48, -inf }
 0x183   :  { %421 = vmax.xlane.f32.xlu2 %v420_v49 }
 0x186   :  { %v164_v50 = vpop.xlane.xlu0 %163 }
 0x187   :  { %v165_v51 = vsub.f32 %v158_v37, %v164_v50 }
 0x189   :  { %v166_v52 = vmul.f32 1.442695, %v165_v51 }
 0x18b   :  { %5984 = vpow2.f32 %v166_v52 }
 0x191   :  { %v5985_v53 = vpop.eup %5984 }
 0x192   :  { %v168_v54 = vsel %vm161_vm2, %v5985_v53, 0.0 }
 0x193   :  { %169 = vadd.xlane.f32.xlu0 %v168_v54 }
 0x199   :  { %v755_v0 = vpop.permute.xlu0 %754 }
 0x1a2   :  { %v6489_v55 = vpop.f32.mrf.mxu1 }
 0x1a3   :  { %v550_v56 = vsel %vm161_vm2, %v6489_v55, -inf }
 0x1a4   :  { %551 = vmax.xlane.f32.xlu2 %v550_v56 }
 0x1a7   :  { %885 = vrot.lane.b32.xlu0 %v108_v35, %s6300_s14 }
 0x1aa   :  { %v6509_v61 = vpop.f32.mrf.mxu1 }
 0x1ab   :  { %v718_v15 = vsel %vm161_vm2, %v6509_v61, -inf }
 0x1af   :  { %950 = vrot.lane.b32.xlu0 %v108_v35, %s6302_s16 }
 0x1b2   :  { %v6511_v62 = vpop.f32.mrf.mxu1 }
 0x1b3   :  { %v846_v63 = vsel %vm161_vm2, %v6511_v62, -inf }
 0x1b4   :  { %847 = vmax.xlane.f32.xlu1 %v846_v63 }
 0x1b7   :  { %1013 = vrot.lane.b32.xlu0 %v84_v31, %s6303_s17 }
 0x1bc   :  { %5930 = vrot.lane.b32.xlu2 %v5924_v59, %s6298_s0 }
 0x1bf   :  { %1078 = vrot.lane.b32.xlu0 %v84_v31, %s6304_s18 }
 0x1c4   :  { %431 = vrot.lane.b32.xlu2 %v6445_v23, %s6302_s16 }
 0x1e9   :  { %291 = vmax.xlane.f32.xlu0 %v290_v60 }
 0x1f6   :  { %v422_v17 = vpop.xlane.xlu2 %421 }
 0x1fd   :  { %5935 = vrot.lane.b32.xlu0 %v5924_v59, %s6300_s14 }
 0x205   :  { %496 = vrot.lane.b32.xlu0 %v6445_v23, %s6303_s17 }
 0x206   :  { %v170_v1 = vpop.xlane.xlu0 %169 }
 0x207   :  { %5986 = vrcp.f32 %v170_v1 }
 0x20d   :  { %v5987_v2 = vpop.eup %5986 }
 0x20e   :  { %v172_v3 = vmul.f32 %v5987_v2, %v5985_v53 }
 0x210   :  { %5612 = vmatmul.msk.f32.vlgmr.msrb.gmra.mxu3 %vm161_vm2, %v172_v3 }
 0x211   :  { %5619 = vmatpush.xpose.msk.msrb.mxu3 %vm134_vm1, %v6449_v25  ;;  %v5927_v25 = vunpack.i.l.bf16 %v6549_v24 }
 0x213   :  { %257 = vmatpush.msrb.mxu0 %v5927_v25 }
 0x217   :  { %v552_v18 = vpop.xlane.xlu2 %551 }
 0x218   :  { %5614 = vmatmul.msk.f32.vlgmr.msra.gmra.mxu3 %vm134_vm1, %v6455_v33  ;;  %v553_v28 = vsub.f32 %v6489_v55, %v552_v18 }
 0x219   :  { %5625 = vmatpush.xpose.msk.msra.mxu3 %vm134_vm1, %v460_v39  ;;  %v886_v6 = vpop.permute.xlu0 %885 }
 0x21a   :  { %v554_v30 = vmul.f32 1.442695, %v553_v28 }
 0x21f   :  { %v6544_v19 = vpop.permute.xlu2 %5930 }
 0x220   :  { %5620 = vmatmul.msk.f32.vlgmr.msrb.gmra.mxu3 %vm134_vm1, %v6462_v36  ;;  %v5932_v20 = vunpack.i.l.bf16 %v6544_v19 }
 0x221   :  { %5631 = vmatpush.xpose.msk.msrb.mxu3 %vm134_vm1, %v590_v47  ;;  %v951_v8 = vpop.permute.xlu0 %950 }
 0x222   :  { %5646 = vmatpush.xpose.msk.msra.mxu1 %vm134_vm1, %v951_v8  ;;  %322 = vmatpush.msrb.mxu2 %v5932_v20 }
 0x225   :  { %5647 = vmatmul.msk.f32.vlgmr.msra.gmra.mxu1 %vm134_vm1, %v949_v7 }
 0x226   :  { %5652 = vmatpush.xpose.msk.msrb.mxu1 %vm134_vm1, %v1081_v9 }
 0x227   :  { %v432_v21 = vpop.permute.xlu2 %431 }
 0x228   :  { %5626 = vmatmul.msk.f32.vlgmr.msra.gmra.mxu3 %vm134_vm1, %v6469_v40  ;;  %452 = vmatpush.msra.mxu2 %v432_v21 }
 0x229   :  { %5637 = vmatpush.xpose.msk.msra.mxu3 %vm134_vm1, %v755_v0  ;;  %v1014_v11 = vpop.permute.xlu0 %1013  ;;  %v848_v0 = vpop.xlane.xlu1 %847 }
 0x22a   :  { %v849_v1 = vsub.f32 %v6511_v62, %v848_v0 }
 0x22c   :  { %v850_v3 = vmul.f32 1.442695, %v849_v1 }
 0x22f   :  { %719 = vmax.xlane.f32.xlu0 %v718_v15 }
 0x230   :  { %5632 = vmatmul.msk.f32.vlgmr.msrb.gmra.mxu3 %vm134_vm1, %v6476_v42 }
 0x231   :  { %5643 = vmatpush.xpose.msk.msrb.mxu3 %vm134_vm1, %v886_v6  ;;  %v1079_v16 = vpop.permute.xlu0 %1078 }
 0x232   :  { %5653 = vmatmul.msk.f32.vlgmr.msrb.gmra.mxu1 %vm134_vm1, %v1079_v16 }
 0x238   :  { %5638 = vmatmul.msk.f32.vlgmr.msra.gmra.mxu3 %vm134_vm1, %v6479_v44  ;;  %v423_v44 = vsub.f32 %v6484_v48, %v422_v17 }
 0x239   :  { %5649 = vmatpush.xpose.msk.msra.mxu3 %vm134_vm1, %v1016_v5 }
 0x240   :  { %5644 = vmatmul.msk.f32.vlgmr.msrb.gmra.mxu3 %vm134_vm1, %v884_v4 }
 0x241   :  { %5655 = vmatpush.xpose.msk.msrb.mxu3 %vm134_vm1, %v1146_v12 }
 0x248   :  { %5650 = vmatmul.msk.f32.vlgmr.msra.gmra.mxu3 %vm134_vm1, %v1014_v11 }
 0x250   :  { %5656 = vmatmul.msk.f32.vlgmr.msrb.gmra.mxu3 %vm134_vm1, %v1144_v22 }
 0x25c   :  { %v292_v26 = vpop.xlane.xlu0 %291 }
 0x25d   :  { %v293_v27 = vsub.f32 %v6481_v45, %v292_v26  ;;  %v424_v45 = vmul.f32 1.442695, %v423_v44 }
 0x25f   :  { %v294_v29 = vmul.f32 1.442695, %v293_v27 }
 0x261   :  { %5988 = vpow2.f32 %v294_v29 }
 0x262   :  { %5990 = vpow2.f32 %v554_v30 }
 0x263   :  { %5992 = vpow2.f32 %v424_v45 }
 0x267   :  { %v6554_v31 = vpop.eup %5988 }
 0x268   :  { %v296_v32 = vsel %vm161_vm2, %v6554_v31, 0.0  ;;  %v6558_v33 = vpop.eup %5990 }
 0x269   :  { %297 = vadd.xlane.f32.xlu1 %v296_v32  ;;  %v556_v35 = vsel %vm161_vm2, %v6558_v33, 0.0  ;;  %v6587_v55 = vpop.eup %5992 }
 0x26a   :  { %v426_v56 = vsel %vm161_vm2, %v6587_v55, 0.0 }
 0x26f   :  { %v6560_v34 = vpop.permute.xlu0 %5935 }
 0x270   :  { %v5937_v36 = vunpack.i.l.bf16 %v6560_v34 }
 0x271   :  { %557 = vadd.xlane.f32.xlu1 %v556_v35 }
 0x272   :  { %387 = vmatpush.msra.mxu0 %v5937_v36 }
 0x277   :  { %v6572_v42 = vpop.permute.xlu0 %496 }
 0x293   :  { %v6565_v37 = vpop.f32.mrf.mxu3 }
 0x29b   :  { %v6567_v38 = vpop.f32.mrf.mxu3 }
 0x29c   :  { %v224_v47 = vsel %vm161_vm2, %v6567_v38, -inf }
 0x2a2   :  { %v973_v39 = vpop.f32.mrf.mxu1  ;;  %v720_v49 = vpop.xlane.xlu0 %719 }
 0x2a3   :  { %v6569_v40 = vpop.f32.mrf.mxu3  ;;  %v976_v41 = vsel %vm161_vm2, %v973_v39, -inf  ;;  %v721_v50 = vsub.f32 %v6509_v61, %v720_v49 }
 0x2a4   :  { %977 = vmax.xlane.f32.xlu2 %v976_v41  ;;  %v355_v43 = vsel %vm161_vm2, %v6569_v40, -inf }
 0x2a5   :  { %356 = vmax.xlane.f32.xlu1 %v355_v43  ;;  %v722_v53 = vmul.f32 1.442695, %v721_v50 }
 0x2a7   :  { %5994 = vpow2.f32 %v722_v53 }
 0x2a8   :  { %5996 = vpow2.f32 %v850_v3 }
 0x2ab   :  { %v6577_v46 = vpop.f32.mrf.mxu3 }
 0x2ac   :  { %225 = vmax.xlane.f32.xlu2 %v224_v47  ;;  %v485_v2 = vsel %vm161_vm2, %v6577_v46, -inf }
 0x2ad   :  { %v6595_v60 = vpop.eup %5994 }
 0x2ae   :  { %v724_v61 = vsel %vm161_vm2, %v6595_v60, 0.0  ;;  %v6610_v7 = vpop.eup %5996 }
 0x2af   :  { %v1103_v51 = vpop.f32.mrf.mxu1  ;;  %v852_v62 = vsel %vm161_vm2, %v6610_v7, 0.0 }
 0x2b0   :  { %v1106_v52 = vsel %vm161_vm2, %v1103_v51, -inf }
 0x2b1   :  { %1107 = vmax.xlane.f32.xlu0 %v1106_v52 }
 0x2b3   :  { %v6583_v54 = vpop.f32.mrf.mxu3 }
 0x2b4   :  { %v615_v48 = vsel %vm161_vm2, %v6583_v54, -inf }
 0x2b5   :  { %616 = vmax.xlane.f32.xlu1 %v615_v48 }
 0x2b9   :  { %427 = vadd.xlane.f32.xlu0 %v426_v56 }
 0x2bb   :  { %v6591_v57 = vpop.f32.mrf.mxu3 }
 0x2bc   :  { %v780_v59 = vsel %vm161_vm2, %v6591_v57, -inf }
 0x2bd   :  { %781 = vmax.xlane.f32.xlu2 %v780_v59 }
 0x2c1   :  { %725 = vadd.xlane.f32.xlu0 %v724_v61 }
 0x2c3   :  { %v6599_v63 = vpop.f32.mrf.mxu3 }
 0x2c4   :  { %v911_v6 = vsel %vm161_vm2, %v6599_v63, -inf }
 0x2c9   :  { %486 = vmax.xlane.f32.xlu0 %v485_v2 }
 0x2cb   :  { %v6604_v4 = vpop.f32.mrf.mxu3 }
 0x2cc   :  { %v1041_v5 = vsel %vm161_vm2, %v6604_v4, -inf }
 0x2cd   :  { %1042 = vmax.xlane.f32.xlu1 %v1041_v5 }
 0x2d1   :  { %912 = vmax.xlane.f32.xlu0 %v911_v6 }
 0x2d5   :  { %626 = vrot.lane.b32.xlu2 %v6445_v23, %s6301_s15 }
 0x2d9   :  { %853 = vadd.xlane.f32.xlu0 %v852_v62 }
 0x2dc   :  { %v298_v8 = vpop.xlane.xlu1 %297 }
 0x2dd   :  { %5998 = vrcp.f32 %v298_v8 }
 0x2e3   :  { %v5999_v9 = vpop.eup %5998 }
 0x2e4   :  { %v300_v11 = vmul.f32 %v5999_v9, %v6554_v31  ;;  %v558_v18 = vpop.xlane.xlu1 %557 }
 0x2e6   :  { %561 = vrot.lane.b32.xlu1 %v6445_v23, %s6304_s18  ;;  %5618 = vmatmul.msk.f32.vlgmr.msrb.gmra.mxu2 %vm161_vm2, %v300_v11  ;;  %v6625_v23 = vpop.f32.mrf.mxu3 }
 0x2e7   :  { %v1171_v29 = vsel %vm161_vm2, %v6625_v23, -inf }
 0x317   :  { %v978_v12 = vpop.xlane.xlu2 %977 }
 0x318   :  { %v979_v15 = vsub.f32 %v973_v39, %v978_v12  ;;  %v357_v30 = vpop.xlane.xlu1 %356  ;;  %v5933_v12 = vunpack.i.h.bf16 %v6544_v19 }
 0x319   :  { %v358_v35 = vsub.f32 %v6569_v40, %v357_v30 }
 0x31a   :  { %v980_v16 = vmul.f32 1.442695, %v979_v15 }
 0x31c   :  { %6000 = vpow2.f32 %v980_v16 }
 0x31f   :  { %v226_v21 = vpop.xlane.xlu2 %225 }
 0x320   :  { %v227_v26 = vsub.f32 %v6567_v38, %v226_v21  ;;  %v359_v38 = vmul.f32 1.442695, %v358_v35 }
 0x322   :  { %v6620_v17 = vpop.eup %6000  ;;  %v228_v28 = vmul.f32 1.442695, %v227_v26 }
 0x323   :  { %v982_v20 = vsel %vm161_vm2, %v6620_v17, 0.0 }
 0x324   :  { %983 = vadd.xlane.f32.xlu0 %v982_v20  ;;  %v1108_v22 = vpop.xlane.xlu0 %1107 }
 0x325   :  { %v1109_v25 = vsub.f32 %v1103_v51, %v1108_v22 }
 0x327   :  { %v1110_v27 = vmul.f32 1.442695, %v1109_v25 }
 0x328   :  { %v617_v41 = vpop.xlane.xlu1 %616 }
 0x329   :  { %6002 = vpow2.f32 %v1110_v27  ;;  %v618_v47 = vsub.f32 %v6583_v54, %v617_v41 }
 0x32b   :  { %v619_v49 = vmul.f32 1.442695, %v618_v47 }
 0x32c   :  { %1172 = vmax.xlane.f32.xlu0 %v1171_v29  ;;  %v428_v31 = vpop.xlane.xlu0 %427 }
 0x32d   :  { %6004 = vrcp.f32 %v428_v31 }
 0x32e   :  { %6006 = vpow2.f32 %v228_v28 }
 0x32f   :  { %v6629_v32 = vpop.eup %6002  ;;  %6008 = vpow2.f32 %v359_v38 }
 0x330   :  { %v1112_v36 = vsel %vm161_vm2, %v6629_v32, 0.0  ;;  %v782_v50 = vpop.xlane.xlu2 %781  ;;  %6010 = vpow2.f32 %v619_v49 }
 0x331   :  { %1113 = vadd.xlane.f32.xlu2 %v1112_v36  ;;  %v783_v48 = vsub.f32 %v6591_v57, %v782_v50 }
 0x333   :  { %v6005_v39 = vpop.eup %6004  ;;  %v784_v56 = vmul.f32 1.442695, %v783_v48 }
 0x334   :  { %v726_v43 = vpop.xlane.xlu0 %725  ;;  %v6634_v44 = vpop.eup %6006  ;;  %v430_v45 = vmul.f32 %v6005_v39, %v6587_v55 }
 0x335   :  { %v230_v40 = vsel %vm161_vm2, %v6634_v44, 0.0  ;;  %v6641_v52 = vpop.eup %6008 }
 0x336   :  { %5624 = vmatmul.msk.f32.vlgmr.msra.gmra.mxu2 %vm161_vm2, %v430_v45  ;;  %v361_v54 = vsel %vm161_vm2, %v6641_v52, 0.0  ;;  %v6647_v61 = vpop.eup %6010 }
 0x338   :  { %v627_v26 = vpop.permute.xlu2 %626 }
 0x339   :  { %231 = vadd.xlane.f32.xlu2 %v230_v40  ;;  %v5928_v40 = vunpack.i.h.bf16 %v6549_v24 }
 0x33c   :  { %v487_v51 = vpop.xlane.xlu0 %486 }
 0x33d   :  { %v488_v53 = vsub.f32 %v6577_v46, %v487_v51  ;;  %v621_v46 = vsel %vm161_vm2, %v6647_v61, 0.0 }
 0x33f   :  { %v489_v55 = vmul.f32 1.442695, %v488_v53 }
 0x340   :  { %v1043_v6 = vpop.xlane.xlu1 %1042 }
 0x341   :  { %6012 = vpow2.f32 %v489_v55  ;;  %362 = vadd.xlane.f32.xlu2 %v361_v54  ;;  %v1044_v19 = vsub.f32 %v6604_v4, %v1043_v6 }
 0x342   :  { %6014 = vpow2.f32 %v784_v56 }
 0x343   :  { %v1045_v21 = vmul.f32 1.442695, %v1044_v19  ;;  %v5603_v19 = vld [vmem:[%s8129_s2 + $0x78] sm:$0xff] }
 0x344   :  { %v913_v59 = vpop.xlane.xlu0 %912  ;;  %1262 = vmatpush.msra.mxu1 %v5603_v19  ;;  %v5663_v19 = vld [vmem:[%s8129_s2 + $0x98] sm:$0xff] }
 0x345   :  { %v914_v0 = vsub.f32 %v6599_v63, %v913_v59 }
 0x347   :  { %v6650_v1 = vpop.eup %6012  ;;  %v915_v2 = vmul.f32 1.442695, %v914_v0 }
 0x348   :  { %v491_v57 = vsel %vm161_vm2, %v6650_v1, 0.0  ;;  %v6656_v3 = vpop.eup %6014 }
 0x349   :  { %6016 = vpow2.f32 %v915_v2  ;;  %622 = vadd.xlane.f32.xlu2 %v621_v46  ;;  %492 = vadd.xlane.f32.xlu0 %v491_v57  ;;  %v786_v63 = vsel %vm161_vm2, %v6656_v3, 0.0 }
 0x34a   :  { %6018 = vrcp.f32 %v558_v18 }
 0x34b   :  { %6020 = vrcp.f32 %v726_v43 }
 0x34c   :  { %v854_v15 = vpop.xlane.xlu0 %853 }
 0x34d   :  { %6022 = vrcp.f32 %v854_v15 }
 0x34e   :  { %6024 = vpow2.f32 %v1045_v21  ;;  %v5602_v21 = vld [vmem:[%s8129_s2 + $0x70] sm:$0xff] }
 0x34f   :  { %v6658_v5 = vpop.eup %6016  ;;  %1263 = vmatpush.msra.mxu1 %v5602_v21  ;;  %v5662_v21 = vld [vmem:[%s8129_s2 + $0x90] sm:$0xff] }
 0x350   :  { %v917_v62 = vsel %vm161_vm2, %v6658_v5, 0.0  ;;  %v6019_v8 = vpop.eup %6018 }
 0x351   :  { %787 = vadd.xlane.f32.xlu2 %v786_v63  ;;  %918 = vadd.xlane.f32.xlu1 %v917_v62  ;;  %v560_v9 = vmul.f32 %v6019_v8, %v6558_v33  ;;  %v6021_v16 = vpop.eup %6020 }
 0x352   :  { %v728_v18 = vmul.f32 %v6021_v16, %v6595_v60 }
 0x353   :  { %v6023_v33 = vpop.eup %6022 }
 0x354   :  { %v856_v20 = vmul.f32 %v6023_v33, %v6610_v7  ;;  %v6682_v7 = vpop.eup %6024 }
 0x355   :  { %v1047_v22 = vsel %vm161_vm2, %v6682_v7, 0.0 }
 0x358   :  { %v562_v11 = vpop.permute.xlu1 %561 }
 0x359   :  { %582 = vmatpush.msrb.mxu2 %v562_v11 }
 0x35a   :  { %5630 = vmatmul.msk.f32.vlgmr.msrb.gmra.mxu2 %vm161_vm2, %v560_v9 }
 0x35b   :  { %747 = vmatpush.msra.mxu2 %v6499_v58 }
 0x35d   :  { %878 = vmatpush.msrb.mxu2 %v5933_v12  ;;  %987 = vrot.lane.b32.xlu0 %v6499_v58, %s6302_s16 }
 0x362   :  { %5636 = vmatmul.msk.f32.vlgmr.msra.gmra.mxu2 %vm161_vm2, %v728_v18 }
 0x369   :  { %1117 = vrot.lane.b32.xlu2 %v6499_v58, %s6304_s18  ;;  %v324_v60 = vpop.f32.mrf.mxu2 }
 0x36a   :  { %1052 = vrot.lane.b32.xlu1 %v6499_v58, %s6303_s17  ;;  %5642 = vmatmul.msk.f32.vlgmr.msrb.gmra.mxu2 %vm161_vm2, %v856_v20 }
 0x372   :  { %1182 = vrot.lane.b32.xlu1 %v6499_v58, %s6301_s15 }
 0x37a   :  { %657 = vrot.lane.b32.xlu1 %v324_v60, %s6305_s19  ;;  %v5601_v60 = vld [vmem:[%s8129_s2 + $0x68] sm:$0xff] }
 0x37b   :  { %1264 = vmatpush.msra.mxu1 %v5601_v60  ;;  %v5661_v60 = vld [vmem:[%s8129_s2 + $0x88] sm:$0xff] }
 0x387   :  { %1048 = vadd.xlane.f32.xlu0 %v1047_v22 }
 0x397   :  { %v984_v25 = vpop.xlane.xlu0 %983 }
 0x39f   :  { %v1173_v27 = vpop.xlane.xlu0 %1172 }
 0x3a0   :  { %v1174_v28 = vsub.f32 %v6625_v23, %v1173_v27 }
 0x3a2   :  { %v1175_v58 = vmul.f32 1.442695, %v1174_v28 }
 0x3a4   :  { %6026 = vpow2.f32 %v1175_v58  ;;  %v1114_v4 = vpop.xlane.xlu2 %1113 }
 0x3aa   :  { %v6687_v29 = vpop.eup %6026 }
 0x3ab   :  { %v1177_v30 = vsel %vm161_vm2, %v6687_v29, 0.0 }
 0x3ac   :  { %v232_v31 = vpop.xlane.xlu2 %231  ;;  %1178 = vadd.xlane.f32.xlu0 %v1177_v30 }
 0x3ad   :  { %6028 = vrcp.f32 %v232_v31 }
 0x3b3   :  { %v6029_v35 = vpop.eup %6028 }
 0x3b4   :  { %v363_v36 = vpop.xlane.xlu2 %362  ;;  %v234_v38 = vmul.f32 %v6029_v35, %v6634_v44 }
 0x3b5   :  { %6030 = vrcp.f32 %v363_v36 }
 0x3b6   :  { %5615 = vmatmul.msk.f32.vlgmr.msrb.gmra.mxu0 %vm161_vm2, %v234_v38 }
 0x3b7   :  { %517 = vmatpush.msrb.mxu0 %v6572_v42 }
 0x3b9   :  { %v454_v23 = vpop.f32.mrf.mxu2 }
 0x3ba   :  { %665 = vrot.lane.b32.xlu2 %v454_v23, %s6306_s20 }
 0x3bb   :  { %v6031_v39 = vpop.eup %6030 }
 0x3bc   :  { %v365_v41 = vmul.f32 %v6031_v39, %v6641_v52  ;;  %v493_v43 = vpop.xlane.xlu0 %492  ;;  %v623_v45 = vpop.xlane.xlu2 %622  ;;  %v5938_v52 = vunpack.i.h.bf16 %v6560_v34 }
 0x3bd   :  { %6032 = vrcp.f32 %v493_v43 }
 0x3be   :  { %5621 = vmatmul.msk.f32.vlgmr.msra.gmra.mxu0 %vm161_vm2, %v365_v41  ;;  %6034 = vrcp.f32 %v623_v45 }
 0x3bf   :  { %647 = vmatpush.msra.mxu0 %v627_v26  ;;  %6036 = vrcp.f32 %v984_v25 }
 0x3c3   :  { %v6033_v47 = vpop.eup %6032 }
 0x3c4   :  { %v495_v44 = vmul.f32 %v6033_v47, %v6650_v1  ;;  %v788_v42 = vpop.xlane.xlu2 %787  ;;  %v6035_v49 = vpop.eup %6034 }
 0x3c5   :  { %v6037_v50 = vpop.eup %6036  ;;  %6038 = vrcp.f32 %v788_v42  ;;  %v625_v51 = vmul.f32 %v6035_v49, %v6647_v61  ;;  %v919_v24 = vpop.xlane.xlu1 %918 }
 0x3c6   :  { %5627 = vmatmul.msk.f32.vlgmr.msrb.gmra.mxu0 %vm161_vm2, %v495_v44  ;;  %6040 = vrcp.f32 %v1114_v4  ;;  %v986_v53 = vmul.f32 %v6037_v50, %v6620_v17 }
 0x3c7   :  { %813 = vmatpush.msrb.mxu0 %v5928_v40  ;;  %6042 = vrcp.f32 %v919_v24  ;;  %v1243_v24 = vperm.slane %v6411_v13, 3 }
 0x3cb   :  { %v6039_v54 = vpop.eup %6038 }
 0x3cc   :  { %v1118_v55 = vpop.permute.xlu2 %1117  ;;  %v6041_v56 = vpop.eup %6040  ;;  %v790_v59 = vmul.f32 %v6039_v54, %v6656_v3 }
 0x3cd   :  { %v1116_v34 = vmul.f32 %v6041_v56, %v6629_v32  ;;  %v6043_v17 = vpop.eup %6042 }
 0x3ce   :  { %5633 = vmatmul.msk.f32.vlgmr.msra.gmra.mxu0 %vm161_vm2, %v625_v51  ;;  %v921_v0 = vmul.f32 %v6043_v17, %v6658_v5 }
 0x3cf   :  { %v988_v48 = vpop.permute.xlu0 %987  ;;  %943 = vmatpush.msra.mxu0 %v5938_v52 }
 0x3d0   :  { %1008 = vmatpush.msra.mxu2 %v988_v48 }
 0x3d1   :  { %5648 = vmatmul.msk.f32.vlgmr.msra.gmra.mxu2 %vm161_vm2, %v986_v53 }
 0x3d2   :  { %1138 = vmatpush.msrb.mxu2 %v1118_v55 }
 0x3d4   :  { %1371 = vmatpush.msra.mxu2 %v5663_v19 }
 0x3d6   :  { %5639 = vmatmul.msk.f32.vlgmr.msrb.gmra.mxu0 %vm161_vm2, %v790_v59  ;;  %1372 = vmatpush.msra.mxu2 %v5662_v21 }
 0x3d8   :  { %1373 = vmatpush.msra.mxu2 %v5661_v60 }
 0x3d9   :  { %5654 = vmatmul.msk.f32.vlgmr.msrb.gmra.mxu2 %vm161_vm2, %v1116_v34 }
 0x3dc   :  { %v1053_v61 = vpop.permute.xlu1 %1052 }
 0x3dd   :  { %v584_v1 = vpop.f32.mrf.mxu2  ;;  %1073 = vmatpush.msrb.mxu0 %v1053_v61 }
 0x3de   :  { %673 = vrot.lane.b32.xlu2 %v584_v1, %s8140_s21  ;;  %5645 = vmatmul.msk.f32.vlgmr.msra.gmra.mxu0 %vm161_vm2, %v921_v0  ;;  %v6312_v1 = vmov 32.0  }
 0x3e4   :  { %v1183_v2 = vpop.permute.xlu1 %1182 }
 0x3e5   :  { %1203 = vmatpush.msra.mxu0 %v1183_v2  ;;  %v749_v62 = vpop.f32.mrf.mxu2 }
 0x3ec   :  { %v658_v25 = vpop.permute.xlu1 %657 }
 0x3ed   :  { %v880_v9 = vpop.f32.mrf.mxu2 }
 0x3fa   :  { %v1049_v46 = vpop.xlane.xlu0 %1048 }
 0x3fb   :  { %6044 = vrcp.f32 %v1049_v46 }
 0x401   :  { %v6045_v32 = vpop.eup %6044 }
 0x402   :  { %v1051_v57 = vmul.f32 %v6045_v32, %v6682_v7  ;;  %v5600_v7 = vld [vmem:[%s8129_s2 + $0x60] sm:$0xff] }
 0x403   :  { %1265 = vmatpush.msra.mxu1 %v5600_v7  ;;  %v5660_v7 = vld [vmem:[%s8129_s2 + $0x80] sm:$0xff] }
 0x404   :  { %5651 = vmatmul.msk.f32.vlgmr.msrb.gmra.mxu0 %vm161_vm2, %v1051_v57  ;;  %1374 = vmatpush.msra.mxu2 %v5660_v7 }
 0x414   :  { %v666_v58 = vpop.permute.xlu2 %665 }
 0x41f   :  { %v1179_v3 = vpop.xlane.xlu0 %1178 }
 0x420   :  { %6046 = vrcp.f32 %v1179_v3 }
 0x421   :  { %6048 = vrcp.f32 %v6312_v1 }
 0x426   :  { %v6047_v6 = vpop.eup %6046 }
 0x427   :  { %v1181_v5 = vmul.f32 %v6047_v6, %v6687_v29  ;;  %v6049_v2 = vpop.eup %6048 }
 0x428   :  { %v1282_v46 = vmul.f32 32.0, %v6049_v2  ;;  %vm1286_vm8 = vweird.f32 %v6049_v2 }
 0x429   :  { %5657 = vmatmul.msk.f32.vlgmr.msra.gmra.mxu0 %vm161_vm2, %v1181_v5 }
 0x42a   :  { %v1283_v32 = vsub.f32 1.0, %v1282_v46 }
 0x42c   :  { %v1284_v13 = vmul.f32 %v6049_v2, %v1283_v32 }
 0x42e   :  { %v1285_v57 = vadd.f32 %v6049_v2, %v1284_v13 }
 0x430   :  { %v6761_v3 = vsel %vm1286_vm8, %v6049_v2, %v1285_v57 }
 0x433   :  { %v259_v63 = vpop.f32.mrf.mxu0 }
 0x434   :  { %653 = vrot.lane.b32.xlu1 %v259_v63, %s6308_s22 }
 0x438   :  { %v674_v36 = vpop.permute.xlu2 %673 }
 0x43b   :  { %v389_v8 = vpop.f32.mrf.mxu0 }
 0x43c   :  { %661 = vrot.lane.b32.xlu0 %v389_v8, %s6309_s23  ;;  %v5666_v8 = vld [vmem:[%s8129_s2 + $0xb0] sm:$0xff] }
 0x443   :  { %v519_v11 = vpop.f32.mrf.mxu0 }
 0x444   :  { %1213 = vrot.lane.b32.xlu0 %v880_v9, %s6305_s19  ;;  %669 = vrot.lane.b32.xlu1 %v519_v11, %s8138_s24  ;;  %v5665_v9 = vld [vmem:[%s8129_s2 + $0xa8] sm:$0xff] }
 0x44b   :  { %v649_v12 = vpop.f32.mrf.mxu0 }
 0x44c   :  { %677 = vrot.lane.b32.xlu1 %v649_v12, %s8136_s25 }
 0x453   :  { %v815_v15 = vpop.f32.mrf.mxu0 }
 0x454   :  { %v1010_v16 = vpop.f32.mrf.mxu2 }
 0x455   :  { %1221 = vrot.lane.b32.xlu2 %v1010_v16, %s6306_s20 }
 0x45b   :  { %v945_v18 = vpop.f32.mrf.mxu0 }
 0x45c   :  { %1217 = vrot.lane.b32.xlu1 %v945_v18, %s6309_s23  ;;  %v1140_v33 = vpop.f32.mrf.mxu2 }
 0x45d   :  { %1209 = vrot.lane.b32.xlu2 %v815_v15, %s6308_s22 }
 0x464   :  { %1229 = vrot.lane.b32.xlu1 %v1140_v33, %s8140_s21  ;;  %v5664_v33 = vld [vmem:[%s8129_s2 + $0xa0] sm:$0xff] }
 0x481   :  { %v1075_v20 = vpop.f32.mrf.mxu0 }
 0x482   :  { %1225 = vrot.lane.b32.xlu0 %v1075_v20, %s8138_s24  ;;  %v32_v20 = vld [vmem:[%s8128_s1] sm:$0xff] }
 0x4a6   :  { %v1205_v22 = vpop.f32.mrf.mxu0  ;;  %v654_v26 = vpop.permute.xlu1 %653 }
 0x4a7   :  { %1233 = vrot.lane.b32.xlu2 %v1205_v22, %s8136_s25  ;;  %v680_v27 = vsel %vm134_vm1, %v6565_v37, %v654_v26 }
 0x4a8   :  { %v681_v4 = vsel %vm161_vm2, %v680_v27, %v658_v25 }
 0x4ae   :  { %v662_v28 = vpop.permute.xlu0 %661 }
 0x4af   :  { %v683_v30 = vsel %vm682_vm3, %v681_v4, %v662_v28  ;;  %v1222_v39 = vpop.permute.xlu2 %1221 }
 0x4b0   :  { %v685_v31 = vsel %vm684_vm4, %v683_v30, %v666_v58 }
 0x4b6   :  { %v670_v29 = vpop.permute.xlu1 %669  ;;  %v1214_v41 = vpop.permute.xlu0 %1213 }
 0x4b7   :  { %v687_v35 = vsel %vm686_vm5, %v685_v31, %v670_v29  ;;  %v1210_v43 = vpop.permute.xlu2 %1209  ;;  %v35_v29 = vld [vmem:[%s8132_s5 + $0x8] sm:$0xff] }
 0x4b8   :  { %v689_v38 = vsel %vm688_vm6, %v687_v35, %v674_v36  ;;  %v1236_v45 = vsel %vm134_vm1, %v749_v62, %v1210_v43  ;;  %v5667_v62 = vld [vmem:[%s8129_s2 + $0xb8] sm:$0xff]  ;;  %v1326_v35 = vperm.slane %v35_v29, 1 }
 0x4b9   :  { %v1237_v44 = vsel %vm161_vm2, %v1236_v45, %v1214_v41  ;;  %1401 = vmatpush.msra.mxu3 %v5667_v62  ;;  %v33_v41 = vld [vmem:[%s8128_s1 + $0x8] sm:$0xff]  ;;  %v5671_v43 = vld [vmem:[%s8129_s2 + $0xd8] sm:$0xff]  ;;  %v5670_v45 = vld [vmem:[%s8129_s2 + $0xd0] sm:$0xff] }
 0x4ba   :  { %1425 = vmatpush.msrb.mxu0 %v5671_v43 }
 0x4bb   :  { %1402 = vmatpush.msra.mxu3 %v5666_v8 }
 0x4bc   :  { %1426 = vmatpush.msrb.mxu0 %v5670_v45 }
 0x4bd   :  { %1403 = vmatpush.msra.mxu3 %v5665_v9 }
 0x4be   :  { %v678_v37 = vpop.permute.xlu1 %677 }
 0x4bf   :  { %v691_v23 = vsel %vm690_vm7, %v689_v38, %v678_v37  ;;  %1404 = vmatpush.msra.mxu3 %v5664_v33  ;;  %v1329_v37 = vperm.slane %v35_v29, 2 }
 0x4c0   :  { %5658 = vmatmul.msk.f32.vlgmr.msra.gmra.mxu1 %vm56_vm0, %v691_v23  ;;  %5678 = vmatmul.msk.f32.vlgmr.msra.gmra.mxu3 %vm56_vm0, %v32_v20 }
 0x4c8   :  { %5679 = vmatmul.msk.f32.gmra.mxu3 %vm56_vm0, %v33_v41 }
 0x4ce   :  { %v1218_v47 = vpop.permute.xlu1 %1217 }
 0x4cf   :  { %v1238_v40 = vsel %vm682_vm3, %v1237_v44, %v1218_v47  ;;  %v5669_v47 = vld [vmem:[%s8129_s2 + $0xc8] sm:$0xff] }
 0x4d0   :  { %v1239_v49 = vsel %vm684_vm4, %v1238_v40, %v1222_v39  ;;  %1427 = vmatpush.msrb.mxu0 %v5669_v47 }
 0x4d6   :  { %v1230_v51 = vpop.permute.xlu1 %1229 }
 0x4f4   :  { %v1226_v42 = vpop.permute.xlu0 %1225 }
 0x4f5   :  { %v1240_v50 = vsel %vm686_vm5, %v1239_v49, %v1226_v42  ;;  %v5668_v42 = vld [vmem:[%s8129_s2 + $0xc0] sm:$0xff] }
 0x4f6   :  { %v1241_v53 = vsel %vm688_vm6, %v1240_v50, %v1230_v51  ;;  %1428 = vmatpush.msrb.mxu0 %v5668_v42 }
 0x4f7   :  { %5680 = vmatmul.msk.f32.vlgmr.msrb.gmra.mxu0 %vm56_vm0, %v32_v20 }
 0x4ff   :  { %5681 = vmatmul.msk.f32.gmra.mxu0 %vm56_vm0, %v33_v41 }
 0x501   :  { %v1234_v52 = vpop.permute.xlu2 %1233 }
 0x502   :  { %v1242_v48 = vsel %vm690_vm7, %v1241_v53, %v1234_v52 }
 0x503   :  { %5659 = vmatmul.msk.f32.gmra.mxu1 %vm56_vm0, %v1242_v48 }
 0x53d   :  { %v1267_v55 = vpop.f32.mrf.mxu1 }
 0x53e   :  { %v1268_v54 = vadd.f32 %v1267_v55, %v1243_v24 }
 0x540   :  { %v1273_v56 = vadd.f32 %v1268_v54, %v6394_v10 }
 0x542   :  { %v1275_v59 = vsel %vm56_vm0, %v1273_v56, 0.0 }
 0x543   :  { %1276 = vadd.xlane.f32.xlu0 %v1275_v59 }
 0x580   :  { %v1270_v34 = vpop.f32.mrf.mxu1 }
 0x581   :  { %v1271_v17 = vadd.f32 %v1270_v34, %v1243_v24  ;;  %v6834_v34 = vld [vmem:[%s8132_s5] sm:$0xff] }
 0x582   :  { %v1352_v1 = vperm.slane %v6834_v34, 4  ;;  %v1412_v57 = vperm.slane %v6834_v34, 6 }
 0x583   :  { %v1274_v61 = vadd.f32 %v1271_v17, %v6416_v14  ;;  %v1382_v17 = vperm.slane %v6834_v34, 5 }
 0x585   :  { %v1278_v0 = vsel %vm56_vm0, %v1274_v61, 0.0 }
 0x586   :  { %1279 = vadd.xlane.f32.xlu1 %v1278_v0 }
 0x5b6   :  { %v1277_v10 = vpop.xlane.xlu0 %1276 }
 0x5b7   :  { %v1288_v6 = vmul.f32 %v6761_v3, %v1277_v10  ;;  %v1430_v10 = vpop.f32.mrf.mxu0 }
 0x5b9   :  { %v1290_v5 = vsub.f32 %v1273_v56, %v1288_v6  ;;  %v6858_v6 = vadd.f32 %v1430_v10, %v1412_v57 }
 0x5bb   :  { %v1292_v63 = vmul.f32 %v1290_v5, %v1290_v5  ;;  %1491 = vmatpush.msrb.mxu2 %v6858_v6 }
 0x5bd   :  { %v1294_v14 = vsel %vm56_vm0, %v1292_v63, 0.0 }
 0x5be   :  { %1295 = vadd.xlane.f32.xlu2 %v1294_v14 }
 0x5f9   :  { %v1280_v11 = vpop.xlane.xlu1 %1279 }
 0x5fa   :  { %v1289_v12 = vmul.f32 %v6761_v3, %v1280_v11  ;;  %v1433_v11 = vpop.f32.mrf.mxu0 }
 0x5fc   :  { %v6775_v15 = vsub.f32 %v1274_v61, %v1289_v12  ;;  %v1406_v61 = vpop.f32.mrf.mxu3  ;;  %v6872_v12 = vadd.f32 %v1433_v11, %v1412_v57 }
 0x5fd   :  { %v1407_v0 = vadd.f32 %v1406_v61, %v1382_v17 }
 0x5fe   :  { %v1293_v16 = vmul.f32 %v6775_v15, %v6775_v15 }
 0x5ff   :  { %1498 = vrot.lane.b32.xlu1 %v1407_v0, %s6299_s13  ;;  %5682 = vmatpush.xpose.msk.msrb.mxu1 %vm134_vm1, %v1407_v0 }
 0x600   :  { %v1297_v18 = vsel %vm56_vm0, %v1293_v16, 0.0 }
 0x601   :  { %1298 = vadd.xlane.f32.xlu0 %v1297_v18 }
 0x604   :  { %v1409_v32 = vpop.f32.mrf.mxu3 }
 0x605   :  { %v1410_v13 = vadd.f32 %v1409_v32, %v1382_v17 }
 0x607   :  { %1759 = vrot.lane.b32.xlu1 %v1407_v0, %s6303_s17 }
 0x615   :  { %1564 = vrot.lane.b32.xlu0 %v1407_v0, %s6298_s0 }
 0x61d   :  { %1629 = vrot.lane.b32.xlu0 %v1407_v0, %s6300_s14 }
 0x625   :  { %1694 = vrot.lane.b32.xlu0 %v1407_v0, %s6302_s16 }
 0x631   :  { %v1296_v22 = vpop.xlane.xlu2 %1295 }
 0x632   :  { %v1300_v25 = vmul.f32 %v1296_v22, %v6761_v3 }
 0x634   :  { %v1302_v26 = vadd.f32 1e-05, %v1300_v25 }
 0x636   :  { %6050 = vrsqrt.f32 %v1302_v26  ;;  %vm1310_vm10 = vweird.f32 %v1302_v26 }
 0x63c   :  { %v6051_v27 = vpop.eup %6050 }
 0x63d   :  { %v1305_v28 = vmul.f32 %v6051_v27, %v1302_v26  ;;  %vm1311_vm9 = vweird.f32 %v6051_v27 }
 0x63e   :  { %vm1312_vm11 = vmor %vm1310_vm10, %vm1311_vm9 }
 0x63f   :  { %v1306_v58 = vmul.f32 %v6051_v27, %v1305_v28 }
 0x641   :  { %v1307_v4 = vmul.f32 0.5, %v1306_v58 }
 0x643   :  { %v1308_v30 = vsub.f32 1.5, %v1307_v4 }
 0x645   :  { %v1309_v31 = vmul.f32 %v6051_v27, %v1308_v30 }
 0x647   :  { %v1313_v36 = vsel %vm1312_vm11, %v6051_v27, %v1309_v31 }
 0x648   :  { %v1324_v38 = vmul.f32 %v1313_v36, %v1290_v5 }
 0x64a   :  { %v1327_v23 = vmul.f32 %v1326_v35, %v1324_v38 }
 0x64c   :  { %v6803_v39 = vadd.f32 %v1329_v37, %v1327_v23 }
 0x64e   :  { %5676 = vmatmul.msk.f32.vlgmr.msra.gmra.mxu2 %vm56_vm0, %v6803_v39 }
 0x671   :  { %v1499_v5 = vpop.permute.xlu1 %1498 }
 0x672   :  { %5685 = vmatpush.xpose.msk.msrb.mxu3 %vm134_vm1, %v1499_v5 }
 0x674   :  { %v1299_v44 = vpop.xlane.xlu0 %1298 }
 0x675   :  { %v1301_v40 = vmul.f32 %v1299_v44, %v6761_v3 }
 0x677   :  { %v1303_v49 = vadd.f32 1e-05, %v1301_v40 }
 0x679   :  { %6052 = vrsqrt.f32 %v1303_v49  ;;  %vm1320_vm13 = vweird.f32 %v1303_v49  ;;  %v1760_v18 = vpop.permute.xlu1 %1759 }
 0x67f   :  { %v6053_v50 = vpop.eup %6052 }
 0x680   :  { %v1315_v51 = vmul.f32 %v6053_v50, %v1303_v49  ;;  %vm1321_vm12 = vweird.f32 %v6053_v50 }
 0x681   :  { %vm1322_vm14 = vmor %vm1320_vm13, %vm1321_vm12  ;;  %vm2665_vm13 = vcmask 523264  }
 0x682   :  { %v1316_v52 = vmul.f32 %v6053_v50, %v1315_v51 }
 0x684   :  { %v1317_v53 = vmul.f32 0.5, %v1316_v52 }
 0x686   :  { %v1318_v48 = vsub.f32 1.5, %v1317_v53 }
 0x687   :  { %v1565_v63 = vpop.permute.xlu0 %1564 }
 0x688   :  { %v1319_v24 = vmul.f32 %v6053_v50, %v1318_v48  ;;  %5688 = vmatpush.xpose.msk.msra.mxu1 %vm134_vm1, %v1565_v63 }
 0x68a   :  { %v1323_v55 = vsel %vm1322_vm14, %v6053_v50, %v1319_v24 }
 0x68b   :  { %v1325_v54 = vmul.f32 %v1323_v55, %v6775_v15  ;;  %v5939_v15 = vpack.i.bf16 %v6872_v12, %v6858_v6 }
 0x68d   :  { %v1328_v56 = vmul.f32 %v1326_v35, %v1325_v54 }
 0x68f   :  { %v6827_v59 = vadd.f32 %v1329_v37, %v1328_v56  ;;  %v1630_v8 = vpop.permute.xlu0 %1629 }
 0x690   :  { %5691 = vmatpush.xpose.msk.msra.mxu3 %vm134_vm1, %v1630_v8 }
 0x691   :  { %5677 = vmatmul.msk.f32.gmra.mxu2 %vm56_vm0, %v6827_v59 }
 0x697   :  { %v1695_v9 = vpop.permute.xlu0 %1694 }
 0x6d1   :  { %v1376_v2 = vpop.f32.mrf.mxu2 }
 0x6d2   :  { %v1377_v46 = vadd.f32 %v1376_v2, %v1352_v1 }
 0x6d4   :  { %1757 = vrot.lane.b32.xlu0 %v1377_v46, %s6303_s17  ;;  %1562 = vrot.lane.b32.xlu1 %v1377_v46, %s6298_s0 }
 0x6d5   :  { %1496 = vrot.lane.b32.xlu2 %v1377_v46, %s6299_s13  ;;  %5683 = vmatmul.msk.f32.vlgmr.msrb.gmra.mxu1 %vm134_vm1, %v1377_v46 }
 0x6d6   :  { %5694 = vmatpush.xpose.msk.msrb.mxu1 %vm134_vm1, %v1695_v9 }
 0x6dc   :  { %1822 = vrot.lane.b32.xlu0 %v1377_v46, %s6304_s18  ;;  %1824 = vrot.lane.b32.xlu1 %v1407_v0, %s6304_s18 }
 0x6dd   :  { %1889 = vrot.lane.b32.xlu2 %v1407_v0, %s6301_s15 }
 0x6e4   :  { %1887 = vrot.lane.b32.xlu1 %v1377_v46, %s6301_s15 }
 0x6e5   :  { %1627 = vrot.lane.b32.xlu2 %v1377_v46, %s6300_s14 }
 0x6ec   :  { %2115 = vrot.lane.b32.xlu1 %v1410_v13, %s6298_s0 }
 0x6ed   :  { %1692 = vrot.lane.b32.xlu2 %v1377_v46, %s6302_s16 }
 0x6f5   :  { %2049 = vrot.lane.b32.xlu2 %v1410_v13, %s6299_s13 }
 0x6fd   :  { %2180 = vrot.lane.b32.xlu2 %v1410_v13, %s6300_s14 }
 0x705   :  { %2245 = vrot.lane.b32.xlu2 %v1410_v13, %s6302_s16 }
 0x714   :  { %v1379_v14 = vpop.f32.mrf.mxu2 }
 0x715   :  { %v1380_v62 = vadd.f32 %v1379_v14, %v1352_v1 }
 0x717   :  { %2047 = vrot.lane.b32.xlu0 %v1380_v62, %s6299_s13  ;;  %2178 = vrot.lane.b32.xlu1 %v1380_v62, %s6300_s14 }
 0x718   :  { %2308 = vrot.lane.b32.xlu2 %v1380_v62, %s6303_s17 }
 0x71f   :  { %2113 = vrot.lane.b32.xlu0 %v1380_v62, %s6298_s0  ;;  %2243 = vrot.lane.b32.xlu1 %v1380_v62, %s6302_s16 }
 0x720   :  { %2373 = vrot.lane.b32.xlu2 %v1380_v62, %s6304_s18 }
 0x727   :  { %2310 = vrot.lane.b32.xlu0 %v1410_v13, %s6303_s17  ;;  %2440 = vrot.lane.b32.xlu1 %v1410_v13, %s6301_s15 }
 0x728   :  { %5940 = vrot.lane.b32.xlu2 %v5939_v15, %s6299_s13 }
 0x72f   :  { %2375 = vrot.lane.b32.xlu0 %v1410_v13, %s6304_s18  ;;  %5945 = vrot.lane.b32.xlu1 %v5939_v15, %s6298_s0  ;;  %v1497_v16 = vpop.permute.xlu2 %1496 }
 0x730   :  { %1861 = vrot.lane.b32.xlu2 %v6858_v6, %s6304_s18  ;;  %5686 = vmatmul.msk.f32.vlgmr.msrb.gmra.mxu3 %vm134_vm1, %v1497_v16 }
 0x731   :  { %5697 = vmatpush.xpose.msk.msrb.mxu3 %vm134_vm1, %v1760_v18 }
 0x737   :  { %2438 = vrot.lane.b32.xlu0 %v1380_v62, %s6301_s15  ;;  %1731 = vrot.lane.b32.xlu1 %v6858_v6, %s6302_s16  ;;  %v1890_v33 = vpop.permute.xlu2 %1889 }
 0x73f   :  { %5950 = vrot.lane.b32.xlu0 %v5939_v15, %s6300_s14  ;;  %v1628_v20 = vpop.permute.xlu2 %1627 }
 0x740   :  { %5692 = vmatmul.msk.f32.vlgmr.msra.gmra.mxu3 %vm134_vm1, %v1628_v20 }
 0x741   :  { %5703 = vmatpush.xpose.msk.msra.mxu3 %vm134_vm1, %v1890_v33 }
 0x746   :  { %v1758_v19 = vpop.permute.xlu0 %1757  ;;  %v1563_v21 = vpop.permute.xlu1 %1562 }
 0x747   :  { %1796 = vrot.lane.b32.xlu0 %v6858_v6, %s6303_s17  ;;  %v1693_v60 = vpop.permute.xlu2 %1692  ;;  %5689 = vmatmul.msk.f32.vlgmr.msra.gmra.mxu1 %vm134_vm1, %v1563_v21 }
 0x748   :  { %5698 = vmatmul.msk.f32.vlgmr.msrb.gmra.mxu3 %vm134_vm1, %v1758_v19 }
 0x74e   :  { %v1825_v7 = vpop.permute.xlu1 %1824  ;;  %v1823_v25 = vpop.permute.xlu0 %1822 }
 0x74f   :  { %5695 = vmatmul.msk.f32.vlgmr.msrb.gmra.mxu1 %vm134_vm1, %v1693_v60  ;;  %v2050_v22 = vpop.permute.xlu2 %2049 }
 0x750   :  { %5700 = vmatpush.xpose.msk.msra.mxu1 %vm134_vm1, %v1825_v7  ;;  %5709 = vmatpush.xpose.msk.msrb.mxu3 %vm134_vm1, %v2050_v22 }
 0x752   :  { %v1459_v28 = vpop.f32.mrf.mxu1 }
 0x753   :  { %v1462_v4 = vsel %vm161_vm2, %v1459_v28, -inf }
 0x754   :  { %5706 = vmatpush.xpose.msk.msrb.mxu1 %vm134_vm1, %v1410_v13 }
 0x756   :  { %v1888_v26 = vpop.permute.xlu1 %1887 }
 0x757   :  { %5701 = vmatmul.msk.f32.vlgmr.msra.gmra.mxu1 %vm134_vm1, %v1823_v25  ;;  %5704 = vmatmul.msk.f32.vlgmr.msra.gmra.mxu3 %vm134_vm1, %v1888_v26  ;;  %v2181_v27 = vpop.permute.xlu2 %2180 }
 0x758   :  { %5715 = vmatpush.xpose.msk.msra.mxu3 %vm134_vm1, %v2181_v27 }
 0x75e   :  { %v2116_v58 = vpop.permute.xlu1 %2115 }
 0x75f   :  { %5707 = vmatmul.msk.f32.vlgmr.msrb.gmra.mxu1 %vm134_vm1, %v1380_v62  ;;  %v2246_v29 = vpop.permute.xlu2 %2245 }
 0x760   :  { %5712 = vmatpush.xpose.msk.msra.mxu1 %vm134_vm1, %v2116_v58 }
 0x761   :  { %1463 = vmax.xlane.f32.xlu1 %v1462_v4 }
 0x764   :  { %5718 = vmatpush.xpose.msk.msrb.mxu1 %vm134_vm1, %v2246_v29 }
 0x772   :  { %v2309_v30 = vpop.permute.xlu2 %2308 }
 0x77a   :  { %v2374_v31 = vpop.permute.xlu2 %2373 }
 0x782   :  { %v6906_v35 = vpop.permute.xlu2 %5940 }
 0x783   :  { %v5942_v36 = vunpack.i.l.bf16 %v6906_v35 }
 0x785   :  { %1557 = vmatpush.msra.mxu0 %v5942_v36 }
 0x789   :  { %v2048_v38 = vpop.permute.xlu0 %2047  ;;  %v2179_v37 = vpop.permute.xlu1 %2178 }
 0x78a   :  { %5710 = vmatmul.msk.f32.vlgmr.msrb.gmra.mxu3 %vm134_vm1, %v2048_v38  ;;  %v6978_v21 = vpop.permute.xlu2 %1861 }
 0x791   :  { %v2114_v23 = vpop.permute.xlu0 %2113  ;;  %v2244_v41 = vpop.permute.xlu1 %2243 }
 0x792   :  { %5713 = vmatmul.msk.f32.vlgmr.msra.gmra.mxu1 %vm134_vm1, %v2114_v23  ;;  %5716 = vmatmul.msk.f32.vlgmr.msra.gmra.mxu3 %vm134_vm1, %v2179_v37 }
 0x799   :  { %v2311_v43 = vpop.permute.xlu0 %2310  ;;  %v2441_v45 = vpop.permute.xlu1 %2440 }
 0x79a   :  { %5719 = vmatmul.msk.f32.vlgmr.msrb.gmra.mxu1 %vm134_vm1, %v2244_v41  ;;  %5721 = vmatpush.xpose.msk.msrb.mxu3 %vm134_vm1, %v2311_v43 }
 0x79d   :  { %5722 = vmatmul.msk.f32.vlgmr.msrb.gmra.mxu3 %vm134_vm1, %v2309_v30 }
 0x79e   :  { %5727 = vmatpush.xpose.msk.msra.mxu3 %vm134_vm1, %v2441_v45 }
 0x7a1   :  { %v2376_v47 = vpop.permute.xlu0 %2375  ;;  %v6916_v44 = vpop.permute.xlu1 %5945 }
 0x7a2   :  { %5724 = vmatpush.xpose.msk.msra.mxu1 %vm134_vm1, %v2376_v47  ;;  %v5947_v40 = vunpack.i.l.bf16 %v6916_v44 }
 0x7a4   :  { %1622 = vmatpush.msra.mxu2 %v5947_v40 }
 0x7a5   :  { %5725 = vmatmul.msk.f32.vlgmr.msra.gmra.mxu1 %vm134_vm1, %v2374_v31 }
 0x7a9   :  { %v2439_v42 = vpop.permute.xlu0 %2438  ;;  %v6934_v54 = vpop.permute.xlu1 %1731 }
 0x7aa   :  { %5728 = vmatmul.msk.f32.vlgmr.msra.gmra.mxu3 %vm134_vm1, %v2439_v42 }
 0x7b1   :  { %v6922_v49 = vpop.permute.xlu0 %5950 }
 0x7b2   :  { %v5952_v50 = vunpack.i.l.bf16 %v6922_v49 }
 0x7b3   :  { %v1521_v51 = vpop.f32.mrf.mxu3 }
 0x7b4   :  { %1687 = vmatpush.msrb.mxu0 %v5952_v50  ;;  %v1524_v52 = vsel %vm161_vm2, %v1521_v51, -inf }
 0x7b5   :  { %1525 = vmax.xlane.f32.xlu2 %v1524_v52 }
 0x7b9   :  { %v6990_v4 = vpop.permute.xlu0 %1796 }
 0x7c3   :  { %v6926_v53 = vpop.f32.mrf.mxu3 }
 0x7c4   :  { %v6928_v48 = vpop.f32.mrf.mxu1  ;;  %v1655_v24 = vsel %vm161_vm2, %v6926_v53, -inf }
 0x7c5   :  { %1656 = vmax.xlane.f32.xlu2 %v1655_v24  ;;  %v1590_v55 = vsel %vm161_vm2, %v6928_v48, -inf }
 0x7c6   :  { %1591 = vmax.xlane.f32.xlu0 %v1590_v55 }
 0x7cb   :  { %v6936_v56 = vpop.f32.mrf.mxu3 }
 0x7cc   :  { %v6938_v17 = vpop.f32.mrf.mxu1  ;;  %v1785_v61 = vsel %vm161_vm2, %v6936_v56, -inf }
 0x7cd   :  { %1786 = vmax.xlane.f32.xlu2 %v1785_v61  ;;  %v1720_v0 = vsel %vm161_vm2, %v6938_v17, -inf }
 0x7ce   :  { %1721 = vmax.xlane.f32.xlu1 %v1720_v0 }
 0x7d4   :  { %v1464_v1 = vpop.xlane.xlu1 %1463  ;;  %v6944_v2 = vpop.f32.mrf.mxu1 }
 0x7d5   :  { %v1465_v46 = vsub.f32 %v1459_v28, %v1464_v1  ;;  %v1850_v32 = vsel %vm161_vm2, %v6944_v2, -inf }
 0x7d6   :  { %1851 = vmax.xlane.f32.xlu0 %v1850_v32 }
 0x7d7   :  { %v1466_v13 = vmul.f32 1.442695, %v1465_v46 }
 0x7d9   :  { %6054 = vpow2.f32 %v1466_v13 }
 0x7da   :  { %v6956_v14 = vpop.f32.mrf.mxu3 }
 0x7db   :  { %v1915_v62 = vsel %vm161_vm2, %v6956_v14, -inf }
 0x7dc   :  { %v6948_v57 = vpop.f32.mrf.mxu1 }
 0x7dd   :  { %v2013_v10 = vsel %vm161_vm2, %v6948_v57, -inf }
 0x7de   :  { %2014 = vmax.xlane.f32.xlu2 %v2013_v10 }
 0x7df   :  { %v6952_v5 = vpop.eup %6054 }
 0x7e0   :  { %v1468_v63 = vsel %vm161_vm2, %v6952_v5, 0.0 }
 0x7e1   :  { %1469 = vadd.xlane.f32.xlu1 %v1468_v63 }
 0x7e9   :  { %1916 = vmax.xlane.f32.xlu1 %v1915_v62 }
 0x80d   :  { %v6960_v8 = vpop.f32.mrf.mxu3 }
 0x80e   :  { %v2075_v9 = vsel %vm161_vm2, %v6960_v8, -inf }
 0x80f   :  { %v6964_v11 = vpop.f32.mrf.mxu1  ;;  %2076 = vmax.xlane.f32.xlu0 %v2075_v9 }
 0x810   :  { %v2141_v15 = vsel %vm161_vm2, %v6964_v11, -inf }
 0x811   :  { %2142 = vmax.xlane.f32.xlu1 %v2141_v15 }
 0x815   :  { %v6968_v16 = vpop.f32.mrf.mxu3 }
 0x816   :  { %v2206_v18 = vsel %vm161_vm2, %v6968_v16, -inf }
 0x817   :  { %v6972_v33 = vpop.f32.mrf.mxu1  ;;  %2207 = vmax.xlane.f32.xlu2 %v2206_v18 }
 0x818   :  { %v2271_v20 = vsel %vm161_vm2, %v6972_v33, -inf }
 0x819   :  { %2272 = vmax.xlane.f32.xlu0 %v2271_v20 }
 0x820   :  { %v6976_v19 = vpop.f32.mrf.mxu3 }
 0x821   :  { %v2336_v60 = vsel %vm161_vm2, %v6976_v19, -inf }
 0x822   :  { %v6982_v7 = vpop.f32.mrf.mxu1  ;;  %2337 = vmax.xlane.f32.xlu2 %v2336_v60 }
 0x823   :  { %v2401_v22 = vsel %vm161_vm2, %v6982_v7, -inf }
 0x824   :  { %2402 = vmax.xlane.f32.xlu0 %v2401_v22 }
 0x828   :  { %v1526_v25 = vpop.xlane.xlu2 %1525 }
 0x829   :  { %v1527_v26 = vsub.f32 %v1521_v51, %v1526_v25 }
 0x82b   :  { %v1528_v27 = vmul.f32 1.442695, %v1527_v26 }
 0x82d   :  { %v6986_v28 = vpop.f32.mrf.mxu3  ;;  %6056 = vpow2.f32 %v1528_v27 }
 0x82e   :  { %v2466_v58 = vsel %vm161_vm2, %v6986_v28, -inf }
 0x82f   :  { %2467 = vmax.xlane.f32.xlu0 %v2466_v58 }
 0x833   :  { %v6992_v29 = vpop.eup %6056 }
 0x834   :  { %v1530_v30 = vsel %vm161_vm2, %v6992_v29, 0.0 }
 0x835   :  { %1531 = vadd.xlane.f32.xlu1 %v1530_v30 }
 0x838   :  { %v1657_v31 = vpop.xlane.xlu2 %1656 }
 0x839   :  { %v1658_v36 = vsub.f32 %v6926_v53, %v1657_v31  ;;  %v1592_v38 = vpop.xlane.xlu0 %1591 }
 0x83a   :  { %v1593_v37 = vsub.f32 %v6928_v48, %v1592_v38 }
 0x83b   :  { %v1659_v23 = vmul.f32 1.442695, %v1658_v36 }
 0x83c   :  { %v1594_v41 = vmul.f32 1.442695, %v1593_v37 }
 0x83d   :  { %6058 = vpow2.f32 %v1659_v23 }
 0x83e   :  { %6060 = vpow2.f32 %v1594_v41 }
 0x840   :  { %v1787_v43 = vpop.xlane.xlu2 %1786 }
 0x841   :  { %v1722_v45 = vpop.xlane.xlu1 %1721  ;;  %v1788_v50 = vsub.f32 %v6936_v56, %v1787_v43 }
 0x842   :  { %v1723_v47 = vsub.f32 %v6938_v17, %v1722_v45 }
 0x843   :  { %v6999_v40 = vpop.eup %6058  ;;  %v1789_v48 = vmul.f32 1.442695, %v1788_v50 }
 0x844   :  { %v7001_v42 = vpop.eup %6060  ;;  %v1724_v51 = vmul.f32 1.442695, %v1723_v47  ;;  %v1661_v52 = vsel %vm161_vm2, %v6999_v40, 0.0 }
 0x845   :  { %1662 = vadd.xlane.f32.xlu1 %v1661_v52  ;;  %v1596_v53 = vsel %vm161_vm2, %v7001_v42, 0.0 }
 0x846   :  { %6062 = vpow2.f32 %v1724_v51  ;;  %1597 = vadd.xlane.f32.xlu2 %v1596_v53 }
 0x847   :  { %6064 = vpow2.f32 %v1789_v48 }
 0x849   :  { %v1852_v24 = vpop.xlane.xlu0 %1851 }
 0x84a   :  { %v1853_v55 = vsub.f32 %v6944_v2, %v1852_v24 }
 0x84c   :  { %v7009_v17 = vpop.eup %6062  ;;  %v1854_v61 = vmul.f32 1.442695, %v1853_v55 }
 0x84d   :  { %v1726_v56 = vsel %vm161_vm2, %v7009_v17, 0.0  ;;  %v7013_v1 = vpop.eup %6064 }
 0x84e   :  { %6066 = vpow2.f32 %v1854_v61  ;;  %1727 = vadd.xlane.f32.xlu0 %v1726_v56  ;;  %v1791_v63 = vsel %vm161_vm2, %v7013_v1, 0.0 }
 0x851   :  { %v2015_v0 = vpop.xlane.xlu2 %2014 }
 0x852   :  { %v2016_v46 = vsub.f32 %v6948_v57, %v2015_v0 }
 0x854   :  { %v1470_v32 = vpop.xlane.xlu1 %1469  ;;  %v7016_v13 = vpop.eup %6066  ;;  %v2017_v10 = vmul.f32 1.442695, %v2016_v46 }
 0x855   :  { %6068 = vrcp.f32 %v1470_v32  ;;  %v1856_v2 = vsel %vm161_vm2, %v7016_v13, 0.0 }
 0x856   :  { %6070 = vpow2.f32 %v2017_v10  ;;  %1857 = vadd.xlane.f32.xlu2 %v1856_v2  ;;  %1792 = vadd.xlane.f32.xlu0 %v1791_v63 }
 0x85b   :  { %v6069_v62 = vpop.eup %6068 }
 0x85c   :  { %v1472_v9 = vmul.f32 %v6069_v62, %v6952_v5  ;;  %v1917_v15 = vpop.xlane.xlu1 %1916  ;;  %v7023_v18 = vpop.eup %6070 }
 0x85d   :  { %v1918_v57 = vsub.f32 %v6956_v14, %v1917_v15  ;;  %v2019_v20 = vsel %vm161_vm2, %v7023_v18, 0.0 }
 0x85e   :  { %5684 = vmatmul.msk.f32.vlgmr.msrb.gmra.mxu2 %vm161_vm2, %v1472_v9  ;;  %2020 = vadd.xlane.f32.xlu0 %v2019_v20 }
 0x85f   :  { %v1919_v60 = vmul.f32 1.442695, %v1918_v57  ;;  %1752 = vmatpush.msrb.mxu2 %v6934_v54 }
 0x861   :  { %6072 = vpow2.f32 %v1919_v60 }
 0x867   :  { %v7030_v22 = vpop.eup %6072 }
 0x868   :  { %v1921_v5 = vsel %vm161_vm2, %v7030_v22, 0.0 }
 0x869   :  { %1922 = vadd.xlane.f32.xlu1 %v1921_v5 }
 0x882   :  { %v2077_v25 = vpop.xlane.xlu0 %2076 }
 0x883   :  { %v2078_v26 = vsub.f32 %v6960_v8, %v2077_v25 }
 0x884   :  { %v2143_v14 = vpop.xlane.xlu1 %2142 }
 0x885   :  { %v2079_v27 = vmul.f32 1.442695, %v2078_v26  ;;  %v2144_v58 = vsub.f32 %v6964_v11, %v2143_v14  ;;  %v5948_v26 = vunpack.i.h.bf16 %v6916_v44 }
 0x887   :  { %6074 = vpow2.f32 %v2079_v27  ;;  %v2145_v30 = vmul.f32 1.442695, %v2144_v58 }
 0x889   :  { %6076 = vpow2.f32 %v2145_v30 }
 0x88a   :  { %v2208_v31 = vpop.xlane.xlu2 %2207 }
 0x88b   :  { %v2209_v54 = vsub.f32 %v6968_v16, %v2208_v31 }
 0x88c   :  { %v2273_v36 = vpop.xlane.xlu0 %2272 }
 0x88d   :  { %v7037_v38 = vpop.eup %6074  ;;  %v2210_v37 = vmul.f32 1.442695, %v2209_v54  ;;  %v2274_v23 = vsub.f32 %v6972_v33, %v2273_v36 }
 0x88e   :  { %v2081_v41 = vsel %vm161_vm2, %v7037_v38, 0.0 }
 0x88f   :  { %v7042_v8 = vpop.eup %6076  ;;  %6078 = vpow2.f32 %v2210_v37  ;;  %v2275_v43 = vmul.f32 1.442695, %v2274_v23  ;;  %2082 = vadd.xlane.f32.xlu1 %v2081_v41 }
 0x890   :  { %v2147_v11 = vsel %vm161_vm2, %v7042_v8, 0.0 }
 0x891   :  { %6080 = vpow2.f32 %v2275_v43  ;;  %2148 = vadd.xlane.f32.xlu0 %v2147_v11  ;;  %v5953_v43 = vunpack.i.h.bf16 %v6922_v49 }
 0x895   :  { %v7046_v16 = vpop.eup %6078 }
 0x896   :  { %v2212_v45 = vsel %vm161_vm2, %v7046_v16, 0.0 }
 0x897   :  { %v7050_v47 = vpop.eup %6080  ;;  %2213 = vadd.xlane.f32.xlu2 %v2212_v45  ;;  %v2403_v50 = vpop.xlane.xlu0 %2402 }
 0x898   :  { %v2277_v33 = vsel %vm161_vm2, %v7050_v47, 0.0  ;;  %v2404_v32 = vsub.f32 %v6982_v7, %v2403_v50 }
 0x899   :  { %2278 = vadd.xlane.f32.xlu0 %v2277_v33 }
 0x8a2   :  { %v2468_v51 = vpop.xlane.xlu0 %2467 }
 0x8a3   :  { %v2469_v52 = vsub.f32 %v6986_v28, %v2468_v51  ;;  %v2338_v28 = vpop.xlane.xlu2 %2337 }
 0x8a5   :  { %v2470_v53 = vmul.f32 1.442695, %v2469_v52 }
 0x8a7   :  { %6082 = vpow2.f32 %v2470_v53 }
 0x8a8   :  { %1926 = vrot.lane.b32.xlu1 %v6858_v6, %s6301_s15  ;;  %v1532_v48 = vpop.xlane.xlu1 %1531 }
 0x8a9   :  { %6084 = vrcp.f32 %v1532_v48 }
 0x8ad   :  { %v7057_v24 = vpop.eup %6082  ;;  %2282 = vrot.lane.b32.xlu0 %v6872_v12, %s6302_s16 }
 0x8ae   :  { %v2472_v55 = vsel %vm161_vm2, %v7057_v24, 0.0 }
 0x8af   :  { %2473 = vadd.xlane.f32.xlu2 %v2472_v55  ;;  %v6085_v61 = vpop.eup %6084 }
 0x8b0   :  { %v1534_v56 = vmul.f32 %v6085_v61, %v6992_v29 }
 0x8b2   :  { %5687 = vmatmul.msk.f32.vlgmr.msra.gmra.mxu0 %vm161_vm2, %v1534_v56 }
 0x8b3   :  { %1817 = vmatpush.msra.mxu0 %v6990_v4  ;;  %v2405_v4 = vmul.f32 1.442695, %v2404_v32 }
 0x8b5   :  { %2347 = vrot.lane.b32.xlu0 %v6872_v12, %s6303_s17 }
 0x8b8   :  { %v1663_v6 = vpop.xlane.xlu1 %1662 }
 0x8b9   :  { %6086 = vrcp.f32 %v1663_v6  ;;  %v1598_v0 = vpop.xlane.xlu2 %1597 }
 0x8ba   :  { %6088 = vrcp.f32 %v1598_v0 }
 0x8bf   :  { %v6087_v46 = vpop.eup %6086 }
 0x8c0   :  { %v6089_v10 = vpop.eup %6088  ;;  %v1665_v2 = vmul.f32 %v6087_v46, %v6999_v40 }
 0x8c1   :  { %v1600_v29 = vmul.f32 %v6089_v10, %v7001_v42  ;;  %v1728_v63 = vpop.xlane.xlu0 %1727  ;;  %v2339_v42 = vsub.f32 %v6976_v19, %v2338_v28 }
 0x8c2   :  { %6090 = vrcp.f32 %v1728_v63  ;;  %5693 = vmatmul.msk.f32.vlgmr.msrb.gmra.mxu0 %vm161_vm2, %v1665_v2 }
 0x8c3   :  { %5690 = vmatmul.msk.f32.vlgmr.msra.gmra.mxu2 %vm161_vm2, %v1600_v29  ;;  %6092 = vpow2.f32 %v2405_v4  ;;  %v2340_v57 = vmul.f32 1.442695, %v2339_v42  ;;  %v5673_v42 = vld [vmem:[%s8129_s2 + $0xe8] sm:$0xff] }
 0x8c4   :  { %1882 = vmatpush.msra.mxu2 %v6978_v21 }
 0x8c7   :  { %2412 = vrot.lane.b32.xlu2 %v6872_v12, %s6304_s18 }
 0x8c8   :  { %v6091_v62 = vpop.eup %6090 }
 0x8c9   :  { %v1730_v7 = vmul.f32 %v6091_v62, %v7009_v17  ;;  %v1793_v9 = vpop.xlane.xlu0 %1792  ;;  %v1858_v40 = vpop.xlane.xlu2 %1857 }
 0x8ca   :  { %6094 = vrcp.f32 %v1793_v9  ;;  %v7080_v15 = vpop.eup %6092 }
 0x8cb   :  { %6096 = vrcp.f32 %v1858_v40  ;;  %5696 = vmatmul.msk.f32.vlgmr.msrb.gmra.mxu2 %vm161_vm2, %v1730_v7  ;;  %v2407_v20 = vsel %vm161_vm2, %v7080_v15, 0.0  ;;  %v5674_v40 = vld [vmem:[%s8129_s2 + $0xf0] sm:$0xff] }
 0x8cc   :  { %2042 = vmatpush.msrb.mxu2 %v6872_v12 }
 0x8d0   :  { %v6095_v21 = vpop.eup %6094 }
 0x8d1   :  { %v6097_v60 = vpop.eup %6096  ;;  %v1795_v17 = vmul.f32 %v6095_v21, %v7013_v1  ;;  %v2021_v5 = vpop.xlane.xlu0 %2020 }
 0x8d2   :  { %2408 = vadd.xlane.f32.xlu1 %v2407_v20  ;;  %v1860_v25 = vmul.f32 %v6097_v60, %v7016_v13  ;;  %6098 = vrcp.f32 %v2021_v5  ;;  %v5672_v20 = vld [vmem:[%s8129_s2 + $0xe0] sm:$0xff] }
 0x8d3   :  { %5699 = vmatmul.msk.f32.vlgmr.msra.gmra.mxu0 %vm161_vm2, %v1795_v17  ;;  %6100 = vpow2.f32 %v2340_v57 }
 0x8d4   :  { %5702 = vmatmul.msk.f32.vlgmr.msra.gmra.mxu2 %vm161_vm2, %v1860_v25 }
 0x8d5   :  { %2173 = vmatpush.msra.mxu2 %v5948_v26 }
 0x8d8   :  { %v6099_v19 = vpop.eup %6098 }
 0x8d9   :  { %v2023_v14 = vmul.f32 %v6099_v19, %v7023_v18  ;;  %v7090_v27 = vpop.eup %6100 }
 0x8da   :  { %v2342_v1 = vsel %vm161_vm2, %v7090_v27, 0.0 }
 0x8dc   :  { %5708 = vmatmul.msk.f32.vlgmr.msrb.gmra.mxu2 %vm161_vm2, %v2023_v14  ;;  %v1923_v13 = vpop.xlane.xlu1 %1922 }
 0x8df   :  { %2343 = vadd.xlane.f32.xlu0 %v2342_v1 }
 0x8e1   :  { %v1493_v52 = vpop.f32.mrf.mxu2 }
 0x8f3   :  { %2477 = vrot.lane.b32.xlu0 %v6872_v12, %s6301_s15  ;;  %v5943_v12 = vunpack.i.h.bf16 %v6906_v35 }
 0x902   :  { %v2083_v18 = vpop.xlane.xlu1 %2082 }
 0x904   :  { %v2149_v44 = vpop.xlane.xlu0 %2148 }
 0x905   :  { %6102 = vrcp.f32 %v2149_v44 }
 0x906   :  { %6104 = vrcp.f32 %v1923_v13 }
 0x90a   :  { %v2214_v37 = vpop.xlane.xlu2 %2213 }
 0x90b   :  { %v6103_v58 = vpop.eup %6102 }
 0x90c   :  { %v2151_v30 = vmul.f32 %v6103_v58, %v7042_v8  ;;  %v2279_v31 = vpop.xlane.xlu0 %2278  ;;  %v6105_v54 = vpop.eup %6104 }
 0x90d   :  { %6106 = vrcp.f32 %v2279_v31  ;;  %v1925_v36 = vmul.f32 %v6105_v54, %v7030_v22 }
 0x90e   :  { %5714 = vmatmul.msk.f32.vlgmr.msra.gmra.mxu2 %vm161_vm2, %v2151_v30  ;;  %6108 = vrcp.f32 %v2083_v18 }
 0x90f   :  { %6110 = vrcp.f32 %v2214_v37 }
 0x913   :  { %v6107_v41 = vpop.eup %6106 }
 0x914   :  { %v6109_v8 = vpop.eup %6108  ;;  %v2281_v11 = vmul.f32 %v6107_v41, %v7050_v47 }
 0x915   :  { %v2085_v22 = vmul.f32 %v6109_v8, %v7037_v38  ;;  %v6111_v35 = vpop.eup %6110 }
 0x916   :  { %v2216_v49 = vmul.f32 %v6111_v35, %v7046_v16 }
 0x91a   :  { %v1927_v23 = vpop.permute.xlu1 %1926 }
 0x91b   :  { %1947 = vmatpush.msrb.mxu0 %v1927_v23 }
 0x91c   :  { %5705 = vmatmul.msk.f32.vlgmr.msrb.gmra.mxu0 %vm161_vm2, %v1925_v36 }
 0x91d   :  { %2108 = vmatpush.msra.mxu0 %v5943_v12 }
 0x91f   :  { %2238 = vmatpush.msrb.mxu0 %v5953_v43  ;;  %v2283_v45 = vpop.permute.xlu0 %2282 }
 0x920   :  { %2303 = vmatpush.msrb.mxu2 %v2283_v45 }
 0x921   :  { %5720 = vmatmul.msk.f32.vlgmr.msrb.gmra.mxu2 %vm161_vm2, %v2281_v11 }
 0x922   :  { %v2474_v33 = vpop.xlane.xlu2 %2473 }
 0x924   :  { %5711 = vmatmul.msk.f32.vlgmr.msra.gmra.mxu0 %vm161_vm2, %v2085_v22 }
 0x927   :  { %v2348_v50 = vpop.permute.xlu0 %2347 }
 0x928   :  { %2368 = vmatpush.msra.mxu0 %v2348_v50  ;;  %v2538_v50 = vperm.slane %v6834_v34, 7 }
 0x92a   :  { %v2413_v51 = vpop.permute.xlu2 %2412 }
 0x92b   :  { %2433 = vmatpush.msra.mxu2 %v2413_v51 }
 0x92c   :  { %5717 = vmatmul.msk.f32.vlgmr.msrb.gmra.mxu0 %vm161_vm2, %v2216_v49 }
 0x92f   :  { %v1559_v47 = vpop.f32.mrf.mxu0 }
 0x930   :  { %1953 = vrot.lane.b32.xlu0 %v1559_v47, %s6308_s22 }
 0x93f   :  { %v1689_v53 = vpop.f32.mrf.mxu0 }
 0x940   :  { %1961 = vrot.lane.b32.xlu0 %v1689_v53, %s6309_s23 }
 0x945   :  { %v2409_v38 = vpop.xlane.xlu1 %2408 }
 0x946   :  { %6112 = vrcp.f32 %v2409_v38  ;;  %v1624_v48 = vpop.f32.mrf.mxu2 }
 0x947   :  { %1957 = vrot.lane.b32.xlu1 %v1624_v48, %s6305_s19 }
 0x94c   :  { %v6113_v55 = vpop.eup %6112 }
 0x94d   :  { %v2411_v61 = vmul.f32 %v6113_v55, %v7080_v15 }
 0x94e   :  { %v1754_v16 = vpop.f32.mrf.mxu2 }
 0x94f   :  { %5726 = vmatmul.msk.f32.vlgmr.msra.gmra.mxu2 %vm161_vm2, %v2411_v61  ;;  %1965 = vrot.lane.b32.xlu2 %v1754_v16, %s6306_s20 }
 0x950   :  { %v1819_v56 = vpop.f32.mrf.mxu0 }
 0x951   :  { %1969 = vrot.lane.b32.xlu0 %v1819_v56, %s8138_s24 }
 0x952   :  { %v2344_v28 = vpop.xlane.xlu0 %2343 }
 0x953   :  { %6114 = vrcp.f32 %v2344_v28 }
 0x954   :  { %6116 = vrcp.f32 %v2474_v33 }
 0x957   :  { %v1884_v6 = vpop.f32.mrf.mxu2 }
 0x958   :  { %1973 = vrot.lane.b32.xlu2 %v1884_v6, %s8140_s21 }
 0x959   :  { %v6115_v0 = vpop.eup %6114 }
 0x95a   :  { %v2346_v46 = vmul.f32 %v6115_v0, %v7090_v27  ;;  %v6117_v32 = vpop.eup %6116 }
 0x95b   :  { %v2476_v10 = vmul.f32 %v6117_v32, %v7057_v24  ;;  %v5675_v24 = vld [vmem:[%s8129_s2 + $0xf8] sm:$0xff] }
 0x95c   :  { %5723 = vmatmul.msk.f32.vlgmr.msra.gmra.mxu0 %vm161_vm2, %v2346_v46  ;;  %2557 = vmatpush.msrb.mxu1 %v5675_v24 }
 0x95e   :  { %2558 = vmatpush.msrb.mxu1 %v5674_v40 }
 0x95f   :  { %v2044_v29 = vpop.f32.mrf.mxu2 }
 0x960   :  { %2559 = vmatpush.msrb.mxu1 %v5673_v42 }
 0x962   :  { %2560 = vmatpush.msrb.mxu1 %v5672_v20 }
 0x965   :  { %v2478_v2 = vpop.permute.xlu0 %2477 }
 0x966   :  { %2498 = vmatpush.msrb.mxu0 %v2478_v2  ;;  %v2621_v2 = vld [vmem:[%s8130_s3 + $0x8] sm:$0xff] }
 0x967   :  { %5729 = vmatmul.msk.f32.vlgmr.msrb.gmra.mxu0 %vm161_vm2, %v2476_v10  ;;  %v2622_v10 = vld [vmem:[%s8130_s3 + $0x10] sm:$0xff] }
 0x991   :  { %v2175_v63 = vpop.f32.mrf.mxu2 }
 0x992   :  { %2508 = vrot.lane.b32.xlu2 %v2175_v63, %s6305_s19 }
 0x999   :  { %v1949_v4 = vpop.f32.mrf.mxu0 }
 0x99a   :  { %1977 = vrot.lane.b32.xlu0 %v1949_v4, %s8142_s27 }
 0x9a1   :  { %v2110_v62 = vpop.f32.mrf.mxu0 }
 0x9a2   :  { %2504 = vrot.lane.b32.xlu1 %v2110_v62, %s6308_s22  ;;  %v1954_v60 = vpop.permute.xlu0 %1953 }
 0x9a3   :  { %v1980_v25 = vsel %vm134_vm1, %v1493_v52, %v1954_v60 }
 0x9a4   :  { %v2305_v7 = vpop.f32.mrf.mxu2 }
 0x9a9   :  { %v2240_v9 = vpop.f32.mrf.mxu0  ;;  %v1966_v26 = vpop.permute.xlu2 %1965 }
 0x9aa   :  { %2512 = vrot.lane.b32.xlu0 %v2240_v9, %s6309_s23  ;;  %2516 = vrot.lane.b32.xlu1 %v2305_v7, %s6306_s20 }
 0x9b2   :  { %v1962_v17 = vpop.permute.xlu0 %1961  ;;  %v1974_v13 = vpop.permute.xlu2 %1973 }
 0x9b9   :  { %v1958_v5 = vpop.permute.xlu1 %1957 }
 0x9ba   :  { %v1981_v19 = vsel %vm161_vm2, %v1980_v25, %v1958_v5 }
 0x9bb   :  { %v1982_v27 = vsel %vm682_vm3, %v1981_v19, %v1962_v17  ;;  %v2662_v19 = vld [vmem:[%s8131_s4 + $0x30] sm:$0xff] }
 0x9bc   :  { %v1983_v1 = vsel %vm684_vm4, %v1982_v27, %v1966_v26  ;;  %v2663_v26 = vld [vmem:[%s8131_s4 + $0x38] sm:$0xff] }
 0x9bd   :  { %2680 = vmatpush.msrb.mxu3 %v2663_v26 }
 0x9bf   :  { %2681 = vmatpush.msrb.mxu3 %v2662_v19 }
 0x9c3   :  { %v1970_v14 = vpop.permute.xlu0 %1969 }
 0x9c4   :  { %v1984_v44 = vsel %vm686_vm5, %v1983_v1, %v1970_v14  ;;  %v2661_v14 = vld [vmem:[%s8131_s4 + $0x28] sm:$0xff] }
 0x9c5   :  { %v1985_v30 = vsel %vm688_vm6, %v1984_v44, %v1974_v13  ;;  %v2660_v44 = vld [vmem:[%s8131_s4 + $0x20] sm:$0xff]  ;;  %2682 = vmatpush.msrb.mxu3 %v2661_v14 }
 0x9c7   :  { %2683 = vmatpush.msrb.mxu3 %v2660_v44 }
 0x9d2   :  { %v2435_v15 = vpop.f32.mrf.mxu2 }
 0x9d3   :  { %2524 = vrot.lane.b32.xlu0 %v2435_v15, %s8140_s21 }
 0x9d9   :  { %v2370_v21 = vpop.f32.mrf.mxu0 }
 0x9da   :  { %2520 = vrot.lane.b32.xlu2 %v2370_v21, %s8138_s24  ;;  %v7182_v21 = vld [vmem:[%s8132_s5 + $0x8] sm:$0xff]  ;;  %s6315_s24 = smov 32  }
 0x9db   :  { %v2617_v17 = vperm.slane %v7182_v21, 4 }
 0x9e4   :  { %v2500_v57 = vpop.f32.mrf.mxu0 }
 0x9e5   :  { %2528 = vrot.lane.b32.xlu1 %v2500_v57, %s8142_s27  ;;  %v2614_v57 = vperm.slane %v7182_v21, 3 }
 0x9ec   :  { %v2509_v54 = vpop.permute.xlu2 %2508 }
 0xa0c   :  { %v1978_v58 = vpop.permute.xlu0 %1977 }
 0xa0d   :  { %v1986_v18 = vsel %vm690_vm7, %v1985_v30, %v1978_v58  ;;  %v2659_v58 = vld [vmem:[%s8131_s4 + $0x18] sm:$0xff] }
 0xa0e   :  { %5730 = vmatmul.msk.f32.vlgmr.msrb.gmra.mxu1 %vm56_vm0, %v1986_v18  ;;  %2684 = vmatpush.msrb.mxu3 %v2659_v58 }
 0xa14   :  { %v2505_v31 = vpop.permute.xlu1 %2504 }
 0xa15   :  { %v2531_v37 = vsel %vm134_vm1, %v2044_v29, %v2505_v31  ;;  %v2620_v29 = vld [vmem:[%s8130_s3] sm:$0xff] }
 0xa16   :  { %v2532_v12 = vsel %vm161_vm2, %v2531_v37, %v2509_v54 }
 0xa1c   :  { %v2513_v36 = vpop.permute.xlu0 %2512  ;;  %v2517_v23 = vpop.permute.xlu1 %2516 }
 0xa1d   :  { %v2533_v41 = vsel %vm682_vm3, %v2532_v12, %v2513_v36 }
 0xa1e   :  { %v2534_v11 = vsel %vm684_vm4, %v2533_v41, %v2517_v23 }
 0xa34   :  { %v2521_v43 = vpop.permute.xlu2 %2520 }
 0xa35   :  { %v2535_v45 = vsel %vm686_vm5, %v2534_v11, %v2521_v43  ;;  %v2657_v11 = vld [vmem:[%s8131_s4 + $0x8] sm:$0xff] }
 0xa45   :  { %v2525_v8 = vpop.permute.xlu0 %2524 }
 0xa46   :  { %v2536_v22 = vsel %vm688_vm6, %v2535_v45, %v2525_v8  ;;  %v2658_v8 = vld [vmem:[%s8131_s4 + $0x10] sm:$0xff]  ;;  %v2656_v45 = vld [vmem:[%s8131_s4] sm:$0xff] }
 0xa47   :  { %2685 = vmatpush.msrb.mxu3 %v2658_v8 }
 0xa49   :  { %2686 = vmatpush.msrb.mxu3 %v2657_v11 }
 0xa4b   :  { %2687 = vmatpush.msrb.mxu3 %v2656_v45 }
 0xa57   :  { %v2529_v33 = vpop.permute.xlu1 %2528 }
 0xa58   :  { %v2537_v35 = vsel %vm690_vm7, %v2536_v22, %v2529_v33  ;;  %v2624_v22 = vperm.slane %v7182_v21, 7 }
 0xa59   :  { %5731 = vmatmul.msk.f32.gmra.mxu1 %vm56_vm0, %v2537_v35 }
 0xa8b   :  { %v2562_v49 = vpop.f32.mrf.mxu1 }
 0xa8c   :  { %v2563_v51 = vadd.f32 %v2562_v49, %v2538_v50 }
 0xa8e   :  { %v2568_v47 = vadd.f32 %v2563_v51, %v6803_v39 }
 0xa90   :  { %v2570_v52 = vsel %vm56_vm0, %v2568_v47, 0.0 }
 0xa91   :  { %2571 = vadd.xlane.f32.xlu2 %v2570_v52  ;;  %v2664_v52 = vperm.slane %v7182_v21, 0 }
 0xad6   :  { %v2565_v53 = vpop.f32.mrf.mxu1 }
 0xad7   :  { %v2566_v38 = vadd.f32 %v2565_v53, %v2538_v50 }
 0xad9   :  { %v2569_v48 = vadd.f32 %v2566_v38, %v6827_v59  ;;  %v2623_v59 = vld [vmem:[%s8130_s3 + $0x18] sm:$0xff] }
 0xada   :  { %2643 = vmatpush.msrb.mxu2 %v2623_v59 }
 0xadb   :  { %v2573_v55 = vsel %vm56_vm0, %v2569_v48, 0.0 }
 0xadc   :  { %2574 = vadd.xlane.f32.xlu0 %v2573_v55  ;;  %2644 = vmatpush.msrb.mxu2 %v2622_v10 }
 0xade   :  { %2645 = vmatpush.msrb.mxu2 %v2621_v2 }
 0xae0   :  { %2646 = vmatpush.msrb.mxu2 %v2620_v29 }
 0xb04   :  { %v2572_v61 = vpop.xlane.xlu2 %2571 }
 0xb05   :  { %v2576_v16 = vmul.f32 %v2572_v61, %v6761_v3 }
 0xb07   :  { %v2578_v56 = vsub.f32 %v2568_v47, %v2576_v16 }
 0xb09   :  { %v2580_v28 = vmul.f32 %v2578_v56, %v2578_v56 }
 0xb0b   :  { %v2582_v34 = vsel %vm56_vm0, %v2580_v28, 0.0 }
 0xb0c   :  { %2583 = vadd.xlane.f32.xlu1 %v2582_v34 }
 0xb4f   :  { %v2575_v6 = vpop.xlane.xlu0 %2574 }
 0xb50   :  { %v2577_v39 = vmul.f32 %v2575_v6, %v6761_v3 }
 0xb52   :  { %v2579_v0 = vsub.f32 %v2569_v48, %v2577_v39 }
 0xb54   :  { %v2581_v46 = vmul.f32 %v2579_v0, %v2579_v0 }
 0xb56   :  { %v2585_v32 = vsel %vm56_vm0, %v2581_v46, 0.0 }
 0xb57   :  { %2586 = vadd.xlane.f32.xlu2 %v2585_v32 }
 0xb7f   :  { %v2584_v63 = vpop.xlane.xlu1 %2583 }
 0xb80   :  { %v2588_v4 = vmul.f32 %v2584_v63, %v6761_v3  ;;  %v5745_v63 = vld [vmem:[%s8129_s2 + $0x138] sm:$0xff] }
 0xb81   :  { %2813 = vmatpush.msra.mxu1 %v5745_v63 }
 0xb82   :  { %v2590_v62 = vadd.f32 1e-05, %v2588_v4  ;;  %v5741_v4 = vld [vmem:[%s8129_s2 + $0x118] sm:$0xff] }
 0xb83   :  { %2789 = vmatpush.msra.mxu0 %v5741_v4 }
 0xb84   :  { %6118 = vrsqrt.f32 %v2590_v62  ;;  %vm2598_vm8 = vweird.f32 %v2590_v62 }
 0xb8a   :  { %v6119_v7 = vpop.eup %6118 }
 0xb8b   :  { %v2593_v9 = vmul.f32 %v6119_v7, %v2590_v62  ;;  %vm2599_vm15 = vweird.f32 %v6119_v7  ;;  %v5749_v62 = vld [vmem:[%s8129_s2 + $0x158] sm:$0xff] }
 0xb8c   :  { %vm2600_vm9 = vmor %vm2598_vm8, %vm2599_vm15  ;;  %2837 = vmatpush.msra.mxu2 %v5749_v62 }
 0xb8d   :  { %v2594_v24 = vmul.f32 %v6119_v7, %v2593_v9  ;;  %v5744_v9 = vld [vmem:[%s8129_s2 + $0x130] sm:$0xff] }
 0xb8e   :  { %2814 = vmatpush.msra.mxu1 %v5744_v9 }
 0xb8f   :  { %v2595_v40 = vmul.f32 0.5, %v2594_v24  ;;  %v5748_v24 = vld [vmem:[%s8129_s2 + $0x150] sm:$0xff] }
 0xb90   :  { %2838 = vmatpush.msra.mxu2 %v5748_v24 }
 0xb91   :  { %v2596_v42 = vsub.f32 1.5, %v2595_v40  ;;  %v5739_v40 = vld [vmem:[%s8129_s2 + $0x108] sm:$0xff] }
 0xb93   :  { %v2597_v15 = vmul.f32 %v6119_v7, %v2596_v42  ;;  %v5743_v42 = vld [vmem:[%s8129_s2 + $0x128] sm:$0xff] }
 0xb94   :  { %2815 = vmatpush.msra.mxu1 %v5743_v42 }
 0xb95   :  { %v2601_v20 = vsel %vm2600_vm9, %v6119_v7, %v2597_v15  ;;  %v5740_v7 = vld [vmem:[%s8129_s2 + $0x110] sm:$0xff]  ;;  %v5747_v15 = vld [vmem:[%s8129_s2 + $0x148] sm:$0xff] }
 0xb96   :  { %v2612_v60 = vmul.f32 %v2601_v20, %v2578_v56  ;;  %2790 = vmatpush.msra.mxu0 %v5740_v7  ;;  %v5742_v20 = vld [vmem:[%s8129_s2 + $0x120] sm:$0xff]  ;;  %2839 = vmatpush.msra.mxu2 %v5747_v15 }
 0xb97   :  { %2816 = vmatpush.msra.mxu1 %v5742_v20 }
 0xb98   :  { %v2615_v5 = vmul.f32 %v2614_v57, %v2612_v60  ;;  %2791 = vmatpush.msra.mxu0 %v5739_v40  ;;  %v5746_v60 = vld [vmem:[%s8129_s2 + $0x140] sm:$0xff] }
 0xb99   :  { %2840 = vmatpush.msra.mxu2 %v5746_v60 }
 0xb9a   :  { %v2618_v25 = vadd.f32 %v2617_v17, %v2615_v5 }
 0xb9c   :  { %5732 = vmatmul.msk.f32.vlgmr.msrb.gmra.mxu2 %vm56_vm0, %v2618_v25 }
 0xbca   :  { %v2587_v27 = vpop.xlane.xlu2 %2586 }
 0xbcb   :  { %v2589_v1 = vmul.f32 %v2587_v27, %v6761_v3 }
 0xbcd   :  { %v2591_v13 = vadd.f32 1e-05, %v2589_v1 }
 0xbcf   :  { %6120 = vrsqrt.f32 %v2591_v13  ;;  %vm2608_vm11 = vweird.f32 %v2591_v13 }
 0xbd5   :  { %v6121_v30 = vpop.eup %6120 }
 0xbd6   :  { %v2603_v18 = vmul.f32 %v6121_v30, %v2591_v13  ;;  %vm2609_vm10 = vweird.f32 %v6121_v30  ;;  %v2741_v13 = vperm.slane %v7182_v21, 5 }
 0xbd7   :  { %vm2610_vm12 = vmor %vm2608_vm11, %vm2609_vm10 }
 0xbd8   :  { %v2604_v31 = vmul.f32 %v6121_v30, %v2603_v18  ;;  %v2744_v18 = vperm.slane %v7182_v21, 6 }
 0xbda   :  { %v2605_v54 = vmul.f32 0.5, %v2604_v31 }
 0xbdc   :  { %v2606_v36 = vsub.f32 1.5, %v2605_v54 }
 0xbde   :  { %v2607_v37 = vmul.f32 %v6121_v30, %v2606_v36 }
 0xbe0   :  { %v2611_v23 = vsel %vm2610_vm12, %v6121_v30, %v2607_v37 }
 0xbe1   :  { %v2613_v12 = vmul.f32 %v2611_v23, %v2579_v0 }
 0xbe3   :  { %v2616_v41 = vmul.f32 %v2614_v57, %v2613_v12  ;;  %v5738_v57 = vld [vmem:[%s8129_s2 + $0x100] sm:$0xff] }
 0xbe4   :  { %2792 = vmatpush.msra.mxu0 %v5738_v57 }
 0xbe5   :  { %v2619_v43 = vadd.f32 %v2617_v17, %v2616_v41 }
 0xbe7   :  { %5733 = vmatmul.msk.f32.gmra.mxu2 %vm56_vm0, %v2619_v43 }
 0xc1f   :  { %v2648_v33 = vpop.f32.mrf.mxu2 }
 0xc20   :  { %v2649_v35 = vadd.f32 %v2648_v33, %v2624_v22 }
 0xc22   :  { %v2654_v50 = vmax.f32 %v2649_v35, 0.0 }
 0xc24   :  { %5734 = vmatmul.msk.f32.vlgmr.msrb.gmra.mxu3 %vm2665_vm13, %v2654_v50  ;;  %v7287_v50 = vld [vmem:[%s8132_s5 + $0x10] sm:$0xff] }
 0xc6a   :  { %v2651_v49 = vpop.f32.mrf.mxu2 }
 0xc6b   :  { %v2652_v51 = vadd.f32 %v2651_v49, %v2624_v22  ;;  %v2770_v49 = vperm.slane %v7287_v50, 0 }
 0xc6d   :  { %v2655_v47 = vmax.f32 %v2652_v51, 0.0  ;;  %v2800_v51 = vperm.slane %v7287_v50, 1 }
 0xc6f   :  { %5735 = vmatmul.msk.f32.gmra.mxu3 %vm2665_vm13, %v2655_v47 }
 0xca7   :  { %v2689_v53 = vpop.f32.mrf.mxu3 }
 0xca8   :  { %v2690_v38 = vadd.f32 %v2689_v53, %v2664_v52 }
 0xcaa   :  { %v2695_v48 = vadd.f32 %v2690_v38, %v2618_v25 }
 0xcac   :  { %v2697_v55 = vsel %vm56_vm0, %v2695_v48, 0.0 }
 0xcad   :  { %2698 = vadd.xlane.f32.xlu0 %v2697_v55 }
 0xcf2   :  { %v2692_v61 = vpop.f32.mrf.mxu3 }
 0xcf3   :  { %v2693_v16 = vadd.f32 %v2692_v61, %v2664_v52 }
 0xcf5   :  { %v2696_v56 = vadd.f32 %v2693_v16, %v2619_v43 }
 0xcf7   :  { %v2700_v28 = vsel %vm56_vm0, %v2696_v56, 0.0 }
 0xcf8   :  { %2701 = vadd.xlane.f32.xlu1 %v2700_v28 }
 0xd20   :  { %v2699_v34 = vpop.xlane.xlu0 %2698 }
 0xd21   :  { %v2703_v6 = vmul.f32 %v2699_v34, %v6761_v3 }
 0xd23   :  { %v2705_v39 = vsub.f32 %v2695_v48, %v2703_v6  ;;  %v2824_v48 = vperm.slane %v7287_v50, 2 }
 0xd25   :  { %v2707_v0 = vmul.f32 %v2705_v39, %v2705_v39 }
 0xd27   :  { %v2709_v46 = vsel %vm56_vm0, %v2707_v0, 0.0 }
 0xd28   :  { %2710 = vadd.xlane.f32.xlu2 %v2709_v46 }
 0xd6b   :  { %v2702_v32 = vpop.xlane.xlu1 %2701 }
 0xd6c   :  { %v2704_v59 = vmul.f32 %v2702_v32, %v6761_v3 }
 0xd6e   :  { %v7222_v10 = vsub.f32 %v2696_v56, %v2704_v59 }
 0xd70   :  { %v2708_v2 = vmul.f32 %v7222_v10, %v7222_v10 }
 0xd72   :  { %v2712_v29 = vsel %vm56_vm0, %v2708_v2, 0.0 }
 0xd73   :  { %2713 = vadd.xlane.f32.xlu0 %v2712_v29 }
 0xd9b   :  { %v2711_v17 = vpop.xlane.xlu2 %2710 }
 0xd9c   :  { %v2715_v5 = vmul.f32 %v2711_v17, %v6761_v3 }
 0xd9e   :  { %v2717_v25 = vadd.f32 1e-05, %v2715_v5 }
 0xda0   :  { %6122 = vrsqrt.f32 %v2717_v25  ;;  %vm2725_vm15 = vweird.f32 %v2717_v25 }
 0xda6   :  { %v6123_v26 = vpop.eup %6122 }
 0xda7   :  { %v2720_v19 = vmul.f32 %v6123_v26, %v2717_v25  ;;  %vm2726_vm14 = vweird.f32 %v6123_v26 }
 0xda8   :  { %vm2727_vm8 = vmor %vm2725_vm15, %vm2726_vm14 }
 0xda9   :  { %v2721_v14 = vmul.f32 %v6123_v26, %v2720_v19 }
 0xdab   :  { %v2722_v27 = vmul.f32 0.5, %v2721_v14 }
 0xdad   :  { %v2723_v1 = vsub.f32 1.5, %v2722_v27 }
 0xdaf   :  { %v2724_v44 = vmul.f32 %v6123_v26, %v2723_v1 }
 0xdb1   :  { %v2728_v58 = vsel %vm2727_vm8, %v6123_v26, %v2724_v44 }
 0xdb2   :  { %v2739_v30 = vmul.f32 %v2728_v58, %v2705_v39 }
 0xdb4   :  { %v2742_v31 = vmul.f32 %v2741_v13, %v2739_v30 }
 0xdb6   :  { %v7266_v54 = vadd.f32 %v2744_v18, %v2742_v31 }
 0xdb8   :  { %5754 = vmatmul.msk.f32.vlgmr.msra.gmra.mxu0 %vm56_vm0, %v7266_v54  ;;  %5756 = vmatmul.msk.f32.vlgmr.msra.gmra.mxu1 %vm56_vm0, %v7266_v54 }
 0xdb9   :  { %5758 = vmatmul.msk.f32.vlgmr.msra.gmra.mxu2 %vm56_vm0, %v7266_v54 }
 0xde6   :  { %v2714_v36 = vpop.xlane.xlu0 %2713 }
 0xde7   :  { %v2716_v37 = vmul.f32 %v2714_v36, %v6761_v3 }
 0xde9   :  { %v2718_v23 = vadd.f32 1e-05, %v2716_v37 }
 0xdeb   :  { %6124 = vrsqrt.f32 %v2718_v23  ;;  %vm2735_vm10 = vweird.f32 %v2718_v23 }
 0xdf1   :  { %v6125_v12 = vpop.eup %6124 }
 0xdf2   :  { %v2730_v41 = vmul.f32 %v6125_v12, %v2718_v23  ;;  %vm2736_vm9 = vweird.f32 %v6125_v12 }
 0xdf3   :  { %vm2737_vm11 = vmor %vm2735_vm10, %vm2736_vm9 }
 0xdf4   :  { %v2731_v21 = vmul.f32 %v6125_v12, %v2730_v41 }
 0xdf6   :  { %v2732_v43 = vmul.f32 0.5, %v2731_v21 }
 0xdf8   :  { %v2733_v8 = vsub.f32 1.5, %v2732_v43 }
 0xdfa   :  { %v2734_v11 = vmul.f32 %v6125_v12, %v2733_v8 }
 0xdfc   :  { %v2738_v45 = vsel %vm2737_vm11, %v6125_v12, %v2734_v11 }
 0xdfd   :  { %v2740_v22 = vmul.f32 %v2738_v45, %v7222_v10 }
 0xdff   :  { %v2743_v33 = vmul.f32 %v2741_v13, %v2740_v22 }
 0xe01   :  { %v7276_v35 = vadd.f32 %v2744_v18, %v2743_v33 }
 0xe03   :  { %5755 = vmatmul.msk.f32.gmra.mxu0 %vm56_vm0, %v7276_v35  ;;  %5757 = vmatmul.msk.f32.gmra.mxu1 %vm56_vm0, %v7276_v35 }
 0xe04   :  { %5759 = vmatmul.msk.f32.gmra.mxu2 %vm56_vm0, %v7276_v35 }
 0xe35   :  { %v2794_v47 = vpop.f32.mrf.mxu0  ;;  %v2818_v52 = vpop.f32.mrf.mxu1 }
 0xe36   :  { %v2795_v53 = vadd.f32 %v2794_v47, %v2770_v49  ;;  %v2819_v38 = vadd.f32 %v2818_v52, %v2800_v51 }
 0xe38   :  { %2910 = vrot.lane.b32.xlu0 %v2819_v38, %s6299_s13  ;;  %2976 = vrot.lane.b32.xlu1 %v2819_v38, %s6298_s0 }
 0xe39   :  { %5760 = vmatpush.xpose.msk.msrb.mxu0 %vm134_vm1, %v2819_v38  ;;  %2974 = vrot.lane.b32.xlu2 %v2795_v53, %s6298_s0 }
 0xe3c   :  { %v2842_v55 = vpop.f32.mrf.mxu2  ;;  %5761 = vmatmul.msk.f32.vlgmr.msrb.gmra.mxu0 %vm134_vm1, %v2795_v53 }
 0xe3d   :  { %v7297_v61 = vadd.f32 %v2842_v55, %v2824_v48 }
 0xe3f   :  { %2903 = vmatpush.msra.mxu3 %v7297_v61 }
 0xe40   :  { %3106 = vrot.lane.b32.xlu1 %v2819_v38, %s6302_s16  ;;  %2908 = vrot.lane.b32.xlu0 %v2795_v53, %s6299_s13 }
 0xe41   :  { %3104 = vrot.lane.b32.xlu2 %v2795_v53, %s6302_s16 }
 0xe48   :  { %3039 = vrot.lane.b32.xlu1 %v2795_v53, %s6300_s14  ;;  %3041 = vrot.lane.b32.xlu0 %v2819_v38, %s6300_s14 }
 0xe49   :  { %3236 = vrot.lane.b32.xlu2 %v2819_v38, %s6304_s18 }
 0xe50   :  { %3171 = vrot.lane.b32.xlu1 %v2819_v38, %s6303_s17  ;;  %3234 = vrot.lane.b32.xlu0 %v2795_v53, %s6304_s18 }
 0xe51   :  { %3169 = vrot.lane.b32.xlu2 %v2795_v53, %s6303_s17 }
 0xe58   :  { %3299 = vrot.lane.b32.xlu1 %v2795_v53, %s6301_s15  ;;  %3301 = vrot.lane.b32.xlu0 %v2819_v38, %s6301_s15 }
 0xe80   :  { %v2797_v16 = vpop.f32.mrf.mxu0  ;;  %v2821_v56 = vpop.f32.mrf.mxu1 }
 0xe81   :  { %v2798_v28 = vadd.f32 %v2797_v16, %v2770_v49  ;;  %v2822_v34 = vadd.f32 %v2821_v56, %v2800_v51 }
 0xe83   :  { %3461 = vrot.lane.b32.xlu1 %v2822_v34, %s6299_s13  ;;  %3527 = vrot.lane.b32.xlu2 %v2822_v34, %s6298_s0 }
 0xe84   :  { %3525 = vrot.lane.b32.xlu0 %v2798_v28, %s6298_s0 }
 0xe87   :  { %v2845_v39 = vpop.f32.mrf.mxu2 }
 0xe88   :  { %v7327_v0 = vadd.f32 %v2845_v39, %v2824_v48 }
 0xe8a   :  { %v5959_v32 = vpack.i.bf16 %v7327_v0, %v7297_v61 }
 0xe8b   :  { %3655 = vrot.lane.b32.xlu1 %v2798_v28, %s6302_s16  ;;  %3459 = vrot.lane.b32.xlu2 %v2798_v28, %s6299_s13 }
 0xe8c   :  { %3657 = vrot.lane.b32.xlu0 %v2822_v34, %s6302_s16 }
 0xe93   :  { %3787 = vrot.lane.b32.xlu1 %v2822_v34, %s6304_s18  ;;  %3592 = vrot.lane.b32.xlu2 %v2822_v34, %s6300_s14  ;;  %v2975_v6 = vpop.permute.xlu2 %2974 }
 0xe94   :  { %3590 = vrot.lane.b32.xlu0 %v2798_v28, %s6300_s14 }
 0xe9b   :  { %3720 = vrot.lane.b32.xlu1 %v2798_v28, %s6303_s17  ;;  %3785 = vrot.lane.b32.xlu2 %v2798_v28, %s6304_s18  ;;  %v3105_v46 = vpop.permute.xlu2 %3104 }
 0xe9c   :  { %3722 = vrot.lane.b32.xlu0 %v2822_v34, %s6303_s17 }
 0xea3   :  { %3143 = vrot.lane.b32.xlu1 %v7297_v61, %s6302_s16  ;;  %3852 = vrot.lane.b32.xlu2 %v2822_v34, %s6301_s15  ;;  %v3237_v63 = vpop.permute.xlu2 %3236 }
 0xea4   :  { %3850 = vrot.lane.b32.xlu0 %v2798_v28, %s6301_s15 }
 0xeaa   :  { %v2977_v59 = vpop.permute.xlu1 %2976  ;;  %v2911_v10 = vpop.permute.xlu0 %2910 }
 0xeab   :  { %5766 = vmatpush.xpose.msk.msrb.mxu2 %vm134_vm1, %v2977_v59  ;;  %5960 = vrot.lane.b32.xlu1 %v5959_v32, %s6298_s0  ;;  %v3170_v24 = vpop.permute.xlu2 %3169 }
 0xeac   :  { %3208 = vrot.lane.b32.xlu2 %v7297_v61, %s6303_s17  ;;  %3273 = vrot.lane.b32.xlu0 %v7297_v61, %s6304_s18 }
 0xead   :  { %5763 = vmatpush.xpose.msk.msra.mxu0 %vm134_vm1, %v2911_v10 }
 0xeae   :  { %5767 = vmatmul.msk.f32.vlgmr.msrb.gmra.mxu2 %vm134_vm1, %v2975_v6 }
 0xeb2   :  { %v3107_v2 = vpop.permute.xlu1 %3106  ;;  %v2909_v29 = vpop.permute.xlu0 %2908 }
 0xeb3   :  { %5772 = vmatpush.xpose.msk.msra.mxu2 %vm134_vm1, %v3107_v2  ;;  %5764 = vmatmul.msk.f32.vlgmr.msra.gmra.mxu0 %vm134_vm1, %v2909_v29 }
 0xeb4   :  { %5965 = vrot.lane.b32.xlu2 %v5959_v32, %s6300_s14  ;;  %5955 = vrot.lane.b32.xlu0 %v5959_v32, %s6299_s13 }
 0xeb6   :  { %5773 = vmatmul.msk.f32.vlgmr.msra.gmra.mxu2 %vm134_vm1, %v3105_v46 }
 0xeb7   :  { %5778 = vmatpush.xpose.msk.msrb.mxu2 %vm134_vm1, %v3237_v63 }
 0xeb9   :  { %v2871_v15 = vpop.f32.mrf.mxu0 }
 0xeba   :  { %v3040_v4 = vpop.permute.xlu1 %3039  ;;  %v3042_v62 = vpop.permute.xlu0 %3041  ;;  %v2874_v57 = vsel %vm161_vm2, %v2871_v15, -inf }
 0xebb   :  { %5784 = vmatpush.xpose.msk.msra.mxu2 %vm134_vm1, %v2822_v34  ;;  %5769 = vmatpush.xpose.msk.msrb.mxu0 %vm134_vm1, %v3042_v62 }
 0xebe   :  { %5770 = vmatmul.msk.f32.vlgmr.msrb.gmra.mxu0 %vm134_vm1, %v3040_v4 }
 0xec2   :  { %v3172_v7 = vpop.permute.xlu1 %3171  ;;  %v3235_v9 = vpop.permute.xlu0 %3234 }
 0xec3   :  { %5775 = vmatpush.xpose.msk.msra.mxu0 %vm134_vm1, %v3172_v7  ;;  %5779 = vmatmul.msk.f32.vlgmr.msrb.gmra.mxu2 %vm134_vm1, %v3235_v9 }
 0xec6   :  { %5776 = vmatmul.msk.f32.vlgmr.msra.gmra.mxu0 %vm134_vm1, %v3170_v24 }
 0xeca   :  { %v3302_v40 = vpop.permute.xlu0 %3301  ;;  %v3300_v42 = vpop.permute.xlu1 %3299 }
 0xecb   :  { %5781 = vmatpush.xpose.msk.msrb.mxu0 %vm134_vm1, %v3302_v40  ;;  %5785 = vmatmul.msk.f32.vlgmr.msra.gmra.mxu2 %vm134_vm1, %v2798_v28 }
 0xece   :  { %5782 = vmatmul.msk.f32.vlgmr.msrb.gmra.mxu0 %vm134_vm1, %v3300_v42 }
 0xed5   :  { %2875 = vmax.xlane.f32.xlu1 %v2874_v57 }
 0xedd   :  { %v3528_v20 = vpop.permute.xlu2 %3527 }
 0xede   :  { %5790 = vmatpush.xpose.msk.msrb.mxu2 %vm134_vm1, %v3528_v20 }
 0xee5   :  { %v3460_v60 = vpop.permute.xlu2 %3459 }
 0xeed   :  { %v3593_v5 = vpop.permute.xlu2 %3592 }
 0xef5   :  { %v3462_v17 = vpop.permute.xlu1 %3461  ;;  %v3786_v14 = vpop.permute.xlu2 %3785 }
 0xef6   :  { %v3526_v25 = vpop.permute.xlu0 %3525  ;;  %5787 = vmatpush.xpose.msk.msra.mxu0 %vm134_vm1, %v3462_v17 }
 0xef7   :  { %5791 = vmatmul.msk.f32.vlgmr.msrb.gmra.mxu2 %vm134_vm1, %v3526_v25 }
 0xef9   :  { %5788 = vmatmul.msk.f32.vlgmr.msra.gmra.mxu0 %vm134_vm1, %v3460_v60 }
 0xefa   :  { %5793 = vmatpush.xpose.msk.msrb.mxu0 %vm134_vm1, %v3593_v5 }
 0xefd   :  { %v3656_v26 = vpop.permute.xlu1 %3655  ;;  %v3853_v58 = vpop.permute.xlu2 %3852 }
 0xefe   :  { %v3658_v19 = vpop.permute.xlu0 %3657 }
 0xeff   :  { %5796 = vmatpush.xpose.msk.msra.mxu2 %vm134_vm1, %v3658_v19 }
 0xf02   :  { %5797 = vmatmul.msk.f32.vlgmr.msra.gmra.mxu2 %vm134_vm1, %v3656_v26 }
 0xf05   :  { %v3788_v27 = vpop.permute.xlu1 %3787 }
 0xf06   :  { %v3591_v1 = vpop.permute.xlu0 %3590  ;;  %5802 = vmatpush.xpose.msk.msrb.mxu2 %vm134_vm1, %v3788_v27  ;;  %v7371_v31 = vpop.permute.xlu2 %3208 }
 0xf07   :  { %5794 = vmatmul.msk.f32.vlgmr.msrb.gmra.mxu0 %vm134_vm1, %v3591_v1 }
 0xf0a   :  { %5803 = vmatmul.msk.f32.vlgmr.msrb.gmra.mxu2 %vm134_vm1, %v3786_v14 }
 0xf0d   :  { %v3721_v44 = vpop.permute.xlu1 %3720 }
 0xf0e   :  { %v3723_v13 = vpop.permute.xlu0 %3722  ;;  %v7378_v12 = vpop.permute.xlu2 %5965 }
 0xf0f   :  { %5799 = vmatpush.xpose.msk.msra.mxu0 %vm134_vm1, %v3723_v13  ;;  %v5967_v43 = vunpack.i.l.bf16 %v7378_v12 }
 0xf12   :  { %5800 = vmatmul.msk.f32.vlgmr.msra.gmra.mxu0 %vm134_vm1, %v3721_v44 }
 0xf13   :  { %5805 = vmatpush.xpose.msk.msrb.mxu0 %vm134_vm1, %v3853_v58 }
 0xf15   :  { %v7368_v30 = vpop.permute.xlu1 %3143 }
 0xf16   :  { %v3851_v18 = vpop.permute.xlu0 %3850 }
 0xf1a   :  { %5806 = vmatmul.msk.f32.vlgmr.msrb.gmra.mxu0 %vm134_vm1, %v3851_v18 }
 0xf1d   :  { %v7373_v36 = vpop.permute.xlu1 %5960 }
 0xf1e   :  { %v5962_v37 = vunpack.i.l.bf16 %v7373_v36  ;;  %v7376_v23 = vpop.permute.xlu0 %3273 }
 0xf20   :  { %3034 = vmatpush.msrb.mxu3 %v5962_v37 }
 0xf26   :  { %v7380_v41 = vpop.permute.xlu0 %5955 }
 0xf27   :  { %v5957_v21 = vunpack.i.l.bf16 %v7380_v41 }
 0xf29   :  { %2969 = vmatpush.msrb.mxu1 %v5957_v21 }
 0xf2b   :  { %3099 = vmatpush.msra.mxu1 %v5967_v43 }
 0xf30   :  { %v2933_v8 = vpop.f32.mrf.mxu0 }
 0xf31   :  { %v2999_v11 = vpop.f32.mrf.mxu2  ;;  %v2936_v45 = vsel %vm161_vm2, %v2933_v8, -inf }
 0xf32   :  { %2937 = vmax.xlane.f32.xlu2 %v2936_v45  ;;  %v3002_v22 = vsel %vm161_vm2, %v2999_v11, -inf }
 0xf33   :  { %3003 = vmax.xlane.f32.xlu0 %v3002_v22 }
 0xf39   :  { %v7390_v51 = vpop.f32.mrf.mxu2 }
 0xf3a   :  { %v3132_v39 = vsel %vm161_vm2, %v7390_v51, -inf }
 0xf3b   :  { %v7386_v33 = vpop.f32.mrf.mxu0 }
 0xf3c   :  { %v3067_v49 = vsel %vm161_vm2, %v7386_v33, -inf }
 0xf3d   :  { %3068 = vmax.xlane.f32.xlu2 %v3067_v49 }
 0xf43   :  { %v7392_v47 = vpop.f32.mrf.mxu0 }
 0xf44   :  { %v3197_v52 = vsel %vm161_vm2, %v7392_v47, -inf }
 0xf45   :  { %3198 = vmax.xlane.f32.xlu0 %v3197_v52 }
 0xf46   :  { %v7396_v53 = vpop.f32.mrf.mxu2 }
 0xf47   :  { %v3262_v38 = vsel %vm161_vm2, %v7396_v53, -inf }
 0xf48   :  { %v2876_v48 = vpop.xlane.xlu1 %2875  ;;  %3263 = vmax.xlane.f32.xlu2 %v3262_v38 }
 0xf49   :  { %v2877_v55 = vsub.f32 %v2871_v15, %v2876_v48 }
 0xf4b   :  { %v2878_v16 = vmul.f32 1.442695, %v2877_v55  ;;  %v7407_v46 = vpop.f32.mrf.mxu0 }
 0xf4c   :  { %v3327_v32 = vsel %vm161_vm2, %v7407_v46, -inf }
 0xf4d   :  { %6126 = vpow2.f32 %v2878_v16 }
 0xf4e   :  { %v7400_v56 = vpop.f32.mrf.mxu2 }
 0xf4f   :  { %v3425_v28 = vsel %vm161_vm2, %v7400_v56, -inf }
 0xf50   :  { %3426 = vmax.xlane.f32.xlu0 %v3425_v28 }
 0xf53   :  { %v6127_v34 = vpop.eup %6126 }
 0xf54   :  { %v2880_v6 = vsel %vm161_vm2, %v6127_v34, 0.0 }
 0xf55   :  { %2881 = vadd.xlane.f32.xlu1 %v2880_v6 }
 0xf5d   :  { %3133 = vmax.xlane.f32.xlu1 %v3132_v39 }
 0xf65   :  { %3328 = vmax.xlane.f32.xlu1 %v3327_v32 }
 0xf76   :  { %v7411_v59 = vpop.f32.mrf.mxu0 }
 0xf77   :  { %v3487_v10 = vsel %vm161_vm2, %v7411_v59, -inf }
 0xf78   :  { %3488 = vmax.xlane.f32.xlu2 %v3487_v10 }
 0xf7a   :  { %v7415_v2 = vpop.f32.mrf.mxu2 }
 0xf7b   :  { %v3553_v29 = vsel %vm161_vm2, %v7415_v2, -inf }
 0xf7c   :  { %3554 = vmax.xlane.f32.xlu1 %v3553_v29 }
 0xf84   :  { %v7419_v63 = vpop.f32.mrf.mxu0 }
 0xf85   :  { %v7421_v4 = vpop.f32.mrf.mxu2  ;;  %v3618_v62 = vsel %vm161_vm2, %v7419_v63, -inf }
 0xf86   :  { %3619 = vmax.xlane.f32.xlu0 %v3618_v62  ;;  %v3683_v7 = vsel %vm161_vm2, %v7421_v4, -inf }
 0xf87   :  { %3684 = vmax.xlane.f32.xlu2 %v3683_v7 }
 0xf8d   :  { %v7427_v9 = vpop.f32.mrf.mxu2 }
 0xf8e   :  { %v3813_v24 = vsel %vm161_vm2, %v7427_v9, -inf }
 0xf8f   :  { %3814 = vmax.xlane.f32.xlu2 %v3813_v24  ;;  %v7431_v40 = vpop.f32.mrf.mxu0 }
 0xf90   :  { %v3748_v42 = vsel %vm161_vm2, %v7431_v40, -inf }
 0xf91   :  { %3749 = vmax.xlane.f32.xlu0 %v3748_v42 }
 0xf97   :  { %v7435_v15 = vpop.f32.mrf.mxu0 }
 0xf98   :  { %v3878_v57 = vsel %vm161_vm2, %v7435_v15, -inf }
 0xf99   :  { %3879 = vmax.xlane.f32.xlu2 %v3878_v57 }
 0xfa5   :  { %v2938_v20 = vpop.xlane.xlu2 %2937 }
 0xfa6   :  { %v2939_v60 = vsub.f32 %v2933_v8, %v2938_v20  ;;  %v3004_v17 = vpop.xlane.xlu0 %3003 }
 0xfa7   :  { %v3005_v5 = vsub.f32 %v2999_v11, %v3004_v17 }
 0xfa8   :  { %v2940_v25 = vmul.f32 1.442695, %v2939_v60 }
 0xfa9   :  { %v3006_v26 = vmul.f32 1.442695, %v3005_v5 }
 0xfaa   :  { %6128 = vpow2.f32 %v2940_v25 }
 0xfab   :  { %6130 = vpow2.f32 %v3006_v26 }
 0xfb0   :  { %v7439_v19 = vpop.eup %6128  ;;  %v3069_v11 = vpop.xlane.xlu2 %3068 }
 0xfb1   :  { %v7441_v14 = vpop.eup %6130  ;;  %v2942_v27 = vsel %vm161_vm2, %v7439_v19, 0.0 }
 0xfb2   :  { %2943 = vadd.xlane.f32.xlu1 %v2942_v27  ;;  %v3008_v1 = vsel %vm161_vm2, %v7441_v14, 0.0 }
 0xfb3   :  { %3009 = vadd.xlane.f32.xlu0 %v3008_v1 }
 0xfb8   :  { %v3199_v58 = vpop.xlane.xlu0 %3198 }
 0xfb9   :  { %v3200_v43 = vsub.f32 %v7392_v47, %v3199_v58 }
 0xfbb   :  { %v3264_v52 = vpop.xlane.xlu2 %3263 }
 0xfbc   :  { %v3265_v38 = vsub.f32 %v7396_v53, %v3264_v52 }
 0xfbe   :  { %v3266_v55 = vmul.f32 1.442695, %v3265_v38 }
 0xfc3   :  { %v3427_v45 = vpop.xlane.xlu0 %3426 }
 0xfc4   :  { %v3428_v49 = vsub.f32 %v7400_v56, %v3427_v45 }
 0xfc6   :  { %v3429_v47 = vmul.f32 1.442695, %v3428_v49 }
 0xfc7   :  { %3338 = vrot.lane.b32.xlu0 %v7297_v61, %s6301_s15  ;;  %v3201_v61 = vmul.f32 1.442695, %v3200_v43 }
 0xfc8   :  { %v2882_v44 = vpop.xlane.xlu1 %2881 }
 0xfc9   :  { %6132 = vrcp.f32 %v2882_v44 }
 0xfcb   :  { %3694 = vrot.lane.b32.xlu1 %v7327_v0, %s6302_s16 }
 0xfcf   :  { %v6133_v13 = vpop.eup %6132 }
 0xfd0   :  { %v2884_v18 = vmul.f32 %v6133_v13, %v6127_v34  ;;  %v3134_v37 = vpop.xlane.xlu1 %3133 }
 0xfd1   :  { %v3135_v21 = vsub.f32 %v7390_v51, %v3134_v37 }
 0xfd2   :  { %5762 = vmatmul.msk.f32.vlgmr.msra.gmra.mxu3 %vm161_vm2, %v2884_v18 }
 0xfd3   :  { %v3136_v8 = vmul.f32 1.442695, %v3135_v21  ;;  %3164 = vmatpush.msra.mxu3 %v7368_v30  ;;  %v3070_v30 = vsub.f32 %v7386_v33, %v3069_v11 }
 0xfd5   :  { %6134 = vpow2.f32 %v3136_v8  ;;  %v3071_v28 = vmul.f32 1.442695, %v3070_v30 }
 0xfd6   :  { %6136 = vpow2.f32 %v3201_v61 }
 0xfd7   :  { %6138 = vpow2.f32 %v3429_v47 }
 0xfd8   :  { %6140 = vpow2.f32 %v3266_v55  ;;  %v3329_v56 = vpop.xlane.xlu1 %3328 }
 0xfd9   :  { %6142 = vpow2.f32 %v3071_v28  ;;  %v3330_v6 = vsub.f32 %v7407_v46, %v3329_v56 }
 0xfdb   :  { %v7455_v22 = vpop.eup %6134  ;;  %v3331_v33 = vmul.f32 1.442695, %v3330_v6 }
 0xfdc   :  { %v3138_v51 = vsel %vm161_vm2, %v7455_v22, 0.0  ;;  %v7461_v48 = vpop.eup %6136 }
 0xfdd   :  { %3139 = vadd.xlane.f32.xlu2 %v3138_v51  ;;  %v3203_v16 = vsel %vm161_vm2, %v7461_v48, 0.0  ;;  %v7466_v34 = vpop.eup %6138  ;;  %6144 = vpow2.f32 %v3331_v33 }
 0xfde   :  { %v3431_v53 = vsel %vm161_vm2, %v7466_v34, 0.0  ;;  %v7471_v39 = vpop.eup %6140 }
 0xfdf   :  { %v3268_v10 = vsel %vm161_vm2, %v7471_v39, 0.0  ;;  %v7475_v29 = vpop.eup %6142 }
 0xfe0   :  { %v3073_v46 = vsel %vm161_vm2, %v7475_v29, 0.0 }
 0xfe3   :  { %v7480_v42 = vpop.eup %6144 }
 0xfe5   :  { %3204 = vadd.xlane.f32.xlu2 %v3203_v16 }
 0xfeb   :  { %v3489_v32 = vpop.xlane.xlu2 %3488 }
 0xfec   :  { %v3490_v62 = vsub.f32 %v7411_v59, %v3489_v32  ;;  %v3333_v59 = vsel %vm161_vm2, %v7480_v42, 0.0 }
 0xfed   :  { %3432 = vadd.xlane.f32.xlu2 %v3431_v53 }
 0xfee   :  { %v3491_v7 = vmul.f32 1.442695, %v3490_v62 }
 0xfef   :  { %v3555_v24 = vpop.xlane.xlu1 %3554 }
 0xff0   :  { %6146 = vpow2.f32 %v3491_v7  ;;  %v3556_v17 = vsub.f32 %v7415_v2, %v3555_v24  ;;  %v5963_v24 = vunpack.i.h.bf16 %v7373_v36 }
 0xff1   :  { %3269 = vadd.xlane.f32.xlu0 %v3268_v10 }
 0xff2   :  { %v3557_v27 = vmul.f32 1.442695, %v3556_v17 }
 0xff5   :  { %3074 = vadd.xlane.f32.xlu1 %v3073_v46 }
 0xff6   :  { %v7487_v1 = vpop.eup %6146 }
 0xff9   :  { %v3620_v57 = vpop.xlane.xlu0 %3619 }
 0xffa   :  { %v3621_v20 = vsub.f32 %v7419_v63, %v3620_v57  ;;  %v3685_v60 = vpop.xlane.xlu2 %3684 }
 0xffb   :  { %v3686_v5 = vsub.f32 %v7421_v4, %v3685_v60  ;;  %v3493_v4 = vsel %vm161_vm2, %v7487_v1, 0.0 }
 0xffc   :  { %v3622_v25 = vmul.f32 1.442695, %v3621_v20 }
 0xffd   :  { %v3687_v26 = vmul.f32 1.442695, %v3686_v5  ;;  %3334 = vadd.xlane.f32.xlu1 %v3333_v59  ;;  %v5958_v5 = vunpack.i.h.bf16 %v7380_v41 }
 0xffe   :  { %6148 = vpow2.f32 %v3622_v25 }
 0xfff   :  { %6150 = vpow2.f32 %v3687_v26 }
0x1000   :  { %6152 = vpow2.f32 %v3557_v27 }
0x1002   :  { %v3815_v44 = vpop.xlane.xlu2 %3814 }
0x1003   :  { %v3816_v63 = vsub.f32 %v7427_v9, %v3815_v44 }
0x1004   :  { %v7490_v13 = vpop.eup %6148  ;;  %v3750_v2 = vpop.xlane.xlu0 %3749 }
0x1005   :  { %v7494_v58 = vpop.eup %6150  ;;  %v3817_v18 = vmul.f32 1.442695, %v3816_v63  ;;  %v3751_v37 = vsub.f32 %v7431_v40, %v3750_v2  ;;  %3494 = vadd.xlane.f32.xlu1 %v3493_v4  ;;  %v3624_v21 = vsel %vm161_vm2, %v7490_v13, 0.0 }
0x1006   :  { %3625 = vadd.xlane.f32.xlu0 %v3624_v21  ;;  %v3689_v43 = vsel %vm161_vm2, %v7494_v58, 0.0  ;;  %v7501_v8 = vpop.eup %6152 }
0x1007   :  { %6154 = vpow2.f32 %v3817_v18  ;;  %v3752_v9 = vmul.f32 1.442695, %v3751_v37  ;;  %3690 = vadd.xlane.f32.xlu2 %v3689_v43  ;;  %v3559_v61 = vsel %vm161_vm2, %v7501_v8, 0.0 }
0x1009   :  { %6156 = vpow2.f32 %v3752_v9 }
0x100c   :  { %v3880_v11 = vpop.xlane.xlu2 %3879 }
0x100d   :  { %v7505_v45 = vpop.eup %6154  ;;  %v3881_v40 = vsub.f32 %v7435_v15, %v3880_v11  ;;  %3560 = vadd.xlane.f32.xlu1 %v3559_v61 }
0x100e   :  { %v3819_v49 = vsel %vm161_vm2, %v7505_v45, 0.0 }
0x100f   :  { %v3882_v52 = vmul.f32 1.442695, %v3881_v40  ;;  %3820 = vadd.xlane.f32.xlu2 %v3819_v49  ;;  %v7510_v51 = vpop.eup %6156 }
0x1010   :  { %v3754_v38 = vsel %vm161_vm2, %v7510_v51, 0.0 }
0x1011   :  { %6158 = vpow2.f32 %v3882_v52 }
0x1015   :  { %3755 = vadd.xlane.f32.xlu1 %v3754_v38 }
0x1017   :  { %v7514_v47 = vpop.eup %6158 }
0x1018   :  { %v3884_v30 = vsel %vm161_vm2, %v7514_v47, 0.0 }
0x1019   :  { %3885 = vadd.xlane.f32.xlu2 %v3884_v30 }
0x101a   :  { %3889 = vrot.lane.b32.xlu0 %v7327_v0, %s6301_s15 }
0x1025   :  { %v2944_v15 = vpop.xlane.xlu1 %2943 }
0x1026   :  { %6160 = vrcp.f32 %v2944_v15  ;;  %v3010_v55 = vpop.xlane.xlu0 %3009 }
0x1027   :  { %6162 = vrcp.f32 %v3010_v55 }
0x102c   :  { %v6161_v16 = vpop.eup %6160 }
0x102d   :  { %v6163_v28 = vpop.eup %6162  ;;  %v2946_v56 = vmul.f32 %v6161_v16, %v7439_v19 }
0x102e   :  { %v3012_v6 = vmul.f32 %v6163_v28, %v7441_v14  ;;  %3824 = vrot.lane.b32.xlu1 %v7327_v0, %s6304_s18 }
0x102f   :  { %5765 = vmatmul.msk.f32.vlgmr.msrb.gmra.mxu1 %vm161_vm2, %v2946_v56 }
0x1030   :  { %3229 = vmatpush.msrb.mxu1 %v7371_v31  ;;  %5768 = vmatmul.msk.f32.vlgmr.msrb.gmra.mxu3 %vm161_vm2, %v3012_v6 }
0x1031   :  { %3759 = vrot.lane.b32.xlu2 %v7327_v0, %s6303_s17  ;;  %3294 = vmatpush.msrb.mxu3 %v7376_v23 }
0x1039   :  { %v3339_v14 = vpop.permute.xlu0 %3338 }
0x103d   :  { %v3695_v10 = vpop.permute.xlu1 %3694 }
0x1050   :  { %v3140_v53 = vpop.xlane.xlu2 %3139 }
0x1051   :  { %6164 = vrcp.f32 %v3140_v53 }
0x1055   :  { %v2905_v49 = vpop.f32.mrf.mxu3 }
0x1057   :  { %v6165_v33 = vpop.eup %6164 }
0x1058   :  { %v3142_v19 = vmul.f32 %v6165_v33, %v7455_v22  ;;  %v3205_v32 = vpop.xlane.xlu2 %3204 }
0x105a   :  { %5774 = vmatmul.msk.f32.vlgmr.msra.gmra.mxu3 %vm161_vm2, %v3142_v19 }
0x105b   :  { %3454 = vmatpush.msra.mxu3 %v7327_v0 }
0x1060   :  { %v3433_v62 = vpop.xlane.xlu2 %3432 }
0x1064   :  { %v3270_v31 = vpop.xlane.xlu0 %3269 }
0x1065   :  { %6166 = vrcp.f32 %v3270_v31  ;;  %v5750_v31 = vld [vmem:[%s8129_s2 + $0x160] sm:$0xff] }
0x1068   :  { %v3075_v46 = vpop.xlane.xlu1 %3074 }
0x1069   :  { %6168 = vrcp.f32 %v3075_v46 }
0x106a   :  { %6170 = vrcp.f32 %v3433_v62 }
0x106b   :  { %v6167_v7 = vpop.eup %6166  ;;  %6172 = vrcp.f32 %v3205_v32  ;;  %v5752_v32 = vld [vmem:[%s8129_s2 + $0x170] sm:$0xff] }
0x106c   :  { %v3272_v23 = vmul.f32 %v6167_v7, %v7471_v39 }
0x106e   :  { %5780 = vmatmul.msk.f32.vlgmr.msrb.gmra.mxu3 %vm161_vm2, %v3272_v23 }
0x106f   :  { %v6169_v22 = vpop.eup %6168  ;;  %3585 = vmatpush.msrb.mxu3 %v5963_v24 }
0x1070   :  { %v3077_v0 = vmul.f32 %v6169_v22, %v7475_v29  ;;  %v3335_v57 = vpop.xlane.xlu1 %3334  ;;  %v6171_v20 = vpop.eup %6170 }
0x1071   :  { %v3435_v60 = vmul.f32 %v6171_v20, %v7466_v34  ;;  %v6173_v17 = vpop.eup %6172  ;;  %6174 = vrcp.f32 %v3335_v57  ;;  %v5968_v34 = vunpack.i.h.bf16 %v7378_v12 }
0x1072   :  { %5771 = vmatmul.msk.f32.vlgmr.msra.gmra.mxu1 %vm161_vm2, %v3077_v0  ;;  %v3207_v36 = vmul.f32 %v6173_v17, %v7461_v48 }
0x1073   :  { %3359 = vmatpush.msra.mxu1 %v3339_v14  ;;  %v5753_v14 = vld [vmem:[%s8129_s2 + $0x178] sm:$0xff] }
0x1074   :  { %3969 = vmatpush.msra.mxu2 %v5753_v14 }
0x1076   :  { %5786 = vmatmul.msk.f32.vlgmr.msra.gmra.mxu3 %vm161_vm2, %v3435_v60  ;;  %3970 = vmatpush.msra.mxu2 %v5752_v32 }
0x1077   :  { %3715 = vmatpush.msra.mxu3 %v3695_v10  ;;  %v6175_v29 = vpop.eup %6174  ;;  %v5751_v10 = vld [vmem:[%s8129_s2 + $0x168] sm:$0xff] }
0x1078   :  { %v3495_v39 = vpop.xlane.xlu1 %3494  ;;  %v3337_v59 = vmul.f32 %v6175_v29, %v7480_v42  ;;  %3971 = vmatpush.msra.mxu2 %v5751_v10 }
0x1079   :  { %6176 = vrcp.f32 %v3495_v39  ;;  %v3626_v27 = vpop.xlane.xlu0 %3625 }
0x107a   :  { %v3691_v25 = vpop.xlane.xlu2 %3690  ;;  %5777 = vmatmul.msk.f32.vlgmr.msrb.gmra.mxu1 %vm161_vm2, %v3207_v36  ;;  %3972 = vmatpush.msra.mxu2 %v5750_v31 }
0x107b   :  { %3520 = vmatpush.msrb.mxu1 %v5958_v5 }
0x107f   :  { %v6177_v44 = vpop.eup %6176 }
0x1080   :  { %v3561_v26 = vpop.xlane.xlu1 %3560  ;;  %v3497_v63 = vmul.f32 %v6177_v44, %v7487_v1 }
0x1081   :  { %6178 = vrcp.f32 %v3561_v26 }
0x1082   :  { %5783 = vmatmul.msk.f32.vlgmr.msra.gmra.mxu1 %vm161_vm2, %v3337_v59  ;;  %v3821_v48 = vpop.xlane.xlu2 %3820  ;;  %6180 = vrcp.f32 %v3626_v27 }
0x1083   :  { %3650 = vmatpush.msra.mxu1 %v5968_v34  ;;  %6182 = vrcp.f32 %v3691_v25 }
0x1087   :  { %v6179_v41 = vpop.eup %6178 }
0x1088   :  { %v3563_v2 = vmul.f32 %v6179_v41, %v7501_v8  ;;  %v6181_v42 = vpop.eup %6180  ;;  %v3756_v12 = vpop.xlane.xlu1 %3755 }
0x1089   :  { %v6183_v18 = vpop.eup %6182  ;;  %6184 = vrcp.f32 %v3756_v12  ;;  %v3628_v37 = vmul.f32 %v6181_v42, %v7490_v13 }
0x108a   :  { %5789 = vmatmul.msk.f32.vlgmr.msrb.gmra.mxu1 %vm161_vm2, %v3497_v63  ;;  %5792 = vmatmul.msk.f32.vlgmr.msrb.gmra.mxu3 %vm161_vm2, %v3563_v2  ;;  %v3693_v21 = vmul.f32 %v6183_v18, %v7494_v58  ;;  %6186 = vrcp.f32 %v3821_v48  ;;  %v3950_v18 = vperm.slane %v7287_v50, 3 }
0x108c   :  { %v3886_v4 = vpop.xlane.xlu2 %3885  ;;  %v3890_v9 = vpop.permute.xlu0 %3889 }
0x108d   :  { %6188 = vrcp.f32 %v3886_v4 }
0x108f   :  { %v6185_v43 = vpop.eup %6184 }
0x1090   :  { %v3758_v8 = vmul.f32 %v6185_v43, %v7510_v51  ;;  %v6187_v11 = vpop.eup %6186 }
0x1091   :  { %v3823_v13 = vmul.f32 %v6187_v11, %v7505_v45 }
0x1092   :  { %5795 = vmatmul.msk.f32.vlgmr.msra.gmra.mxu1 %vm161_vm2, %v3628_v37  ;;  %5798 = vmatmul.msk.f32.vlgmr.msra.gmra.mxu3 %vm161_vm2, %v3693_v21 }
0x1093   :  { %v6189_v61 = vpop.eup %6188 }
0x1094   :  { %v3760_v1 = vpop.permute.xlu2 %3759  ;;  %v3888_v58 = vmul.f32 %v6189_v61, %v7514_v47 }
0x1095   :  { %3780 = vmatpush.msrb.mxu1 %v3760_v1 }
0x1097   :  { %3910 = vmatpush.msra.mxu1 %v3890_v9 }
0x109a   :  { %5801 = vmatmul.msk.f32.vlgmr.msrb.gmra.mxu1 %vm161_vm2, %v3758_v8 }
0x10a0   :  { %v3825_v40 = vpop.permute.xlu1 %3824 }
0x10a1   :  { %3845 = vmatpush.msrb.mxu3 %v3825_v40 }
0x10a2   :  { %5804 = vmatmul.msk.f32.vlgmr.msrb.gmra.mxu3 %vm161_vm2, %v3823_v13  ;;  %5807 = vmatmul.msk.f32.vlgmr.msra.gmra.mxu1 %vm161_vm2, %v3888_v58 }
0x10ac   :  { %v2971_v52 = vpop.f32.mrf.mxu1 }
0x10ad   :  { %3365 = vrot.lane.b32.xlu1 %v2971_v52, %s6308_s22  ;;  %v5816_v52 = vld [vmem:[%s8129_s2 + $0x1b0] sm:$0xff] }
0x10b3   :  { %v3036_v38 = vpop.f32.mrf.mxu3 }
0x10b4   :  { %3369 = vrot.lane.b32.xlu2 %v3036_v38, %s6305_s19  ;;  %v5814_v38 = vld [vmem:[%s8129_s2 + $0x1a0] sm:$0xff] }
0x10dd   :  { %v3166_v51 = vpop.f32.mrf.mxu3 }
0x10de   :  { %3377 = vrot.lane.b32.xlu2 %v3166_v51, %s6306_s20  ;;  %v6268_v51 = vld [vmem:[%s8128_s1] sm:$0xff] }
0x10ef   :  { %v3101_v30 = vpop.f32.mrf.mxu1 }
0x10f0   :  { %3373 = vrot.lane.b32.xlu1 %v3101_v30, %s6309_s23  ;;  %v6269_v30 = vld [vmem:[%s8128_s1 + $0x8] sm:$0xff] }
0x10f1   :  { %v3296_v45 = vpop.f32.mrf.mxu3 }
0x10f2   :  { %3385 = vrot.lane.b32.xlu0 %v3296_v45, %s8140_s21 }
0x10f7   :  { %v3231_v47 = vpop.f32.mrf.mxu1 }
0x10f8   :  { %3381 = vrot.lane.b32.xlu1 %v3231_v47, %s8143_s10 }
0x10f9   :  { %v3456_v55 = vpop.f32.mrf.mxu3 }
0x10ff   :  { %v3361_v15 = vpop.f32.mrf.mxu1 }
0x1100   :  { %3389 = vrot.lane.b32.xlu2 %v3361_v15, %s8142_s27 }
0x1107   :  { %v3522_v16 = vpop.f32.mrf.mxu1 }
0x1108   :  { %3916 = vrot.lane.b32.xlu1 %v3522_v16, %s6308_s22 }
0x110d   :  { %v3587_v28 = vpop.f32.mrf.mxu3 }
0x110e   :  { %3920 = vrot.lane.b32.xlu0 %v3587_v28, %s6305_s19  ;;  %v3370_v46 = vpop.permute.xlu2 %3369  ;;  %v5813_v28 = vld [vmem:[%s8129_s2 + $0x198] sm:$0xff] }
0x110f   :  { %v3652_v56 = vpop.f32.mrf.mxu1  ;;  %4071 = vmatpush.msra.mxu3 %v5813_v28 }
0x1110   :  { %3924 = vrot.lane.b32.xlu2 %v3652_v56, %s6309_s23  ;;  %v5812_v56 = vld [vmem:[%s8129_s2 + $0x190] sm:$0xff] }
0x1111   :  { %4072 = vmatpush.msra.mxu3 %v5812_v56 }
0x1115   :  { %v3717_v6 = vpop.f32.mrf.mxu3 }
0x1116   :  { %3928 = vrot.lane.b32.xlu1 %v3717_v6, %s6306_s20  ;;  %v5811_v6 = vld [vmem:[%s8129_s2 + $0x188] sm:$0xff] }
0x1117   :  { %v3782_v53 = vpop.f32.mrf.mxu1  ;;  %4073 = vmatpush.msra.mxu3 %v5811_v6 }
0x1118   :  { %3932 = vrot.lane.b32.xlu0 %v3782_v53, %s8143_s10  ;;  %v5810_v53 = vld [vmem:[%s8129_s2 + $0x180] sm:$0xff] }
0x1119   :  { %4074 = vmatpush.msra.mxu3 %v5810_v53 }
0x111f   :  { %v3912_v33 = vpop.f32.mrf.mxu1  ;;  %v3366_v62 = vpop.permute.xlu1 %3365 }
0x1120   :  { %3940 = vrot.lane.b32.xlu1 %v3912_v33, %s8142_s27  ;;  %v3392_v23 = vsel %vm134_vm1, %v2905_v49, %v3366_v62 }
0x1121   :  { %v3393_v22 = vsel %vm161_vm2, %v3392_v23, %v3370_v46  ;;  %v5737_v46 = vld [vmem:[%s8132_s5 + $0x18] sm:$0xff] }
0x1125   :  { %v3847_v19 = vpop.f32.mrf.mxu3 }
0x1126   :  { %3936 = vrot.lane.b32.xlu2 %v3847_v19, %s8140_s21  ;;  %s6314_s21 = smov 512  }
0x1138   :  { %v3378_v24 = vpop.permute.xlu2 %3377 }
0x115a   :  { %v3390_v36 = vpop.permute.xlu2 %3389 }
0x1162   :  { %v3374_v7 = vpop.permute.xlu1 %3373 }
0x1163   :  { %v3394_v0 = vsel %vm682_vm3, %v3393_v22, %v3374_v7 }
0x1164   :  { %v3395_v57 = vsel %vm684_vm4, %v3394_v0, %v3378_v24  ;;  %v3386_v60 = vpop.permute.xlu0 %3385  ;;  %v4026_v24 = vperm.slane %v5737_v46, 1  ;;  %v4029_v0 = vperm.slane %v5737_v46, 2 }
0x116a   :  { %v3382_v20 = vpop.permute.xlu1 %3381  ;;  %v3925_v34 = vpop.permute.xlu2 %3924 }
0x116b   :  { %v3396_v17 = vsel %vm686_vm5, %v3395_v57, %v3382_v20 }
0x116c   :  { %v3397_v39 = vsel %vm688_vm6, %v3396_v17, %v3386_v60  ;;  %v5821_v17 = vld [vmem:[%s8129_s2 + $0x1d8] sm:$0xff] }
0x116d   :  { %v3398_v5 = vsel %vm690_vm7, %v3397_v39, %v3390_v36  ;;  %v5820_v36 = vld [vmem:[%s8129_s2 + $0x1d0] sm:$0xff]  ;;  %4119 = vmatpush.msrb.mxu1 %v5821_v17 }
0x116e   :  { %5808 = vmatmul.msk.f32.vlgmr.msra.gmra.mxu2 %vm56_vm0, %v3398_v5  ;;  %v7664_v39 = vld [vmem:[%s8132_s5 + $0x10] sm:$0xff] }
0x116f   :  { %v4082_v5 = vperm.slane %v7664_v39, 5  ;;  %4120 = vmatpush.msrb.mxu1 %v5820_v36 }
0x117a   :  { %v3917_v25 = vpop.permute.xlu1 %3916 }
0x117b   :  { %v3943_v59 = vsel %vm134_vm1, %v3456_v55, %v3917_v25 }
0x1180   :  { %v3921_v29 = vpop.permute.xlu0 %3920  ;;  %v3937_v2 = vpop.permute.xlu2 %3936 }
0x1181   :  { %v3944_v26 = vsel %vm161_vm2, %v3943_v59, %v3921_v29  ;;  %v5819_v29 = vld [vmem:[%s8129_s2 + $0x1c8] sm:$0xff] }
0x1182   :  { %v3945_v48 = vsel %vm682_vm3, %v3944_v26, %v3925_v34  ;;  %4121 = vmatpush.msrb.mxu1 %v5819_v29 }
0x1188   :  { %v3929_v27 = vpop.permute.xlu1 %3928 }
0x1189   :  { %v3946_v44 = vsel %vm684_vm4, %v3945_v48, %v3929_v27  ;;  %v5818_v27 = vld [vmem:[%s8129_s2 + $0x1c0] sm:$0xff] }
0x118a   :  { %v3933_v41 = vpop.permute.xlu0 %3932  ;;  %4122 = vmatpush.msrb.mxu1 %v5818_v27 }
0x118b   :  { %v3947_v63 = vsel %vm686_vm5, %v3946_v44, %v3933_v41  ;;  %5830 = vmatmul.msk.f32.vlgmr.msrb.gmra.mxu1 %vm56_vm0, %v6268_v51 }
0x118c   :  { %v3948_v42 = vsel %vm688_vm6, %v3947_v63, %v3937_v2 }
0x1192   :  { %v3941_v12 = vpop.permute.xlu1 %3940 }
0x1193   :  { %v3949_v4 = vsel %vm690_vm7, %v3948_v42, %v3941_v12  ;;  %5831 = vmatmul.msk.f32.gmra.mxu1 %vm56_vm0, %v6269_v30 }
0x1194   :  { %5809 = vmatmul.msk.f32.gmra.mxu2 %vm56_vm0, %v3949_v4 }
0x11f1   :  { %v3974_v37 = vpop.f32.mrf.mxu2 }
0x11f2   :  { %v3975_v21 = vadd.f32 %v3974_v37, %v3950_v18 }
0x11f4   :  { %v3980_v1 = vadd.f32 %v3975_v21, %v7266_v54  ;;  %v5817_v54 = vld [vmem:[%s8129_s2 + $0x1b8] sm:$0xff] }
0x11f5   :  { %4095 = vmatpush.msra.mxu0 %v5817_v54 }
0x11f6   :  { %v3982_v43 = vsel %vm56_vm0, %v3980_v1, 0.0 }
0x11f7   :  { %3983 = vadd.xlane.f32.xlu0 %v3982_v43  ;;  %4096 = vmatpush.msra.mxu0 %v5816_v52 }
0x1217   :  { %v3977_v9 = vpop.f32.mrf.mxu2 }
0x1218   :  { %v3978_v8 = vadd.f32 %v3977_v9, %v3950_v18 }
0x121a   :  { %v3981_v11 = vadd.f32 %v3978_v8, %v7276_v35  ;;  %v5815_v35 = vld [vmem:[%s8129_s2 + $0x1a8] sm:$0xff] }
0x121b   :  { %4097 = vmatpush.msra.mxu0 %v5815_v35 }
0x121c   :  { %v3985_v61 = vsel %vm56_vm0, %v3981_v11, 0.0 }
0x121d   :  { %3986 = vadd.xlane.f32.xlu2 %v3985_v61  ;;  %4098 = vmatpush.msra.mxu0 %v5814_v38  ;;  %v4106_v61 = vperm.slane %v7664_v39, 6 }
0x121e   :  { %5828 = vmatmul.msk.f32.vlgmr.msra.gmra.mxu0 %vm56_vm0, %v6268_v51 }
0x1226   :  { %5829 = vmatmul.msk.f32.gmra.mxu0 %vm56_vm0, %v6269_v30 }
0x126a   :  { %v3984_v13 = vpop.xlane.xlu0 %3983 }
0x126b   :  { %v3988_v58 = vmul.f32 %v3984_v13, %v6761_v3  ;;  %v4124_v13 = vpop.f32.mrf.mxu1 }
0x126d   :  { %v3990_v40 = vsub.f32 %v3980_v1, %v3988_v58  ;;  %v4052_v1 = vperm.slane %v7664_v39, 4  ;;  %v7701_v58 = vadd.f32 %v4124_v13, %v4106_v61 }
0x126f   :  { %v3992_v49 = vmul.f32 %v3990_v40, %v3990_v40  ;;  %4185 = vmatpush.msrb.mxu3 %v7701_v58 }
0x1271   :  { %v3994_v50 = vsel %vm56_vm0, %v3992_v49, 0.0 }
0x1272   :  { %3995 = vadd.xlane.f32.xlu1 %v3994_v50 }
0x1273   :  { %v4127_v35 = vpop.f32.mrf.mxu1 }
0x1274   :  { %v7716_v38 = vadd.f32 %v4127_v35, %v4106_v61 }
0x1276   :  { %v5979_v51 = vpack.i.bf16 %v7716_v38, %v7701_v58 }
0x1290   :  { %v3987_v45 = vpop.xlane.xlu2 %3986 }
0x1291   :  { %v3989_v47 = vmul.f32 %v3987_v45, %v6761_v3 }
0x1293   :  { %v7630_v15 = vsub.f32 %v3981_v11, %v3989_v47 }
0x1295   :  { %v3993_v55 = vmul.f32 %v7630_v15, %v7630_v15 }
0x1297   :  { %v3997_v16 = vsel %vm56_vm0, %v3993_v55, 0.0 }
0x1298   :  { %3998 = vadd.xlane.f32.xlu0 %v3997_v16 }
0x129b   :  { %v4100_v25 = vpop.f32.mrf.mxu0 }
0x129c   :  { %v4101_v59 = vadd.f32 %v4100_v25, %v4082_v5 }
0x129e   :  { %4258 = vrot.lane.b32.xlu2 %v4101_v59, %s6298_s0  ;;  %5832 = vmatpush.xpose.msk.msrb.mxu2 %vm134_vm1, %v4101_v59 }
0x129f   :  { %4518 = vrot.lane.b32.xlu1 %v4101_v59, %s6304_s18 }
0x12a3   :  { %v4103_v8 = vpop.f32.mrf.mxu0 }
0x12a4   :  { %v4104_v11 = vadd.f32 %v4103_v8, %v4082_v5 }
0x12a6   :  { %4323 = vrot.lane.b32.xlu2 %v4101_v59, %s6300_s14 }
0x12ac   :  { %4192 = vrot.lane.b32.xlu0 %v4101_v59, %s6299_s13 }
0x12b4   :  { %4388 = vrot.lane.b32.xlu0 %v4101_v59, %s6302_s16 }
0x12bc   :  { %4453 = vrot.lane.b32.xlu0 %v4101_v59, %s6303_s17 }
0x12e5   :  { %v3996_v33 = vpop.xlane.xlu1 %3995 }
0x12e6   :  { %v4000_v19 = vmul.f32 %v3996_v33, %v6761_v3 }
0x12e8   :  { %v4002_v14 = vadd.f32 1e-05, %v4000_v19 }
0x12ea   :  { %6190 = vrsqrt.f32 %v4002_v14  ;;  %vm4010_vm14 = vweird.f32 %v4002_v14 }
0x12f0   :  { %v6191_v32 = vpop.eup %6190 }
0x12f1   :  { %v4005_v10 = vmul.f32 %v6191_v32, %v4002_v14  ;;  %vm4011_vm12 = vweird.f32 %v6191_v32 }
0x12f2   :  { %vm4012_vm15 = vmor %vm4010_vm14, %vm4011_vm12 }
0x12f3   :  { %v4006_v31 = vmul.f32 %v6191_v32, %v4005_v10 }
0x12f5   :  { %v4007_v62 = vmul.f32 0.5, %v4006_v31 }
0x12f7   :  { %v4008_v7 = vsub.f32 1.5, %v4007_v62 }
0x12f8   :  { %v4259_v50 = vpop.permute.xlu2 %4258 }
0x12f9   :  { %v4009_v23 = vmul.f32 %v6191_v32, %v4008_v7  ;;  %5838 = vmatpush.xpose.msk.msra.mxu2 %vm134_vm1, %v4259_v50 }
0x12fb   :  { %v4013_v22 = vsel %vm4012_vm15, %v6191_v32, %v4009_v23 }
0x12fc   :  { %v4024_v57 = vmul.f32 %v4013_v22, %v3990_v40 }
0x12fe   :  { %v4027_v20 = vmul.f32 %v4026_v24, %v4024_v57 }
0x1300   :  { %v7651_v60 = vadd.f32 %v4029_v0, %v4027_v20  ;;  %v4324_v52 = vpop.permute.xlu2 %4323 }
0x1302   :  { %5826 = vmatmul.msk.f32.vlgmr.msra.gmra.mxu3 %vm56_vm0, %v7651_v60 }
0x130b   :  { %v3999_v26 = vpop.xlane.xlu0 %3998 }
0x130c   :  { %v4001_v34 = vmul.f32 %v3999_v26, %v6761_v3 }
0x130e   :  { %v4003_v48 = vadd.f32 1e-05, %v4001_v34 }
0x1310   :  { %6192 = vrsqrt.f32 %v4003_v48  ;;  %vm4020_vm9 = vweird.f32 %v4003_v48 }
0x1311   :  { %v4519_v55 = vpop.permute.xlu1 %4518 }
0x1316   :  { %v6193_v44 = vpop.eup %6192 }
0x1317   :  { %v4015_v41 = vmul.f32 %v6193_v44, %v4003_v48  ;;  %vm4021_vm8 = vweird.f32 %v6193_v44 }
0x1318   :  { %vm4022_vm10 = vmor %vm4020_vm9, %vm4021_vm8 }
0x1319   :  { %v4016_v63 = vmul.f32 %v6193_v44, %v4015_v41 }
0x131b   :  { %v4017_v2 = vmul.f32 0.5, %v4016_v63 }
0x131d   :  { %v4018_v42 = vsub.f32 1.5, %v4017_v2 }
0x131e   :  { %v4193_v54 = vpop.permute.xlu0 %4192 }
0x131f   :  { %v4019_v12 = vmul.f32 %v6193_v44, %v4018_v42  ;;  %5835 = vmatpush.xpose.msk.msrb.mxu0 %vm134_vm1, %v4193_v54 }
0x1321   :  { %v4023_v4 = vsel %vm4022_vm10, %v6193_v44, %v4019_v12 }
0x1322   :  { %v4025_v18 = vmul.f32 %v4023_v4, %v7630_v15 }
0x1323   :  { %5841 = vmatpush.xpose.msk.msra.mxu0 %vm134_vm1, %v4324_v52 }
0x1324   :  { %v4028_v37 = vmul.f32 %v4026_v24, %v4025_v18 }
0x1326   :  { %v7684_v21 = vadd.f32 %v4029_v0, %v4028_v37  ;;  %v4389_v30 = vpop.permute.xlu0 %4388 }
0x1328   :  { %5827 = vmatmul.msk.f32.gmra.mxu3 %vm56_vm0, %v7684_v21 }
0x132e   :  { %v4454_v45 = vpop.permute.xlu0 %4453 }
0x1385   :  { %v4076_v43 = vpop.f32.mrf.mxu3 }
0x1386   :  { %v4077_v9 = vadd.f32 %v4076_v43, %v4052_v1 }
0x1388   :  { %4321 = vrot.lane.b32.xlu0 %v4077_v9, %s6300_s14  ;;  %4190 = vrot.lane.b32.xlu2 %v4077_v9, %s6299_s13 }
0x1389   :  { %4256 = vrot.lane.b32.xlu1 %v4077_v9, %s6298_s0  ;;  %5833 = vmatmul.msk.f32.vlgmr.msrb.gmra.mxu2 %vm134_vm1, %v4077_v9 }
0x138a   :  { %5844 = vmatpush.xpose.msk.msrb.mxu2 %vm134_vm1, %v4389_v30 }
0x1390   :  { %4743 = vrot.lane.b32.xlu0 %v4104_v11, %s6299_s13  ;;  %4516 = vrot.lane.b32.xlu2 %v4077_v9, %s6304_s18 }
0x1391   :  { %4386 = vrot.lane.b32.xlu1 %v4077_v9, %s6302_s16 }
0x1398   :  { %4581 = vrot.lane.b32.xlu0 %v4077_v9, %s6301_s15  ;;  %4583 = vrot.lane.b32.xlu2 %v4101_v59, %s6301_s15 }
0x1399   :  { %4451 = vrot.lane.b32.xlu1 %v4077_v9, %s6303_s17 }
0x13a1   :  { %4809 = vrot.lane.b32.xlu1 %v4104_v11, %s6298_s0 }
0x13ab   :  { %v4079_v40 = vpop.f32.mrf.mxu3 }
0x13ac   :  { %v4080_v49 = vadd.f32 %v4079_v40, %v4052_v1 }
0x13ae   :  { %4937 = vrot.lane.b32.xlu0 %v4080_v49, %s6302_s16  ;;  %4807 = vrot.lane.b32.xlu2 %v4080_v49, %s6298_s0 }
0x13af   :  { %4741 = vrot.lane.b32.xlu1 %v4080_v49, %s6299_s13 }
0x13b6   :  { %5069 = vrot.lane.b32.xlu0 %v4104_v11, %s6304_s18  ;;  %4939 = vrot.lane.b32.xlu2 %v4104_v11, %s6302_s16 }
0x13b7   :  { %4874 = vrot.lane.b32.xlu1 %v4104_v11, %s6300_s14 }
0x13be   :  { %5002 = vrot.lane.b32.xlu0 %v4080_v49, %s6303_s17  ;;  %4872 = vrot.lane.b32.xlu2 %v4080_v49, %s6300_s14 }
0x13bf   :  { %5067 = vrot.lane.b32.xlu1 %v4080_v49, %s6304_s18 }
0x13c6   :  { %5004 = vrot.lane.b32.xlu2 %v4104_v11, %s6303_s17  ;;  %5980 = vrot.lane.b32.xlu0 %v5979_v51, %s6300_s14 }
0x13c7   :  { %5134 = vrot.lane.b32.xlu1 %v4104_v11, %s6301_s15 }
0x13ce   :  { %5132 = vrot.lane.b32.xlu2 %v4080_v49, %s6301_s15 }
0x13cf   :  { %5975 = vrot.lane.b32.xlu1 %v5979_v51, %s6298_s0  ;;  %s8144_s0 = smov 24  }
0x13d6   :  { %5970 = vrot.lane.b32.xlu2 %v5979_v51, %s6299_s13 }
0x13d7   :  { %4425 = vrot.lane.b32.xlu1 %v7701_v58, %s6302_s16 }
0x13de   :  { %4555 = vrot.lane.b32.xlu2 %v7701_v58, %s6304_s18 }
0x13df   :  { %4490 = vrot.lane.b32.xlu1 %v7701_v58, %s6303_s17 }
0x13e2   :  { %v4191_v47 = vpop.permute.xlu2 %4190 }
0x13e3   :  { %5836 = vmatmul.msk.f32.vlgmr.msrb.gmra.mxu0 %vm134_vm1, %v4191_v47 }
0x13e4   :  { %5847 = vmatpush.xpose.msk.msrb.mxu0 %vm134_vm1, %v4454_v45 }
0x13ea   :  { %v4517_v15 = vpop.permute.xlu2 %4516 }
0x13f2   :  { %v4584_v28 = vpop.permute.xlu2 %4583 }
0x13fa   :  { %v4322_v16 = vpop.permute.xlu0 %4321 }
0x13fb   :  { %v4257_v56 = vpop.permute.xlu1 %4256  ;;  %5842 = vmatmul.msk.f32.vlgmr.msra.gmra.mxu0 %vm134_vm1, %v4322_v16 }
0x13fc   :  { %5839 = vmatmul.msk.f32.vlgmr.msra.gmra.mxu2 %vm134_vm1, %v4257_v56  ;;  %5853 = vmatpush.xpose.msk.msra.mxu0 %vm134_vm1, %v4584_v28 }
0x13fd   :  { %5850 = vmatpush.xpose.msk.msra.mxu2 %vm134_vm1, %v4519_v55 }
0x1402   :  { %v4744_v33 = vpop.permute.xlu0 %4743 }
0x1403   :  { %v4387_v6 = vpop.permute.xlu1 %4386 }
0x1404   :  { %5845 = vmatmul.msk.f32.vlgmr.msrb.gmra.mxu2 %vm134_vm1, %v4387_v6 }
0x1405   :  { %5856 = vmatpush.xpose.msk.msrb.mxu2 %vm134_vm1, %v4104_v11 }
0x1408   :  { %v4808_v53 = vpop.permute.xlu2 %4807 }
0x140a   :  { %v4582_v31 = vpop.permute.xlu0 %4581 }
0x140b   :  { %v4452_v19 = vpop.permute.xlu1 %4451 }
0x140c   :  { %v4153_v14 = vpop.f32.mrf.mxu2  ;;  %5848 = vmatmul.msk.f32.vlgmr.msrb.gmra.mxu0 %vm134_vm1, %v4452_v19  ;;  %5851 = vmatmul.msk.f32.vlgmr.msra.gmra.mxu2 %vm134_vm1, %v4517_v15 }
0x140d   :  { %v4156_v32 = vsel %vm161_vm2, %v4153_v14, -inf  ;;  %5859 = vmatpush.xpose.msk.msrb.mxu0 %vm134_vm1, %v4744_v33 }
0x140e   :  { %4157 = vmax.xlane.f32.xlu0 %v4156_v32 }
0x1410   :  { %v4940_v10 = vpop.permute.xlu2 %4939 }
0x1413   :  { %v4810_v62 = vpop.permute.xlu1 %4809 }
0x1414   :  { %5854 = vmatmul.msk.f32.vlgmr.msra.gmra.mxu0 %vm134_vm1, %v4582_v31  ;;  %5857 = vmatmul.msk.f32.vlgmr.msrb.gmra.mxu2 %vm134_vm1, %v4080_v49 }
0x1415   :  { %5862 = vmatpush.xpose.msk.msra.mxu2 %vm134_vm1, %v4810_v62 }
0x1418   :  { %v4873_v46 = vpop.permute.xlu2 %4872 }
0x1419   :  { %5868 = vmatpush.xpose.msk.msrb.mxu2 %vm134_vm1, %v4940_v10 }
0x141c   :  { %5863 = vmatmul.msk.f32.vlgmr.msra.gmra.mxu2 %vm134_vm1, %v4808_v53 }
0x1420   :  { %v4938_v7 = vpop.permute.xlu0 %4937  ;;  %v5005_v23 = vpop.permute.xlu2 %5004 }
0x1421   :  { %v4742_v24 = vpop.permute.xlu1 %4741 }
0x1422   :  { %5860 = vmatmul.msk.f32.vlgmr.msrb.gmra.mxu0 %vm134_vm1, %v4742_v24 }
0x1424   :  { %5869 = vmatmul.msk.f32.vlgmr.msrb.gmra.mxu2 %vm134_vm1, %v4938_v7 }
0x1428   :  { %v5070_v22 = vpop.permute.xlu0 %5069  ;;  %v5133_v0 = vpop.permute.xlu2 %5132 }
0x1429   :  { %v4875_v57 = vpop.permute.xlu1 %4874  ;;  %5874 = vmatpush.xpose.msk.msra.mxu2 %vm134_vm1, %v5070_v22 }
0x142a   :  { %5865 = vmatpush.xpose.msk.msra.mxu0 %vm134_vm1, %v4875_v57 }
0x142d   :  { %5866 = vmatmul.msk.f32.vlgmr.msra.gmra.mxu0 %vm134_vm1, %v4873_v46 }
0x142e   :  { %5871 = vmatpush.xpose.msk.msrb.mxu0 %vm134_vm1, %v5005_v23 }
0x1430   :  { %v5003_v20 = vpop.permute.xlu0 %5002  ;;  %v7756_v17 = vpop.permute.xlu2 %5970 }
0x1431   :  { %v5068_v36 = vpop.permute.xlu1 %5067  ;;  %v5972_v5 = vunpack.i.l.bf16 %v7756_v17 }
0x1432   :  { %5875 = vmatmul.msk.f32.vlgmr.msra.gmra.mxu2 %vm134_vm1, %v5068_v36 }
0x1433   :  { %4251 = vmatpush.msra.mxu1 %v5972_v5 }
0x1435   :  { %5872 = vmatmul.msk.f32.vlgmr.msrb.gmra.mxu0 %vm134_vm1, %v5003_v20 }
0x1438   :  { %v7761_v25 = vpop.permute.xlu0 %5980  ;;  %v7830_v46 = vpop.permute.xlu2 %4555 }
0x1439   :  { %v5135_v29 = vpop.permute.xlu1 %5134  ;;  %v5982_v59 = vunpack.i.l.bf16 %v7761_v25 }
0x143a   :  { %5877 = vmatpush.xpose.msk.msra.mxu0 %vm134_vm1, %v5135_v29 }
0x143b   :  { %4381 = vmatpush.msrb.mxu1 %v5982_v59 }
0x143d   :  { %5878 = vmatmul.msk.f32.vlgmr.msra.gmra.mxu0 %vm134_vm1, %v5133_v0 }
0x1441   :  { %v7766_v26 = vpop.permute.xlu1 %5975 }
0x1442   :  { %v5977_v34 = vunpack.i.l.bf16 %v7766_v26 }
0x1444   :  { %4316 = vmatpush.msra.mxu3 %v5977_v34 }
0x1449   :  { %v4426_v33 = vpop.permute.xlu1 %4425 }
0x1451   :  { %v7824_v19 = vpop.permute.xlu1 %4490 }
0x1460   :  { %v4215_v27 = vpop.f32.mrf.mxu0 }
0x1461   :  { %v4218_v48 = vsel %vm161_vm2, %v4215_v27, -inf }
0x1462   :  { %4219 = vmax.xlane.f32.xlu1 %v4218_v48 }
0x1478   :  { %v4346_v44 = vpop.f32.mrf.mxu0 }
0x1479   :  { %v4349_v41 = vsel %vm161_vm2, %v4346_v44, -inf }
0x147a   :  { %4350 = vmax.xlane.f32.xlu0 %v4349_v41 }
0x147f   :  { %v4281_v63 = vpop.f32.mrf.mxu2 }
0x1480   :  { %v4284_v2 = vsel %vm161_vm2, %v4281_v63, -inf }
0x1481   :  { %v4158_v42 = vpop.xlane.xlu0 %4157  ;;  %4285 = vmax.xlane.f32.xlu2 %v4284_v2 }
0x1482   :  { %v4159_v12 = vsub.f32 %v4153_v14, %v4158_v42 }
0x1484   :  { %v4160_v4 = vmul.f32 1.442695, %v4159_v12 }
0x1486   :  { %6194 = vpow2.f32 %v4160_v4 }
0x1487   :  { %v7772_v18 = vpop.f32.mrf.mxu2 }
0x1488   :  { %v4414_v37 = vsel %vm161_vm2, %v7772_v18, -inf }
0x1489   :  { %v7776_v1 = vpop.f32.mrf.mxu0  ;;  %4415 = vmax.xlane.f32.xlu1 %v4414_v37 }
0x148a   :  { %v4479_v43 = vsel %vm161_vm2, %v7776_v1, -inf }
0x148b   :  { %4480 = vmax.xlane.f32.xlu2 %v4479_v43 }
0x148c   :  { %v7780_v9 = vpop.eup %6194 }
0x148d   :  { %v4162_v61 = vsel %vm161_vm2, %v7780_v9, 0.0 }
0x148f   :  { %v7782_v8 = vpop.f32.mrf.mxu2 }
0x1490   :  { %v4544_v11 = vsel %vm161_vm2, %v7782_v8, -inf }
0x1491   :  { %4545 = vmax.xlane.f32.xlu0 %v4544_v11  ;;  %4163 = vadd.xlane.f32.xlu1 %v4162_v61  ;;  %v7788_v13 = vpop.f32.mrf.mxu0 }
0x1492   :  { %v4609_v49 = vsel %vm161_vm2, %v7788_v13, -inf }
0x1497   :  { %v7790_v40 = vpop.f32.mrf.mxu2 }
0x1498   :  { %v4707_v50 = vsel %vm161_vm2, %v7790_v40, -inf }
0x1499   :  { %4610 = vmax.xlane.f32.xlu1 %v4609_v49  ;;  %4708 = vmax.xlane.f32.xlu2 %v4707_v50 }
0x149f   :  { %v7796_v54 = vpop.f32.mrf.mxu0  ;;  %v7798_v52 = vpop.f32.mrf.mxu2 }
0x14a0   :  { %v4769_v35 = vsel %vm161_vm2, %v7796_v54, -inf  ;;  %v4835_v51 = vsel %vm161_vm2, %v7798_v52, -inf }
0x14a1   :  { %4770 = vmax.xlane.f32.xlu0 %v4769_v35  ;;  %4836 = vmax.xlane.f32.xlu1 %v4835_v51 }
0x14a7   :  { %v7804_v30 = vpop.f32.mrf.mxu2 }
0x14a8   :  { %v4965_v45 = vsel %vm161_vm2, %v7804_v30, -inf }
0x14a9   :  { %4966 = vmax.xlane.f32.xlu0 %v4965_v45 }
0x14aa   :  { %v7808_v47 = vpop.f32.mrf.mxu0 }
0x14ab   :  { %v4900_v15 = vsel %vm161_vm2, %v7808_v47, -inf }
0x14ac   :  { %4901 = vmax.xlane.f32.xlu2 %v4900_v15 }
0x14b2   :  { %v7812_v55 = vpop.f32.mrf.mxu0 }
0x14b3   :  { %v5030_v16 = vsel %vm161_vm2, %v7812_v55, -inf }
0x14b4   :  { %5031 = vmax.xlane.f32.xlu2 %v5030_v16 }
0x14b5   :  { %v7816_v28 = vpop.f32.mrf.mxu2 }
0x14b6   :  { %v5095_v56 = vsel %vm161_vm2, %v7816_v28, -inf }
0x14b7   :  { %5096 = vmax.xlane.f32.xlu0 %v5095_v56 }
0x14ba   :  { %v7820_v6 = vpop.f32.mrf.mxu0 }
0x14bb   :  { %v5160_v53 = vsel %vm161_vm2, %v7820_v6, -inf }
0x14bf   :  { %5161 = vmax.xlane.f32.xlu0 %v5160_v53 }
0x14d5   :  { %v4220_v14 = vpop.xlane.xlu1 %4219 }
0x14d6   :  { %v4221_v32 = vsub.f32 %v4215_v27, %v4220_v14 }
0x14d8   :  { %v4222_v10 = vmul.f32 1.442695, %v4221_v32 }
0x14da   :  { %6196 = vpow2.f32 %v4222_v10 }
0x14e0   :  { %v7826_v31 = vpop.eup %6196 }
0x14e1   :  { %v4224_v62 = vsel %vm161_vm2, %v7826_v31, 0.0 }
0x14e2   :  { %4225 = vadd.xlane.f32.xlu1 %v4224_v62 }
0x14ed   :  { %v4351_v7 = vpop.xlane.xlu0 %4350 }
0x14ee   :  { %v4352_v23 = vsub.f32 %v4346_v44, %v4351_v7 }
0x14f0   :  { %v4353_v24 = vmul.f32 1.442695, %v4352_v23 }
0x14f2   :  { %6198 = vpow2.f32 %v4353_v24 }
0x14f4   :  { %v4286_v22 = vpop.xlane.xlu2 %4285 }
0x14f5   :  { %v4287_v0 = vsub.f32 %v4281_v63, %v4286_v22 }
0x14f7   :  { %v4288_v57 = vmul.f32 1.442695, %v4287_v0 }
0x14f8   :  { %v7832_v20 = vpop.eup %6198 }
0x14f9   :  { %6200 = vpow2.f32 %v4288_v57  ;;  %v4355_v36 = vsel %vm161_vm2, %v7832_v20, 0.0 }
0x14fa   :  { %4356 = vadd.xlane.f32.xlu1 %v4355_v36 }
0x14fc   :  { %v4416_v5 = vpop.xlane.xlu1 %4415 }
0x14fd   :  { %v4417_v29 = vsub.f32 %v7772_v18, %v4416_v5 }
0x14fe   :  { %v4481_v59 = vpop.xlane.xlu2 %4480 }
0x14ff   :  { %v7837_v34 = vpop.eup %6200  ;;  %v4418_v27 = vmul.f32 1.442695, %v4417_v29  ;;  %v4482_v48 = vsub.f32 %v7776_v1, %v4481_v59 }
0x1500   :  { %v4290_v44 = vsel %vm161_vm2, %v7837_v34, 0.0 }
0x1501   :  { %6202 = vpow2.f32 %v4418_v27  ;;  %4291 = vadd.xlane.f32.xlu2 %v4290_v44  ;;  %v4483_v41 = vmul.f32 1.442695, %v4482_v48 }
0x1504   :  { %v4546_v63 = vpop.xlane.xlu0 %4545  ;;  %v4164_v2 = vpop.xlane.xlu1 %4163 }
0x1505   :  { %v4547_v42 = vsub.f32 %v7782_v8, %v4546_v63  ;;  %6204 = vrcp.f32 %v4164_v2 }
0x1506   :  { %6206 = vpow2.f32 %v4483_v41 }
0x1507   :  { %v7843_v12 = vpop.eup %6202  ;;  %v4548_v4 = vmul.f32 1.442695, %v4547_v42 }
0x1508   :  { %v4420_v18 = vsel %vm161_vm2, %v7843_v12, 0.0 }
0x1509   :  { %6208 = vpow2.f32 %v4548_v4  ;;  %4421 = vadd.xlane.f32.xlu0 %v4420_v18 }
0x150b   :  { %v6205_v37 = vpop.eup %6204 }
0x150c   :  { %v4166_v1 = vmul.f32 %v6205_v37, %v7780_v9  ;;  %v4611_v43 = vpop.xlane.xlu1 %4610  ;;  %v4709_v11 = vpop.xlane.xlu2 %4708 }
0x150d   :  { %v7848_v61 = vpop.eup %6206  ;;  %v4612_v49 = vsub.f32 %v7788_v13, %v4611_v43  ;;  %v4710_v8 = vsub.f32 %v7790_v40, %v4709_v11 }
0x150e   :  { %5834 = vmatmul.msk.f32.vlgmr.msrb.gmra.mxu3 %vm161_vm2, %v4166_v1  ;;  %v4485_v9 = vsel %vm161_vm2, %v7848_v61, 0.0 }
0x150f   :  { %v7853_v50 = vpop.eup %6208  ;;  %v4613_v35 = vmul.f32 1.442695, %v4612_v49  ;;  %v4711_v51 = vmul.f32 1.442695, %v4710_v8  ;;  %4446 = vmatpush.msrb.mxu3 %v4426_v33 }
0x1510   :  { %v4550_v45 = vsel %vm161_vm2, %v7853_v50, 0.0 }
0x1511   :  { %6210 = vpow2.f32 %v4613_v35  ;;  %4551 = vadd.xlane.f32.xlu2 %v4550_v45  ;;  %4486 = vadd.xlane.f32.xlu0 %v4485_v9 }
0x1512   :  { %6212 = vpow2.f32 %v4711_v51 }
0x1514   :  { %v4771_v13 = vpop.xlane.xlu0 %4770  ;;  %v4837_v15 = vpop.xlane.xlu1 %4836 }
0x1515   :  { %v4772_v40 = vsub.f32 %v7796_v54, %v4771_v13  ;;  %v4838_v53 = vsub.f32 %v7798_v52, %v4837_v15 }
0x1517   :  { %v7860_v16 = vpop.eup %6210  ;;  %v4773_v56 = vmul.f32 1.442695, %v4772_v40  ;;  %v4839_v10 = vmul.f32 1.442695, %v4838_v53 }
0x1518   :  { %v7863_v33 = vpop.eup %6212  ;;  %v4615_v14 = vsel %vm161_vm2, %v7860_v16, 0.0 }
0x1519   :  { %6214 = vpow2.f32 %v4773_v56  ;;  %4616 = vadd.xlane.f32.xlu0 %v4615_v14  ;;  %v4713_v32 = vsel %vm161_vm2, %v7863_v33, 0.0  ;;  %v5973_v14 = vunpack.i.h.bf16 %v7756_v17  ;;  %v5983_v17 = vunpack.i.h.bf16 %v7761_v25 }
0x151a   :  { %4714 = vadd.xlane.f32.xlu1 %v4713_v32  ;;  %6216 = vpow2.f32 %v4839_v10  ;;  %v5978_v10 = vunpack.i.h.bf16 %v7766_v26 }
0x151c   :  { %v4967_v23 = vpop.xlane.xlu0 %4966 }
0x151d   :  { %v4968_v63 = vsub.f32 %v7804_v30, %v4967_v23 }
0x151f   :  { %v7869_v62 = vpop.eup %6214  ;;  %v4902_v54 = vpop.xlane.xlu2 %4901 }
0x1520   :  { %v4903_v7 = vsub.f32 %v7808_v47, %v4902_v54  ;;  %v4775_v52 = vsel %vm161_vm2, %v7869_v62, 0.0  ;;  %v7874_v22 = vpop.eup %6216 }
0x1521   :  { %4776 = vadd.xlane.f32.xlu0 %v4775_v52  ;;  %v4841_v0 = vsel %vm161_vm2, %v7874_v22, 0.0 }
0x1522   :  { %v4904_v24 = vmul.f32 1.442695, %v4903_v7 }
0x1524   :  { %6218 = vpow2.f32 %v4904_v24 }
0x1527   :  { %v5032_v4 = vpop.xlane.xlu2 %5031 }
0x1528   :  { %v5033_v18 = vsub.f32 %v7812_v55, %v5032_v4 }
0x1529   :  { %4620 = vrot.lane.b32.xlu2 %v7701_v58, %s6301_s15  ;;  %4842 = vadd.xlane.f32.xlu0 %v4841_v0 }
0x152a   :  { %v7880_v57 = vpop.eup %6218  ;;  %v5097_v36 = vpop.xlane.xlu0 %5096  ;;  %v5034_v1 = vmul.f32 1.442695, %v5033_v18 }
0x152b   :  { %v5098_v47 = vsub.f32 %v7816_v28, %v5097_v36  ;;  %v4906_v5 = vsel %vm161_vm2, %v7880_v57, 0.0 }
0x152c   :  { %4907 = vadd.xlane.f32.xlu1 %v4906_v5 }
0x152d   :  { %v5099_v29 = vmul.f32 1.442695, %v5098_v47 }
0x152f   :  { %6220 = vpow2.f32 %v5099_v29 }
0x1532   :  { %v5162_v59 = vpop.xlane.xlu0 %5161 }
0x1533   :  { %v5163_v27 = vsub.f32 %v7820_v6, %v5162_v59  ;;  %v4969_v6 = vmul.f32 1.442695, %v4968_v63 }
0x1535   :  { %v7886_v48 = vpop.eup %6220  ;;  %v5164_v44 = vmul.f32 1.442695, %v5163_v27 }
0x1536   :  { %v5101_v58 = vsel %vm161_vm2, %v7886_v48, 0.0 }
0x1537   :  { %6222 = vpow2.f32 %v5164_v44  ;;  %5102 = vadd.xlane.f32.xlu1 %v5101_v58 }
0x1538   :  { %6224 = vpow2.f32 %v4969_v6 }
0x153d   :  { %v7890_v41 = vpop.eup %6222  ;;  %4976 = vrot.lane.b32.xlu0 %v7716_v38, %s6302_s16 }
0x153e   :  { %v5166_v28 = vsel %vm161_vm2, %v7890_v41, 0.0  ;;  %v7897_v2 = vpop.eup %6224 }
0x153f   :  { %5167 = vadd.xlane.f32.xlu1 %v5166_v28  ;;  %v4971_v42 = vsel %vm161_vm2, %v7897_v2, 0.0 }
0x1552   :  { %4972 = vadd.xlane.f32.xlu2 %v4971_v42 }
0x1555   :  { %v4226_v37 = vpop.xlane.xlu1 %4225 }
0x1556   :  { %6226 = vrcp.f32 %v4226_v37 }
0x1557   :  { %6228 = vpow2.f32 %v5034_v1 }
0x1558   :  { %5041 = vrot.lane.b32.xlu1 %v7716_v38, %s6303_s17 }
0x155c   :  { %v6227_v43 = vpop.eup %6226 }
0x155d   :  { %v4228_v30 = vmul.f32 %v6227_v43, %v7826_v31  ;;  %v7907_v11 = vpop.eup %6228 }
0x155e   :  { %v5036_v49 = vsel %vm161_vm2, %v7907_v11, 0.0 }
0x155f   :  { %5837 = vmatmul.msk.f32.vlgmr.msra.gmra.mxu1 %vm161_vm2, %v4228_v30 }
0x1560   :  { %4511 = vmatpush.msra.mxu1 %v7824_v19 }
0x1567   :  { %5037 = vadd.xlane.f32.xlu0 %v5036_v49 }
0x156d   :  { %v4357_v55 = vpop.xlane.xlu1 %4356 }
0x156e   :  { %6230 = vrcp.f32 %v4357_v55 }
0x1574   :  { %v6231_v8 = vpop.eup %6230  ;;  %v4292_v35 = vpop.xlane.xlu2 %4291 }
0x1575   :  { %v4359_v51 = vmul.f32 %v6231_v8, %v7832_v20  ;;  %6232 = vrcp.f32 %v4292_v35 }
0x1577   :  { %5843 = vmatmul.msk.f32.vlgmr.msrb.gmra.mxu1 %vm161_vm2, %v4359_v51  ;;  %v5825_v51 = vld [vmem:[%s8129_s2 + $0x1f8] sm:$0xff] }
0x1578   :  { %5251 = vmatpush.msrb.mxu2 %v5825_v51 }
0x157b   :  { %v6233_v31 = vpop.eup %6232  ;;  %5106 = vrot.lane.b32.xlu0 %v7716_v38, %s6304_s18 }
0x157c   :  { %v4294_v19 = vmul.f32 %v6233_v31, %v7837_v34  ;;  %v4422_v45 = vpop.xlane.xlu0 %4421  ;;  %v5824_v31 = vld [vmem:[%s8129_s2 + $0x1f0] sm:$0xff] }
0x157d   :  { %6234 = vrcp.f32 %v4422_v45  ;;  %5252 = vmatpush.msrb.mxu2 %v5824_v31  ;;  %v5823_v45 = vld [vmem:[%s8129_s2 + $0x1e8] sm:$0xff] }
0x157e   :  { %5840 = vmatmul.msk.f32.vlgmr.msra.gmra.mxu3 %vm161_vm2, %v4294_v19 }
0x157f   :  { %4576 = vmatpush.msra.mxu3 %v7830_v46  ;;  %5253 = vmatpush.msrb.mxu2 %v5823_v45 }
0x1583   :  { %v6235_v9 = vpop.eup %6234  ;;  %5171 = vrot.lane.b32.xlu0 %v7716_v38, %s6301_s15 }
0x1584   :  { %v4424_v20 = vmul.f32 %v6235_v9, %v7843_v12  ;;  %v4487_v13 = vpop.xlane.xlu0 %4486  ;;  %v4552_v15 = vpop.xlane.xlu2 %4551  ;;  %v5822_v9 = vld [vmem:[%s8129_s2 + $0x1e0] sm:$0xff] }
0x1585   :  { %6236 = vrcp.f32 %v4487_v13  ;;  %5254 = vmatpush.msrb.mxu2 %v5822_v9  ;;  %v8015_v9 = vld [vmem:[%s8132_s5 + $0x18] sm:$0xff] }
0x1586   :  { %6238 = vrcp.f32 %v4552_v15  ;;  %5846 = vmatmul.msk.f32.vlgmr.msrb.gmra.mxu3 %vm161_vm2, %v4424_v20 }
0x1587   :  { %4736 = vmatpush.msrb.mxu3 %v7716_v38 }
0x158b   :  { %v6237_v34 = vpop.eup %6236 }
0x158c   :  { %v6239_v40 = vpop.eup %6238  ;;  %v4489_v56 = vmul.f32 %v6237_v34, %v7848_v61  ;;  %v4617_v53 = vpop.xlane.xlu0 %4616 }
0x158d   :  { %v4621_v46 = vpop.permute.xlu2 %4620  ;;  %v4554_v32 = vmul.f32 %v6239_v40, %v7853_v50  ;;  %6240 = vrcp.f32 %v4617_v53  ;;  %v4715_v12 = vpop.xlane.xlu1 %4714 }
0x158e   :  { %4641 = vmatpush.msrb.mxu1 %v4621_v46  ;;  %6242 = vrcp.f32 %v4715_v12 }
0x158f   :  { %5849 = vmatmul.msk.f32.vlgmr.msra.gmra.mxu1 %vm161_vm2, %v4489_v56  ;;  %5852 = vmatmul.msk.f32.vlgmr.msra.gmra.mxu3 %vm161_vm2, %v4554_v32 }
0x1590   :  { %4802 = vmatpush.msra.mxu1 %v5973_v14  ;;  %4867 = vmatpush.msra.mxu3 %v5978_v10 }
0x1591   :  { %v4187_v37 = vpop.f32.mrf.mxu3 }
0x1593   :  { %v6241_v38 = vpop.eup %6240 }
0x1594   :  { %v6243_v61 = vpop.eup %6242  ;;  %v4619_v54 = vmul.f32 %v6241_v38, %v7860_v16  ;;  %v4777_v7 = vpop.xlane.xlu0 %4776 }
0x1595   :  { %v4717_v50 = vmul.f32 %v6243_v61, %v7863_v33  ;;  %6244 = vrcp.f32 %v4777_v7 }
0x1597   :  { %5855 = vmatmul.msk.f32.vlgmr.msrb.gmra.mxu1 %vm161_vm2, %v4619_v54  ;;  %5858 = vmatmul.msk.f32.vlgmr.msrb.gmra.mxu3 %vm161_vm2, %v4717_v50 }
0x1598   :  { %4932 = vmatpush.msrb.mxu1 %v5983_v17 }
0x159b   :  { %v6245_v26 = vpop.eup %6244 }
0x159c   :  { %v4779_v52 = vmul.f32 %v6245_v26, %v7869_v62  ;;  %v4843_v23 = vpop.xlane.xlu0 %4842 }
0x159d   :  { %6246 = vrcp.f32 %v4843_v23 }
0x159f   :  { %5861 = vmatmul.msk.f32.vlgmr.msra.gmra.mxu1 %vm161_vm2, %v4779_v52  ;;  %v4908_v24 = vpop.xlane.xlu1 %4907 }
0x15a0   :  { %6248 = vrcp.f32 %v4908_v24 }
0x15a3   :  { %v6247_v16 = vpop.eup %6246 }
0x15a4   :  { %v4845_v25 = vmul.f32 %v6247_v16, %v7874_v22 }
0x15a6   :  { %v6249_v0 = vpop.eup %6248  ;;  %5864 = vmatmul.msk.f32.vlgmr.msra.gmra.mxu3 %vm161_vm2, %v4845_v25 }
0x15a7   :  { %v4910_v33 = vmul.f32 %v6249_v0, %v7880_v57 }
0x15a9   :  { %5867 = vmatmul.msk.f32.vlgmr.msrb.gmra.mxu1 %vm161_vm2, %v4910_v33 }
0x15aa   :  { %v5103_v47 = vpop.xlane.xlu1 %5102 }
0x15af   :  { %v4977_v36 = vpop.permute.xlu0 %4976 }
0x15b0   :  { %4997 = vmatpush.msrb.mxu3 %v4977_v36 }
0x15b2   :  { %v5168_v62 = vpop.xlane.xlu1 %5167 }
0x15c5   :  { %v4973_v5 = vpop.xlane.xlu2 %4972 }
0x15c6   :  { %6250 = vrcp.f32 %v4973_v5 }
0x15ca   :  { %v5042_v29 = vpop.permute.xlu1 %5041 }
0x15cb   :  { %5062 = vmatpush.msra.mxu1 %v5042_v29  ;;  %v5232_v29 = vperm.slane %v7664_v39, 7 }
0x15cc   :  { %v6251_v59 = vpop.eup %6250 }
0x15cd   :  { %v4975_v27 = vmul.f32 %v6251_v59, %v7897_v2 }
0x15cf   :  { %5870 = vmatmul.msk.f32.vlgmr.msrb.gmra.mxu3 %vm161_vm2, %v4975_v27 }
0x15da   :  { %v5038_v22 = vpop.xlane.xlu0 %5037 }
0x15db   :  { %6252 = vrcp.f32 %v5038_v22 }
0x15dc   :  { %v4253_v44 = vpop.f32.mrf.mxu1  ;;  %6254 = vrcp.f32 %v5103_v47 }
0x15dd   :  { %4647 = vrot.lane.b32.xlu2 %v4253_v44, %s6308_s22  ;;  %6256 = vrcp.f32 %v5168_v62 }
0x15e1   :  { %v6253_v57 = vpop.eup %6252 }
0x15e2   :  { %v5040_v58 = vmul.f32 %v6253_v57, %v7907_v11  ;;  %v6255_v28 = vpop.eup %6254 }
0x15e3   :  { %v5105_v63 = vmul.f32 %v6255_v28, %v7886_v48  ;;  %v6257_v2 = vpop.eup %6256 }
0x15e4   :  { %5873 = vmatmul.msk.f32.vlgmr.msra.gmra.mxu1 %vm161_vm2, %v5040_v58  ;;  %v5170_v4 = vmul.f32 %v6257_v2, %v7890_v41 }
0x15ed   :  { %v5107_v6 = vpop.permute.xlu0 %5106 }
0x15ee   :  { %5127 = vmatpush.msra.mxu3 %v5107_v6 }
0x15ef   :  { %5876 = vmatmul.msk.f32.vlgmr.msra.gmra.mxu3 %vm161_vm2, %v5105_v63 }
0x15f4   :  { %v4383_v42 = vpop.f32.mrf.mxu1 }
0x15f5   :  { %v5172_v18 = vpop.permute.xlu0 %5171  ;;  %4655 = vrot.lane.b32.xlu0 %v4383_v42, %s6309_s23 }
0x15f6   :  { %5192 = vmatpush.msrb.mxu1 %v5172_v18 }
0x15f7   :  { %5879 = vmatmul.msk.f32.vlgmr.msrb.gmra.mxu1 %vm161_vm2, %v5170_v4 }
0x1601   :  { %v4318_v1 = vpop.f32.mrf.mxu3 }
0x1602   :  { %4651 = vrot.lane.b32.xlu1 %v4318_v1, %s6305_s19 }
0x1609   :  { %v4448_v43 = vpop.f32.mrf.mxu3 }
0x160a   :  { %4659 = vrot.lane.b32.xlu1 %v4448_v43, %s6306_s20 }
0x160c   :  { %v4513_v48 = vpop.f32.mrf.mxu1 }
0x160d   :  { %4663 = vrot.lane.b32.xlu0 %v4513_v48, %s8143_s10  ;;  %v5884_v48 = vld [vmem:[%s8130_s3 + $0x30] sm:$0xff] }
0x1612   :  { %v4578_v30 = vpop.f32.mrf.mxu3 }
0x1613   :  { %4667 = vrot.lane.b32.xlu1 %v4578_v30, %s8144_s0  ;;  %v5883_v30 = vld [vmem:[%s8130_s3 + $0x28] sm:$0xff] }
0x1614   :  { %v4643_v41 = vpop.f32.mrf.mxu1 }
0x1615   :  { %4671 = vrot.lane.b32.xlu0 %v4643_v41, %s8142_s27  ;;  %v5882_v41 = vld [vmem:[%s8130_s3 + $0x20] sm:$0xff] }
0x161a   :  { %v4738_v49 = vpop.f32.mrf.mxu3 }
0x161c   :  { %v4804_v11 = vpop.f32.mrf.mxu1 }
0x161d   :  { %5198 = vrot.lane.b32.xlu2 %v4804_v11, %s6308_s22 }
0x1626   :  { %v4934_v55 = vpop.f32.mrf.mxu1 }
0x1627   :  { %5206 = vrot.lane.b32.xlu0 %v4934_v55, %s6309_s23 }
0x1629   :  { %v4869_v8 = vpop.f32.mrf.mxu3 }
0x162a   :  { %5202 = vrot.lane.b32.xlu1 %v4869_v8, %s6305_s19 }
0x1637   :  { %v4648_v40 = vpop.permute.xlu2 %4647 }
0x1638   :  { %v4674_v53 = vsel %vm134_vm1, %v4187_v37, %v4648_v40 }
0x1652   :  { %v4999_v35 = vpop.f32.mrf.mxu3 }
0x1653   :  { %5210 = vrot.lane.b32.xlu2 %v4999_v35, %s6306_s20 }
0x1661   :  { %v5064_v19 = vpop.f32.mrf.mxu1 }
0x1662   :  { %5214 = vrot.lane.b32.xlu1 %v5064_v19, %s8143_s10 }
0x1667   :  { %v4656_v34 = vpop.permute.xlu0 %4655 }
0x1672   :  { %v5129_v20 = vpop.f32.mrf.mxu3 }
0x1673   :  { %5218 = vrot.lane.b32.xlu0 %v5129_v20, %s8144_s0  ;;  %v5308_v20 = vperm.slane %v8015_v9, 3 }
0x1674   :  { %v5194_v13 = vpop.f32.mrf.mxu1  ;;  %v4652_v15 = vpop.permute.xlu1 %4651 }
0x1675   :  { %5222 = vrot.lane.b32.xlu2 %v5194_v13, %s8142_s27  ;;  %v4675_v46 = vsel %vm161_vm2, %v4674_v53, %v4652_v15  ;;  %v5311_v15 = vperm.slane %v8015_v9, 4  ;;  %v5895_v53 = vld [vmem:[%s8131_s4 + $0x78] sm:$0xff] }
0x1676   :  { %v4676_v32 = vsel %vm682_vm3, %v4675_v46, %v4656_v34  ;;  %v5894_v46 = vld [vmem:[%s8131_s4 + $0x70] sm:$0xff]  ;;  %5375 = vmatpush.msrb.mxu0 %v5895_v53 }
0x1677   :  { %v5199_v17 = vpop.permute.xlu2 %5198 }
0x1678   :  { %v5225_v23 = vsel %vm134_vm1, %v4738_v49, %v5199_v17  ;;  %5376 = vmatpush.msrb.mxu0 %v5894_v46 }
0x167c   :  { %v4660_v56 = vpop.permute.xlu1 %4659 }
0x167d   :  { %v4677_v12 = vsel %vm684_vm4, %v4676_v32, %v4660_v56 }
0x167f   :  { %v4664_v14 = vpop.permute.xlu0 %4663 }
0x1680   :  { %v4678_v10 = vsel %vm686_vm5, %v4677_v12, %v4664_v14  ;;  %v5893_v14 = vld [vmem:[%s8131_s4 + $0x68] sm:$0xff] }
0x1681   :  { %5377 = vmatpush.msrb.mxu0 %v5893_v14 }
0x1685   :  { %v4668_v38 = vpop.permute.xlu1 %4667 }
0x1686   :  { %v4679_v61 = vsel %vm688_vm6, %v4678_v10, %v4668_v38  ;;  %v5892_v10 = vld [vmem:[%s8131_s4 + $0x60] sm:$0xff] }
0x1687   :  { %v4672_v54 = vpop.permute.xlu0 %4671  ;;  %5378 = vmatpush.msrb.mxu0 %v5892_v10 }
0x1688   :  { %v4680_v7 = vsel %vm690_vm7, %v4679_v61, %v4672_v54  ;;  %v5891_v61 = vld [vmem:[%s8131_s4 + $0x58] sm:$0xff] }
0x1689   :  { %5880 = vmatmul.msk.f32.vlgmr.msrb.gmra.mxu2 %vm56_vm0, %v4680_v7  ;;  %5379 = vmatpush.msrb.mxu0 %v5891_v61 }
0x1699   :  { %v5207_v26 = vpop.permute.xlu0 %5206 }
0x169c   :  { %v5203_v50 = vpop.permute.xlu1 %5202 }
0x169d   :  { %v5226_v24 = vsel %vm161_vm2, %v5225_v23, %v5203_v50 }
0x169e   :  { %v5227_v25 = vsel %vm682_vm3, %v5226_v24, %v5207_v26 }
0x16ad   :  { %v5211_v52 = vpop.permute.xlu2 %5210 }
0x16ae   :  { %v5228_v0 = vsel %vm684_vm4, %v5227_v25, %v5211_v52 }
0x16cf   :  { %v5223_v47 = vpop.permute.xlu2 %5222 }
0x16d4   :  { %v5215_v16 = vpop.permute.xlu1 %5214 }
0x16d5   :  { %v5229_v33 = vsel %vm686_vm5, %v5228_v0, %v5215_v16  ;;  %v5890_v0 = vld [vmem:[%s8131_s4 + $0x50] sm:$0xff] }
0x16d6   :  { %5380 = vmatpush.msrb.mxu0 %v5890_v0 }
0x16e5   :  { %v5219_v36 = vpop.permute.xlu0 %5218 }
0x16e6   :  { %v5230_v62 = vsel %vm688_vm6, %v5229_v33, %v5219_v36  ;;  %v5889_v33 = vld [vmem:[%s8131_s4 + $0x48] sm:$0xff]  ;;  %v5888_v36 = vld [vmem:[%s8131_s4 + $0x40] sm:$0xff] }
0x16e7   :  { %v5231_v5 = vsel %vm690_vm7, %v5230_v62, %v5223_v47  ;;  %5381 = vmatpush.msrb.mxu0 %v5889_v33  ;;  %v5319_v47 = vperm.slane %v8015_v9, 7 }
0x16e8   :  { %5881 = vmatmul.msk.f32.gmra.mxu2 %vm56_vm0, %v5231_v5 }
0x16e9   :  { %5382 = vmatpush.msrb.mxu0 %v5888_v36 }
0x170c   :  { %v5256_v59 = vpop.f32.mrf.mxu2 }
0x170d   :  { %v5257_v27 = vadd.f32 %v5256_v59, %v5232_v29 }
0x170f   :  { %v5262_v22 = vadd.f32 %v5257_v27, %v7651_v60 }
0x1711   :  { %v5264_v44 = vsel %vm56_vm0, %v5262_v22, 0.0 }
0x1712   :  { %5265 = vadd.xlane.f32.xlu1 %v5264_v44  ;;  %v5360_v44 = vperm.slane %v8015_v9, 0 }
0x176b   :  { %v5259_v57 = vpop.f32.mrf.mxu2 }
0x176c   :  { %v5260_v58 = vadd.f32 %v5259_v57, %v5232_v29 }
0x176e   :  { %v5263_v28 = vadd.f32 %v5260_v58, %v7684_v21  ;;  %v5885_v21 = vld [vmem:[%s8130_s3 + $0x38] sm:$0xff] }
0x176f   :  { %5338 = vmatpush.msrb.mxu3 %v5885_v21 }
0x1770   :  { %v5267_v63 = vsel %vm56_vm0, %v5263_v28, 0.0 }
0x1771   :  { %5268 = vadd.xlane.f32.xlu0 %v5267_v63  ;;  %5339 = vmatpush.msrb.mxu3 %v5884_v48 }
0x1773   :  { %5340 = vmatpush.msrb.mxu3 %v5883_v30 }
0x1775   :  { %5341 = vmatpush.msrb.mxu3 %v5882_v41 }
0x1785   :  { %v5266_v6 = vpop.xlane.xlu1 %5265 }
0x1786   :  { %v5270_v2 = vmul.f32 %v5266_v6, %v6761_v3 }
0x1788   :  { %v5272_v42 = vsub.f32 %v5262_v22, %v5270_v2 }
0x178a   :  { %v5274_v4 = vmul.f32 %v5272_v42, %v5272_v42 }
0x178c   :  { %v5276_v39 = vsel %vm56_vm0, %v5274_v4, 0.0 }
0x178d   :  { %5277 = vadd.xlane.f32.xlu2 %v5276_v39 }
0x17e4   :  { %v5269_v18 = vpop.xlane.xlu0 %5268 }
0x17e5   :  { %v5271_v60 = vmul.f32 %v5269_v18, %v6761_v3 }
0x17e7   :  { %v5273_v37 = vsub.f32 %v5263_v28, %v5271_v60 }
0x17e9   :  { %v5275_v1 = vmul.f32 %v5273_v37, %v5273_v37 }
0x17eb   :  { %v5279_v43 = vsel %vm56_vm0, %v5275_v1, 0.0 }
0x17ec   :  { %5280 = vadd.xlane.f32.xlu1 %v5279_v43 }
0x1800   :  { %v5278_v11 = vpop.xlane.xlu2 %5277 }
0x1801   :  { %v5282_v49 = vmul.f32 %v5278_v11, %v6761_v3  ;;  %v5454_v11 = vld [vmem:[%s8133_s6 + $0x60] sm:$0xff] }
0x1802   :  { %5486 = vmatpush.msra.mxu1 %v5454_v11 }
0x1803   :  { %v5284_v55 = vadd.f32 1e-05, %v5282_v49  ;;  %v5455_v49 = vld [vmem:[%s8133_s6 + $0x68] sm:$0xff] }
0x1804   :  { %5509 = vmatpush.msra.mxu2 %v5455_v49 }
0x1805   :  { %6258 = vrsqrt.f32 %v5284_v55  ;;  %vm5292_vm2 = vweird.f32 %v5284_v55 }
0x180b   :  { %v6259_v8 = vpop.eup %6258 }
0x180c   :  { %v5287_v35 = vmul.f32 %v6259_v8, %v5284_v55  ;;  %vm5293_vm1 = vweird.f32 %v6259_v8  ;;  %v5456_v55 = vld [vmem:[%s8133_s6 + $0x70] sm:$0xff] }
0x180d   :  { %vm5294_vm3 = vmor %vm5292_vm2, %vm5293_vm1  ;;  %5532 = vmatpush.msra.mxu3 %v5456_v55 }
0x180e   :  { %v5288_v51 = vmul.f32 %v6259_v8, %v5287_v35  ;;  %v5451_v35 = vld [vmem:[%s8133_s6 + $0x48] sm:$0xff] }
0x180f   :  { %5510 = vmatpush.msra.mxu2 %v5451_v35 }
0x1810   :  { %v5289_v31 = vmul.f32 0.5, %v5288_v51  ;;  %v5452_v51 = vld [vmem:[%s8133_s6 + $0x50] sm:$0xff] }
0x1811   :  { %5533 = vmatpush.msra.mxu3 %v5452_v51 }
0x1812   :  { %v5290_v19 = vsub.f32 1.5, %v5289_v31  ;;  %v5446_v31 = vld [vmem:[%s8133_s6 + $0x20] sm:$0xff] }
0x1814   :  { %v5291_v45 = vmul.f32 %v6259_v8, %v5290_v19  ;;  %v5447_v19 = vld [vmem:[%s8133_s6 + $0x28] sm:$0xff] }
0x1815   :  { %5511 = vmatpush.msra.mxu2 %v5447_v19 }
0x1816   :  { %v5295_v13 = vsel %vm5294_vm3, %v6259_v8, %v5291_v45  ;;  %v5450_v8 = vld [vmem:[%s8133_s6 + $0x40] sm:$0xff]  ;;  %v5448_v45 = vld [vmem:[%s8133_s6 + $0x30] sm:$0xff] }
0x1817   :  { %v5306_v34 = vmul.f32 %v5295_v13, %v5272_v42  ;;  %5487 = vmatpush.msra.mxu1 %v5450_v8  ;;  %v5443_v13 = vld [vmem:[%s8133_s6 + $0x8] sm:$0xff]  ;;  %5534 = vmatpush.msra.mxu3 %v5448_v45 }
0x1818   :  { %5512 = vmatpush.msra.mxu2 %v5443_v13 }
0x1819   :  { %v5309_v40 = vmul.f32 %v5308_v20, %v5306_v34  ;;  %5488 = vmatpush.msra.mxu1 %v5446_v31 }
0x181b   :  { %v5312_v56 = vadd.f32 %v5311_v15, %v5309_v40 }
0x181d   :  { %5886 = vmatmul.msk.f32.vlgmr.msrb.gmra.mxu3 %vm56_vm0, %v5312_v56 }
0x185f   :  { %v5281_v32 = vpop.xlane.xlu1 %5280 }
0x1860   :  { %v5283_v12 = vmul.f32 %v5281_v32, %v6761_v3 }
0x1862   :  { %v5285_v38 = vadd.f32 1e-05, %v5283_v12 }
0x1864   :  { %6260 = vrsqrt.f32 %v5285_v38  ;;  %vm5302_vm5 = vweird.f32 %v5285_v38 }
0x186a   :  { %v6261_v54 = vpop.eup %6260 }
0x186b   :  { %v5297_v7 = vmul.f32 %v6261_v54, %v5285_v38  ;;  %vm5303_vm4 = vweird.f32 %v6261_v54  ;;  %v5436_v38 = vperm.slane %v8015_v9, 5 }
0x186c   :  { %vm5304_vm6 = vmor %vm5302_vm5, %vm5303_vm4 }
0x186d   :  { %v5298_v17 = vmul.f32 %v6261_v54, %v5297_v7 }
0x186f   :  { %v5299_v50 = vmul.f32 0.5, %v5298_v17 }
0x1871   :  { %v5300_v26 = vsub.f32 1.5, %v5299_v50 }
0x1873   :  { %v5301_v52 = vmul.f32 %v6261_v54, %v5300_v26  ;;  %v5457_v26 = vld [vmem:[%s8133_s6 + $0x78] sm:$0xff] }
0x1875   :  { %v5305_v23 = vsel %vm5304_vm6, %v6261_v54, %v5301_v52  ;;  %v5439_v54 = vperm.slane %v8015_v9, 6  ;;  %v5453_v52 = vld [vmem:[%s8133_s6 + $0x58] sm:$0xff] }
0x1876   :  { %v5307_v24 = vmul.f32 %v5305_v23, %v5273_v37  ;;  %v5449_v9 = vld [vmem:[%s8133_s6 + $0x38] sm:$0xff] }
0x1878   :  { %v5310_v16 = vmul.f32 %v5308_v20, %v5307_v24  ;;  %v5442_v20 = vld [vmem:[%s8133_s6] sm:$0xff]  ;;  %v5445_v24 = vld [vmem:[%s8133_s6 + $0x18] sm:$0xff] }
0x1879   :  { %5489 = vmatpush.msra.mxu1 %v5442_v20 }
0x187a   :  { %v5313_v25 = vadd.f32 %v5311_v15, %v5310_v16  ;;  %v5444_v15 = vld [vmem:[%s8133_s6 + $0x10] sm:$0xff] }
0x187b   :  { %5535 = vmatpush.msra.mxu3 %v5444_v15  ;;  %5555 = vmatpush.msrb.mxu1 %v5457_v26 }
0x187c   :  { %5887 = vmatmul.msk.f32.gmra.mxu3 %vm56_vm0, %v5313_v25 }
0x187d   :  { %5556 = vmatpush.msrb.mxu1 %v5453_v52 }
0x187f   :  { %5557 = vmatpush.msrb.mxu1 %v5449_v9 }
0x1881   :  { %5558 = vmatpush.msrb.mxu1 %v5445_v24 }
0x18a0   :  { %v5343_v62 = vpop.f32.mrf.mxu3 }
0x18a1   :  { %v5344_v5 = vadd.f32 %v5343_v62, %v5319_v47 }
0x18a3   :  { %v5349_v29 = vmax.f32 %v5344_v5, 0.0 }
0x18a5   :  { %5896 = vmatmul.msk.f32.vlgmr.msrb.gmra.mxu0 %vm2665_vm13, %v5349_v29 }
0x18ff   :  { %v5346_v59 = vpop.f32.mrf.mxu3 }
0x1900   :  { %v5347_v27 = vadd.f32 %v5346_v59, %v5319_v47 }
0x1902   :  { %v5350_v22 = vmax.f32 %v5347_v27, 0.0 }
0x1904   :  { %5897 = vmatmul.msk.f32.gmra.mxu0 %vm2665_vm13, %v5350_v22 }
0x1922   :  { %v5384_v57 = vpop.f32.mrf.mxu0 }
0x1923   :  { %v5385_v58 = vadd.f32 %v5384_v57, %v5360_v44 }
0x1925   :  { %v5390_v28 = vadd.f32 %v5385_v58, %v5312_v56 }
0x1927   :  { %v5392_v63 = vsel %vm56_vm0, %v5390_v28, 0.0 }
0x1928   :  { %5393 = vadd.xlane.f32.xlu0 %v5392_v63 }
0x1981   :  { %v5387_v6 = vpop.f32.mrf.mxu0 }
0x1982   :  { %v5388_v2 = vadd.f32 %v5387_v6, %v5360_v44 }
0x1984   :  { %v5391_v42 = vadd.f32 %v5388_v2, %v5313_v25 }
0x1986   :  { %v5395_v4 = vsel %vm56_vm0, %v5391_v42, 0.0 }
0x1987   :  { %5396 = vadd.xlane.f32.xlu2 %v5395_v4 }
0x199b   :  { %v5394_v39 = vpop.xlane.xlu0 %5393 }
0x199c   :  { %v5398_v18 = vmul.f32 %v5394_v39, %v6761_v3 }
0x199e   :  { %v5400_v60 = vsub.f32 %v5390_v28, %v5398_v18 }
0x19a0   :  { %v5402_v37 = vmul.f32 %v5400_v60, %v5400_v60 }
0x19a2   :  { %v5404_v1 = vsel %vm56_vm0, %v5402_v37, 0.0 }
0x19a3   :  { %5405 = vadd.xlane.f32.xlu1 %v5404_v1 }
0x19fa   :  { %v5397_v43 = vpop.xlane.xlu2 %5396 }
0x19fb   :  { %v5399_v21 = vmul.f32 %v5397_v43, %v6761_v3 }
0x19fd   :  { %v8055_v48 = vsub.f32 %v5391_v42, %v5399_v21 }
0x19ff   :  { %v5403_v30 = vmul.f32 %v8055_v48, %v8055_v48 }
0x1a01   :  { %v5407_v41 = vsel %vm56_vm0, %v5403_v30, 0.0 }
0x1a02   :  { %5408 = vadd.xlane.f32.xlu0 %v5407_v41 }
0x1a16   :  { %v5406_v34 = vpop.xlane.xlu1 %5405 }
0x1a17   :  { %v5410_v40 = vmul.f32 %v5406_v34, %v6761_v3 }
0x1a19   :  { %v5412_v56 = vadd.f32 1e-05, %v5410_v40 }
0x1a1b   :  { %6262 = vrsqrt.f32 %v5412_v56  ;;  %vm5420_vm13 = vweird.f32 %v5412_v56 }
0x1a21   :  { %v6263_v53 = vpop.eup %6262 }
0x1a22   :  { %v5415_v46 = vmul.f32 %v6263_v53, %v5412_v56  ;;  %vm5421_vm7 = vweird.f32 %v6263_v53 }
0x1a23   :  { %vm5422_vm11 = vmor %vm5420_vm13, %vm5421_vm7 }
0x1a24   :  { %v5416_v14 = vmul.f32 %v6263_v53, %v5415_v46 }
0x1a26   :  { %v5417_v32 = vmul.f32 0.5, %v5416_v14 }
0x1a28   :  { %v5418_v12 = vsub.f32 1.5, %v5417_v32 }
0x1a2a   :  { %v5419_v10 = vmul.f32 %v6263_v53, %v5418_v12 }
0x1a2c   :  { %v5423_v61 = vsel %vm5422_vm11, %v6263_v53, %v5419_v10 }
0x1a2d   :  { %v5434_v7 = vmul.f32 %v5423_v61, %v5400_v60 }
0x1a2f   :  { %v5437_v17 = vmul.f32 %v5436_v38, %v5434_v7 }
0x1a31   :  { %v5440_v50 = vadd.f32 %v5439_v54, %v5437_v17 }
0x1a33   :  { %5898 = vmatmul.msk.f32.vlgmr.msra.gmra.mxu1 %vm56_vm0, %v5440_v50  ;;  %5900 = vmatmul.msk.f32.vlgmr.msra.gmra.mxu2 %vm56_vm0, %v5440_v50 }
0x1a34   :  { %5902 = vmatmul.msk.f32.vlgmr.msra.gmra.mxu3 %vm56_vm0, %v5440_v50 }
0x1a75   :  { %v5409_v23 = vpop.xlane.xlu0 %5408 }
0x1a76   :  { %v5411_v16 = vmul.f32 %v5409_v23, %v6761_v3  ;;  %v5458_v3 = vld [vmem:[%s8134_s7] sm:$0xf]  ;;  %s6313_s7 = smov [#allocation2]  }
0x1a77   :  { %v5460_v44 = vperm.slane %v5458_v3, 0  ;;  %v5461_v28 = vperm.slane %v5458_v3, 1  ;;  %v5462_v63 = vperm.slane %v5458_v3, 2  ;;  %v5463_v60 = vperm.slane %v5458_v3, 3  ;;  %s5578_s27 = sshll.u32 %s6313_s7, 4  ;;  %s5579_s27 = int_to_ptr.vmem [resolvable:$true] %s5578_s27 }
0x1a78   :  { %v5413_v25 = vadd.f32 1e-05, %v5411_v16 }
0x1a7a   :  { %6264 = vrsqrt.f32 %v5413_v25  ;;  %vm5430_vm14 = vweird.f32 %v5413_v25 }
0x1a80   :  { %v6265_v0 = vpop.eup %6264 }
0x1a81   :  { %v5425_v33 = vmul.f32 %v6265_v0, %v5413_v25  ;;  %vm5431_vm12 = vweird.f32 %v6265_v0 }
0x1a82   :  { %vm5432_vm15 = vmor %vm5430_vm14, %vm5431_vm12 }
0x1a83   :  { %v5426_v36 = vmul.f32 %v6265_v0, %v5425_v33 }
0x1a85   :  { %v5427_v47 = vmul.f32 0.5, %v5426_v36 }
0x1a87   :  { %v5428_v62 = vsub.f32 1.5, %v5427_v47 }
0x1a89   :  { %v5429_v5 = vmul.f32 %v6265_v0, %v5428_v62 }
0x1a8b   :  { %v5433_v29 = vsel %vm5432_vm15, %v6265_v0, %v5429_v5 }
0x1a8c   :  { %v5435_v59 = vmul.f32 %v5433_v29, %v8055_v48 }
0x1a8e   :  { %v5438_v27 = vmul.f32 %v5436_v38, %v5435_v59 }
0x1a90   :  { %v5441_v22 = vadd.f32 %v5439_v54, %v5438_v27 }
0x1a92   :  { %5899 = vmatmul.msk.f32.gmra.mxu1 %vm56_vm0, %v5441_v22  ;;  %5901 = vmatmul.msk.f32.gmra.mxu2 %vm56_vm0, %v5441_v22 }
0x1a93   :  { %5903 = vmatmul.msk.f32.gmra.mxu3 %vm56_vm0, %v5441_v22 }
0x1a9a   :  { %5904 = vmatmul.msk.f32.vlgmr.msrb.gmra.mxu1 %vm56_vm0, %v5440_v50 }
0x1aa2   :  { %5905 = vmatmul.msk.f32.gmra.mxu1 %vm56_vm0, %v5441_v22 }
0x1ab0   :  { %v5491_v57 = vpop.f32.mrf.mxu1 }
0x1ab1   :  { %v5492_v58 = vadd.f32 %v5491_v57, %v5460_v44 }
0x1ab3   :  { %5566 = vst [vmem:[#allocation2] sm:$0xff] %v5492_v58 }
0x1ab6   :  { %v5514_v6 = vpop.f32.mrf.mxu2 }
0x1ab7   :  { %v5515_v2 = vadd.f32 %v5514_v6, %v5461_v28  ;;  %v5537_v42 = vpop.f32.mrf.mxu3 }
0x1ab8   :  { %v5538_v4 = vadd.f32 %v5537_v42, %v5462_v63 }
0x1ab9   :  { %5567 = vst [vmem:[#allocation2 + $0x8] sm:$0xff] %v5515_v2 }
0x1aba   :  { %5568 = vst [vmem:[#allocation2 + $0x10] sm:$0xff] %v5538_v4 }
0x1b0f   :  { %v5494_v39 = vpop.f32.mrf.mxu1 }
0x1b10   :  { %v5495_v18 = vadd.f32 %v5494_v39, %v5460_v44 }
0x1b12   :  { %5570 = vst [vmem:[#allocation2 + $0x20] sm:$0xff] %v5495_v18 }
0x1b15   :  { %v5517_v37 = vpop.f32.mrf.mxu2 }
0x1b16   :  { %v5518_v1 = vadd.f32 %v5517_v37, %v5461_v28  ;;  %v5540_v43 = vpop.f32.mrf.mxu3 }
0x1b17   :  { %v5541_v21 = vadd.f32 %v5540_v43, %v5462_v63  ;;  %v5560_v48 = vpop.f32.mrf.mxu1 }
0x1b18   :  { %5571 = vst [vmem:[#allocation2 + $0x28] sm:$0xff] %v5518_v1  ;;  %v5561_v30 = vadd.f32 %v5560_v48, %v5463_v60 }
0x1b19   :  { %5572 = vst [vmem:[#allocation2 + $0x30] sm:$0xff] %v5541_v21 }
0x1b1a   :  { %5569 = vst [vmem:[#allocation2 + $0x18] sm:$0xff] %v5561_v30 }
0x1b1f   :  { %v5563_v41 = vpop.f32.mrf.mxu1 }
0x1b20   :  { %v5564_v11 = vadd.f32 %v5563_v41, %v5463_v60 }
0x1b22   :  { %5573 = vst [vmem:[#allocation2 + $0x38] sm:$0xff] %v5564_v11 }
0x1b23   :  { %5586 = dma.vmem_to_hbm [thread:$0]  %s5579_s27, 1024, %s5581_s11, [#allocation3], %s6314_s21, %s6314_s21, %s6315_s24  }
0x1b24   :  { %6296 = dma.done.wait [#allocation3], 1024  }
0x1b25   :  { %6297 = vsyncadd [#allocation3], 4294966272 }
0x1b26   :  { %5591 = vsyncpa [#allocation3], 1 }

</bundles_post_ra>
